<compile_context>
chip_gen: v5e
topology: v5e:2x2
jax: 0.10.0
libtpu: 0.0.40
codegen_flags: <defaults>
</compile_context>

<pallas_src>
import math

import jax
import jax.numpy as jnp
from jax.experimental import pallas as pl
from jax.experimental.pallas import tpu as pltpu

# Module hyper-parameters (defaults of nn.TransformerEncoderLayer).
D_MODEL = 14                     # input_features
N_HEADS = 7
HEAD_DIM = D_MODEL // N_HEADS    # = 2
N_LAYERS = 4
D_FF = 2048                      # PyTorch default dim_feedforward
LN_EPS = 1e-5
ATTN_SCALE = 1.0 / math.sqrt(HEAD_DIM)

PARAM_ORDER = ("w_in", "b_in", "w_out", "b_out",
               "ln1_g", "ln1_b", "ln2_g", "ln2_b",
               "w1", "b1", "w2", "b2")

# "NT" dot_general: contract both operands' last dims (flash-attention style).
_NT_DIMS = (((1,), (1,)), ((), ()))


def _layer_norm(h, gamma, beta):
    mean = jnp.mean(h, axis=-1, keepdims=True)
    c = h - mean
    var = jnp.mean(c * c, axis=-1, keepdims=True)
    return c * jax.lax.rsqrt(var + LN_EPS) * gamma + beta


# --------------------------------------------------------------------------
# Kernel-side forward (runs on one (BT, S, E) block of activations).
# --------------------------------------------------------------------------
def _encoder_forward(x3, mask, p):
    """x3: (BT, S, E) activations. mask: (S, S) additive mask or None.
    p: dict of stacked per-layer parameter Refs (only p[name][l] indexing)."""
    BT, S, E = x3.shape
    M = BT * S
    x = x3.reshape(M, E).astype(jnp.float32)

    for l in range(N_LAYERS):
        # ---- fused QKV projection: one (M,14)@(14,42) MXU matmul ----------
        qkv = jnp.dot(x, p["w_in"][l],
                      preferred_element_type=jnp.float32) + p["b_in"][l]
        q = (qkv[:, 0:E] * ATTN_SCALE).reshape(BT, S, E)
        k = qkv[:, E:2 * E].reshape(BT, S, E)
        v = qkv[:, 2 * E:3 * E].reshape(BT, S, E)

        # ---- multi-head self-attention (head_dim == 2) on the VPU ---------
        # Scores/context via broadcast FMAs (no K=2 / N=2 MXU micro-matmuls);
        # head-concat + out_proj folded into per-head rank-1 updates.
        w_out_l = p["w_out"][l]                      # (E, E) = out_proj.weight.T
        attn = jnp.zeros((BT, S, E), jnp.float32)
        for h in range(N_HEADS):
            d0, d1 = 2 * h, 2 * h + 1
            s = (q[:, :, d0][:, :, None] * k[:, :, d0][:, None, :]
                 + q[:, :, d1][:, :, None] * k[:, :, d1][:, None, :])
            if mask is not None:
                s = s + mask[None, :, :]
            s = s - jnp.max(s, axis=-1, keepdims=True)
            e = jnp.exp(s)
            a = e * pl.reciprocal(jnp.sum(e, axis=-1, keepdims=True),
                                  approx=True)
            c0 = jnp.sum(a * v[:, :, d0][:, None, :], axis=-1)      # (BT, S)
            c1 = jnp.sum(a * v[:, :, d1][:, None, :], axis=-1)
            attn = (attn
                    + c0[:, :, None] * w_out_l[d0, :].reshape(1, 1, E)
                    + c1[:, :, None] * w_out_l[d1, :].reshape(1, 1, E))
        attn = attn.reshape(M, E) + p["b_out"][l]

        # TODO(synk): training-mode dropout omitted (eval semantics only).
        x = _layer_norm(x + attn, p["ln1_g"][l], p["ln1_b"][l])     # post-LN 1

        # ---- feed-forward: bf16 operands, f32 accumulation on the MXU ------
        h1 = jnp.dot(x.astype(jnp.bfloat16), p["w1"][l],
                     preferred_element_type=jnp.float32) + p["b1"][l]
        h1 = jnp.maximum(h1, 0.0)                                    # ReLU
        ff = jax.lax.dot_general(h1.astype(jnp.bfloat16), p["w2"][l], _NT_DIMS,
                                 preferred_element_type=jnp.float32) + p["b2"][l]

        x = _layer_norm(x + ff, p["ln2_g"][l], p["ln2_b"][l])        # post-LN 2
    return x.reshape(BT, S, E)


def _make_kernel(has_mask):
    def kernel(*refs):
        *in_refs, o_ref = refs
        if has_mask:
            x_ref, mask_ref, *param_refs = in_refs
            mask = mask_ref[...]
        else:
            x_ref, *param_refs = in_refs
            mask = None
        p = dict(zip(PARAM_ORDER, param_refs))
        o_ref[...] = _encoder_forward(x_ref[...], mask, p).astype(o_ref.dtype)
    return kernel


def _full_block(shape):
    n = len(shape)
    return pl.BlockSpec(shape, lambda b, _n=n: (0,) * _n)


def _choose_block_batch(B, S):
    bt = max(1, 128 // S)          # target ~128 MXU rows per grid step
    bt = min(bt, B)
    if B >= 2:                     # keep >= 2 grid steps (v7x dual TensorCore)
        bt = min(bt, pl.cdiv(B, 2))
    return max(bt, 1)


# --------------------------------------------------------------------------
# Host-side wrapper
# --------------------------------------------------------------------------
def temporal_encoder(x, params, src_mask=None, block_batch=None):
    """x: (B, S, D_MODEL). src_mask: None, bool (S,S) or additive float (S,S)."""
    B, S, E = x.shape
    assert E == D_MODEL, f"expected d_model={D_MODEL}, got {E}"

    bt = block_batch or _choose_block_batch(B, S)
    n_steps = pl.cdiv(B, bt)
    B_pad = n_steps * bt
    x_in = x if B_pad == B else jnp.pad(x, ((0, B_pad - B), (0, 0), (0, 0)))

    has_mask = src_mask is not None
    inputs = [x_in]
    in_specs = [pl.BlockSpec((bt, S, E), lambda b: (b, 0, 0))]
    if has_mask:
        if src_mask.dtype == jnp.bool_:
            # TODO(synk): PyTorch yields NaN on fully-masked rows; the finite
            # -1e9 additive mask gives uniform attention there instead.
            mask = jnp.where(src_mask, -1e9, 0.0).astype(jnp.float32)
        else:
            mask = src_mask.astype(jnp.float32)
        inputs.append(mask)
        in_specs.append(pl.BlockSpec((S, S), lambda b: (0, 0)))
    in_specs += [_full_block(params[k].shape) for k in PARAM_ORDER]
    inputs += [params[k] for k in PARAM_ORDER]

    per_elem_layer_flops = (2 * S * E * 3 * E          # qkv projection
                            + 4 * S * S * E            # scores + context
                            + 2 * S * E * E            # folded out projection
                            + 4 * S * E * D_FF)        # feed-forward
    flops = B_pad * N_LAYERS * per_elem_layer_flops
    transcendentals = B_pad * N_LAYERS * (N_HEADS * S * S + N_HEADS * S + 2 * S)
    bytes_accessed = (2 * B_pad * S * E * x.dtype.itemsize
                      + (S * S * 4 if has_mask else 0)
                      + sum(int(params[k].size) * params[k].dtype.itemsize
                            for k in PARAM_ORDER))

    out = pl.pallas_call(
        _make_kernel(has_mask),
        out_shape=jax.ShapeDtypeStruct((B_pad, S, E), x.dtype),
        grid_spec=pltpu.PrefetchScalarGridSpec(
            num_scalar_prefetch=0,
            grid=(n_steps,),
            in_specs=in_specs,
            out_specs=pl.BlockSpec((bt, S, E), lambda b: (b, 0, 0)),
        ),
        compiler_params=pltpu.CompilerParams(
            dimension_semantics=("parallel",)),
        cost_estimate=pl.CostEstimate(flops=flops,
                                      transcendentals=transcendentals,
                                      bytes_accessed=bytes_accessed),
    )(*inputs)
    return out[:B] if B_pad != B else out


# --------------------------------------------------------------------------
# Parameters (layouts the kernel expects)
# --------------------------------------------------------------------------
def init_params(key):
    """w_in = in_proj_weight.T (L,E,3E) f32; w_out = out_proj.weight.T (L,E,E) f32;
    w1 = linear1.weight.T (L,E,D_FF) bf16; w2 = linear2.weight (L,E,D_FF) bf16
    (lane-dense, consumed via NT dot_general); biases/LN stacked as (L,X) f32."""
    ks = jax.random.split(key, 8)

    def nrm(k, shape, std):
        return jax.random.normal(k, shape, dtype=jnp.float32) * std

    return dict(
        w_in=nrm(ks[0], (N_LAYERS, D_MODEL, 3 * D_MODEL), 0.25),
        b_in=nrm(ks[1], (N_LAYERS, 3 * D_MODEL), 0.02),
        w_out=nrm(ks[2], (N_LAYERS, D_MODEL, D_MODEL), 0.25),
        b_out=nrm(ks[3], (N_LAYERS, D_MODEL), 0.02),
        ln1_g=jnp.ones((N_LAYERS, D_MODEL), jnp.float32),
        ln1_b=jnp.zeros((N_LAYERS, D_MODEL), jnp.float32),
        ln2_g=jnp.ones((N_LAYERS, D_MODEL), jnp.float32),
        ln2_b=jnp.zeros((N_LAYERS, D_MODEL), jnp.float32),
        w1=nrm(ks[4], (N_LAYERS, D_MODEL, D_FF), 0.1).astype(jnp.bfloat16),
        b1=nrm(ks[5], (N_LAYERS, D_FF), 0.02),
        w2=nrm(ks[6], (N_LAYERS, D_MODEL, D_FF), 0.02).astype(jnp.bfloat16),
        b2=nrm(ks[7], (N_LAYERS, D_MODEL), 0.02),
    )


# --------------------------------------------------------------------------
# Independent pure-JAX/XLA reference (standard batched-MHA formulation),
# using the same bf16 operand casts on the FFN matmuls as the kernel.
# --------------------------------------------------------------------------
def _reference_forward(x, mask_add, p):
    B, S, E = x.shape
    x = x.astype(jnp.float32)
    for l in range(N_LAYERS):
        qkv = x @ p["w_in"][l] + p["b_in"][l]
        q, k, v = jnp.split(qkv, 3, axis=-1)
        q = q.reshape(B, S, N_HEADS, HEAD_DIM).transpose(0, 2, 1, 3)
        k = k.reshape(B, S, N_HEADS, HEAD_DIM).transpose(0, 2, 1, 3)
        v = v.reshape(B, S, N_HEADS, HEAD_DIM).transpose(0, 2, 1, 3)
        s = jnp.einsum("bhqd,bhkd->bhqk", q, k) * ATTN_SCALE
        if mask_add is not None:
            s = s + mask_add[None, None]
        a = jax.nn.softmax(s, axis=-1)
        ctx = jnp.einsum("bhqk,bhkd->bhqd", a, v)
        ctx = ctx.transpose(0, 2, 1, 3).reshape(B, S, E)
        attn = ctx @ p["w_out"][l] + p["b_out"][l]
        x = _layer_norm(x + attn, p["ln1_g"][l], p["ln1_b"][l])
        h1 = jnp.einsum("bse,ef->bsf", x.astype(jnp.bfloat16), p["w1"][l],
                        preferred_element_type=jnp.float32) + p["b1"][l]
        h1 = jnp.maximum(h1, 0.0)
        ff = jnp.einsum("bsf,ef->bse", h1.astype(jnp.bfloat16), p["w2"][l],
                        preferred_element_type=jnp.float32) + p["b2"][l]
        x = _layer_norm(x + ff, p["ln2_g"][l], p["ln2_b"][l])
    return x


def _run_and_check(x, params, src_mask, atol=5e-2):
    out = jax.block_until_ready(temporal_encoder(x, params, src_mask))
    if src_mask is None:
        mask_add = None
    elif src_mask.dtype == jnp.bool_:
        mask_add = jnp.where(src_mask, -1e9, 0.0).astype(jnp.float32)
    else:
        mask_add = src_mask.astype(jnp.float32)
    ref = _reference_forward(x, mask_add, params)
    assert out.shape == x.shape
    assert bool(jnp.isfinite(out).all()), "non-finite output"
    err = float(jnp.max(jnp.abs(out - ref)))
    assert err <= atol, f"mismatch vs reference: max abs err = {err}"
    return out


if __name__ == "__main__":
    key = jax.random.PRNGKey(0)
    k_p, k_x1, k_x2 = jax.random.split(key, 3)
    params = init_params(k_p)

    B, S = 2, 8
    x1 = jax.random.normal(k_x1, (B, S, D_MODEL), dtype=jnp.float32)

    # 1) The module's common forward path (src_mask=None); BT=1, 2 grid steps.
    _run_and_check(x1, params, None)

    # 2) Batched-grid path: BT=16 -> 128 MXU rows/step, padded batch 33 -> 48.
    x2 = jax.random.normal(k_x2, (33, S, D_MODEL), dtype=jnp.float32)
    _run_and_check(x2, params, None)

    # 3) Boolean (causal) src_mask path.
    causal = jnp.triu(jnp.ones((S, S), dtype=jnp.bool_), k=1)
    _run_and_check(x1, params, causal)

    print("KERNEL_OK")
</pallas_src>

<mosaic_0001>
module attributes {stable_mosaic.version = 11 : i64} {
  func.func @kernel(%arg0: i32, %arg1: memref<1x8x14xf32, #tpu.memory_space<vmem>>, %arg2: memref<4x14x42xf32, #tpu.memory_space<vmem>>, %arg3: memref<4x42xf32, #tpu.memory_space<vmem>>, %arg4: memref<4x14x14xf32, #tpu.memory_space<vmem>>, %arg5: memref<4x14xf32, #tpu.memory_space<vmem>>, %arg6: memref<4x14xf32, #tpu.memory_space<vmem>>, %arg7: memref<4x14xf32, #tpu.memory_space<vmem>>, %arg8: memref<4x14xf32, #tpu.memory_space<vmem>>, %arg9: memref<4x14xf32, #tpu.memory_space<vmem>>, %arg10: memref<4x14x2048xbf16, #tpu.memory_space<vmem>>, %arg11: memref<4x2048xf32, #tpu.memory_space<vmem>>, %arg12: memref<4x14x2048xbf16, #tpu.memory_space<vmem>>, %arg13: memref<4x14xf32, #tpu.memory_space<vmem>>, %arg14: memref<1x8x14xf32, #tpu.memory_space<vmem>>) attributes {dimension_semantics = [#tpu.dimension_semantics<parallel>], iteration_bounds = array<i64: 2>, scalar_prefetch = 0 : i64, scratch_operands = 0 : i64, tpu.core_type = #tpu.core_type<tc>, window_params = [{transform_indices = @transform_0, window_bounds = array<i64: 1, 8, 14>}, {pipeline_mode = #tpu.pipeline_mode<synchronous>, transform_indices = @transform_1, window_bounds = array<i64: 4, 14, 42>}, {pipeline_mode = #tpu.pipeline_mode<synchronous>, transform_indices = @transform_2, window_bounds = array<i64: 4, 42>}, {pipeline_mode = #tpu.pipeline_mode<synchronous>, transform_indices = @transform_3, window_bounds = array<i64: 4, 14, 14>}, {pipeline_mode = #tpu.pipeline_mode<synchronous>, transform_indices = @transform_4, window_bounds = array<i64: 4, 14>}, {pipeline_mode = #tpu.pipeline_mode<synchronous>, transform_indices = @transform_5, window_bounds = array<i64: 4, 14>}, {pipeline_mode = #tpu.pipeline_mode<synchronous>, transform_indices = @transform_6, window_bounds = array<i64: 4, 14>}, {pipeline_mode = #tpu.pipeline_mode<synchronous>, transform_indices = @transform_7, window_bounds = array<i64: 4, 14>}, {pipeline_mode = #tpu.pipeline_mode<synchronous>, transform_indices = @transform_8, window_bounds = array<i64: 4, 14>}, {pipeline_mode = #tpu.pipeline_mode<synchronous>, transform_indices = @transform_9, window_bounds = array<i64: 4, 14, 2048>}, {pipeline_mode = #tpu.pipeline_mode<synchronous>, transform_indices = @transform_10, window_bounds = array<i64: 4, 2048>}, {pipeline_mode = #tpu.pipeline_mode<synchronous>, transform_indices = @transform_11, window_bounds = array<i64: 4, 14, 2048>}, {pipeline_mode = #tpu.pipeline_mode<synchronous>, transform_indices = @transform_12, window_bounds = array<i64: 4, 14>}, {transform_indices = @transform_13, window_bounds = array<i64: 1, 8, 14>}]} {
    %c0 = arith.constant 0 : index
    %c0_0 = arith.constant 0 : index
    %c0_1 = arith.constant 0 : index
    %0 = vector.load %arg1[%c0, %c0_0, %c0_1] : memref<1x8x14xf32, #tpu.memory_space<vmem>>, vector<1x8x14xf32>
    %1 = vector.shape_cast %0 : vector<1x8x14xf32> to vector<8x14xf32>
    %c0_2 = arith.constant 0 : index
    %c0_3 = arith.constant 0 : index
    %c0_4 = arith.constant 0 : index
    %2 = vector.load %arg2[%c0_2, %c0_3, %c0_4] : memref<4x14x42xf32, #tpu.memory_space<vmem>>, vector<1x14x42xf32>
    %3 = vector.shape_cast %2 : vector<1x14x42xf32> to vector<14x42xf32>
    %cst = arith.constant dense<0.000000e+00> : vector<8x42xf32>
    %4 = tpu.matmul %1, %3, %cst {dimension_numbers = #tpu.dot_dimension_numbers<[1], [0], [0], [1], [0, 0, 1, 1], [], []>} : vector<8x14xf32>, vector<14x42xf32>, vector<8x42xf32> -> vector<8x42xf32>
    %c0_5 = arith.constant 0 : index
    %c0_6 = arith.constant 0 : index
    %5 = vector.load %arg3[%c0_5, %c0_6] : memref<4x42xf32, #tpu.memory_space<vmem>>, vector<1x42xf32>
    %6 = vector.shape_cast %5 : vector<1x42xf32> to vector<42xf32>
    %7 = vector.shape_cast %6 : vector<42xf32> to vector<1x42xf32>
    %8 = vector.broadcast %7 : vector<1x42xf32> to vector<8x42xf32>
    %9 = arith.addf %4, %8 : vector<8x42xf32>
    %10 = vector.extract_strided_slice %9 {offsets = [0, 0], sizes = [8, 14], strides = [1, 1]} : vector<8x42xf32> to vector<8x14xf32>
    %cst_7 = arith.constant 0.707106769 : f32
    %11 = vector.broadcast %cst_7 : f32 to vector<8x14xf32>
    %12 = arith.mulf %10, %11 : vector<8x14xf32>
    %13 = vector.shape_cast %12 : vector<8x14xf32> to vector<1x8x14xf32>
    %14 = vector.extract_strided_slice %9 {offsets = [0, 14], sizes = [8, 14], strides = [1, 1]} : vector<8x42xf32> to vector<8x14xf32>
    %15 = vector.shape_cast %14 : vector<8x14xf32> to vector<1x8x14xf32>
    %16 = vector.extract_strided_slice %9 {offsets = [0, 28], sizes = [8, 14], strides = [1, 1]} : vector<8x42xf32> to vector<8x14xf32>
    %17 = vector.shape_cast %16 : vector<8x14xf32> to vector<1x8x14xf32>
    %c0_8 = arith.constant 0 : index
    %c0_9 = arith.constant 0 : index
    %c0_10 = arith.constant 0 : index
    %18 = vector.load %arg4[%c0_8, %c0_9, %c0_10] : memref<4x14x14xf32, #tpu.memory_space<vmem>>, vector<1x14x14xf32>
    %19 = vector.shape_cast %18 : vector<1x14x14xf32> to vector<14x14xf32>
    %cst_11 = arith.constant 0.000000e+00 : f32
    %20 = vector.broadcast %cst_11 : f32 to vector<1x8x14xf32>
    %21 = vector.extract_strided_slice %13 {offsets = [0, 0, 0], sizes = [1, 8, 1], strides = [1, 1, 1]} : vector<1x8x14xf32> to vector<1x8x1xf32>
    %22 = vector.shape_cast %21 : vector<1x8x1xf32> to vector<1x8xf32>
    %23 = vector.shape_cast %22 : vector<1x8xf32> to vector<1x8x1xf32>
    %24 = vector.extract_strided_slice %15 {offsets = [0, 0, 0], sizes = [1, 8, 1], strides = [1, 1, 1]} : vector<1x8x14xf32> to vector<1x8x1xf32>
    %25 = vector.shape_cast %24 : vector<1x8x1xf32> to vector<1x8xf32>
    %26 = vector.shape_cast %25 : vector<1x8xf32> to vector<1x1x8xf32>
    %27 = vector.broadcast %23 : vector<1x8x1xf32> to vector<1x8x8xf32>
    %28 = vector.broadcast %26 : vector<1x1x8xf32> to vector<1x8x8xf32>
    %29 = arith.mulf %27, %28 : vector<1x8x8xf32>
    %30 = vector.extract_strided_slice %13 {offsets = [0, 0, 1], sizes = [1, 8, 1], strides = [1, 1, 1]} : vector<1x8x14xf32> to vector<1x8x1xf32>
    %31 = vector.shape_cast %30 : vector<1x8x1xf32> to vector<1x8xf32>
    %32 = vector.shape_cast %31 : vector<1x8xf32> to vector<1x8x1xf32>
    %33 = vector.extract_strided_slice %15 {offsets = [0, 0, 1], sizes = [1, 8, 1], strides = [1, 1, 1]} : vector<1x8x14xf32> to vector<1x8x1xf32>
    %34 = vector.shape_cast %33 : vector<1x8x1xf32> to vector<1x8xf32>
    %35 = vector.shape_cast %34 : vector<1x8xf32> to vector<1x1x8xf32>
    %36 = vector.broadcast %32 : vector<1x8x1xf32> to vector<1x8x8xf32>
    %37 = vector.broadcast %35 : vector<1x1x8xf32> to vector<1x8x8xf32>
    %38 = arith.mulf %36, %37 : vector<1x8x8xf32>
    %39 = arith.addf %29, %38 : vector<1x8x8xf32>
    %cst_12 = arith.constant dense<0xFF800000> : vector<1x8xf32>
    %40 = vector.multi_reduction <maximumf>, %39, %cst_12 [2] : vector<1x8x8xf32> to vector<1x8xf32>
    %41 = vector.shape_cast %40 : vector<1x8xf32> to vector<1x8x1xf32>
    %42 = vector.broadcast %41 : vector<1x8x1xf32> to vector<1x8x8xf32>
    %43 = arith.subf %39, %42 : vector<1x8x8xf32>
    %44 = math.exp %43 : vector<1x8x8xf32>
    %cst_13 = arith.constant dense<0.000000e+00> : vector<1x8xf32>
    %45 = vector.multi_reduction <add>, %44, %cst_13 [2] : vector<1x8x8xf32> to vector<1x8xf32>
    %46 = vector.shape_cast %45 : vector<1x8xf32> to vector<1x8x1xf32>
    %47 = tpu.reciprocal %46 {approx = true} : vector<1x8x1xf32> -> vector<1x8x1xf32>
    %48 = vector.broadcast %47 : vector<1x8x1xf32> to vector<1x8x8xf32>
    %49 = arith.mulf %44, %48 : vector<1x8x8xf32>
    %50 = vector.extract_strided_slice %17 {offsets = [0, 0, 0], sizes = [1, 8, 1], strides = [1, 1, 1]} : vector<1x8x14xf32> to vector<1x8x1xf32>
    %51 = vector.shape_cast %50 : vector<1x8x1xf32> to vector<1x8xf32>
    %52 = vector.shape_cast %51 : vector<1x8xf32> to vector<1x1x8xf32>
    %53 = vector.broadcast %52 : vector<1x1x8xf32> to vector<1x8x8xf32>
    %54 = arith.mulf %49, %53 : vector<1x8x8xf32>
    %cst_14 = arith.constant dense<0.000000e+00> : vector<1x8xf32>
    %55 = vector.multi_reduction <add>, %54, %cst_14 [2] : vector<1x8x8xf32> to vector<1x8xf32>
    %56 = vector.extract_strided_slice %17 {offsets = [0, 0, 1], sizes = [1, 8, 1], strides = [1, 1, 1]} : vector<1x8x14xf32> to vector<1x8x1xf32>
    %57 = vector.shape_cast %56 : vector<1x8x1xf32> to vector<1x8xf32>
    %58 = vector.shape_cast %57 : vector<1x8xf32> to vector<1x1x8xf32>
    %59 = vector.broadcast %58 : vector<1x1x8xf32> to vector<1x8x8xf32>
    %60 = arith.mulf %49, %59 : vector<1x8x8xf32>
    %cst_15 = arith.constant dense<0.000000e+00> : vector<1x8xf32>
    %61 = vector.multi_reduction <add>, %60, %cst_15 [2] : vector<1x8x8xf32> to vector<1x8xf32>
    %62 = vector.shape_cast %55 : vector<1x8xf32> to vector<1x8x1xf32>
    %63 = vector.extract_strided_slice %19 {offsets = [0, 0], sizes = [1, 14], strides = [1, 1]} : vector<14x14xf32> to vector<1x14xf32>
    %64 = vector.shape_cast %63 : vector<1x14xf32> to vector<14xf32>
    %65 = vector.shape_cast %64 : vector<14xf32> to vector<1x1x14xf32>
    %66 = vector.broadcast %62 : vector<1x8x1xf32> to vector<1x8x14xf32>
    %67 = vector.broadcast %65 : vector<1x1x14xf32> to vector<1x8x14xf32>
    %68 = arith.mulf %66, %67 : vector<1x8x14xf32>
    %69 = arith.addf %20, %68 : vector<1x8x14xf32>
    %70 = vector.shape_cast %61 : vector<1x8xf32> to vector<1x8x1xf32>
    %71 = vector.extract_strided_slice %19 {offsets = [1, 0], sizes = [1, 14], strides = [1, 1]} : vector<14x14xf32> to vector<1x14xf32>
    %72 = vector.shape_cast %71 : vector<1x14xf32> to vector<14xf32>
    %73 = vector.shape_cast %72 : vector<14xf32> to vector<1x1x14xf32>
    %74 = vector.broadcast %70 : vector<1x8x1xf32> to vector<1x8x14xf32>
    %75 = vector.broadcast %73 : vector<1x1x14xf32> to vector<1x8x14xf32>
    %76 = arith.mulf %74, %75 : vector<1x8x14xf32>
    %77 = arith.addf %69, %76 : vector<1x8x14xf32>
    %78 = vector.extract_strided_slice %13 {offsets = [0, 0, 2], sizes = [1, 8, 1], strides = [1, 1, 1]} : vector<1x8x14xf32> to vector<1x8x1xf32>
    %79 = vector.shape_cast %78 : vector<1x8x1xf32> to vector<1x8xf32>
    %80 = vector.shape_cast %79 : vector<1x8xf32> to vector<1x8x1xf32>
    %81 = vector.extract_strided_slice %15 {offsets = [0, 0, 2], sizes = [1, 8, 1], strides = [1, 1, 1]} : vector<1x8x14xf32> to vector<1x8x1xf32>
    %82 = vector.shape_cast %81 : vector<1x8x1xf32> to vector<1x8xf32>
    %83 = vector.shape_cast %82 : vector<1x8xf32> to vector<1x1x8xf32>
    %84 = vector.broadcast %80 : vector<1x8x1xf32> to vector<1x8x8xf32>
    %85 = vector.broadcast %83 : vector<1x1x8xf32> to vector<1x8x8xf32>
    %86 = arith.mulf %84, %85 : vector<1x8x8xf32>
    %87 = vector.extract_strided_slice %13 {offsets = [0, 0, 3], sizes = [1, 8, 1], strides = [1, 1, 1]} : vector<1x8x14xf32> to vector<1x8x1xf32>
    %88 = vector.shape_cast %87 : vector<1x8x1xf32> to vector<1x8xf32>
    %89 = vector.shape_cast %88 : vector<1x8xf32> to vector<1x8x1xf32>
    %90 = vector.extract_strided_slice %15 {offsets = [0, 0, 3], sizes = [1, 8, 1], strides = [1, 1, 1]} : vector<1x8x14xf32> to vector<1x8x1xf32>
    %91 = vector.shape_cast %90 : vector<1x8x1xf32> to vector<1x8xf32>
    %92 = vector.shape_cast %91 : vector<1x8xf32> to vector<1x1x8xf32>
    %93 = vector.broadcast %89 : vector<1x8x1xf32> to vector<1x8x8xf32>
    %94 = vector.broadcast %92 : vector<1x1x8xf32> to vector<1x8x8xf32>
    %95 = arith.mulf %93, %94 : vector<1x8x8xf32>
    %96 = arith.addf %86, %95 : vector<1x8x8xf32>
    %cst_16 = arith.constant dense<0xFF800000> : vector<1x8xf32>
    %97 = vector.multi_reduction <maximumf>, %96, %cst_16 [2] : vector<1x8x8xf32> to vector<1x8xf32>
    %98 = vector.shape_cast %97 : vector<1x8xf32> to vector<1x8x1xf32>
    %99 = vector.broadcast %98 : vector<1x8x1xf32> to vector<1x8x8xf32>
    %100 = arith.subf %96, %99 : vector<1x8x8xf32>
    %101 = math.exp %100 : vector<1x8x8xf32>
    %cst_17 = arith.constant dense<0.000000e+00> : vector<1x8xf32>
    %102 = vector.multi_reduction <add>, %101, %cst_17 [2] : vector<1x8x8xf32> to vector<1x8xf32>
    %103 = vector.shape_cast %102 : vector<1x8xf32> to vector<1x8x1xf32>
    %104 = tpu.reciprocal %103 {approx = true} : vector<1x8x1xf32> -> vector<1x8x1xf32>
    %105 = vector.broadcast %104 : vector<1x8x1xf32> to vector<1x8x8xf32>
    %106 = arith.mulf %101, %105 : vector<1x8x8xf32>
    %107 = vector.extract_strided_slice %17 {offsets = [0, 0, 2], sizes = [1, 8, 1], strides = [1, 1, 1]} : vector<1x8x14xf32> to vector<1x8x1xf32>
    %108 = vector.shape_cast %107 : vector<1x8x1xf32> to vector<1x8xf32>
    %109 = vector.shape_cast %108 : vector<1x8xf32> to vector<1x1x8xf32>
    %110 = vector.broadcast %109 : vector<1x1x8xf32> to vector<1x8x8xf32>
    %111 = arith.mulf %106, %110 : vector<1x8x8xf32>
    %cst_18 = arith.constant dense<0.000000e+00> : vector<1x8xf32>
    %112 = vector.multi_reduction <add>, %111, %cst_18 [2] : vector<1x8x8xf32> to vector<1x8xf32>
    %113 = vector.extract_strided_slice %17 {offsets = [0, 0, 3], sizes = [1, 8, 1], strides = [1, 1, 1]} : vector<1x8x14xf32> to vector<1x8x1xf32>
    %114 = vector.shape_cast %113 : vector<1x8x1xf32> to vector<1x8xf32>
    %115 = vector.shape_cast %114 : vector<1x8xf32> to vector<1x1x8xf32>
    %116 = vector.broadcast %115 : vector<1x1x8xf32> to vector<1x8x8xf32>
    %117 = arith.mulf %106, %116 : vector<1x8x8xf32>
    %cst_19 = arith.constant dense<0.000000e+00> : vector<1x8xf32>
    %118 = vector.multi_reduction <add>, %117, %cst_19 [2] : vector<1x8x8xf32> to vector<1x8xf32>
    %119 = vector.shape_cast %112 : vector<1x8xf32> to vector<1x8x1xf32>
    %120 = vector.extract_strided_slice %19 {offsets = [2, 0], sizes = [1, 14], strides = [1, 1]} : vector<14x14xf32> to vector<1x14xf32>
    %121 = vector.shape_cast %120 : vector<1x14xf32> to vector<14xf32>
    %122 = vector.shape_cast %121 : vector<14xf32> to vector<1x1x14xf32>
    %123 = vector.broadcast %119 : vector<1x8x1xf32> to vector<1x8x14xf32>
    %124 = vector.broadcast %122 : vector<1x1x14xf32> to vector<1x8x14xf32>
    %125 = arith.mulf %123, %124 : vector<1x8x14xf32>
    %126 = arith.addf %77, %125 : vector<1x8x14xf32>
    %127 = vector.shape_cast %118 : vector<1x8xf32> to vector<1x8x1xf32>
    %128 = vector.extract_strided_slice %19 {offsets = [3, 0], sizes = [1, 14], strides = [1, 1]} : vector<14x14xf32> to vector<1x14xf32>
    %129 = vector.shape_cast %128 : vector<1x14xf32> to vector<14xf32>
    %130 = vector.shape_cast %129 : vector<14xf32> to vector<1x1x14xf32>
    %131 = vector.broadcast %127 : vector<1x8x1xf32> to vector<1x8x14xf32>
    %132 = vector.broadcast %130 : vector<1x1x14xf32> to vector<1x8x14xf32>
    %133 = arith.mulf %131, %132 : vector<1x8x14xf32>
    %134 = arith.addf %126, %133 : vector<1x8x14xf32>
    %135 = vector.extract_strided_slice %13 {offsets = [0, 0, 4], sizes = [1, 8, 1], strides = [1, 1, 1]} : vector<1x8x14xf32> to vector<1x8x1xf32>
    %136 = vector.shape_cast %135 : vector<1x8x1xf32> to vector<1x8xf32>
    %137 = vector.shape_cast %136 : vector<1x8xf32> to vector<1x8x1xf32>
    %138 = vector.extract_strided_slice %15 {offsets = [0, 0, 4], sizes = [1, 8, 1], strides = [1, 1, 1]} : vector<1x8x14xf32> to vector<1x8x1xf32>
    %139 = vector.shape_cast %138 : vector<1x8x1xf32> to vector<1x8xf32>
    %140 = vector.shape_cast %139 : vector<1x8xf32> to vector<1x1x8xf32>
    %141 = vector.broadcast %137 : vector<1x8x1xf32> to vector<1x8x8xf32>
    %142 = vector.broadcast %140 : vector<1x1x8xf32> to vector<1x8x8xf32>
    %143 = arith.mulf %141, %142 : vector<1x8x8xf32>
    %144 = vector.extract_strided_slice %13 {offsets = [0, 0, 5], sizes = [1, 8, 1], strides = [1, 1, 1]} : vector<1x8x14xf32> to vector<1x8x1xf32>
    %145 = vector.shape_cast %144 : vector<1x8x1xf32> to vector<1x8xf32>
    %146 = vector.shape_cast %145 : vector<1x8xf32> to vector<1x8x1xf32>
    %147 = vector.extract_strided_slice %15 {offsets = [0, 0, 5], sizes = [1, 8, 1], strides = [1, 1, 1]} : vector<1x8x14xf32> to vector<1x8x1xf32>
    %148 = vector.shape_cast %147 : vector<1x8x1xf32> to vector<1x8xf32>
    %149 = vector.shape_cast %148 : vector<1x8xf32> to vector<1x1x8xf32>
    %150 = vector.broadcast %146 : vector<1x8x1xf32> to vector<1x8x8xf32>
    %151 = vector.broadcast %149 : vector<1x1x8xf32> to vector<1x8x8xf32>
    %152 = arith.mulf %150, %151 : vector<1x8x8xf32>
    %153 = arith.addf %143, %152 : vector<1x8x8xf32>
    %cst_20 = arith.constant dense<0xFF800000> : vector<1x8xf32>
    %154 = vector.multi_reduction <maximumf>, %153, %cst_20 [2] : vector<1x8x8xf32> to vector<1x8xf32>
    %155 = vector.shape_cast %154 : vector<1x8xf32> to vector<1x8x1xf32>
    %156 = vector.broadcast %155 : vector<1x8x1xf32> to vector<1x8x8xf32>
    %157 = arith.subf %153, %156 : vector<1x8x8xf32>
    %158 = math.exp %157 : vector<1x8x8xf32>
    %cst_21 = arith.constant dense<0.000000e+00> : vector<1x8xf32>
    %159 = vector.multi_reduction <add>, %158, %cst_21 [2] : vector<1x8x8xf32> to vector<1x8xf32>
    %160 = vector.shape_cast %159 : vector<1x8xf32> to vector<1x8x1xf32>
    %161 = tpu.reciprocal %160 {approx = true} : vector<1x8x1xf32> -> vector<1x8x1xf32>
    %162 = vector.broadcast %161 : vector<1x8x1xf32> to vector<1x8x8xf32>
    %163 = arith.mulf %158, %162 : vector<1x8x8xf32>
    %164 = vector.extract_strided_slice %17 {offsets = [0, 0, 4], sizes = [1, 8, 1], strides = [1, 1, 1]} : vector<1x8x14xf32> to vector<1x8x1xf32>
    %165 = vector.shape_cast %164 : vector<1x8x1xf32> to vector<1x8xf32>
    %166 = vector.shape_cast %165 : vector<1x8xf32> to vector<1x1x8xf32>
    %167 = vector.broadcast %166 : vector<1x1x8xf32> to vector<1x8x8xf32>
    %168 = arith.mulf %163, %167 : vector<1x8x8xf32>
    %cst_22 = arith.constant dense<0.000000e+00> : vector<1x8xf32>
    %169 = vector.multi_reduction <add>, %168, %cst_22 [2] : vector<1x8x8xf32> to vector<1x8xf32>
    %170 = vector.extract_strided_slice %17 {offsets = [0, 0, 5], sizes = [1, 8, 1], strides = [1, 1, 1]} : vector<1x8x14xf32> to vector<1x8x1xf32>
    %171 = vector.shape_cast %170 : vector<1x8x1xf32> to vector<1x8xf32>
    %172 = vector.shape_cast %171 : vector<1x8xf32> to vector<1x1x8xf32>
    %173 = vector.broadcast %172 : vector<1x1x8xf32> to vector<1x8x8xf32>
    %174 = arith.mulf %163, %173 : vector<1x8x8xf32>
    %cst_23 = arith.constant dense<0.000000e+00> : vector<1x8xf32>
    %175 = vector.multi_reduction <add>, %174, %cst_23 [2] : vector<1x8x8xf32> to vector<1x8xf32>
    %176 = vector.shape_cast %169 : vector<1x8xf32> to vector<1x8x1xf32>
    %177 = vector.extract_strided_slice %19 {offsets = [4, 0], sizes = [1, 14], strides = [1, 1]} : vector<14x14xf32> to vector<1x14xf32>
    %178 = vector.shape_cast %177 : vector<1x14xf32> to vector<14xf32>
    %179 = vector.shape_cast %178 : vector<14xf32> to vector<1x1x14xf32>
    %180 = vector.broadcast %176 : vector<1x8x1xf32> to vector<1x8x14xf32>
    %181 = vector.broadcast %179 : vector<1x1x14xf32> to vector<1x8x14xf32>
    %182 = arith.mulf %180, %181 : vector<1x8x14xf32>
    %183 = arith.addf %134, %182 : vector<1x8x14xf32>
    %184 = vector.shape_cast %175 : vector<1x8xf32> to vector<1x8x1xf32>
    %185 = vector.extract_strided_slice %19 {offsets = [5, 0], sizes = [1, 14], strides = [1, 1]} : vector<14x14xf32> to vector<1x14xf32>
    %186 = vector.shape_cast %185 : vector<1x14xf32> to vector<14xf32>
    %187 = vector.shape_cast %186 : vector<14xf32> to vector<1x1x14xf32>
    %188 = vector.broadcast %184 : vector<1x8x1xf32> to vector<1x8x14xf32>
    %189 = vector.broadcast %187 : vector<1x1x14xf32> to vector<1x8x14xf32>
    %190 = arith.mulf %188, %189 : vector<1x8x14xf32>
    %191 = arith.addf %183, %190 : vector<1x8x14xf32>
    %192 = vector.extract_strided_slice %13 {offsets = [0, 0, 6], sizes = [1, 8, 1], strides = [1, 1, 1]} : vector<1x8x14xf32> to vector<1x8x1xf32>
    %193 = vector.shape_cast %192 : vector<1x8x1xf32> to vector<1x8xf32>
    %194 = vector.shape_cast %193 : vector<1x8xf32> to vector<1x8x1xf32>
    %195 = vector.extract_strided_slice %15 {offsets = [0, 0, 6], sizes = [1, 8, 1], strides = [1, 1, 1]} : vector<1x8x14xf32> to vector<1x8x1xf32>
    %196 = vector.shape_cast %195 : vector<1x8x1xf32> to vector<1x8xf32>
    %197 = vector.shape_cast %196 : vector<1x8xf32> to vector<1x1x8xf32>
    %198 = vector.broadcast %194 : vector<1x8x1xf32> to vector<1x8x8xf32>
    %199 = vector.broadcast %197 : vector<1x1x8xf32> to vector<1x8x8xf32>
    %200 = arith.mulf %198, %199 : vector<1x8x8xf32>
    %201 = vector.extract_strided_slice %13 {offsets = [0, 0, 7], sizes = [1, 8, 1], strides = [1, 1, 1]} : vector<1x8x14xf32> to vector<1x8x1xf32>
    %202 = vector.shape_cast %201 : vector<1x8x1xf32> to vector<1x8xf32>
    %203 = vector.shape_cast %202 : vector<1x8xf32> to vector<1x8x1xf32>
    %204 = vector.extract_strided_slice %15 {offsets = [0, 0, 7], sizes = [1, 8, 1], strides = [1, 1, 1]} : vector<1x8x14xf32> to vector<1x8x1xf32>
    %205 = vector.shape_cast %204 : vector<1x8x1xf32> to vector<1x8xf32>
    %206 = vector.shape_cast %205 : vector<1x8xf32> to vector<1x1x8xf32>
    %207 = vector.broadcast %203 : vector<1x8x1xf32> to vector<1x8x8xf32>
    %208 = vector.broadcast %206 : vector<1x1x8xf32> to vector<1x8x8xf32>
    %209 = arith.mulf %207, %208 : vector<1x8x8xf32>
    %210 = arith.addf %200, %209 : vector<1x8x8xf32>
    %cst_24 = arith.constant dense<0xFF800000> : vector<1x8xf32>
    %211 = vector.multi_reduction <maximumf>, %210, %cst_24 [2] : vector<1x8x8xf32> to vector<1x8xf32>
    %212 = vector.shape_cast %211 : vector<1x8xf32> to vector<1x8x1xf32>
    %213 = vector.broadcast %212 : vector<1x8x1xf32> to vector<1x8x8xf32>
    %214 = arith.subf %210, %213 : vector<1x8x8xf32>
    %215 = math.exp %214 : vector<1x8x8xf32>
    %cst_25 = arith.constant dense<0.000000e+00> : vector<1x8xf32>
    %216 = vector.multi_reduction <add>, %215, %cst_25 [2] : vector<1x8x8xf32> to vector<1x8xf32>
    %217 = vector.shape_cast %216 : vector<1x8xf32> to vector<1x8x1xf32>
    %218 = tpu.reciprocal %217 {approx = true} : vector<1x8x1xf32> -> vector<1x8x1xf32>
    %219 = vector.broadcast %218 : vector<1x8x1xf32> to vector<1x8x8xf32>
    %220 = arith.mulf %215, %219 : vector<1x8x8xf32>
    %221 = vector.extract_strided_slice %17 {offsets = [0, 0, 6], sizes = [1, 8, 1], strides = [1, 1, 1]} : vector<1x8x14xf32> to vector<1x8x1xf32>
    %222 = vector.shape_cast %221 : vector<1x8x1xf32> to vector<1x8xf32>
    %223 = vector.shape_cast %222 : vector<1x8xf32> to vector<1x1x8xf32>
    %224 = vector.broadcast %223 : vector<1x1x8xf32> to vector<1x8x8xf32>
    %225 = arith.mulf %220, %224 : vector<1x8x8xf32>
    %cst_26 = arith.constant dense<0.000000e+00> : vector<1x8xf32>
    %226 = vector.multi_reduction <add>, %225, %cst_26 [2] : vector<1x8x8xf32> to vector<1x8xf32>
    %227 = vector.extract_strided_slice %17 {offsets = [0, 0, 7], sizes = [1, 8, 1], strides = [1, 1, 1]} : vector<1x8x14xf32> to vector<1x8x1xf32>
    %228 = vector.shape_cast %227 : vector<1x8x1xf32> to vector<1x8xf32>
    %229 = vector.shape_cast %228 : vector<1x8xf32> to vector<1x1x8xf32>
    %230 = vector.broadcast %229 : vector<1x1x8xf32> to vector<1x8x8xf32>
    %231 = arith.mulf %220, %230 : vector<1x8x8xf32>
    %cst_27 = arith.constant dense<0.000000e+00> : vector<1x8xf32>
    %232 = vector.multi_reduction <add>, %231, %cst_27 [2] : vector<1x8x8xf32> to vector<1x8xf32>
    %233 = vector.shape_cast %226 : vector<1x8xf32> to vector<1x8x1xf32>
    %234 = vector.extract_strided_slice %19 {offsets = [6, 0], sizes = [1, 14], strides = [1, 1]} : vector<14x14xf32> to vector<1x14xf32>
    %235 = vector.shape_cast %234 : vector<1x14xf32> to vector<14xf32>
    %236 = vector.shape_cast %235 : vector<14xf32> to vector<1x1x14xf32>
    %237 = vector.broadcast %233 : vector<1x8x1xf32> to vector<1x8x14xf32>
    %238 = vector.broadcast %236 : vector<1x1x14xf32> to vector<1x8x14xf32>
    %239 = arith.mulf %237, %238 : vector<1x8x14xf32>
    %240 = arith.addf %191, %239 : vector<1x8x14xf32>
    %241 = vector.shape_cast %232 : vector<1x8xf32> to vector<1x8x1xf32>
    %242 = vector.extract_strided_slice %19 {offsets = [7, 0], sizes = [1, 14], strides = [1, 1]} : vector<14x14xf32> to vector<1x14xf32>
    %243 = vector.shape_cast %242 : vector<1x14xf32> to vector<14xf32>
    %244 = vector.shape_cast %243 : vector<14xf32> to vector<1x1x14xf32>
    %245 = vector.broadcast %241 : vector<1x8x1xf32> to vector<1x8x14xf32>
    %246 = vector.broadcast %244 : vector<1x1x14xf32> to vector<1x8x14xf32>
    %247 = arith.mulf %245, %246 : vector<1x8x14xf32>
    %248 = arith.addf %240, %247 : vector<1x8x14xf32>
    %249 = vector.extract_strided_slice %13 {offsets = [0, 0, 8], sizes = [1, 8, 1], strides = [1, 1, 1]} : vector<1x8x14xf32> to vector<1x8x1xf32>
    %250 = vector.shape_cast %249 : vector<1x8x1xf32> to vector<1x8xf32>
    %251 = vector.shape_cast %250 : vector<1x8xf32> to vector<1x8x1xf32>
    %252 = vector.extract_strided_slice %15 {offsets = [0, 0, 8], sizes = [1, 8, 1], strides = [1, 1, 1]} : vector<1x8x14xf32> to vector<1x8x1xf32>
    %253 = vector.shape_cast %252 : vector<1x8x1xf32> to vector<1x8xf32>
    %254 = vector.shape_cast %253 : vector<1x8xf32> to vector<1x1x8xf32>
    %255 = vector.broadcast %251 : vector<1x8x1xf32> to vector<1x8x8xf32>
    %256 = vector.broadcast %254 : vector<1x1x8xf32> to vector<1x8x8xf32>
    %257 = arith.mulf %255, %256 : vector<1x8x8xf32>
    %258 = vector.extract_strided_slice %13 {offsets = [0, 0, 9], sizes = [1, 8, 1], strides = [1, 1, 1]} : vector<1x8x14xf32> to vector<1x8x1xf32>
    %259 = vector.shape_cast %258 : vector<1x8x1xf32> to vector<1x8xf32>
    %260 = vector.shape_cast %259 : vector<1x8xf32> to vector<1x8x1xf32>
    %261 = vector.extract_strided_slice %15 {offsets = [0, 0, 9], sizes = [1, 8, 1], strides = [1, 1, 1]} : vector<1x8x14xf32> to vector<1x8x1xf32>
    %262 = vector.shape_cast %261 : vector<1x8x1xf32> to vector<1x8xf32>
    %263 = vector.shape_cast %262 : vector<1x8xf32> to vector<1x1x8xf32>
    %264 = vector.broadcast %260 : vector<1x8x1xf32> to vector<1x8x8xf32>
    %265 = vector.broadcast %263 : vector<1x1x8xf32> to vector<1x8x8xf32>
    %266 = arith.mulf %264, %265 : vector<1x8x8xf32>
    %267 = arith.addf %257, %266 : vector<1x8x8xf32>
    %cst_28 = arith.constant dense<0xFF800000> : vector<1x8xf32>
    %268 = vector.multi_reduction <maximumf>, %267, %cst_28 [2] : vector<1x8x8xf32> to vector<1x8xf32>
    %269 = vector.shape_cast %268 : vector<1x8xf32> to vector<1x8x1xf32>
    %270 = vector.broadcast %269 : vector<1x8x1xf32> to vector<1x8x8xf32>
    %271 = arith.subf %267, %270 : vector<1x8x8xf32>
    %272 = math.exp %271 : vector<1x8x8xf32>
    %cst_29 = arith.constant dense<0.000000e+00> : vector<1x8xf32>
    %273 = vector.multi_reduction <add>, %272, %cst_29 [2] : vector<1x8x8xf32> to vector<1x8xf32>
    %274 = vector.shape_cast %273 : vector<1x8xf32> to vector<1x8x1xf32>
    %275 = tpu.reciprocal %274 {approx = true} : vector<1x8x1xf32> -> vector<1x8x1xf32>
    %276 = vector.broadcast %275 : vector<1x8x1xf32> to vector<1x8x8xf32>
    %277 = arith.mulf %272, %276 : vector<1x8x8xf32>
    %278 = vector.extract_strided_slice %17 {offsets = [0, 0, 8], sizes = [1, 8, 1], strides = [1, 1, 1]} : vector<1x8x14xf32> to vector<1x8x1xf32>
    %279 = vector.shape_cast %278 : vector<1x8x1xf32> to vector<1x8xf32>
    %280 = vector.shape_cast %279 : vector<1x8xf32> to vector<1x1x8xf32>
    %281 = vector.broadcast %280 : vector<1x1x8xf32> to vector<1x8x8xf32>
    %282 = arith.mulf %277, %281 : vector<1x8x8xf32>
    %cst_30 = arith.constant dense<0.000000e+00> : vector<1x8xf32>
    %283 = vector.multi_reduction <add>, %282, %cst_30 [2] : vector<1x8x8xf32> to vector<1x8xf32>
    %284 = vector.extract_strided_slice %17 {offsets = [0, 0, 9], sizes = [1, 8, 1], strides = [1, 1, 1]} : vector<1x8x14xf32> to vector<1x8x1xf32>
    %285 = vector.shape_cast %284 : vector<1x8x1xf32> to vector<1x8xf32>
    %286 = vector.shape_cast %285 : vector<1x8xf32> to vector<1x1x8xf32>
    %287 = vector.broadcast %286 : vector<1x1x8xf32> to vector<1x8x8xf32>
    %288 = arith.mulf %277, %287 : vector<1x8x8xf32>
    %cst_31 = arith.constant dense<0.000000e+00> : vector<1x8xf32>
    %289 = vector.multi_reduction <add>, %288, %cst_31 [2] : vector<1x8x8xf32> to vector<1x8xf32>
    %290 = vector.shape_cast %283 : vector<1x8xf32> to vector<1x8x1xf32>
    %291 = vector.extract_strided_slice %19 {offsets = [8, 0], sizes = [1, 14], strides = [1, 1]} : vector<14x14xf32> to vector<1x14xf32>
    %292 = vector.shape_cast %291 : vector<1x14xf32> to vector<14xf32>
    %293 = vector.shape_cast %292 : vector<14xf32> to vector<1x1x14xf32>
    %294 = vector.broadcast %290 : vector<1x8x1xf32> to vector<1x8x14xf32>
    %295 = vector.broadcast %293 : vector<1x1x14xf32> to vector<1x8x14xf32>
    %296 = arith.mulf %294, %295 : vector<1x8x14xf32>
    %297 = arith.addf %248, %296 : vector<1x8x14xf32>
    %298 = vector.shape_cast %289 : vector<1x8xf32> to vector<1x8x1xf32>
    %299 = vector.extract_strided_slice %19 {offsets = [9, 0], sizes = [1, 14], strides = [1, 1]} : vector<14x14xf32> to vector<1x14xf32>
    %300 = vector.shape_cast %299 : vector<1x14xf32> to vector<14xf32>
    %301 = vector.shape_cast %300 : vector<14xf32> to vector<1x1x14xf32>
    %302 = vector.broadcast %298 : vector<1x8x1xf32> to vector<1x8x14xf32>
    %303 = vector.broadcast %301 : vector<1x1x14xf32> to vector<1x8x14xf32>
    %304 = arith.mulf %302, %303 : vector<1x8x14xf32>
    %305 = arith.addf %297, %304 : vector<1x8x14xf32>
    %306 = vector.extract_strided_slice %13 {offsets = [0, 0, 10], sizes = [1, 8, 1], strides = [1, 1, 1]} : vector<1x8x14xf32> to vector<1x8x1xf32>
    %307 = vector.shape_cast %306 : vector<1x8x1xf32> to vector<1x8xf32>
    %308 = vector.shape_cast %307 : vector<1x8xf32> to vector<1x8x1xf32>
    %309 = vector.extract_strided_slice %15 {offsets = [0, 0, 10], sizes = [1, 8, 1], strides = [1, 1, 1]} : vector<1x8x14xf32> to vector<1x8x1xf32>
    %310 = vector.shape_cast %309 : vector<1x8x1xf32> to vector<1x8xf32>
    %311 = vector.shape_cast %310 : vector<1x8xf32> to vector<1x1x8xf32>
    %312 = vector.broadcast %308 : vector<1x8x1xf32> to vector<1x8x8xf32>
    %313 = vector.broadcast %311 : vector<1x1x8xf32> to vector<1x8x8xf32>
    %314 = arith.mulf %312, %313 : vector<1x8x8xf32>
    %315 = vector.extract_strided_slice %13 {offsets = [0, 0, 11], sizes = [1, 8, 1], strides = [1, 1, 1]} : vector<1x8x14xf32> to vector<1x8x1xf32>
    %316 = vector.shape_cast %315 : vector<1x8x1xf32> to vector<1x8xf32>
    %317 = vector.shape_cast %316 : vector<1x8xf32> to vector<1x8x1xf32>
    %318 = vector.extract_strided_slice %15 {offsets = [0, 0, 11], sizes = [1, 8, 1], strides = [1, 1, 1]} : vector<1x8x14xf32> to vector<1x8x1xf32>
    %319 = vector.shape_cast %318 : vector<1x8x1xf32> to vector<1x8xf32>
    %320 = vector.shape_cast %319 : vector<1x8xf32> to vector<1x1x8xf32>
    %321 = vector.broadcast %317 : vector<1x8x1xf32> to vector<1x8x8xf32>
    %322 = vector.broadcast %320 : vector<1x1x8xf32> to vector<1x8x8xf32>
    %323 = arith.mulf %321, %322 : vector<1x8x8xf32>
    %324 = arith.addf %314, %323 : vector<1x8x8xf32>
    %cst_32 = arith.constant dense<0xFF800000> : vector<1x8xf32>
    %325 = vector.multi_reduction <maximumf>, %324, %cst_32 [2] : vector<1x8x8xf32> to vector<1x8xf32>
    %326 = vector.shape_cast %325 : vector<1x8xf32> to vector<1x8x1xf32>
    %327 = vector.broadcast %326 : vector<1x8x1xf32> to vector<1x8x8xf32>
    %328 = arith.subf %324, %327 : vector<1x8x8xf32>
    %329 = math.exp %328 : vector<1x8x8xf32>
    %cst_33 = arith.constant dense<0.000000e+00> : vector<1x8xf32>
    %330 = vector.multi_reduction <add>, %329, %cst_33 [2] : vector<1x8x8xf32> to vector<1x8xf32>
    %331 = vector.shape_cast %330 : vector<1x8xf32> to vector<1x8x1xf32>
    %332 = tpu.reciprocal %331 {approx = true} : vector<1x8x1xf32> -> vector<1x8x1xf32>
    %333 = vector.broadcast %332 : vector<1x8x1xf32> to vector<1x8x8xf32>
    %334 = arith.mulf %329, %333 : vector<1x8x8xf32>
    %335 = vector.extract_strided_slice %17 {offsets = [0, 0, 10], sizes = [1, 8, 1], strides = [1, 1, 1]} : vector<1x8x14xf32> to vector<1x8x1xf32>
    %336 = vector.shape_cast %335 : vector<1x8x1xf32> to vector<1x8xf32>
    %337 = vector.shape_cast %336 : vector<1x8xf32> to vector<1x1x8xf32>
    %338 = vector.broadcast %337 : vector<1x1x8xf32> to vector<1x8x8xf32>
    %339 = arith.mulf %334, %338 : vector<1x8x8xf32>
    %cst_34 = arith.constant dense<0.000000e+00> : vector<1x8xf32>
    %340 = vector.multi_reduction <add>, %339, %cst_34 [2] : vector<1x8x8xf32> to vector<1x8xf32>
    %341 = vector.extract_strided_slice %17 {offsets = [0, 0, 11], sizes = [1, 8, 1], strides = [1, 1, 1]} : vector<1x8x14xf32> to vector<1x8x1xf32>
    %342 = vector.shape_cast %341 : vector<1x8x1xf32> to vector<1x8xf32>
    %343 = vector.shape_cast %342 : vector<1x8xf32> to vector<1x1x8xf32>
    %344 = vector.broadcast %343 : vector<1x1x8xf32> to vector<1x8x8xf32>
    %345 = arith.mulf %334, %344 : vector<1x8x8xf32>
    %cst_35 = arith.constant dense<0.000000e+00> : vector<1x8xf32>
    %346 = vector.multi_reduction <add>, %345, %cst_35 [2] : vector<1x8x8xf32> to vector<1x8xf32>
    %347 = vector.shape_cast %340 : vector<1x8xf32> to vector<1x8x1xf32>
    %348 = vector.extract_strided_slice %19 {offsets = [10, 0], sizes = [1, 14], strides = [1, 1]} : vector<14x14xf32> to vector<1x14xf32>
    %349 = vector.shape_cast %348 : vector<1x14xf32> to vector<14xf32>
    %350 = vector.shape_cast %349 : vector<14xf32> to vector<1x1x14xf32>
    %351 = vector.broadcast %347 : vector<1x8x1xf32> to vector<1x8x14xf32>
    %352 = vector.broadcast %350 : vector<1x1x14xf32> to vector<1x8x14xf32>
    %353 = arith.mulf %351, %352 : vector<1x8x14xf32>
    %354 = arith.addf %305, %353 : vector<1x8x14xf32>
    %355 = vector.shape_cast %346 : vector<1x8xf32> to vector<1x8x1xf32>
    %356 = vector.extract_strided_slice %19 {offsets = [11, 0], sizes = [1, 14], strides = [1, 1]} : vector<14x14xf32> to vector<1x14xf32>
    %357 = vector.shape_cast %356 : vector<1x14xf32> to vector<14xf32>
    %358 = vector.shape_cast %357 : vector<14xf32> to vector<1x1x14xf32>
    %359 = vector.broadcast %355 : vector<1x8x1xf32> to vector<1x8x14xf32>
    %360 = vector.broadcast %358 : vector<1x1x14xf32> to vector<1x8x14xf32>
    %361 = arith.mulf %359, %360 : vector<1x8x14xf32>
    %362 = arith.addf %354, %361 : vector<1x8x14xf32>
    %363 = vector.extract_strided_slice %13 {offsets = [0, 0, 12], sizes = [1, 8, 1], strides = [1, 1, 1]} : vector<1x8x14xf32> to vector<1x8x1xf32>
    %364 = vector.shape_cast %363 : vector<1x8x1xf32> to vector<1x8xf32>
    %365 = vector.shape_cast %364 : vector<1x8xf32> to vector<1x8x1xf32>
    %366 = vector.extract_strided_slice %15 {offsets = [0, 0, 12], sizes = [1, 8, 1], strides = [1, 1, 1]} : vector<1x8x14xf32> to vector<1x8x1xf32>
    %367 = vector.shape_cast %366 : vector<1x8x1xf32> to vector<1x8xf32>
    %368 = vector.shape_cast %367 : vector<1x8xf32> to vector<1x1x8xf32>
    %369 = vector.broadcast %365 : vector<1x8x1xf32> to vector<1x8x8xf32>
    %370 = vector.broadcast %368 : vector<1x1x8xf32> to vector<1x8x8xf32>
    %371 = arith.mulf %369, %370 : vector<1x8x8xf32>
    %372 = vector.extract_strided_slice %13 {offsets = [0, 0, 13], sizes = [1, 8, 1], strides = [1, 1, 1]} : vector<1x8x14xf32> to vector<1x8x1xf32>
    %373 = vector.shape_cast %372 : vector<1x8x1xf32> to vector<1x8xf32>
    %374 = vector.shape_cast %373 : vector<1x8xf32> to vector<1x8x1xf32>
    %375 = vector.extract_strided_slice %15 {offsets = [0, 0, 13], sizes = [1, 8, 1], strides = [1, 1, 1]} : vector<1x8x14xf32> to vector<1x8x1xf32>
    %376 = vector.shape_cast %375 : vector<1x8x1xf32> to vector<1x8xf32>
    %377 = vector.shape_cast %376 : vector<1x8xf32> to vector<1x1x8xf32>
    %378 = vector.broadcast %374 : vector<1x8x1xf32> to vector<1x8x8xf32>
    %379 = vector.broadcast %377 : vector<1x1x8xf32> to vector<1x8x8xf32>
    %380 = arith.mulf %378, %379 : vector<1x8x8xf32>
    %381 = arith.addf %371, %380 : vector<1x8x8xf32>
    %cst_36 = arith.constant dense<0xFF800000> : vector<1x8xf32>
    %382 = vector.multi_reduction <maximumf>, %381, %cst_36 [2] : vector<1x8x8xf32> to vector<1x8xf32>
    %383 = vector.shape_cast %382 : vector<1x8xf32> to vector<1x8x1xf32>
    %384 = vector.broadcast %383 : vector<1x8x1xf32> to vector<1x8x8xf32>
    %385 = arith.subf %381, %384 : vector<1x8x8xf32>
    %386 = math.exp %385 : vector<1x8x8xf32>
    %cst_37 = arith.constant dense<0.000000e+00> : vector<1x8xf32>
    %387 = vector.multi_reduction <add>, %386, %cst_37 [2] : vector<1x8x8xf32> to vector<1x8xf32>
    %388 = vector.shape_cast %387 : vector<1x8xf32> to vector<1x8x1xf32>
    %389 = tpu.reciprocal %388 {approx = true} : vector<1x8x1xf32> -> vector<1x8x1xf32>
    %390 = vector.broadcast %389 : vector<1x8x1xf32> to vector<1x8x8xf32>
    %391 = arith.mulf %386, %390 : vector<1x8x8xf32>
    %392 = vector.extract_strided_slice %17 {offsets = [0, 0, 12], sizes = [1, 8, 1], strides = [1, 1, 1]} : vector<1x8x14xf32> to vector<1x8x1xf32>
    %393 = vector.shape_cast %392 : vector<1x8x1xf32> to vector<1x8xf32>
    %394 = vector.shape_cast %393 : vector<1x8xf32> to vector<1x1x8xf32>
    %395 = vector.broadcast %394 : vector<1x1x8xf32> to vector<1x8x8xf32>
    %396 = arith.mulf %391, %395 : vector<1x8x8xf32>
    %cst_38 = arith.constant dense<0.000000e+00> : vector<1x8xf32>
    %397 = vector.multi_reduction <add>, %396, %cst_38 [2] : vector<1x8x8xf32> to vector<1x8xf32>
    %398 = vector.extract_strided_slice %17 {offsets = [0, 0, 13], sizes = [1, 8, 1], strides = [1, 1, 1]} : vector<1x8x14xf32> to vector<1x8x1xf32>
    %399 = vector.shape_cast %398 : vector<1x8x1xf32> to vector<1x8xf32>
    %400 = vector.shape_cast %399 : vector<1x8xf32> to vector<1x1x8xf32>
    %401 = vector.broadcast %400 : vector<1x1x8xf32> to vector<1x8x8xf32>
    %402 = arith.mulf %391, %401 : vector<1x8x8xf32>
    %cst_39 = arith.constant dense<0.000000e+00> : vector<1x8xf32>
    %403 = vector.multi_reduction <add>, %402, %cst_39 [2] : vector<1x8x8xf32> to vector<1x8xf32>
    %404 = vector.shape_cast %397 : vector<1x8xf32> to vector<1x8x1xf32>
    %405 = vector.extract_strided_slice %19 {offsets = [12, 0], sizes = [1, 14], strides = [1, 1]} : vector<14x14xf32> to vector<1x14xf32>
    %406 = vector.shape_cast %405 : vector<1x14xf32> to vector<14xf32>
    %407 = vector.shape_cast %406 : vector<14xf32> to vector<1x1x14xf32>
    %408 = vector.broadcast %404 : vector<1x8x1xf32> to vector<1x8x14xf32>
    %409 = vector.broadcast %407 : vector<1x1x14xf32> to vector<1x8x14xf32>
    %410 = arith.mulf %408, %409 : vector<1x8x14xf32>
    %411 = arith.addf %362, %410 : vector<1x8x14xf32>
    %412 = vector.shape_cast %403 : vector<1x8xf32> to vector<1x8x1xf32>
    %413 = vector.extract_strided_slice %19 {offsets = [13, 0], sizes = [1, 14], strides = [1, 1]} : vector<14x14xf32> to vector<1x14xf32>
    %414 = vector.shape_cast %413 : vector<1x14xf32> to vector<14xf32>
    %415 = vector.shape_cast %414 : vector<14xf32> to vector<1x1x14xf32>
    %416 = vector.broadcast %412 : vector<1x8x1xf32> to vector<1x8x14xf32>
    %417 = vector.broadcast %415 : vector<1x1x14xf32> to vector<1x8x14xf32>
    %418 = arith.mulf %416, %417 : vector<1x8x14xf32>
    %419 = arith.addf %411, %418 : vector<1x8x14xf32>
    %420 = vector.shape_cast %419 : vector<1x8x14xf32> to vector<8x14xf32>
    %c0_40 = arith.constant 0 : index
    %c0_41 = arith.constant 0 : index
    %421 = vector.load %arg5[%c0_40, %c0_41] : memref<4x14xf32, #tpu.memory_space<vmem>>, vector<1x14xf32>
    %422 = vector.shape_cast %421 : vector<1x14xf32> to vector<14xf32>
    %423 = vector.shape_cast %422 : vector<14xf32> to vector<1x14xf32>
    %424 = vector.broadcast %423 : vector<1x14xf32> to vector<8x14xf32>
    %425 = arith.addf %420, %424 : vector<8x14xf32>
    %426 = arith.addf %1, %425 : vector<8x14xf32>
    %c0_42 = arith.constant 0 : index
    %c0_43 = arith.constant 0 : index
    %427 = vector.load %arg6[%c0_42, %c0_43] : memref<4x14xf32, #tpu.memory_space<vmem>>, vector<1x14xf32>
    %428 = vector.shape_cast %427 : vector<1x14xf32> to vector<14xf32>
    %c0_44 = arith.constant 0 : index
    %c0_45 = arith.constant 0 : index
    %429 = vector.load %arg7[%c0_44, %c0_45] : memref<4x14xf32, #tpu.memory_space<vmem>>, vector<1x14xf32>
    %430 = vector.shape_cast %429 : vector<1x14xf32> to vector<14xf32>
    %cst_46 = arith.constant dense<0.000000e+00> : vector<8xf32>
    %431 = vector.multi_reduction <add>, %426, %cst_46 [1] : vector<8x14xf32> to vector<8xf32>
    %432 = vector.shape_cast %431 : vector<8xf32> to vector<8x1xf32>
    %cst_47 = arith.constant 1.400000e+01 : f32
    %433 = vector.broadcast %cst_47 : f32 to vector<8x1xf32>
    %434 = arith.divf %432, %433 : vector<8x1xf32>
    %435 = vector.broadcast %434 : vector<8x1xf32> to vector<8x14xf32>
    %436 = arith.subf %426, %435 : vector<8x14xf32>
    %437 = arith.mulf %436, %436 : vector<8x14xf32>
    %cst_48 = arith.constant dense<0.000000e+00> : vector<8xf32>
    %438 = vector.multi_reduction <add>, %437, %cst_48 [1] : vector<8x14xf32> to vector<8xf32>
    %439 = vector.shape_cast %438 : vector<8xf32> to vector<8x1xf32>
    %cst_49 = arith.constant 1.400000e+01 : f32
    %440 = vector.broadcast %cst_49 : f32 to vector<8x1xf32>
    %441 = arith.divf %439, %440 : vector<8x1xf32>
    %cst_50 = arith.constant 9.99999974E-6 : f32
    %442 = vector.broadcast %cst_50 : f32 to vector<8x1xf32>
    %443 = arith.addf %441, %442 : vector<8x1xf32>
    %444 = math.rsqrt %443 : vector<8x1xf32>
    %445 = vector.broadcast %444 : vector<8x1xf32> to vector<8x14xf32>
    %446 = arith.mulf %436, %445 : vector<8x14xf32>
    %447 = vector.shape_cast %428 : vector<14xf32> to vector<1x14xf32>
    %448 = vector.broadcast %447 : vector<1x14xf32> to vector<8x14xf32>
    %449 = arith.mulf %446, %448 : vector<8x14xf32>
    %450 = vector.shape_cast %430 : vector<14xf32> to vector<1x14xf32>
    %451 = vector.broadcast %450 : vector<1x14xf32> to vector<8x14xf32>
    %452 = arith.addf %449, %451 : vector<8x14xf32>
    %453 = arith.truncf %452 : vector<8x14xf32> to vector<8x14xbf16>
    %c0_51 = arith.constant 0 : index
    %c0_52 = arith.constant 0 : index
    %c0_53 = arith.constant 0 : index
    %454 = vector.load %arg10[%c0_51, %c0_52, %c0_53] : memref<4x14x2048xbf16, #tpu.memory_space<vmem>>, vector<1x14x2048xbf16>
    %455 = vector.shape_cast %454 : vector<1x14x2048xbf16> to vector<14x2048xbf16>
    %cst_54 = arith.constant dense<0.000000e+00> : vector<8x2048xf32>
    %456 = tpu.matmul %453, %455, %cst_54 {dimension_numbers = #tpu.dot_dimension_numbers<[1], [0], [0], [1], [0, 0, 1, 1], [], []>} : vector<8x14xbf16>, vector<14x2048xbf16>, vector<8x2048xf32> -> vector<8x2048xf32>
    %c0_55 = arith.constant 0 : index
    %c0_56 = arith.constant 0 : index
    %457 = vector.load %arg11[%c0_55, %c0_56] : memref<4x2048xf32, #tpu.memory_space<vmem>>, vector<1x2048xf32>
    %458 = vector.shape_cast %457 : vector<1x2048xf32> to vector<2048xf32>
    %459 = vector.shape_cast %458 : vector<2048xf32> to vector<1x2048xf32>
    %460 = vector.broadcast %459 : vector<1x2048xf32> to vector<8x2048xf32>
    %461 = arith.addf %456, %460 : vector<8x2048xf32>
    %cst_57 = arith.constant 0.000000e+00 : f32
    %462 = vector.broadcast %cst_57 : f32 to vector<8x2048xf32>
    %463 = arith.maximumf %461, %462 : vector<8x2048xf32>
    %464 = arith.truncf %463 : vector<8x2048xf32> to vector<8x2048xbf16>
    %c0_58 = arith.constant 0 : index
    %c0_59 = arith.constant 0 : index
    %c0_60 = arith.constant 0 : index
    %465 = vector.load %arg12[%c0_58, %c0_59, %c0_60] : memref<4x14x2048xbf16, #tpu.memory_space<vmem>>, vector<1x14x2048xbf16>
    %466 = vector.shape_cast %465 : vector<1x14x2048xbf16> to vector<14x2048xbf16>
    %cst_61 = arith.constant dense<0.000000e+00> : vector<8x14xf32>
    %467 = tpu.matmul %464, %466, %cst_61 {dimension_numbers = #tpu.dot_dimension_numbers<[1], [1], [0], [0], [0, 0, 1, 0], [], []>} : vector<8x2048xbf16>, vector<14x2048xbf16>, vector<8x14xf32> -> vector<8x14xf32>
    %c0_62 = arith.constant 0 : index
    %c0_63 = arith.constant 0 : index
    %468 = vector.load %arg13[%c0_62, %c0_63] : memref<4x14xf32, #tpu.memory_space<vmem>>, vector<1x14xf32>
    %469 = vector.shape_cast %468 : vector<1x14xf32> to vector<14xf32>
    %470 = vector.shape_cast %469 : vector<14xf32> to vector<1x14xf32>
    %471 = vector.broadcast %470 : vector<1x14xf32> to vector<8x14xf32>
    %472 = arith.addf %467, %471 : vector<8x14xf32>
    %473 = arith.addf %452, %472 : vector<8x14xf32>
    %c0_64 = arith.constant 0 : index
    %c0_65 = arith.constant 0 : index
    %474 = vector.load %arg8[%c0_64, %c0_65] : memref<4x14xf32, #tpu.memory_space<vmem>>, vector<1x14xf32>
    %475 = vector.shape_cast %474 : vector<1x14xf32> to vector<14xf32>
    %c0_66 = arith.constant 0 : index
    %c0_67 = arith.constant 0 : index
    %476 = vector.load %arg9[%c0_66, %c0_67] : memref<4x14xf32, #tpu.memory_space<vmem>>, vector<1x14xf32>
    %477 = vector.shape_cast %476 : vector<1x14xf32> to vector<14xf32>
    %cst_68 = arith.constant dense<0.000000e+00> : vector<8xf32>
    %478 = vector.multi_reduction <add>, %473, %cst_68 [1] : vector<8x14xf32> to vector<8xf32>
    %479 = vector.shape_cast %478 : vector<8xf32> to vector<8x1xf32>
    %cst_69 = arith.constant 1.400000e+01 : f32
    %480 = vector.broadcast %cst_69 : f32 to vector<8x1xf32>
    %481 = arith.divf %479, %480 : vector<8x1xf32>
    %482 = vector.broadcast %481 : vector<8x1xf32> to vector<8x14xf32>
    %483 = arith.subf %473, %482 : vector<8x14xf32>
    %484 = arith.mulf %483, %483 : vector<8x14xf32>
    %cst_70 = arith.constant dense<0.000000e+00> : vector<8xf32>
    %485 = vector.multi_reduction <add>, %484, %cst_70 [1] : vector<8x14xf32> to vector<8xf32>
    %486 = vector.shape_cast %485 : vector<8xf32> to vector<8x1xf32>
    %cst_71 = arith.constant 1.400000e+01 : f32
    %487 = vector.broadcast %cst_71 : f32 to vector<8x1xf32>
    %488 = arith.divf %486, %487 : vector<8x1xf32>
    %cst_72 = arith.constant 9.99999974E-6 : f32
    %489 = vector.broadcast %cst_72 : f32 to vector<8x1xf32>
    %490 = arith.addf %488, %489 : vector<8x1xf32>
    %491 = math.rsqrt %490 : vector<8x1xf32>
    %492 = vector.broadcast %491 : vector<8x1xf32> to vector<8x14xf32>
    %493 = arith.mulf %483, %492 : vector<8x14xf32>
    %494 = vector.shape_cast %475 : vector<14xf32> to vector<1x14xf32>
    %495 = vector.broadcast %494 : vector<1x14xf32> to vector<8x14xf32>
    %496 = arith.mulf %493, %495 : vector<8x14xf32>
    %497 = vector.shape_cast %477 : vector<14xf32> to vector<1x14xf32>
    %498 = vector.broadcast %497 : vector<1x14xf32> to vector<8x14xf32>
    %499 = arith.addf %496, %498 : vector<8x14xf32>
    %c1 = arith.constant 1 : index
    %c0_73 = arith.constant 0 : index
    %c0_74 = arith.constant 0 : index
    %500 = vector.load %arg2[%c1, %c0_73, %c0_74] : memref<4x14x42xf32, #tpu.memory_space<vmem>>, vector<1x14x42xf32>
    %501 = vector.shape_cast %500 : vector<1x14x42xf32> to vector<14x42xf32>
    %cst_75 = arith.constant dense<0.000000e+00> : vector<8x42xf32>
    %502 = tpu.matmul %499, %501, %cst_75 {dimension_numbers = #tpu.dot_dimension_numbers<[1], [0], [0], [1], [0, 0, 1, 1], [], []>} : vector<8x14xf32>, vector<14x42xf32>, vector<8x42xf32> -> vector<8x42xf32>
    %c1_76 = arith.constant 1 : index
    %c0_77 = arith.constant 0 : index
    %503 = vector.load %arg3[%c1_76, %c0_77] : memref<4x42xf32, #tpu.memory_space<vmem>>, vector<1x42xf32>
    %504 = vector.shape_cast %503 : vector<1x42xf32> to vector<42xf32>
    %505 = vector.shape_cast %504 : vector<42xf32> to vector<1x42xf32>
    %506 = vector.broadcast %505 : vector<1x42xf32> to vector<8x42xf32>
    %507 = arith.addf %502, %506 : vector<8x42xf32>
    %508 = vector.extract_strided_slice %507 {offsets = [0, 0], sizes = [8, 14], strides = [1, 1]} : vector<8x42xf32> to vector<8x14xf32>
    %cst_78 = arith.constant 0.707106769 : f32
    %509 = vector.broadcast %cst_78 : f32 to vector<8x14xf32>
    %510 = arith.mulf %508, %509 : vector<8x14xf32>
    %511 = vector.shape_cast %510 : vector<8x14xf32> to vector<1x8x14xf32>
    %512 = vector.extract_strided_slice %507 {offsets = [0, 14], sizes = [8, 14], strides = [1, 1]} : vector<8x42xf32> to vector<8x14xf32>
    %513 = vector.shape_cast %512 : vector<8x14xf32> to vector<1x8x14xf32>
    %514 = vector.extract_strided_slice %507 {offsets = [0, 28], sizes = [8, 14], strides = [1, 1]} : vector<8x42xf32> to vector<8x14xf32>
    %515 = vector.shape_cast %514 : vector<8x14xf32> to vector<1x8x14xf32>
    %c1_79 = arith.constant 1 : index
    %c0_80 = arith.constant 0 : index
    %c0_81 = arith.constant 0 : index
    %516 = vector.load %arg4[%c1_79, %c0_80, %c0_81] : memref<4x14x14xf32, #tpu.memory_space<vmem>>, vector<1x14x14xf32>
    %517 = vector.shape_cast %516 : vector<1x14x14xf32> to vector<14x14xf32>
    %cst_82 = arith.constant 0.000000e+00 : f32
    %518 = vector.broadcast %cst_82 : f32 to vector<1x8x14xf32>
    %519 = vector.extract_strided_slice %511 {offsets = [0, 0, 0], sizes = [1, 8, 1], strides = [1, 1, 1]} : vector<1x8x14xf32> to vector<1x8x1xf32>
    %520 = vector.shape_cast %519 : vector<1x8x1xf32> to vector<1x8xf32>
    %521 = vector.shape_cast %520 : vector<1x8xf32> to vector<1x8x1xf32>
    %522 = vector.extract_strided_slice %513 {offsets = [0, 0, 0], sizes = [1, 8, 1], strides = [1, 1, 1]} : vector<1x8x14xf32> to vector<1x8x1xf32>
    %523 = vector.shape_cast %522 : vector<1x8x1xf32> to vector<1x8xf32>
    %524 = vector.shape_cast %523 : vector<1x8xf32> to vector<1x1x8xf32>
    %525 = vector.broadcast %521 : vector<1x8x1xf32> to vector<1x8x8xf32>
    %526 = vector.broadcast %524 : vector<1x1x8xf32> to vector<1x8x8xf32>
    %527 = arith.mulf %525, %526 : vector<1x8x8xf32>
    %528 = vector.extract_strided_slice %511 {offsets = [0, 0, 1], sizes = [1, 8, 1], strides = [1, 1, 1]} : vector<1x8x14xf32> to vector<1x8x1xf32>
    %529 = vector.shape_cast %528 : vector<1x8x1xf32> to vector<1x8xf32>
    %530 = vector.shape_cast %529 : vector<1x8xf32> to vector<1x8x1xf32>
    %531 = vector.extract_strided_slice %513 {offsets = [0, 0, 1], sizes = [1, 8, 1], strides = [1, 1, 1]} : vector<1x8x14xf32> to vector<1x8x1xf32>
    %532 = vector.shape_cast %531 : vector<1x8x1xf32> to vector<1x8xf32>
    %533 = vector.shape_cast %532 : vector<1x8xf32> to vector<1x1x8xf32>
    %534 = vector.broadcast %530 : vector<1x8x1xf32> to vector<1x8x8xf32>
    %535 = vector.broadcast %533 : vector<1x1x8xf32> to vector<1x8x8xf32>
    %536 = arith.mulf %534, %535 : vector<1x8x8xf32>
    %537 = arith.addf %527, %536 : vector<1x8x8xf32>
    %cst_83 = arith.constant dense<0xFF800000> : vector<1x8xf32>
    %538 = vector.multi_reduction <maximumf>, %537, %cst_83 [2] : vector<1x8x8xf32> to vector<1x8xf32>
    %539 = vector.shape_cast %538 : vector<1x8xf32> to vector<1x8x1xf32>
    %540 = vector.broadcast %539 : vector<1x8x1xf32> to vector<1x8x8xf32>
    %541 = arith.subf %537, %540 : vector<1x8x8xf32>
    %542 = math.exp %541 : vector<1x8x8xf32>
    %cst_84 = arith.constant dense<0.000000e+00> : vector<1x8xf32>
    %543 = vector.multi_reduction <add>, %542, %cst_84 [2] : vector<1x8x8xf32> to vector<1x8xf32>
    %544 = vector.shape_cast %543 : vector<1x8xf32> to vector<1x8x1xf32>
    %545 = tpu.reciprocal %544 {approx = true} : vector<1x8x1xf32> -> vector<1x8x1xf32>
    %546 = vector.broadcast %545 : vector<1x8x1xf32> to vector<1x8x8xf32>
    %547 = arith.mulf %542, %546 : vector<1x8x8xf32>
    %548 = vector.extract_strided_slice %515 {offsets = [0, 0, 0], sizes = [1, 8, 1], strides = [1, 1, 1]} : vector<1x8x14xf32> to vector<1x8x1xf32>
    %549 = vector.shape_cast %548 : vector<1x8x1xf32> to vector<1x8xf32>
    %550 = vector.shape_cast %549 : vector<1x8xf32> to vector<1x1x8xf32>
    %551 = vector.broadcast %550 : vector<1x1x8xf32> to vector<1x8x8xf32>
    %552 = arith.mulf %547, %551 : vector<1x8x8xf32>
    %cst_85 = arith.constant dense<0.000000e+00> : vector<1x8xf32>
    %553 = vector.multi_reduction <add>, %552, %cst_85 [2] : vector<1x8x8xf32> to vector<1x8xf32>
    %554 = vector.extract_strided_slice %515 {offsets = [0, 0, 1], sizes = [1, 8, 1], strides = [1, 1, 1]} : vector<1x8x14xf32> to vector<1x8x1xf32>
    %555 = vector.shape_cast %554 : vector<1x8x1xf32> to vector<1x8xf32>
    %556 = vector.shape_cast %555 : vector<1x8xf32> to vector<1x1x8xf32>
    %557 = vector.broadcast %556 : vector<1x1x8xf32> to vector<1x8x8xf32>
    %558 = arith.mulf %547, %557 : vector<1x8x8xf32>
    %cst_86 = arith.constant dense<0.000000e+00> : vector<1x8xf32>
    %559 = vector.multi_reduction <add>, %558, %cst_86 [2] : vector<1x8x8xf32> to vector<1x8xf32>
    %560 = vector.shape_cast %553 : vector<1x8xf32> to vector<1x8x1xf32>
    %561 = vector.extract_strided_slice %517 {offsets = [0, 0], sizes = [1, 14], strides = [1, 1]} : vector<14x14xf32> to vector<1x14xf32>
    %562 = vector.shape_cast %561 : vector<1x14xf32> to vector<14xf32>
    %563 = vector.shape_cast %562 : vector<14xf32> to vector<1x1x14xf32>
    %564 = vector.broadcast %560 : vector<1x8x1xf32> to vector<1x8x14xf32>
    %565 = vector.broadcast %563 : vector<1x1x14xf32> to vector<1x8x14xf32>
    %566 = arith.mulf %564, %565 : vector<1x8x14xf32>
    %567 = arith.addf %518, %566 : vector<1x8x14xf32>
    %568 = vector.shape_cast %559 : vector<1x8xf32> to vector<1x8x1xf32>
    %569 = vector.extract_strided_slice %517 {offsets = [1, 0], sizes = [1, 14], strides = [1, 1]} : vector<14x14xf32> to vector<1x14xf32>
    %570 = vector.shape_cast %569 : vector<1x14xf32> to vector<14xf32>
    %571 = vector.shape_cast %570 : vector<14xf32> to vector<1x1x14xf32>
    %572 = vector.broadcast %568 : vector<1x8x1xf32> to vector<1x8x14xf32>
    %573 = vector.broadcast %571 : vector<1x1x14xf32> to vector<1x8x14xf32>
    %574 = arith.mulf %572, %573 : vector<1x8x14xf32>
    %575 = arith.addf %567, %574 : vector<1x8x14xf32>
    %576 = vector.extract_strided_slice %511 {offsets = [0, 0, 2], sizes = [1, 8, 1], strides = [1, 1, 1]} : vector<1x8x14xf32> to vector<1x8x1xf32>
    %577 = vector.shape_cast %576 : vector<1x8x1xf32> to vector<1x8xf32>
    %578 = vector.shape_cast %577 : vector<1x8xf32> to vector<1x8x1xf32>
    %579 = vector.extract_strided_slice %513 {offsets = [0, 0, 2], sizes = [1, 8, 1], strides = [1, 1, 1]} : vector<1x8x14xf32> to vector<1x8x1xf32>
    %580 = vector.shape_cast %579 : vector<1x8x1xf32> to vector<1x8xf32>
    %581 = vector.shape_cast %580 : vector<1x8xf32> to vector<1x1x8xf32>
    %582 = vector.broadcast %578 : vector<1x8x1xf32> to vector<1x8x8xf32>
    %583 = vector.broadcast %581 : vector<1x1x8xf32> to vector<1x8x8xf32>
    %584 = arith.mulf %582, %583 : vector<1x8x8xf32>
    %585 = vector.extract_strided_slice %511 {offsets = [0, 0, 3], sizes = [1, 8, 1], strides = [1, 1, 1]} : vector<1x8x14xf32> to vector<1x8x1xf32>
    %586 = vector.shape_cast %585 : vector<1x8x1xf32> to vector<1x8xf32>
    %587 = vector.shape_cast %586 : vector<1x8xf32> to vector<1x8x1xf32>
    %588 = vector.extract_strided_slice %513 {offsets = [0, 0, 3], sizes = [1, 8, 1], strides = [1, 1, 1]} : vector<1x8x14xf32> to vector<1x8x1xf32>
    %589 = vector.shape_cast %588 : vector<1x8x1xf32> to vector<1x8xf32>
    %590 = vector.shape_cast %589 : vector<1x8xf32> to vector<1x1x8xf32>
    %591 = vector.broadcast %587 : vector<1x8x1xf32> to vector<1x8x8xf32>
    %592 = vector.broadcast %590 : vector<1x1x8xf32> to vector<1x8x8xf32>
    %593 = arith.mulf %591, %592 : vector<1x8x8xf32>
    %594 = arith.addf %584, %593 : vector<1x8x8xf32>
    %cst_87 = arith.constant dense<0xFF800000> : vector<1x8xf32>
    %595 = vector.multi_reduction <maximumf>, %594, %cst_87 [2] : vector<1x8x8xf32> to vector<1x8xf32>
    %596 = vector.shape_cast %595 : vector<1x8xf32> to vector<1x8x1xf32>
    %597 = vector.broadcast %596 : vector<1x8x1xf32> to vector<1x8x8xf32>
    %598 = arith.subf %594, %597 : vector<1x8x8xf32>
    %599 = math.exp %598 : vector<1x8x8xf32>
    %cst_88 = arith.constant dense<0.000000e+00> : vector<1x8xf32>
    %600 = vector.multi_reduction <add>, %599, %cst_88 [2] : vector<1x8x8xf32> to vector<1x8xf32>
    %601 = vector.shape_cast %600 : vector<1x8xf32> to vector<1x8x1xf32>
    %602 = tpu.reciprocal %601 {approx = true} : vector<1x8x1xf32> -> vector<1x8x1xf32>
    %603 = vector.broadcast %602 : vector<1x8x1xf32> to vector<1x8x8xf32>
    %604 = arith.mulf %599, %603 : vector<1x8x8xf32>
    %605 = vector.extract_strided_slice %515 {offsets = [0, 0, 2], sizes = [1, 8, 1], strides = [1, 1, 1]} : vector<1x8x14xf32> to vector<1x8x1xf32>
    %606 = vector.shape_cast %605 : vector<1x8x1xf32> to vector<1x8xf32>
    %607 = vector.shape_cast %606 : vector<1x8xf32> to vector<1x1x8xf32>
    %608 = vector.broadcast %607 : vector<1x1x8xf32> to vector<1x8x8xf32>
    %609 = arith.mulf %604, %608 : vector<1x8x8xf32>
    %cst_89 = arith.constant dense<0.000000e+00> : vector<1x8xf32>
    %610 = vector.multi_reduction <add>, %609, %cst_89 [2] : vector<1x8x8xf32> to vector<1x8xf32>
    %611 = vector.extract_strided_slice %515 {offsets = [0, 0, 3], sizes = [1, 8, 1], strides = [1, 1, 1]} : vector<1x8x14xf32> to vector<1x8x1xf32>
    %612 = vector.shape_cast %611 : vector<1x8x1xf32> to vector<1x8xf32>
    %613 = vector.shape_cast %612 : vector<1x8xf32> to vector<1x1x8xf32>
    %614 = vector.broadcast %613 : vector<1x1x8xf32> to vector<1x8x8xf32>
    %615 = arith.mulf %604, %614 : vector<1x8x8xf32>
    %cst_90 = arith.constant dense<0.000000e+00> : vector<1x8xf32>
    %616 = vector.multi_reduction <add>, %615, %cst_90 [2] : vector<1x8x8xf32> to vector<1x8xf32>
    %617 = vector.shape_cast %610 : vector<1x8xf32> to vector<1x8x1xf32>
    %618 = vector.extract_strided_slice %517 {offsets = [2, 0], sizes = [1, 14], strides = [1, 1]} : vector<14x14xf32> to vector<1x14xf32>
    %619 = vector.shape_cast %618 : vector<1x14xf32> to vector<14xf32>
    %620 = vector.shape_cast %619 : vector<14xf32> to vector<1x1x14xf32>
    %621 = vector.broadcast %617 : vector<1x8x1xf32> to vector<1x8x14xf32>
    %622 = vector.broadcast %620 : vector<1x1x14xf32> to vector<1x8x14xf32>
    %623 = arith.mulf %621, %622 : vector<1x8x14xf32>
    %624 = arith.addf %575, %623 : vector<1x8x14xf32>
    %625 = vector.shape_cast %616 : vector<1x8xf32> to vector<1x8x1xf32>
    %626 = vector.extract_strided_slice %517 {offsets = [3, 0], sizes = [1, 14], strides = [1, 1]} : vector<14x14xf32> to vector<1x14xf32>
    %627 = vector.shape_cast %626 : vector<1x14xf32> to vector<14xf32>
    %628 = vector.shape_cast %627 : vector<14xf32> to vector<1x1x14xf32>
    %629 = vector.broadcast %625 : vector<1x8x1xf32> to vector<1x8x14xf32>
    %630 = vector.broadcast %628 : vector<1x1x14xf32> to vector<1x8x14xf32>
    %631 = arith.mulf %629, %630 : vector<1x8x14xf32>
    %632 = arith.addf %624, %631 : vector<1x8x14xf32>
    %633 = vector.extract_strided_slice %511 {offsets = [0, 0, 4], sizes = [1, 8, 1], strides = [1, 1, 1]} : vector<1x8x14xf32> to vector<1x8x1xf32>
    %634 = vector.shape_cast %633 : vector<1x8x1xf32> to vector<1x8xf32>
    %635 = vector.shape_cast %634 : vector<1x8xf32> to vector<1x8x1xf32>
    %636 = vector.extract_strided_slice %513 {offsets = [0, 0, 4], sizes = [1, 8, 1], strides = [1, 1, 1]} : vector<1x8x14xf32> to vector<1x8x1xf32>
    %637 = vector.shape_cast %636 : vector<1x8x1xf32> to vector<1x8xf32>
    %638 = vector.shape_cast %637 : vector<1x8xf32> to vector<1x1x8xf32>
    %639 = vector.broadcast %635 : vector<1x8x1xf32> to vector<1x8x8xf32>
    %640 = vector.broadcast %638 : vector<1x1x8xf32> to vector<1x8x8xf32>
    %641 = arith.mulf %639, %640 : vector<1x8x8xf32>
    %642 = vector.extract_strided_slice %511 {offsets = [0, 0, 5], sizes = [1, 8, 1], strides = [1, 1, 1]} : vector<1x8x14xf32> to vector<1x8x1xf32>
    %643 = vector.shape_cast %642 : vector<1x8x1xf32> to vector<1x8xf32>
    %644 = vector.shape_cast %643 : vector<1x8xf32> to vector<1x8x1xf32>
    %645 = vector.extract_strided_slice %513 {offsets = [0, 0, 5], sizes = [1, 8, 1], strides = [1, 1, 1]} : vector<1x8x14xf32> to vector<1x8x1xf32>
    %646 = vector.shape_cast %645 : vector<1x8x1xf32> to vector<1x8xf32>
    %647 = vector.shape_cast %646 : vector<1x8xf32> to vector<1x1x8xf32>
    %648 = vector.broadcast %644 : vector<1x8x1xf32> to vector<1x8x8xf32>
    %649 = vector.broadcast %647 : vector<1x1x8xf32> to vector<1x8x8xf32>
    %650 = arith.mulf %648, %649 : vector<1x8x8xf32>
    %651 = arith.addf %641, %650 : vector<1x8x8xf32>
    %cst_91 = arith.constant dense<0xFF800000> : vector<1x8xf32>
    %652 = vector.multi_reduction <maximumf>, %651, %cst_91 [2] : vector<1x8x8xf32> to vector<1x8xf32>
    %653 = vector.shape_cast %652 : vector<1x8xf32> to vector<1x8x1xf32>
    %654 = vector.broadcast %653 : vector<1x8x1xf32> to vector<1x8x8xf32>
    %655 = arith.subf %651, %654 : vector<1x8x8xf32>
    %656 = math.exp %655 : vector<1x8x8xf32>
    %cst_92 = arith.constant dense<0.000000e+00> : vector<1x8xf32>
    %657 = vector.multi_reduction <add>, %656, %cst_92 [2] : vector<1x8x8xf32> to vector<1x8xf32>
    %658 = vector.shape_cast %657 : vector<1x8xf32> to vector<1x8x1xf32>
    %659 = tpu.reciprocal %658 {approx = true} : vector<1x8x1xf32> -> vector<1x8x1xf32>
    %660 = vector.broadcast %659 : vector<1x8x1xf32> to vector<1x8x8xf32>
    %661 = arith.mulf %656, %660 : vector<1x8x8xf32>
    %662 = vector.extract_strided_slice %515 {offsets = [0, 0, 4], sizes = [1, 8, 1], strides = [1, 1, 1]} : vector<1x8x14xf32> to vector<1x8x1xf32>
    %663 = vector.shape_cast %662 : vector<1x8x1xf32> to vector<1x8xf32>
    %664 = vector.shape_cast %663 : vector<1x8xf32> to vector<1x1x8xf32>
    %665 = vector.broadcast %664 : vector<1x1x8xf32> to vector<1x8x8xf32>
    %666 = arith.mulf %661, %665 : vector<1x8x8xf32>
    %cst_93 = arith.constant dense<0.000000e+00> : vector<1x8xf32>
    %667 = vector.multi_reduction <add>, %666, %cst_93 [2] : vector<1x8x8xf32> to vector<1x8xf32>
    %668 = vector.extract_strided_slice %515 {offsets = [0, 0, 5], sizes = [1, 8, 1], strides = [1, 1, 1]} : vector<1x8x14xf32> to vector<1x8x1xf32>
    %669 = vector.shape_cast %668 : vector<1x8x1xf32> to vector<1x8xf32>
    %670 = vector.shape_cast %669 : vector<1x8xf32> to vector<1x1x8xf32>
    %671 = vector.broadcast %670 : vector<1x1x8xf32> to vector<1x8x8xf32>
    %672 = arith.mulf %661, %671 : vector<1x8x8xf32>
    %cst_94 = arith.constant dense<0.000000e+00> : vector<1x8xf32>
    %673 = vector.multi_reduction <add>, %672, %cst_94 [2] : vector<1x8x8xf32> to vector<1x8xf32>
    %674 = vector.shape_cast %667 : vector<1x8xf32> to vector<1x8x1xf32>
    %675 = vector.extract_strided_slice %517 {offsets = [4, 0], sizes = [1, 14], strides = [1, 1]} : vector<14x14xf32> to vector<1x14xf32>
    %676 = vector.shape_cast %675 : vector<1x14xf32> to vector<14xf32>
    %677 = vector.shape_cast %676 : vector<14xf32> to vector<1x1x14xf32>
    %678 = vector.broadcast %674 : vector<1x8x1xf32> to vector<1x8x14xf32>
    %679 = vector.broadcast %677 : vector<1x1x14xf32> to vector<1x8x14xf32>
    %680 = arith.mulf %678, %679 : vector<1x8x14xf32>
    %681 = arith.addf %632, %680 : vector<1x8x14xf32>
    %682 = vector.shape_cast %673 : vector<1x8xf32> to vector<1x8x1xf32>
    %683 = vector.extract_strided_slice %517 {offsets = [5, 0], sizes = [1, 14], strides = [1, 1]} : vector<14x14xf32> to vector<1x14xf32>
    %684 = vector.shape_cast %683 : vector<1x14xf32> to vector<14xf32>
    %685 = vector.shape_cast %684 : vector<14xf32> to vector<1x1x14xf32>
    %686 = vector.broadcast %682 : vector<1x8x1xf32> to vector<1x8x14xf32>
    %687 = vector.broadcast %685 : vector<1x1x14xf32> to vector<1x8x14xf32>
    %688 = arith.mulf %686, %687 : vector<1x8x14xf32>
    %689 = arith.addf %681, %688 : vector<1x8x14xf32>
    %690 = vector.extract_strided_slice %511 {offsets = [0, 0, 6], sizes = [1, 8, 1], strides = [1, 1, 1]} : vector<1x8x14xf32> to vector<1x8x1xf32>
    %691 = vector.shape_cast %690 : vector<1x8x1xf32> to vector<1x8xf32>
    %692 = vector.shape_cast %691 : vector<1x8xf32> to vector<1x8x1xf32>
    %693 = vector.extract_strided_slice %513 {offsets = [0, 0, 6], sizes = [1, 8, 1], strides = [1, 1, 1]} : vector<1x8x14xf32> to vector<1x8x1xf32>
    %694 = vector.shape_cast %693 : vector<1x8x1xf32> to vector<1x8xf32>
    %695 = vector.shape_cast %694 : vector<1x8xf32> to vector<1x1x8xf32>
    %696 = vector.broadcast %692 : vector<1x8x1xf32> to vector<1x8x8xf32>
    %697 = vector.broadcast %695 : vector<1x1x8xf32> to vector<1x8x8xf32>
    %698 = arith.mulf %696, %697 : vector<1x8x8xf32>
    %699 = vector.extract_strided_slice %511 {offsets = [0, 0, 7], sizes = [1, 8, 1], strides = [1, 1, 1]} : vector<1x8x14xf32> to vector<1x8x1xf32>
    %700 = vector.shape_cast %699 : vector<1x8x1xf32> to vector<1x8xf32>
    %701 = vector.shape_cast %700 : vector<1x8xf32> to vector<1x8x1xf32>
    %702 = vector.extract_strided_slice %513 {offsets = [0, 0, 7], sizes = [1, 8, 1], strides = [1, 1, 1]} : vector<1x8x14xf32> to vector<1x8x1xf32>
    %703 = vector.shape_cast %702 : vector<1x8x1xf32> to vector<1x8xf32>
    %704 = vector.shape_cast %703 : vector<1x8xf32> to vector<1x1x8xf32>
    %705 = vector.broadcast %701 : vector<1x8x1xf32> to vector<1x8x8xf32>
    %706 = vector.broadcast %704 : vector<1x1x8xf32> to vector<1x8x8xf32>
    %707 = arith.mulf %705, %706 : vector<1x8x8xf32>
    %708 = arith.addf %698, %707 : vector<1x8x8xf32>
    %cst_95 = arith.constant dense<0xFF800000> : vector<1x8xf32>
    %709 = vector.multi_reduction <maximumf>, %708, %cst_95 [2] : vector<1x8x8xf32> to vector<1x8xf32>
    %710 = vector.shape_cast %709 : vector<1x8xf32> to vector<1x8x1xf32>
    %711 = vector.broadcast %710 : vector<1x8x1xf32> to vector<1x8x8xf32>
    %712 = arith.subf %708, %711 : vector<1x8x8xf32>
    %713 = math.exp %712 : vector<1x8x8xf32>
    %cst_96 = arith.constant dense<0.000000e+00> : vector<1x8xf32>
    %714 = vector.multi_reduction <add>, %713, %cst_96 [2] : vector<1x8x8xf32> to vector<1x8xf32>
    %715 = vector.shape_cast %714 : vector<1x8xf32> to vector<1x8x1xf32>
    %716 = tpu.reciprocal %715 {approx = true} : vector<1x8x1xf32> -> vector<1x8x1xf32>
    %717 = vector.broadcast %716 : vector<1x8x1xf32> to vector<1x8x8xf32>
    %718 = arith.mulf %713, %717 : vector<1x8x8xf32>
    %719 = vector.extract_strided_slice %515 {offsets = [0, 0, 6], sizes = [1, 8, 1], strides = [1, 1, 1]} : vector<1x8x14xf32> to vector<1x8x1xf32>
    %720 = vector.shape_cast %719 : vector<1x8x1xf32> to vector<1x8xf32>
    %721 = vector.shape_cast %720 : vector<1x8xf32> to vector<1x1x8xf32>
    %722 = vector.broadcast %721 : vector<1x1x8xf32> to vector<1x8x8xf32>
    %723 = arith.mulf %718, %722 : vector<1x8x8xf32>
    %cst_97 = arith.constant dense<0.000000e+00> : vector<1x8xf32>
    %724 = vector.multi_reduction <add>, %723, %cst_97 [2] : vector<1x8x8xf32> to vector<1x8xf32>
    %725 = vector.extract_strided_slice %515 {offsets = [0, 0, 7], sizes = [1, 8, 1], strides = [1, 1, 1]} : vector<1x8x14xf32> to vector<1x8x1xf32>
    %726 = vector.shape_cast %725 : vector<1x8x1xf32> to vector<1x8xf32>
    %727 = vector.shape_cast %726 : vector<1x8xf32> to vector<1x1x8xf32>
    %728 = vector.broadcast %727 : vector<1x1x8xf32> to vector<1x8x8xf32>
    %729 = arith.mulf %718, %728 : vector<1x8x8xf32>
    %cst_98 = arith.constant dense<0.000000e+00> : vector<1x8xf32>
    %730 = vector.multi_reduction <add>, %729, %cst_98 [2] : vector<1x8x8xf32> to vector<1x8xf32>
    %731 = vector.shape_cast %724 : vector<1x8xf32> to vector<1x8x1xf32>
    %732 = vector.extract_strided_slice %517 {offsets = [6, 0], sizes = [1, 14], strides = [1, 1]} : vector<14x14xf32> to vector<1x14xf32>
    %733 = vector.shape_cast %732 : vector<1x14xf32> to vector<14xf32>
    %734 = vector.shape_cast %733 : vector<14xf32> to vector<1x1x14xf32>
    %735 = vector.broadcast %731 : vector<1x8x1xf32> to vector<1x8x14xf32>
    %736 = vector.broadcast %734 : vector<1x1x14xf32> to vector<1x8x14xf32>
    %737 = arith.mulf %735, %736 : vector<1x8x14xf32>
    %738 = arith.addf %689, %737 : vector<1x8x14xf32>
    %739 = vector.shape_cast %730 : vector<1x8xf32> to vector<1x8x1xf32>
    %740 = vector.extract_strided_slice %517 {offsets = [7, 0], sizes = [1, 14], strides = [1, 1]} : vector<14x14xf32> to vector<1x14xf32>
    %741 = vector.shape_cast %740 : vector<1x14xf32> to vector<14xf32>
    %742 = vector.shape_cast %741 : vector<14xf32> to vector<1x1x14xf32>
    %743 = vector.broadcast %739 : vector<1x8x1xf32> to vector<1x8x14xf32>
    %744 = vector.broadcast %742 : vector<1x1x14xf32> to vector<1x8x14xf32>
    %745 = arith.mulf %743, %744 : vector<1x8x14xf32>
    %746 = arith.addf %738, %745 : vector<1x8x14xf32>
    %747 = vector.extract_strided_slice %511 {offsets = [0, 0, 8], sizes = [1, 8, 1], strides = [1, 1, 1]} : vector<1x8x14xf32> to vector<1x8x1xf32>
    %748 = vector.shape_cast %747 : vector<1x8x1xf32> to vector<1x8xf32>
    %749 = vector.shape_cast %748 : vector<1x8xf32> to vector<1x8x1xf32>
    %750 = vector.extract_strided_slice %513 {offsets = [0, 0, 8], sizes = [1, 8, 1], strides = [1, 1, 1]} : vector<1x8x14xf32> to vector<1x8x1xf32>
    %751 = vector.shape_cast %750 : vector<1x8x1xf32> to vector<1x8xf32>
    %752 = vector.shape_cast %751 : vector<1x8xf32> to vector<1x1x8xf32>
    %753 = vector.broadcast %749 : vector<1x8x1xf32> to vector<1x8x8xf32>
    %754 = vector.broadcast %752 : vector<1x1x8xf32> to vector<1x8x8xf32>
    %755 = arith.mulf %753, %754 : vector<1x8x8xf32>
    %756 = vector.extract_strided_slice %511 {offsets = [0, 0, 9], sizes = [1, 8, 1], strides = [1, 1, 1]} : vector<1x8x14xf32> to vector<1x8x1xf32>
    %757 = vector.shape_cast %756 : vector<1x8x1xf32> to vector<1x8xf32>
    %758 = vector.shape_cast %757 : vector<1x8xf32> to vector<1x8x1xf32>
    %759 = vector.extract_strided_slice %513 {offsets = [0, 0, 9], sizes = [1, 8, 1], strides = [1, 1, 1]} : vector<1x8x14xf32> to vector<1x8x1xf32>
    %760 = vector.shape_cast %759 : vector<1x8x1xf32> to vector<1x8xf32>
    %761 = vector.shape_cast %760 : vector<1x8xf32> to vector<1x1x8xf32>
    %762 = vector.broadcast %758 : vector<1x8x1xf32> to vector<1x8x8xf32>
    %763 = vector.broadcast %761 : vector<1x1x8xf32> to vector<1x8x8xf32>
    %764 = arith.mulf %762, %763 : vector<1x8x8xf32>
    %765 = arith.addf %755, %764 : vector<1x8x8xf32>
    %cst_99 = arith.constant dense<0xFF800000> : vector<1x8xf32>
    %766 = vector.multi_reduction <maximumf>, %765, %cst_99 [2] : vector<1x8x8xf32> to vector<1x8xf32>
    %767 = vector.shape_cast %766 : vector<1x8xf32> to vector<1x8x1xf32>
    %768 = vector.broadcast %767 : vector<1x8x1xf32> to vector<1x8x8xf32>
    %769 = arith.subf %765, %768 : vector<1x8x8xf32>
    %770 = math.exp %769 : vector<1x8x8xf32>
    %cst_100 = arith.constant dense<0.000000e+00> : vector<1x8xf32>
    %771 = vector.multi_reduction <add>, %770, %cst_100 [2] : vector<1x8x8xf32> to vector<1x8xf32>
    %772 = vector.shape_cast %771 : vector<1x8xf32> to vector<1x8x1xf32>
    %773 = tpu.reciprocal %772 {approx = true} : vector<1x8x1xf32> -> vector<1x8x1xf32>
    %774 = vector.broadcast %773 : vector<1x8x1xf32> to vector<1x8x8xf32>
    %775 = arith.mulf %770, %774 : vector<1x8x8xf32>
    %776 = vector.extract_strided_slice %515 {offsets = [0, 0, 8], sizes = [1, 8, 1], strides = [1, 1, 1]} : vector<1x8x14xf32> to vector<1x8x1xf32>
    %777 = vector.shape_cast %776 : vector<1x8x1xf32> to vector<1x8xf32>
    %778 = vector.shape_cast %777 : vector<1x8xf32> to vector<1x1x8xf32>
    %779 = vector.broadcast %778 : vector<1x1x8xf32> to vector<1x8x8xf32>
    %780 = arith.mulf %775, %779 : vector<1x8x8xf32>
    %cst_101 = arith.constant dense<0.000000e+00> : vector<1x8xf32>
    %781 = vector.multi_reduction <add>, %780, %cst_101 [2] : vector<1x8x8xf32> to vector<1x8xf32>
    %782 = vector.extract_strided_slice %515 {offsets = [0, 0, 9], sizes = [1, 8, 1], strides = [1, 1, 1]} : vector<1x8x14xf32> to vector<1x8x1xf32>
    %783 = vector.shape_cast %782 : vector<1x8x1xf32> to vector<1x8xf32>
    %784 = vector.shape_cast %783 : vector<1x8xf32> to vector<1x1x8xf32>
    %785 = vector.broadcast %784 : vector<1x1x8xf32> to vector<1x8x8xf32>
    %786 = arith.mulf %775, %785 : vector<1x8x8xf32>
    %cst_102 = arith.constant dense<0.000000e+00> : vector<1x8xf32>
    %787 = vector.multi_reduction <add>, %786, %cst_102 [2] : vector<1x8x8xf32> to vector<1x8xf32>
    %788 = vector.shape_cast %781 : vector<1x8xf32> to vector<1x8x1xf32>
    %789 = vector.extract_strided_slice %517 {offsets = [8, 0], sizes = [1, 14], strides = [1, 1]} : vector<14x14xf32> to vector<1x14xf32>
    %790 = vector.shape_cast %789 : vector<1x14xf32> to vector<14xf32>
    %791 = vector.shape_cast %790 : vector<14xf32> to vector<1x1x14xf32>
    %792 = vector.broadcast %788 : vector<1x8x1xf32> to vector<1x8x14xf32>
    %793 = vector.broadcast %791 : vector<1x1x14xf32> to vector<1x8x14xf32>
    %794 = arith.mulf %792, %793 : vector<1x8x14xf32>
    %795 = arith.addf %746, %794 : vector<1x8x14xf32>
    %796 = vector.shape_cast %787 : vector<1x8xf32> to vector<1x8x1xf32>
    %797 = vector.extract_strided_slice %517 {offsets = [9, 0], sizes = [1, 14], strides = [1, 1]} : vector<14x14xf32> to vector<1x14xf32>
    %798 = vector.shape_cast %797 : vector<1x14xf32> to vector<14xf32>
    %799 = vector.shape_cast %798 : vector<14xf32> to vector<1x1x14xf32>
    %800 = vector.broadcast %796 : vector<1x8x1xf32> to vector<1x8x14xf32>
    %801 = vector.broadcast %799 : vector<1x1x14xf32> to vector<1x8x14xf32>
    %802 = arith.mulf %800, %801 : vector<1x8x14xf32>
    %803 = arith.addf %795, %802 : vector<1x8x14xf32>
    %804 = vector.extract_strided_slice %511 {offsets = [0, 0, 10], sizes = [1, 8, 1], strides = [1, 1, 1]} : vector<1x8x14xf32> to vector<1x8x1xf32>
    %805 = vector.shape_cast %804 : vector<1x8x1xf32> to vector<1x8xf32>
    %806 = vector.shape_cast %805 : vector<1x8xf32> to vector<1x8x1xf32>
    %807 = vector.extract_strided_slice %513 {offsets = [0, 0, 10], sizes = [1, 8, 1], strides = [1, 1, 1]} : vector<1x8x14xf32> to vector<1x8x1xf32>
    %808 = vector.shape_cast %807 : vector<1x8x1xf32> to vector<1x8xf32>
    %809 = vector.shape_cast %808 : vector<1x8xf32> to vector<1x1x8xf32>
    %810 = vector.broadcast %806 : vector<1x8x1xf32> to vector<1x8x8xf32>
    %811 = vector.broadcast %809 : vector<1x1x8xf32> to vector<1x8x8xf32>
    %812 = arith.mulf %810, %811 : vector<1x8x8xf32>
    %813 = vector.extract_strided_slice %511 {offsets = [0, 0, 11], sizes = [1, 8, 1], strides = [1, 1, 1]} : vector<1x8x14xf32> to vector<1x8x1xf32>
    %814 = vector.shape_cast %813 : vector<1x8x1xf32> to vector<1x8xf32>
    %815 = vector.shape_cast %814 : vector<1x8xf32> to vector<1x8x1xf32>
    %816 = vector.extract_strided_slice %513 {offsets = [0, 0, 11], sizes = [1, 8, 1], strides = [1, 1, 1]} : vector<1x8x14xf32> to vector<1x8x1xf32>
    %817 = vector.shape_cast %816 : vector<1x8x1xf32> to vector<1x8xf32>
    %818 = vector.shape_cast %817 : vector<1x8xf32> to vector<1x1x8xf32>
    %819 = vector.broadcast %815 : vector<1x8x1xf32> to vector<1x8x8xf32>
    %820 = vector.broadcast %818 : vector<1x1x8xf32> to vector<1x8x8xf32>
    %821 = arith.mulf %819, %820 : vector<1x8x8xf32>
    %822 = arith.addf %812, %821 : vector<1x8x8xf32>
    %cst_103 = arith.constant dense<0xFF800000> : vector<1x8xf32>
    %823 = vector.multi_reduction <maximumf>, %822, %cst_103 [2] : vector<1x8x8xf32> to vector<1x8xf32>
    %824 = vector.shape_cast %823 : vector<1x8xf32> to vector<1x8x1xf32>
    %825 = vector.broadcast %824 : vector<1x8x1xf32> to vector<1x8x8xf32>
    %826 = arith.subf %822, %825 : vector<1x8x8xf32>
    %827 = math.exp %826 : vector<1x8x8xf32>
    %cst_104 = arith.constant dense<0.000000e+00> : vector<1x8xf32>
    %828 = vector.multi_reduction <add>, %827, %cst_104 [2] : vector<1x8x8xf32> to vector<1x8xf32>
    %829 = vector.shape_cast %828 : vector<1x8xf32> to vector<1x8x1xf32>
    %830 = tpu.reciprocal %829 {approx = true} : vector<1x8x1xf32> -> vector<1x8x1xf32>
    %831 = vector.broadcast %830 : vector<1x8x1xf32> to vector<1x8x8xf32>
    %832 = arith.mulf %827, %831 : vector<1x8x8xf32>
    %833 = vector.extract_strided_slice %515 {offsets = [0, 0, 10], sizes = [1, 8, 1], strides = [1, 1, 1]} : vector<1x8x14xf32> to vector<1x8x1xf32>
    %834 = vector.shape_cast %833 : vector<1x8x1xf32> to vector<1x8xf32>
    %835 = vector.shape_cast %834 : vector<1x8xf32> to vector<1x1x8xf32>
    %836 = vector.broadcast %835 : vector<1x1x8xf32> to vector<1x8x8xf32>
    %837 = arith.mulf %832, %836 : vector<1x8x8xf32>
    %cst_105 = arith.constant dense<0.000000e+00> : vector<1x8xf32>
    %838 = vector.multi_reduction <add>, %837, %cst_105 [2] : vector<1x8x8xf32> to vector<1x8xf32>
    %839 = vector.extract_strided_slice %515 {offsets = [0, 0, 11], sizes = [1, 8, 1], strides = [1, 1, 1]} : vector<1x8x14xf32> to vector<1x8x1xf32>
    %840 = vector.shape_cast %839 : vector<1x8x1xf32> to vector<1x8xf32>
    %841 = vector.shape_cast %840 : vector<1x8xf32> to vector<1x1x8xf32>
    %842 = vector.broadcast %841 : vector<1x1x8xf32> to vector<1x8x8xf32>
    %843 = arith.mulf %832, %842 : vector<1x8x8xf32>
    %cst_106 = arith.constant dense<0.000000e+00> : vector<1x8xf32>
    %844 = vector.multi_reduction <add>, %843, %cst_106 [2] : vector<1x8x8xf32> to vector<1x8xf32>
    %845 = vector.shape_cast %838 : vector<1x8xf32> to vector<1x8x1xf32>
    %846 = vector.extract_strided_slice %517 {offsets = [10, 0], sizes = [1, 14], strides = [1, 1]} : vector<14x14xf32> to vector<1x14xf32>
    %847 = vector.shape_cast %846 : vector<1x14xf32> to vector<14xf32>
    %848 = vector.shape_cast %847 : vector<14xf32> to vector<1x1x14xf32>
    %849 = vector.broadcast %845 : vector<1x8x1xf32> to vector<1x8x14xf32>
    %850 = vector.broadcast %848 : vector<1x1x14xf32> to vector<1x8x14xf32>
    %851 = arith.mulf %849, %850 : vector<1x8x14xf32>
    %852 = arith.addf %803, %851 : vector<1x8x14xf32>
    %853 = vector.shape_cast %844 : vector<1x8xf32> to vector<1x8x1xf32>
    %854 = vector.extract_strided_slice %517 {offsets = [11, 0], sizes = [1, 14], strides = [1, 1]} : vector<14x14xf32> to vector<1x14xf32>
    %855 = vector.shape_cast %854 : vector<1x14xf32> to vector<14xf32>
    %856 = vector.shape_cast %855 : vector<14xf32> to vector<1x1x14xf32>
    %857 = vector.broadcast %853 : vector<1x8x1xf32> to vector<1x8x14xf32>
    %858 = vector.broadcast %856 : vector<1x1x14xf32> to vector<1x8x14xf32>
    %859 = arith.mulf %857, %858 : vector<1x8x14xf32>
    %860 = arith.addf %852, %859 : vector<1x8x14xf32>
    %861 = vector.extract_strided_slice %511 {offsets = [0, 0, 12], sizes = [1, 8, 1], strides = [1, 1, 1]} : vector<1x8x14xf32> to vector<1x8x1xf32>
    %862 = vector.shape_cast %861 : vector<1x8x1xf32> to vector<1x8xf32>
    %863 = vector.shape_cast %862 : vector<1x8xf32> to vector<1x8x1xf32>
    %864 = vector.extract_strided_slice %513 {offsets = [0, 0, 12], sizes = [1, 8, 1], strides = [1, 1, 1]} : vector<1x8x14xf32> to vector<1x8x1xf32>
    %865 = vector.shape_cast %864 : vector<1x8x1xf32> to vector<1x8xf32>
    %866 = vector.shape_cast %865 : vector<1x8xf32> to vector<1x1x8xf32>
    %867 = vector.broadcast %863 : vector<1x8x1xf32> to vector<1x8x8xf32>
    %868 = vector.broadcast %866 : vector<1x1x8xf32> to vector<1x8x8xf32>
    %869 = arith.mulf %867, %868 : vector<1x8x8xf32>
    %870 = vector.extract_strided_slice %511 {offsets = [0, 0, 13], sizes = [1, 8, 1], strides = [1, 1, 1]} : vector<1x8x14xf32> to vector<1x8x1xf32>
    %871 = vector.shape_cast %870 : vector<1x8x1xf32> to vector<1x8xf32>
    %872 = vector.shape_cast %871 : vector<1x8xf32> to vector<1x8x1xf32>
    %873 = vector.extract_strided_slice %513 {offsets = [0, 0, 13], sizes = [1, 8, 1], strides = [1, 1, 1]} : vector<1x8x14xf32> to vector<1x8x1xf32>
    %874 = vector.shape_cast %873 : vector<1x8x1xf32> to vector<1x8xf32>
    %875 = vector.shape_cast %874 : vector<1x8xf32> to vector<1x1x8xf32>
    %876 = vector.broadcast %872 : vector<1x8x1xf32> to vector<1x8x8xf32>
    %877 = vector.broadcast %875 : vector<1x1x8xf32> to vector<1x8x8xf32>
    %878 = arith.mulf %876, %877 : vector<1x8x8xf32>
    %879 = arith.addf %869, %878 : vector<1x8x8xf32>
    %cst_107 = arith.constant dense<0xFF800000> : vector<1x8xf32>
    %880 = vector.multi_reduction <maximumf>, %879, %cst_107 [2] : vector<1x8x8xf32> to vector<1x8xf32>
    %881 = vector.shape_cast %880 : vector<1x8xf32> to vector<1x8x1xf32>
    %882 = vector.broadcast %881 : vector<1x8x1xf32> to vector<1x8x8xf32>
    %883 = arith.subf %879, %882 : vector<1x8x8xf32>
    %884 = math.exp %883 : vector<1x8x8xf32>
    %cst_108 = arith.constant dense<0.000000e+00> : vector<1x8xf32>
    %885 = vector.multi_reduction <add>, %884, %cst_108 [2] : vector<1x8x8xf32> to vector<1x8xf32>
    %886 = vector.shape_cast %885 : vector<1x8xf32> to vector<1x8x1xf32>
    %887 = tpu.reciprocal %886 {approx = true} : vector<1x8x1xf32> -> vector<1x8x1xf32>
    %888 = vector.broadcast %887 : vector<1x8x1xf32> to vector<1x8x8xf32>
    %889 = arith.mulf %884, %888 : vector<1x8x8xf32>
    %890 = vector.extract_strided_slice %515 {offsets = [0, 0, 12], sizes = [1, 8, 1], strides = [1, 1, 1]} : vector<1x8x14xf32> to vector<1x8x1xf32>
    %891 = vector.shape_cast %890 : vector<1x8x1xf32> to vector<1x8xf32>
    %892 = vector.shape_cast %891 : vector<1x8xf32> to vector<1x1x8xf32>
    %893 = vector.broadcast %892 : vector<1x1x8xf32> to vector<1x8x8xf32>
    %894 = arith.mulf %889, %893 : vector<1x8x8xf32>
    %cst_109 = arith.constant dense<0.000000e+00> : vector<1x8xf32>
    %895 = vector.multi_reduction <add>, %894, %cst_109 [2] : vector<1x8x8xf32> to vector<1x8xf32>
    %896 = vector.extract_strided_slice %515 {offsets = [0, 0, 13], sizes = [1, 8, 1], strides = [1, 1, 1]} : vector<1x8x14xf32> to vector<1x8x1xf32>
    %897 = vector.shape_cast %896 : vector<1x8x1xf32> to vector<1x8xf32>
    %898 = vector.shape_cast %897 : vector<1x8xf32> to vector<1x1x8xf32>
    %899 = vector.broadcast %898 : vector<1x1x8xf32> to vector<1x8x8xf32>
    %900 = arith.mulf %889, %899 : vector<1x8x8xf32>
    %cst_110 = arith.constant dense<0.000000e+00> : vector<1x8xf32>
    %901 = vector.multi_reduction <add>, %900, %cst_110 [2] : vector<1x8x8xf32> to vector<1x8xf32>
    %902 = vector.shape_cast %895 : vector<1x8xf32> to vector<1x8x1xf32>
    %903 = vector.extract_strided_slice %517 {offsets = [12, 0], sizes = [1, 14], strides = [1, 1]} : vector<14x14xf32> to vector<1x14xf32>
    %904 = vector.shape_cast %903 : vector<1x14xf32> to vector<14xf32>
    %905 = vector.shape_cast %904 : vector<14xf32> to vector<1x1x14xf32>
    %906 = vector.broadcast %902 : vector<1x8x1xf32> to vector<1x8x14xf32>
    %907 = vector.broadcast %905 : vector<1x1x14xf32> to vector<1x8x14xf32>
    %908 = arith.mulf %906, %907 : vector<1x8x14xf32>
    %909 = arith.addf %860, %908 : vector<1x8x14xf32>
    %910 = vector.shape_cast %901 : vector<1x8xf32> to vector<1x8x1xf32>
    %911 = vector.extract_strided_slice %517 {offsets = [13, 0], sizes = [1, 14], strides = [1, 1]} : vector<14x14xf32> to vector<1x14xf32>
    %912 = vector.shape_cast %911 : vector<1x14xf32> to vector<14xf32>
    %913 = vector.shape_cast %912 : vector<14xf32> to vector<1x1x14xf32>
    %914 = vector.broadcast %910 : vector<1x8x1xf32> to vector<1x8x14xf32>
    %915 = vector.broadcast %913 : vector<1x1x14xf32> to vector<1x8x14xf32>
    %916 = arith.mulf %914, %915 : vector<1x8x14xf32>
    %917 = arith.addf %909, %916 : vector<1x8x14xf32>
    %918 = vector.shape_cast %917 : vector<1x8x14xf32> to vector<8x14xf32>
    %c1_111 = arith.constant 1 : index
    %c0_112 = arith.constant 0 : index
    %919 = vector.load %arg5[%c1_111, %c0_112] : memref<4x14xf32, #tpu.memory_space<vmem>>, vector<1x14xf32>
    %920 = vector.shape_cast %919 : vector<1x14xf32> to vector<14xf32>
    %921 = vector.shape_cast %920 : vector<14xf32> to vector<1x14xf32>
    %922 = vector.broadcast %921 : vector<1x14xf32> to vector<8x14xf32>
    %923 = arith.addf %918, %922 : vector<8x14xf32>
    %924 = arith.addf %499, %923 : vector<8x14xf32>
    %c1_113 = arith.constant 1 : index
    %c0_114 = arith.constant 0 : index
    %925 = vector.load %arg6[%c1_113, %c0_114] : memref<4x14xf32, #tpu.memory_space<vmem>>, vector<1x14xf32>
    %926 = vector.shape_cast %925 : vector<1x14xf32> to vector<14xf32>
    %c1_115 = arith.constant 1 : index
    %c0_116 = arith.constant 0 : index
    %927 = vector.load %arg7[%c1_115, %c0_116] : memref<4x14xf32, #tpu.memory_space<vmem>>, vector<1x14xf32>
    %928 = vector.shape_cast %927 : vector<1x14xf32> to vector<14xf32>
    %cst_117 = arith.constant dense<0.000000e+00> : vector<8xf32>
    %929 = vector.multi_reduction <add>, %924, %cst_117 [1] : vector<8x14xf32> to vector<8xf32>
    %930 = vector.shape_cast %929 : vector<8xf32> to vector<8x1xf32>
    %cst_118 = arith.constant 1.400000e+01 : f32
    %931 = vector.broadcast %cst_118 : f32 to vector<8x1xf32>
    %932 = arith.divf %930, %931 : vector<8x1xf32>
    %933 = vector.broadcast %932 : vector<8x1xf32> to vector<8x14xf32>
    %934 = arith.subf %924, %933 : vector<8x14xf32>
    %935 = arith.mulf %934, %934 : vector<8x14xf32>
    %cst_119 = arith.constant dense<0.000000e+00> : vector<8xf32>
    %936 = vector.multi_reduction <add>, %935, %cst_119 [1] : vector<8x14xf32> to vector<8xf32>
    %937 = vector.shape_cast %936 : vector<8xf32> to vector<8x1xf32>
    %cst_120 = arith.constant 1.400000e+01 : f32
    %938 = vector.broadcast %cst_120 : f32 to vector<8x1xf32>
    %939 = arith.divf %937, %938 : vector<8x1xf32>
    %cst_121 = arith.constant 9.99999974E-6 : f32
    %940 = vector.broadcast %cst_121 : f32 to vector<8x1xf32>
    %941 = arith.addf %939, %940 : vector<8x1xf32>
    %942 = math.rsqrt %941 : vector<8x1xf32>
    %943 = vector.broadcast %942 : vector<8x1xf32> to vector<8x14xf32>
    %944 = arith.mulf %934, %943 : vector<8x14xf32>
    %945 = vector.shape_cast %926 : vector<14xf32> to vector<1x14xf32>
    %946 = vector.broadcast %945 : vector<1x14xf32> to vector<8x14xf32>
    %947 = arith.mulf %944, %946 : vector<8x14xf32>
    %948 = vector.shape_cast %928 : vector<14xf32> to vector<1x14xf32>
    %949 = vector.broadcast %948 : vector<1x14xf32> to vector<8x14xf32>
    %950 = arith.addf %947, %949 : vector<8x14xf32>
    %951 = arith.truncf %950 : vector<8x14xf32> to vector<8x14xbf16>
    %c1_122 = arith.constant 1 : index
    %c0_123 = arith.constant 0 : index
    %c0_124 = arith.constant 0 : index
    %952 = vector.load %arg10[%c1_122, %c0_123, %c0_124] : memref<4x14x2048xbf16, #tpu.memory_space<vmem>>, vector<1x14x2048xbf16>
    %953 = vector.shape_cast %952 : vector<1x14x2048xbf16> to vector<14x2048xbf16>
    %cst_125 = arith.constant dense<0.000000e+00> : vector<8x2048xf32>
    %954 = tpu.matmul %951, %953, %cst_125 {dimension_numbers = #tpu.dot_dimension_numbers<[1], [0], [0], [1], [0, 0, 1, 1], [], []>} : vector<8x14xbf16>, vector<14x2048xbf16>, vector<8x2048xf32> -> vector<8x2048xf32>
    %c1_126 = arith.constant 1 : index
    %c0_127 = arith.constant 0 : index
    %955 = vector.load %arg11[%c1_126, %c0_127] : memref<4x2048xf32, #tpu.memory_space<vmem>>, vector<1x2048xf32>
    %956 = vector.shape_cast %955 : vector<1x2048xf32> to vector<2048xf32>
    %957 = vector.shape_cast %956 : vector<2048xf32> to vector<1x2048xf32>
    %958 = vector.broadcast %957 : vector<1x2048xf32> to vector<8x2048xf32>
    %959 = arith.addf %954, %958 : vector<8x2048xf32>
    %cst_128 = arith.constant 0.000000e+00 : f32
    %960 = vector.broadcast %cst_128 : f32 to vector<8x2048xf32>
    %961 = arith.maximumf %959, %960 : vector<8x2048xf32>
    %962 = arith.truncf %961 : vector<8x2048xf32> to vector<8x2048xbf16>
    %c1_129 = arith.constant 1 : index
    %c0_130 = arith.constant 0 : index
    %c0_131 = arith.constant 0 : index
    %963 = vector.load %arg12[%c1_129, %c0_130, %c0_131] : memref<4x14x2048xbf16, #tpu.memory_space<vmem>>, vector<1x14x2048xbf16>
    %964 = vector.shape_cast %963 : vector<1x14x2048xbf16> to vector<14x2048xbf16>
    %cst_132 = arith.constant dense<0.000000e+00> : vector<8x14xf32>
    %965 = tpu.matmul %962, %964, %cst_132 {dimension_numbers = #tpu.dot_dimension_numbers<[1], [1], [0], [0], [0, 0, 1, 0], [], []>} : vector<8x2048xbf16>, vector<14x2048xbf16>, vector<8x14xf32> -> vector<8x14xf32>
    %c1_133 = arith.constant 1 : index
    %c0_134 = arith.constant 0 : index
    %966 = vector.load %arg13[%c1_133, %c0_134] : memref<4x14xf32, #tpu.memory_space<vmem>>, vector<1x14xf32>
    %967 = vector.shape_cast %966 : vector<1x14xf32> to vector<14xf32>
    %968 = vector.shape_cast %967 : vector<14xf32> to vector<1x14xf32>
    %969 = vector.broadcast %968 : vector<1x14xf32> to vector<8x14xf32>
    %970 = arith.addf %965, %969 : vector<8x14xf32>
    %971 = arith.addf %950, %970 : vector<8x14xf32>
    %c1_135 = arith.constant 1 : index
    %c0_136 = arith.constant 0 : index
    %972 = vector.load %arg8[%c1_135, %c0_136] : memref<4x14xf32, #tpu.memory_space<vmem>>, vector<1x14xf32>
    %973 = vector.shape_cast %972 : vector<1x14xf32> to vector<14xf32>
    %c1_137 = arith.constant 1 : index
    %c0_138 = arith.constant 0 : index
    %974 = vector.load %arg9[%c1_137, %c0_138] : memref<4x14xf32, #tpu.memory_space<vmem>>, vector<1x14xf32>
    %975 = vector.shape_cast %974 : vector<1x14xf32> to vector<14xf32>
    %cst_139 = arith.constant dense<0.000000e+00> : vector<8xf32>
    %976 = vector.multi_reduction <add>, %971, %cst_139 [1] : vector<8x14xf32> to vector<8xf32>
    %977 = vector.shape_cast %976 : vector<8xf32> to vector<8x1xf32>
    %cst_140 = arith.constant 1.400000e+01 : f32
    %978 = vector.broadcast %cst_140 : f32 to vector<8x1xf32>
    %979 = arith.divf %977, %978 : vector<8x1xf32>
    %980 = vector.broadcast %979 : vector<8x1xf32> to vector<8x14xf32>
    %981 = arith.subf %971, %980 : vector<8x14xf32>
    %982 = arith.mulf %981, %981 : vector<8x14xf32>
    %cst_141 = arith.constant dense<0.000000e+00> : vector<8xf32>
    %983 = vector.multi_reduction <add>, %982, %cst_141 [1] : vector<8x14xf32> to vector<8xf32>
    %984 = vector.shape_cast %983 : vector<8xf32> to vector<8x1xf32>
    %cst_142 = arith.constant 1.400000e+01 : f32
    %985 = vector.broadcast %cst_142 : f32 to vector<8x1xf32>
    %986 = arith.divf %984, %985 : vector<8x1xf32>
    %cst_143 = arith.constant 9.99999974E-6 : f32
    %987 = vector.broadcast %cst_143 : f32 to vector<8x1xf32>
    %988 = arith.addf %986, %987 : vector<8x1xf32>
    %989 = math.rsqrt %988 : vector<8x1xf32>
    %990 = vector.broadcast %989 : vector<8x1xf32> to vector<8x14xf32>
    %991 = arith.mulf %981, %990 : vector<8x14xf32>
    %992 = vector.shape_cast %973 : vector<14xf32> to vector<1x14xf32>
    %993 = vector.broadcast %992 : vector<1x14xf32> to vector<8x14xf32>
    %994 = arith.mulf %991, %993 : vector<8x14xf32>
    %995 = vector.shape_cast %975 : vector<14xf32> to vector<1x14xf32>
    %996 = vector.broadcast %995 : vector<1x14xf32> to vector<8x14xf32>
    %997 = arith.addf %994, %996 : vector<8x14xf32>
    %c2 = arith.constant 2 : index
    %c0_144 = arith.constant 0 : index
    %c0_145 = arith.constant 0 : index
    %998 = vector.load %arg2[%c2, %c0_144, %c0_145] : memref<4x14x42xf32, #tpu.memory_space<vmem>>, vector<1x14x42xf32>
    %999 = vector.shape_cast %998 : vector<1x14x42xf32> to vector<14x42xf32>
    %cst_146 = arith.constant dense<0.000000e+00> : vector<8x42xf32>
    %1000 = tpu.matmul %997, %999, %cst_146 {dimension_numbers = #tpu.dot_dimension_numbers<[1], [0], [0], [1], [0, 0, 1, 1], [], []>} : vector<8x14xf32>, vector<14x42xf32>, vector<8x42xf32> -> vector<8x42xf32>
    %c2_147 = arith.constant 2 : index
    %c0_148 = arith.constant 0 : index
    %1001 = vector.load %arg3[%c2_147, %c0_148] : memref<4x42xf32, #tpu.memory_space<vmem>>, vector<1x42xf32>
    %1002 = vector.shape_cast %1001 : vector<1x42xf32> to vector<42xf32>
    %1003 = vector.shape_cast %1002 : vector<42xf32> to vector<1x42xf32>
    %1004 = vector.broadcast %1003 : vector<1x42xf32> to vector<8x42xf32>
    %1005 = arith.addf %1000, %1004 : vector<8x42xf32>
    %1006 = vector.extract_strided_slice %1005 {offsets = [0, 0], sizes = [8, 14], strides = [1, 1]} : vector<8x42xf32> to vector<8x14xf32>
    %cst_149 = arith.constant 0.707106769 : f32
    %1007 = vector.broadcast %cst_149 : f32 to vector<8x14xf32>
    %1008 = arith.mulf %1006, %1007 : vector<8x14xf32>
    %1009 = vector.shape_cast %1008 : vector<8x14xf32> to vector<1x8x14xf32>
    %1010 = vector.extract_strided_slice %1005 {offsets = [0, 14], sizes = [8, 14], strides = [1, 1]} : vector<8x42xf32> to vector<8x14xf32>
    %1011 = vector.shape_cast %1010 : vector<8x14xf32> to vector<1x8x14xf32>
    %1012 = vector.extract_strided_slice %1005 {offsets = [0, 28], sizes = [8, 14], strides = [1, 1]} : vector<8x42xf32> to vector<8x14xf32>
    %1013 = vector.shape_cast %1012 : vector<8x14xf32> to vector<1x8x14xf32>
    %c2_150 = arith.constant 2 : index
    %c0_151 = arith.constant 0 : index
    %c0_152 = arith.constant 0 : index
    %1014 = vector.load %arg4[%c2_150, %c0_151, %c0_152] : memref<4x14x14xf32, #tpu.memory_space<vmem>>, vector<1x14x14xf32>
    %1015 = vector.shape_cast %1014 : vector<1x14x14xf32> to vector<14x14xf32>
    %cst_153 = arith.constant 0.000000e+00 : f32
    %1016 = vector.broadcast %cst_153 : f32 to vector<1x8x14xf32>
    %1017 = vector.extract_strided_slice %1009 {offsets = [0, 0, 0], sizes = [1, 8, 1], strides = [1, 1, 1]} : vector<1x8x14xf32> to vector<1x8x1xf32>
    %1018 = vector.shape_cast %1017 : vector<1x8x1xf32> to vector<1x8xf32>
    %1019 = vector.shape_cast %1018 : vector<1x8xf32> to vector<1x8x1xf32>
    %1020 = vector.extract_strided_slice %1011 {offsets = [0, 0, 0], sizes = [1, 8, 1], strides = [1, 1, 1]} : vector<1x8x14xf32> to vector<1x8x1xf32>
    %1021 = vector.shape_cast %1020 : vector<1x8x1xf32> to vector<1x8xf32>
    %1022 = vector.shape_cast %1021 : vector<1x8xf32> to vector<1x1x8xf32>
    %1023 = vector.broadcast %1019 : vector<1x8x1xf32> to vector<1x8x8xf32>
    %1024 = vector.broadcast %1022 : vector<1x1x8xf32> to vector<1x8x8xf32>
    %1025 = arith.mulf %1023, %1024 : vector<1x8x8xf32>
    %1026 = vector.extract_strided_slice %1009 {offsets = [0, 0, 1], sizes = [1, 8, 1], strides = [1, 1, 1]} : vector<1x8x14xf32> to vector<1x8x1xf32>
    %1027 = vector.shape_cast %1026 : vector<1x8x1xf32> to vector<1x8xf32>
    %1028 = vector.shape_cast %1027 : vector<1x8xf32> to vector<1x8x1xf32>
    %1029 = vector.extract_strided_slice %1011 {offsets = [0, 0, 1], sizes = [1, 8, 1], strides = [1, 1, 1]} : vector<1x8x14xf32> to vector<1x8x1xf32>
    %1030 = vector.shape_cast %1029 : vector<1x8x1xf32> to vector<1x8xf32>
    %1031 = vector.shape_cast %1030 : vector<1x8xf32> to vector<1x1x8xf32>
    %1032 = vector.broadcast %1028 : vector<1x8x1xf32> to vector<1x8x8xf32>
    %1033 = vector.broadcast %1031 : vector<1x1x8xf32> to vector<1x8x8xf32>
    %1034 = arith.mulf %1032, %1033 : vector<1x8x8xf32>
    %1035 = arith.addf %1025, %1034 : vector<1x8x8xf32>
    %cst_154 = arith.constant dense<0xFF800000> : vector<1x8xf32>
    %1036 = vector.multi_reduction <maximumf>, %1035, %cst_154 [2] : vector<1x8x8xf32> to vector<1x8xf32>
    %1037 = vector.shape_cast %1036 : vector<1x8xf32> to vector<1x8x1xf32>
    %1038 = vector.broadcast %1037 : vector<1x8x1xf32> to vector<1x8x8xf32>
    %1039 = arith.subf %1035, %1038 : vector<1x8x8xf32>
    %1040 = math.exp %1039 : vector<1x8x8xf32>
    %cst_155 = arith.constant dense<0.000000e+00> : vector<1x8xf32>
    %1041 = vector.multi_reduction <add>, %1040, %cst_155 [2] : vector<1x8x8xf32> to vector<1x8xf32>
    %1042 = vector.shape_cast %1041 : vector<1x8xf32> to vector<1x8x1xf32>
    %1043 = tpu.reciprocal %1042 {approx = true} : vector<1x8x1xf32> -> vector<1x8x1xf32>
    %1044 = vector.broadcast %1043 : vector<1x8x1xf32> to vector<1x8x8xf32>
    %1045 = arith.mulf %1040, %1044 : vector<1x8x8xf32>
    %1046 = vector.extract_strided_slice %1013 {offsets = [0, 0, 0], sizes = [1, 8, 1], strides = [1, 1, 1]} : vector<1x8x14xf32> to vector<1x8x1xf32>
    %1047 = vector.shape_cast %1046 : vector<1x8x1xf32> to vector<1x8xf32>
    %1048 = vector.shape_cast %1047 : vector<1x8xf32> to vector<1x1x8xf32>
    %1049 = vector.broadcast %1048 : vector<1x1x8xf32> to vector<1x8x8xf32>
    %1050 = arith.mulf %1045, %1049 : vector<1x8x8xf32>
    %cst_156 = arith.constant dense<0.000000e+00> : vector<1x8xf32>
    %1051 = vector.multi_reduction <add>, %1050, %cst_156 [2] : vector<1x8x8xf32> to vector<1x8xf32>
    %1052 = vector.extract_strided_slice %1013 {offsets = [0, 0, 1], sizes = [1, 8, 1], strides = [1, 1, 1]} : vector<1x8x14xf32> to vector<1x8x1xf32>
    %1053 = vector.shape_cast %1052 : vector<1x8x1xf32> to vector<1x8xf32>
    %1054 = vector.shape_cast %1053 : vector<1x8xf32> to vector<1x1x8xf32>
    %1055 = vector.broadcast %1054 : vector<1x1x8xf32> to vector<1x8x8xf32>
    %1056 = arith.mulf %1045, %1055 : vector<1x8x8xf32>
    %cst_157 = arith.constant dense<0.000000e+00> : vector<1x8xf32>
    %1057 = vector.multi_reduction <add>, %1056, %cst_157 [2] : vector<1x8x8xf32> to vector<1x8xf32>
    %1058 = vector.shape_cast %1051 : vector<1x8xf32> to vector<1x8x1xf32>
    %1059 = vector.extract_strided_slice %1015 {offsets = [0, 0], sizes = [1, 14], strides = [1, 1]} : vector<14x14xf32> to vector<1x14xf32>
    %1060 = vector.shape_cast %1059 : vector<1x14xf32> to vector<14xf32>
    %1061 = vector.shape_cast %1060 : vector<14xf32> to vector<1x1x14xf32>
    %1062 = vector.broadcast %1058 : vector<1x8x1xf32> to vector<1x8x14xf32>
    %1063 = vector.broadcast %1061 : vector<1x1x14xf32> to vector<1x8x14xf32>
    %1064 = arith.mulf %1062, %1063 : vector<1x8x14xf32>
    %1065 = arith.addf %1016, %1064 : vector<1x8x14xf32>
    %1066 = vector.shape_cast %1057 : vector<1x8xf32> to vector<1x8x1xf32>
    %1067 = vector.extract_strided_slice %1015 {offsets = [1, 0], sizes = [1, 14], strides = [1, 1]} : vector<14x14xf32> to vector<1x14xf32>
    %1068 = vector.shape_cast %1067 : vector<1x14xf32> to vector<14xf32>
    %1069 = vector.shape_cast %1068 : vector<14xf32> to vector<1x1x14xf32>
    %1070 = vector.broadcast %1066 : vector<1x8x1xf32> to vector<1x8x14xf32>
    %1071 = vector.broadcast %1069 : vector<1x1x14xf32> to vector<1x8x14xf32>
    %1072 = arith.mulf %1070, %1071 : vector<1x8x14xf32>
    %1073 = arith.addf %1065, %1072 : vector<1x8x14xf32>
    %1074 = vector.extract_strided_slice %1009 {offsets = [0, 0, 2], sizes = [1, 8, 1], strides = [1, 1, 1]} : vector<1x8x14xf32> to vector<1x8x1xf32>
    %1075 = vector.shape_cast %1074 : vector<1x8x1xf32> to vector<1x8xf32>
    %1076 = vector.shape_cast %1075 : vector<1x8xf32> to vector<1x8x1xf32>
    %1077 = vector.extract_strided_slice %1011 {offsets = [0, 0, 2], sizes = [1, 8, 1], strides = [1, 1, 1]} : vector<1x8x14xf32> to vector<1x8x1xf32>
    %1078 = vector.shape_cast %1077 : vector<1x8x1xf32> to vector<1x8xf32>
    %1079 = vector.shape_cast %1078 : vector<1x8xf32> to vector<1x1x8xf32>
    %1080 = vector.broadcast %1076 : vector<1x8x1xf32> to vector<1x8x8xf32>
    %1081 = vector.broadcast %1079 : vector<1x1x8xf32> to vector<1x8x8xf32>
    %1082 = arith.mulf %1080, %1081 : vector<1x8x8xf32>
    %1083 = vector.extract_strided_slice %1009 {offsets = [0, 0, 3], sizes = [1, 8, 1], strides = [1, 1, 1]} : vector<1x8x14xf32> to vector<1x8x1xf32>
    %1084 = vector.shape_cast %1083 : vector<1x8x1xf32> to vector<1x8xf32>
    %1085 = vector.shape_cast %1084 : vector<1x8xf32> to vector<1x8x1xf32>
    %1086 = vector.extract_strided_slice %1011 {offsets = [0, 0, 3], sizes = [1, 8, 1], strides = [1, 1, 1]} : vector<1x8x14xf32> to vector<1x8x1xf32>
    %1087 = vector.shape_cast %1086 : vector<1x8x1xf32> to vector<1x8xf32>
    %1088 = vector.shape_cast %1087 : vector<1x8xf32> to vector<1x1x8xf32>
    %1089 = vector.broadcast %1085 : vector<1x8x1xf32> to vector<1x8x8xf32>
    %1090 = vector.broadcast %1088 : vector<1x1x8xf32> to vector<1x8x8xf32>
    %1091 = arith.mulf %1089, %1090 : vector<1x8x8xf32>
    %1092 = arith.addf %1082, %1091 : vector<1x8x8xf32>
    %cst_158 = arith.constant dense<0xFF800000> : vector<1x8xf32>
    %1093 = vector.multi_reduction <maximumf>, %1092, %cst_158 [2] : vector<1x8x8xf32> to vector<1x8xf32>
    %1094 = vector.shape_cast %1093 : vector<1x8xf32> to vector<1x8x1xf32>
    %1095 = vector.broadcast %1094 : vector<1x8x1xf32> to vector<1x8x8xf32>
    %1096 = arith.subf %1092, %1095 : vector<1x8x8xf32>
    %1097 = math.exp %1096 : vector<1x8x8xf32>
    %cst_159 = arith.constant dense<0.000000e+00> : vector<1x8xf32>
    %1098 = vector.multi_reduction <add>, %1097, %cst_159 [2] : vector<1x8x8xf32> to vector<1x8xf32>
    %1099 = vector.shape_cast %1098 : vector<1x8xf32> to vector<1x8x1xf32>
    %1100 = tpu.reciprocal %1099 {approx = true} : vector<1x8x1xf32> -> vector<1x8x1xf32>
    %1101 = vector.broadcast %1100 : vector<1x8x1xf32> to vector<1x8x8xf32>
    %1102 = arith.mulf %1097, %1101 : vector<1x8x8xf32>
    %1103 = vector.extract_strided_slice %1013 {offsets = [0, 0, 2], sizes = [1, 8, 1], strides = [1, 1, 1]} : vector<1x8x14xf32> to vector<1x8x1xf32>
    %1104 = vector.shape_cast %1103 : vector<1x8x1xf32> to vector<1x8xf32>
    %1105 = vector.shape_cast %1104 : vector<1x8xf32> to vector<1x1x8xf32>
    %1106 = vector.broadcast %1105 : vector<1x1x8xf32> to vector<1x8x8xf32>
    %1107 = arith.mulf %1102, %1106 : vector<1x8x8xf32>
    %cst_160 = arith.constant dense<0.000000e+00> : vector<1x8xf32>
    %1108 = vector.multi_reduction <add>, %1107, %cst_160 [2] : vector<1x8x8xf32> to vector<1x8xf32>
    %1109 = vector.extract_strided_slice %1013 {offsets = [0, 0, 3], sizes = [1, 8, 1], strides = [1, 1, 1]} : vector<1x8x14xf32> to vector<1x8x1xf32>
    %1110 = vector.shape_cast %1109 : vector<1x8x1xf32> to vector<1x8xf32>
    %1111 = vector.shape_cast %1110 : vector<1x8xf32> to vector<1x1x8xf32>
    %1112 = vector.broadcast %1111 : vector<1x1x8xf32> to vector<1x8x8xf32>
    %1113 = arith.mulf %1102, %1112 : vector<1x8x8xf32>
    %cst_161 = arith.constant dense<0.000000e+00> : vector<1x8xf32>
    %1114 = vector.multi_reduction <add>, %1113, %cst_161 [2] : vector<1x8x8xf32> to vector<1x8xf32>
    %1115 = vector.shape_cast %1108 : vector<1x8xf32> to vector<1x8x1xf32>
    %1116 = vector.extract_strided_slice %1015 {offsets = [2, 0], sizes = [1, 14], strides = [1, 1]} : vector<14x14xf32> to vector<1x14xf32>
    %1117 = vector.shape_cast %1116 : vector<1x14xf32> to vector<14xf32>
    %1118 = vector.shape_cast %1117 : vector<14xf32> to vector<1x1x14xf32>
    %1119 = vector.broadcast %1115 : vector<1x8x1xf32> to vector<1x8x14xf32>
    %1120 = vector.broadcast %1118 : vector<1x1x14xf32> to vector<1x8x14xf32>
    %1121 = arith.mulf %1119, %1120 : vector<1x8x14xf32>
    %1122 = arith.addf %1073, %1121 : vector<1x8x14xf32>
    %1123 = vector.shape_cast %1114 : vector<1x8xf32> to vector<1x8x1xf32>
    %1124 = vector.extract_strided_slice %1015 {offsets = [3, 0], sizes = [1, 14], strides = [1, 1]} : vector<14x14xf32> to vector<1x14xf32>
    %1125 = vector.shape_cast %1124 : vector<1x14xf32> to vector<14xf32>
    %1126 = vector.shape_cast %1125 : vector<14xf32> to vector<1x1x14xf32>
    %1127 = vector.broadcast %1123 : vector<1x8x1xf32> to vector<1x8x14xf32>
    %1128 = vector.broadcast %1126 : vector<1x1x14xf32> to vector<1x8x14xf32>
    %1129 = arith.mulf %1127, %1128 : vector<1x8x14xf32>
    %1130 = arith.addf %1122, %1129 : vector<1x8x14xf32>
    %1131 = vector.extract_strided_slice %1009 {offsets = [0, 0, 4], sizes = [1, 8, 1], strides = [1, 1, 1]} : vector<1x8x14xf32> to vector<1x8x1xf32>
    %1132 = vector.shape_cast %1131 : vector<1x8x1xf32> to vector<1x8xf32>
    %1133 = vector.shape_cast %1132 : vector<1x8xf32> to vector<1x8x1xf32>
    %1134 = vector.extract_strided_slice %1011 {offsets = [0, 0, 4], sizes = [1, 8, 1], strides = [1, 1, 1]} : vector<1x8x14xf32> to vector<1x8x1xf32>
    %1135 = vector.shape_cast %1134 : vector<1x8x1xf32> to vector<1x8xf32>
    %1136 = vector.shape_cast %1135 : vector<1x8xf32> to vector<1x1x8xf32>
    %1137 = vector.broadcast %1133 : vector<1x8x1xf32> to vector<1x8x8xf32>
    %1138 = vector.broadcast %1136 : vector<1x1x8xf32> to vector<1x8x8xf32>
    %1139 = arith.mulf %1137, %1138 : vector<1x8x8xf32>
    %1140 = vector.extract_strided_slice %1009 {offsets = [0, 0, 5], sizes = [1, 8, 1], strides = [1, 1, 1]} : vector<1x8x14xf32> to vector<1x8x1xf32>
    %1141 = vector.shape_cast %1140 : vector<1x8x1xf32> to vector<1x8xf32>
    %1142 = vector.shape_cast %1141 : vector<1x8xf32> to vector<1x8x1xf32>
    %1143 = vector.extract_strided_slice %1011 {offsets = [0, 0, 5], sizes = [1, 8, 1], strides = [1, 1, 1]} : vector<1x8x14xf32> to vector<1x8x1xf32>
    %1144 = vector.shape_cast %1143 : vector<1x8x1xf32> to vector<1x8xf32>
    %1145 = vector.shape_cast %1144 : vector<1x8xf32> to vector<1x1x8xf32>
    %1146 = vector.broadcast %1142 : vector<1x8x1xf32> to vector<1x8x8xf32>
    %1147 = vector.broadcast %1145 : vector<1x1x8xf32> to vector<1x8x8xf32>
    %1148 = arith.mulf %1146, %1147 : vector<1x8x8xf32>
    %1149 = arith.addf %1139, %1148 : vector<1x8x8xf32>
    %cst_162 = arith.constant dense<0xFF800000> : vector<1x8xf32>
    %1150 = vector.multi_reduction <maximumf>, %1149, %cst_162 [2] : vector<1x8x8xf32> to vector<1x8xf32>
    %1151 = vector.shape_cast %1150 : vector<1x8xf32> to vector<1x8x1xf32>
    %1152 = vector.broadcast %1151 : vector<1x8x1xf32> to vector<1x8x8xf32>
    %1153 = arith.subf %1149, %1152 : vector<1x8x8xf32>
    %1154 = math.exp %1153 : vector<1x8x8xf32>
    %cst_163 = arith.constant dense<0.000000e+00> : vector<1x8xf32>
    %1155 = vector.multi_reduction <add>, %1154, %cst_163 [2] : vector<1x8x8xf32> to vector<1x8xf32>
    %1156 = vector.shape_cast %1155 : vector<1x8xf32> to vector<1x8x1xf32>
    %1157 = tpu.reciprocal %1156 {approx = true} : vector<1x8x1xf32> -> vector<1x8x1xf32>
    %1158 = vector.broadcast %1157 : vector<1x8x1xf32> to vector<1x8x8xf32>
    %1159 = arith.mulf %1154, %1158 : vector<1x8x8xf32>
    %1160 = vector.extract_strided_slice %1013 {offsets = [0, 0, 4], sizes = [1, 8, 1], strides = [1, 1, 1]} : vector<1x8x14xf32> to vector<1x8x1xf32>
    %1161 = vector.shape_cast %1160 : vector<1x8x1xf32> to vector<1x8xf32>
    %1162 = vector.shape_cast %1161 : vector<1x8xf32> to vector<1x1x8xf32>
    %1163 = vector.broadcast %1162 : vector<1x1x8xf32> to vector<1x8x8xf32>
    %1164 = arith.mulf %1159, %1163 : vector<1x8x8xf32>
    %cst_164 = arith.constant dense<0.000000e+00> : vector<1x8xf32>
    %1165 = vector.multi_reduction <add>, %1164, %cst_164 [2] : vector<1x8x8xf32> to vector<1x8xf32>
    %1166 = vector.extract_strided_slice %1013 {offsets = [0, 0, 5], sizes = [1, 8, 1], strides = [1, 1, 1]} : vector<1x8x14xf32> to vector<1x8x1xf32>
    %1167 = vector.shape_cast %1166 : vector<1x8x1xf32> to vector<1x8xf32>
    %1168 = vector.shape_cast %1167 : vector<1x8xf32> to vector<1x1x8xf32>
    %1169 = vector.broadcast %1168 : vector<1x1x8xf32> to vector<1x8x8xf32>
    %1170 = arith.mulf %1159, %1169 : vector<1x8x8xf32>
    %cst_165 = arith.constant dense<0.000000e+00> : vector<1x8xf32>
    %1171 = vector.multi_reduction <add>, %1170, %cst_165 [2] : vector<1x8x8xf32> to vector<1x8xf32>
    %1172 = vector.shape_cast %1165 : vector<1x8xf32> to vector<1x8x1xf32>
    %1173 = vector.extract_strided_slice %1015 {offsets = [4, 0], sizes = [1, 14], strides = [1, 1]} : vector<14x14xf32> to vector<1x14xf32>
    %1174 = vector.shape_cast %1173 : vector<1x14xf32> to vector<14xf32>
    %1175 = vector.shape_cast %1174 : vector<14xf32> to vector<1x1x14xf32>
    %1176 = vector.broadcast %1172 : vector<1x8x1xf32> to vector<1x8x14xf32>
    %1177 = vector.broadcast %1175 : vector<1x1x14xf32> to vector<1x8x14xf32>
    %1178 = arith.mulf %1176, %1177 : vector<1x8x14xf32>
    %1179 = arith.addf %1130, %1178 : vector<1x8x14xf32>
    %1180 = vector.shape_cast %1171 : vector<1x8xf32> to vector<1x8x1xf32>
    %1181 = vector.extract_strided_slice %1015 {offsets = [5, 0], sizes = [1, 14], strides = [1, 1]} : vector<14x14xf32> to vector<1x14xf32>
    %1182 = vector.shape_cast %1181 : vector<1x14xf32> to vector<14xf32>
    %1183 = vector.shape_cast %1182 : vector<14xf32> to vector<1x1x14xf32>
    %1184 = vector.broadcast %1180 : vector<1x8x1xf32> to vector<1x8x14xf32>
    %1185 = vector.broadcast %1183 : vector<1x1x14xf32> to vector<1x8x14xf32>
    %1186 = arith.mulf %1184, %1185 : vector<1x8x14xf32>
    %1187 = arith.addf %1179, %1186 : vector<1x8x14xf32>
    %1188 = vector.extract_strided_slice %1009 {offsets = [0, 0, 6], sizes = [1, 8, 1], strides = [1, 1, 1]} : vector<1x8x14xf32> to vector<1x8x1xf32>
    %1189 = vector.shape_cast %1188 : vector<1x8x1xf32> to vector<1x8xf32>
    %1190 = vector.shape_cast %1189 : vector<1x8xf32> to vector<1x8x1xf32>
    %1191 = vector.extract_strided_slice %1011 {offsets = [0, 0, 6], sizes = [1, 8, 1], strides = [1, 1, 1]} : vector<1x8x14xf32> to vector<1x8x1xf32>
    %1192 = vector.shape_cast %1191 : vector<1x8x1xf32> to vector<1x8xf32>
    %1193 = vector.shape_cast %1192 : vector<1x8xf32> to vector<1x1x8xf32>
    %1194 = vector.broadcast %1190 : vector<1x8x1xf32> to vector<1x8x8xf32>
    %1195 = vector.broadcast %1193 : vector<1x1x8xf32> to vector<1x8x8xf32>
    %1196 = arith.mulf %1194, %1195 : vector<1x8x8xf32>
    %1197 = vector.extract_strided_slice %1009 {offsets = [0, 0, 7], sizes = [1, 8, 1], strides = [1, 1, 1]} : vector<1x8x14xf32> to vector<1x8x1xf32>
    %1198 = vector.shape_cast %1197 : vector<1x8x1xf32> to vector<1x8xf32>
    %1199 = vector.shape_cast %1198 : vector<1x8xf32> to vector<1x8x1xf32>
    %1200 = vector.extract_strided_slice %1011 {offsets = [0, 0, 7], sizes = [1, 8, 1], strides = [1, 1, 1]} : vector<1x8x14xf32> to vector<1x8x1xf32>
    %1201 = vector.shape_cast %1200 : vector<1x8x1xf32> to vector<1x8xf32>
    %1202 = vector.shape_cast %1201 : vector<1x8xf32> to vector<1x1x8xf32>
    %1203 = vector.broadcast %1199 : vector<1x8x1xf32> to vector<1x8x8xf32>
    %1204 = vector.broadcast %1202 : vector<1x1x8xf32> to vector<1x8x8xf32>
    %1205 = arith.mulf %1203, %1204 : vector<1x8x8xf32>
    %1206 = arith.addf %1196, %1205 : vector<1x8x8xf32>
    %cst_166 = arith.constant dense<0xFF800000> : vector<1x8xf32>
    %1207 = vector.multi_reduction <maximumf>, %1206, %cst_166 [2] : vector<1x8x8xf32> to vector<1x8xf32>
    %1208 = vector.shape_cast %1207 : vector<1x8xf32> to vector<1x8x1xf32>
    %1209 = vector.broadcast %1208 : vector<1x8x1xf32> to vector<1x8x8xf32>
    %1210 = arith.subf %1206, %1209 : vector<1x8x8xf32>
    %1211 = math.exp %1210 : vector<1x8x8xf32>
    %cst_167 = arith.constant dense<0.000000e+00> : vector<1x8xf32>
    %1212 = vector.multi_reduction <add>, %1211, %cst_167 [2] : vector<1x8x8xf32> to vector<1x8xf32>
    %1213 = vector.shape_cast %1212 : vector<1x8xf32> to vector<1x8x1xf32>
    %1214 = tpu.reciprocal %1213 {approx = true} : vector<1x8x1xf32> -> vector<1x8x1xf32>
    %1215 = vector.broadcast %1214 : vector<1x8x1xf32> to vector<1x8x8xf32>
    %1216 = arith.mulf %1211, %1215 : vector<1x8x8xf32>
    %1217 = vector.extract_strided_slice %1013 {offsets = [0, 0, 6], sizes = [1, 8, 1], strides = [1, 1, 1]} : vector<1x8x14xf32> to vector<1x8x1xf32>
    %1218 = vector.shape_cast %1217 : vector<1x8x1xf32> to vector<1x8xf32>
    %1219 = vector.shape_cast %1218 : vector<1x8xf32> to vector<1x1x8xf32>
    %1220 = vector.broadcast %1219 : vector<1x1x8xf32> to vector<1x8x8xf32>
    %1221 = arith.mulf %1216, %1220 : vector<1x8x8xf32>
    %cst_168 = arith.constant dense<0.000000e+00> : vector<1x8xf32>
    %1222 = vector.multi_reduction <add>, %1221, %cst_168 [2] : vector<1x8x8xf32> to vector<1x8xf32>
    %1223 = vector.extract_strided_slice %1013 {offsets = [0, 0, 7], sizes = [1, 8, 1], strides = [1, 1, 1]} : vector<1x8x14xf32> to vector<1x8x1xf32>
    %1224 = vector.shape_cast %1223 : vector<1x8x1xf32> to vector<1x8xf32>
    %1225 = vector.shape_cast %1224 : vector<1x8xf32> to vector<1x1x8xf32>
    %1226 = vector.broadcast %1225 : vector<1x1x8xf32> to vector<1x8x8xf32>
    %1227 = arith.mulf %1216, %1226 : vector<1x8x8xf32>
    %cst_169 = arith.constant dense<0.000000e+00> : vector<1x8xf32>
    %1228 = vector.multi_reduction <add>, %1227, %cst_169 [2] : vector<1x8x8xf32> to vector<1x8xf32>
    %1229 = vector.shape_cast %1222 : vector<1x8xf32> to vector<1x8x1xf32>
    %1230 = vector.extract_strided_slice %1015 {offsets = [6, 0], sizes = [1, 14], strides = [1, 1]} : vector<14x14xf32> to vector<1x14xf32>
    %1231 = vector.shape_cast %1230 : vector<1x14xf32> to vector<14xf32>
    %1232 = vector.shape_cast %1231 : vector<14xf32> to vector<1x1x14xf32>
    %1233 = vector.broadcast %1229 : vector<1x8x1xf32> to vector<1x8x14xf32>
    %1234 = vector.broadcast %1232 : vector<1x1x14xf32> to vector<1x8x14xf32>
    %1235 = arith.mulf %1233, %1234 : vector<1x8x14xf32>
    %1236 = arith.addf %1187, %1235 : vector<1x8x14xf32>
    %1237 = vector.shape_cast %1228 : vector<1x8xf32> to vector<1x8x1xf32>
    %1238 = vector.extract_strided_slice %1015 {offsets = [7, 0], sizes = [1, 14], strides = [1, 1]} : vector<14x14xf32> to vector<1x14xf32>
    %1239 = vector.shape_cast %1238 : vector<1x14xf32> to vector<14xf32>
    %1240 = vector.shape_cast %1239 : vector<14xf32> to vector<1x1x14xf32>
    %1241 = vector.broadcast %1237 : vector<1x8x1xf32> to vector<1x8x14xf32>
    %1242 = vector.broadcast %1240 : vector<1x1x14xf32> to vector<1x8x14xf32>
    %1243 = arith.mulf %1241, %1242 : vector<1x8x14xf32>
    %1244 = arith.addf %1236, %1243 : vector<1x8x14xf32>
    %1245 = vector.extract_strided_slice %1009 {offsets = [0, 0, 8], sizes = [1, 8, 1], strides = [1, 1, 1]} : vector<1x8x14xf32> to vector<1x8x1xf32>
    %1246 = vector.shape_cast %1245 : vector<1x8x1xf32> to vector<1x8xf32>
    %1247 = vector.shape_cast %1246 : vector<1x8xf32> to vector<1x8x1xf32>
    %1248 = vector.extract_strided_slice %1011 {offsets = [0, 0, 8], sizes = [1, 8, 1], strides = [1, 1, 1]} : vector<1x8x14xf32> to vector<1x8x1xf32>
    %1249 = vector.shape_cast %1248 : vector<1x8x1xf32> to vector<1x8xf32>
    %1250 = vector.shape_cast %1249 : vector<1x8xf32> to vector<1x1x8xf32>
    %1251 = vector.broadcast %1247 : vector<1x8x1xf32> to vector<1x8x8xf32>
    %1252 = vector.broadcast %1250 : vector<1x1x8xf32> to vector<1x8x8xf32>
    %1253 = arith.mulf %1251, %1252 : vector<1x8x8xf32>
    %1254 = vector.extract_strided_slice %1009 {offsets = [0, 0, 9], sizes = [1, 8, 1], strides = [1, 1, 1]} : vector<1x8x14xf32> to vector<1x8x1xf32>
    %1255 = vector.shape_cast %1254 : vector<1x8x1xf32> to vector<1x8xf32>
    %1256 = vector.shape_cast %1255 : vector<1x8xf32> to vector<1x8x1xf32>
    %1257 = vector.extract_strided_slice %1011 {offsets = [0, 0, 9], sizes = [1, 8, 1], strides = [1, 1, 1]} : vector<1x8x14xf32> to vector<1x8x1xf32>
    %1258 = vector.shape_cast %1257 : vector<1x8x1xf32> to vector<1x8xf32>
    %1259 = vector.shape_cast %1258 : vector<1x8xf32> to vector<1x1x8xf32>
    %1260 = vector.broadcast %1256 : vector<1x8x1xf32> to vector<1x8x8xf32>
    %1261 = vector.broadcast %1259 : vector<1x1x8xf32> to vector<1x8x8xf32>
    %1262 = arith.mulf %1260, %1261 : vector<1x8x8xf32>
    %1263 = arith.addf %1253, %1262 : vector<1x8x8xf32>
    %cst_170 = arith.constant dense<0xFF800000> : vector<1x8xf32>
    %1264 = vector.multi_reduction <maximumf>, %1263, %cst_170 [2] : vector<1x8x8xf32> to vector<1x8xf32>
    %1265 = vector.shape_cast %1264 : vector<1x8xf32> to vector<1x8x1xf32>
    %1266 = vector.broadcast %1265 : vector<1x8x1xf32> to vector<1x8x8xf32>
    %1267 = arith.subf %1263, %1266 : vector<1x8x8xf32>
    %1268 = math.exp %1267 : vector<1x8x8xf32>
    %cst_171 = arith.constant dense<0.000000e+00> : vector<1x8xf32>
    %1269 = vector.multi_reduction <add>, %1268, %cst_171 [2] : vector<1x8x8xf32> to vector<1x8xf32>
    %1270 = vector.shape_cast %1269 : vector<1x8xf32> to vector<1x8x1xf32>
    %1271 = tpu.reciprocal %1270 {approx = true} : vector<1x8x1xf32> -> vector<1x8x1xf32>
    %1272 = vector.broadcast %1271 : vector<1x8x1xf32> to vector<1x8x8xf32>
    %1273 = arith.mulf %1268, %1272 : vector<1x8x8xf32>
    %1274 = vector.extract_strided_slice %1013 {offsets = [0, 0, 8], sizes = [1, 8, 1], strides = [1, 1, 1]} : vector<1x8x14xf32> to vector<1x8x1xf32>
    %1275 = vector.shape_cast %1274 : vector<1x8x1xf32> to vector<1x8xf32>
    %1276 = vector.shape_cast %1275 : vector<1x8xf32> to vector<1x1x8xf32>
    %1277 = vector.broadcast %1276 : vector<1x1x8xf32> to vector<1x8x8xf32>
    %1278 = arith.mulf %1273, %1277 : vector<1x8x8xf32>
    %cst_172 = arith.constant dense<0.000000e+00> : vector<1x8xf32>
    %1279 = vector.multi_reduction <add>, %1278, %cst_172 [2] : vector<1x8x8xf32> to vector<1x8xf32>
    %1280 = vector.extract_strided_slice %1013 {offsets = [0, 0, 9], sizes = [1, 8, 1], strides = [1, 1, 1]} : vector<1x8x14xf32> to vector<1x8x1xf32>
    %1281 = vector.shape_cast %1280 : vector<1x8x1xf32> to vector<1x8xf32>
    %1282 = vector.shape_cast %1281 : vector<1x8xf32> to vector<1x1x8xf32>
    %1283 = vector.broadcast %1282 : vector<1x1x8xf32> to vector<1x8x8xf32>
    %1284 = arith.mulf %1273, %1283 : vector<1x8x8xf32>
    %cst_173 = arith.constant dense<0.000000e+00> : vector<1x8xf32>
    %1285 = vector.multi_reduction <add>, %1284, %cst_173 [2] : vector<1x8x8xf32> to vector<1x8xf32>
    %1286 = vector.shape_cast %1279 : vector<1x8xf32> to vector<1x8x1xf32>
    %1287 = vector.extract_strided_slice %1015 {offsets = [8, 0], sizes = [1, 14], strides = [1, 1]} : vector<14x14xf32> to vector<1x14xf32>
    %1288 = vector.shape_cast %1287 : vector<1x14xf32> to vector<14xf32>
    %1289 = vector.shape_cast %1288 : vector<14xf32> to vector<1x1x14xf32>
    %1290 = vector.broadcast %1286 : vector<1x8x1xf32> to vector<1x8x14xf32>
    %1291 = vector.broadcast %1289 : vector<1x1x14xf32> to vector<1x8x14xf32>
    %1292 = arith.mulf %1290, %1291 : vector<1x8x14xf32>
    %1293 = arith.addf %1244, %1292 : vector<1x8x14xf32>
    %1294 = vector.shape_cast %1285 : vector<1x8xf32> to vector<1x8x1xf32>
    %1295 = vector.extract_strided_slice %1015 {offsets = [9, 0], sizes = [1, 14], strides = [1, 1]} : vector<14x14xf32> to vector<1x14xf32>
    %1296 = vector.shape_cast %1295 : vector<1x14xf32> to vector<14xf32>
    %1297 = vector.shape_cast %1296 : vector<14xf32> to vector<1x1x14xf32>
    %1298 = vector.broadcast %1294 : vector<1x8x1xf32> to vector<1x8x14xf32>
    %1299 = vector.broadcast %1297 : vector<1x1x14xf32> to vector<1x8x14xf32>
    %1300 = arith.mulf %1298, %1299 : vector<1x8x14xf32>
    %1301 = arith.addf %1293, %1300 : vector<1x8x14xf32>
    %1302 = vector.extract_strided_slice %1009 {offsets = [0, 0, 10], sizes = [1, 8, 1], strides = [1, 1, 1]} : vector<1x8x14xf32> to vector<1x8x1xf32>
    %1303 = vector.shape_cast %1302 : vector<1x8x1xf32> to vector<1x8xf32>
    %1304 = vector.shape_cast %1303 : vector<1x8xf32> to vector<1x8x1xf32>
    %1305 = vector.extract_strided_slice %1011 {offsets = [0, 0, 10], sizes = [1, 8, 1], strides = [1, 1, 1]} : vector<1x8x14xf32> to vector<1x8x1xf32>
    %1306 = vector.shape_cast %1305 : vector<1x8x1xf32> to vector<1x8xf32>
    %1307 = vector.shape_cast %1306 : vector<1x8xf32> to vector<1x1x8xf32>
    %1308 = vector.broadcast %1304 : vector<1x8x1xf32> to vector<1x8x8xf32>
    %1309 = vector.broadcast %1307 : vector<1x1x8xf32> to vector<1x8x8xf32>
    %1310 = arith.mulf %1308, %1309 : vector<1x8x8xf32>
    %1311 = vector.extract_strided_slice %1009 {offsets = [0, 0, 11], sizes = [1, 8, 1], strides = [1, 1, 1]} : vector<1x8x14xf32> to vector<1x8x1xf32>
    %1312 = vector.shape_cast %1311 : vector<1x8x1xf32> to vector<1x8xf32>
    %1313 = vector.shape_cast %1312 : vector<1x8xf32> to vector<1x8x1xf32>
    %1314 = vector.extract_strided_slice %1011 {offsets = [0, 0, 11], sizes = [1, 8, 1], strides = [1, 1, 1]} : vector<1x8x14xf32> to vector<1x8x1xf32>
    %1315 = vector.shape_cast %1314 : vector<1x8x1xf32> to vector<1x8xf32>
    %1316 = vector.shape_cast %1315 : vector<1x8xf32> to vector<1x1x8xf32>
    %1317 = vector.broadcast %1313 : vector<1x8x1xf32> to vector<1x8x8xf32>
    %1318 = vector.broadcast %1316 : vector<1x1x8xf32> to vector<1x8x8xf32>
    %1319 = arith.mulf %1317, %1318 : vector<1x8x8xf32>
    %1320 = arith.addf %1310, %1319 : vector<1x8x8xf32>
    %cst_174 = arith.constant dense<0xFF800000> : vector<1x8xf32>
    %1321 = vector.multi_reduction <maximumf>, %1320, %cst_174 [2] : vector<1x8x8xf32> to vector<1x8xf32>
    %1322 = vector.shape_cast %1321 : vector<1x8xf32> to vector<1x8x1xf32>
    %1323 = vector.broadcast %1322 : vector<1x8x1xf32> to vector<1x8x8xf32>
    %1324 = arith.subf %1320, %1323 : vector<1x8x8xf32>
    %1325 = math.exp %1324 : vector<1x8x8xf32>
    %cst_175 = arith.constant dense<0.000000e+00> : vector<1x8xf32>
    %1326 = vector.multi_reduction <add>, %1325, %cst_175 [2] : vector<1x8x8xf32> to vector<1x8xf32>
    %1327 = vector.shape_cast %1326 : vector<1x8xf32> to vector<1x8x1xf32>
    %1328 = tpu.reciprocal %1327 {approx = true} : vector<1x8x1xf32> -> vector<1x8x1xf32>
    %1329 = vector.broadcast %1328 : vector<1x8x1xf32> to vector<1x8x8xf32>
    %1330 = arith.mulf %1325, %1329 : vector<1x8x8xf32>
    %1331 = vector.extract_strided_slice %1013 {offsets = [0, 0, 10], sizes = [1, 8, 1], strides = [1, 1, 1]} : vector<1x8x14xf32> to vector<1x8x1xf32>
    %1332 = vector.shape_cast %1331 : vector<1x8x1xf32> to vector<1x8xf32>
    %1333 = vector.shape_cast %1332 : vector<1x8xf32> to vector<1x1x8xf32>
    %1334 = vector.broadcast %1333 : vector<1x1x8xf32> to vector<1x8x8xf32>
    %1335 = arith.mulf %1330, %1334 : vector<1x8x8xf32>
    %cst_176 = arith.constant dense<0.000000e+00> : vector<1x8xf32>
    %1336 = vector.multi_reduction <add>, %1335, %cst_176 [2] : vector<1x8x8xf32> to vector<1x8xf32>
    %1337 = vector.extract_strided_slice %1013 {offsets = [0, 0, 11], sizes = [1, 8, 1], strides = [1, 1, 1]} : vector<1x8x14xf32> to vector<1x8x1xf32>
    %1338 = vector.shape_cast %1337 : vector<1x8x1xf32> to vector<1x8xf32>
    %1339 = vector.shape_cast %1338 : vector<1x8xf32> to vector<1x1x8xf32>
    %1340 = vector.broadcast %1339 : vector<1x1x8xf32> to vector<1x8x8xf32>
    %1341 = arith.mulf %1330, %1340 : vector<1x8x8xf32>
    %cst_177 = arith.constant dense<0.000000e+00> : vector<1x8xf32>
    %1342 = vector.multi_reduction <add>, %1341, %cst_177 [2] : vector<1x8x8xf32> to vector<1x8xf32>
    %1343 = vector.shape_cast %1336 : vector<1x8xf32> to vector<1x8x1xf32>
    %1344 = vector.extract_strided_slice %1015 {offsets = [10, 0], sizes = [1, 14], strides = [1, 1]} : vector<14x14xf32> to vector<1x14xf32>
    %1345 = vector.shape_cast %1344 : vector<1x14xf32> to vector<14xf32>
    %1346 = vector.shape_cast %1345 : vector<14xf32> to vector<1x1x14xf32>
    %1347 = vector.broadcast %1343 : vector<1x8x1xf32> to vector<1x8x14xf32>
    %1348 = vector.broadcast %1346 : vector<1x1x14xf32> to vector<1x8x14xf32>
    %1349 = arith.mulf %1347, %1348 : vector<1x8x14xf32>
    %1350 = arith.addf %1301, %1349 : vector<1x8x14xf32>
    %1351 = vector.shape_cast %1342 : vector<1x8xf32> to vector<1x8x1xf32>
    %1352 = vector.extract_strided_slice %1015 {offsets = [11, 0], sizes = [1, 14], strides = [1, 1]} : vector<14x14xf32> to vector<1x14xf32>
    %1353 = vector.shape_cast %1352 : vector<1x14xf32> to vector<14xf32>
    %1354 = vector.shape_cast %1353 : vector<14xf32> to vector<1x1x14xf32>
    %1355 = vector.broadcast %1351 : vector<1x8x1xf32> to vector<1x8x14xf32>
    %1356 = vector.broadcast %1354 : vector<1x1x14xf32> to vector<1x8x14xf32>
    %1357 = arith.mulf %1355, %1356 : vector<1x8x14xf32>
    %1358 = arith.addf %1350, %1357 : vector<1x8x14xf32>
    %1359 = vector.extract_strided_slice %1009 {offsets = [0, 0, 12], sizes = [1, 8, 1], strides = [1, 1, 1]} : vector<1x8x14xf32> to vector<1x8x1xf32>
    %1360 = vector.shape_cast %1359 : vector<1x8x1xf32> to vector<1x8xf32>
    %1361 = vector.shape_cast %1360 : vector<1x8xf32> to vector<1x8x1xf32>
    %1362 = vector.extract_strided_slice %1011 {offsets = [0, 0, 12], sizes = [1, 8, 1], strides = [1, 1, 1]} : vector<1x8x14xf32> to vector<1x8x1xf32>
    %1363 = vector.shape_cast %1362 : vector<1x8x1xf32> to vector<1x8xf32>
    %1364 = vector.shape_cast %1363 : vector<1x8xf32> to vector<1x1x8xf32>
    %1365 = vector.broadcast %1361 : vector<1x8x1xf32> to vector<1x8x8xf32>
    %1366 = vector.broadcast %1364 : vector<1x1x8xf32> to vector<1x8x8xf32>
    %1367 = arith.mulf %1365, %1366 : vector<1x8x8xf32>
    %1368 = vector.extract_strided_slice %1009 {offsets = [0, 0, 13], sizes = [1, 8, 1], strides = [1, 1, 1]} : vector<1x8x14xf32> to vector<1x8x1xf32>
    %1369 = vector.shape_cast %1368 : vector<1x8x1xf32> to vector<1x8xf32>
    %1370 = vector.shape_cast %1369 : vector<1x8xf32> to vector<1x8x1xf32>
    %1371 = vector.extract_strided_slice %1011 {offsets = [0, 0, 13], sizes = [1, 8, 1], strides = [1, 1, 1]} : vector<1x8x14xf32> to vector<1x8x1xf32>
    %1372 = vector.shape_cast %1371 : vector<1x8x1xf32> to vector<1x8xf32>
    %1373 = vector.shape_cast %1372 : vector<1x8xf32> to vector<1x1x8xf32>
    %1374 = vector.broadcast %1370 : vector<1x8x1xf32> to vector<1x8x8xf32>
    %1375 = vector.broadcast %1373 : vector<1x1x8xf32> to vector<1x8x8xf32>
    %1376 = arith.mulf %1374, %1375 : vector<1x8x8xf32>
    %1377 = arith.addf %1367, %1376 : vector<1x8x8xf32>
    %cst_178 = arith.constant dense<0xFF800000> : vector<1x8xf32>
    %1378 = vector.multi_reduction <maximumf>, %1377, %cst_178 [2] : vector<1x8x8xf32> to vector<1x8xf32>
    %1379 = vector.shape_cast %1378 : vector<1x8xf32> to vector<1x8x1xf32>
    %1380 = vector.broadcast %1379 : vector<1x8x1xf32> to vector<1x8x8xf32>
    %1381 = arith.subf %1377, %1380 : vector<1x8x8xf32>
    %1382 = math.exp %1381 : vector<1x8x8xf32>
    %cst_179 = arith.constant dense<0.000000e+00> : vector<1x8xf32>
    %1383 = vector.multi_reduction <add>, %1382, %cst_179 [2] : vector<1x8x8xf32> to vector<1x8xf32>
    %1384 = vector.shape_cast %1383 : vector<1x8xf32> to vector<1x8x1xf32>
    %1385 = tpu.reciprocal %1384 {approx = true} : vector<1x8x1xf32> -> vector<1x8x1xf32>
    %1386 = vector.broadcast %1385 : vector<1x8x1xf32> to vector<1x8x8xf32>
    %1387 = arith.mulf %1382, %1386 : vector<1x8x8xf32>
    %1388 = vector.extract_strided_slice %1013 {offsets = [0, 0, 12], sizes = [1, 8, 1], strides = [1, 1, 1]} : vector<1x8x14xf32> to vector<1x8x1xf32>
    %1389 = vector.shape_cast %1388 : vector<1x8x1xf32> to vector<1x8xf32>
    %1390 = vector.shape_cast %1389 : vector<1x8xf32> to vector<1x1x8xf32>
    %1391 = vector.broadcast %1390 : vector<1x1x8xf32> to vector<1x8x8xf32>
    %1392 = arith.mulf %1387, %1391 : vector<1x8x8xf32>
    %cst_180 = arith.constant dense<0.000000e+00> : vector<1x8xf32>
    %1393 = vector.multi_reduction <add>, %1392, %cst_180 [2] : vector<1x8x8xf32> to vector<1x8xf32>
    %1394 = vector.extract_strided_slice %1013 {offsets = [0, 0, 13], sizes = [1, 8, 1], strides = [1, 1, 1]} : vector<1x8x14xf32> to vector<1x8x1xf32>
    %1395 = vector.shape_cast %1394 : vector<1x8x1xf32> to vector<1x8xf32>
    %1396 = vector.shape_cast %1395 : vector<1x8xf32> to vector<1x1x8xf32>
    %1397 = vector.broadcast %1396 : vector<1x1x8xf32> to vector<1x8x8xf32>
    %1398 = arith.mulf %1387, %1397 : vector<1x8x8xf32>
    %cst_181 = arith.constant dense<0.000000e+00> : vector<1x8xf32>
    %1399 = vector.multi_reduction <add>, %1398, %cst_181 [2] : vector<1x8x8xf32> to vector<1x8xf32>
    %1400 = vector.shape_cast %1393 : vector<1x8xf32> to vector<1x8x1xf32>
    %1401 = vector.extract_strided_slice %1015 {offsets = [12, 0], sizes = [1, 14], strides = [1, 1]} : vector<14x14xf32> to vector<1x14xf32>
    %1402 = vector.shape_cast %1401 : vector<1x14xf32> to vector<14xf32>
    %1403 = vector.shape_cast %1402 : vector<14xf32> to vector<1x1x14xf32>
    %1404 = vector.broadcast %1400 : vector<1x8x1xf32> to vector<1x8x14xf32>
    %1405 = vector.broadcast %1403 : vector<1x1x14xf32> to vector<1x8x14xf32>
    %1406 = arith.mulf %1404, %1405 : vector<1x8x14xf32>
    %1407 = arith.addf %1358, %1406 : vector<1x8x14xf32>
    %1408 = vector.shape_cast %1399 : vector<1x8xf32> to vector<1x8x1xf32>
    %1409 = vector.extract_strided_slice %1015 {offsets = [13, 0], sizes = [1, 14], strides = [1, 1]} : vector<14x14xf32> to vector<1x14xf32>
    %1410 = vector.shape_cast %1409 : vector<1x14xf32> to vector<14xf32>
    %1411 = vector.shape_cast %1410 : vector<14xf32> to vector<1x1x14xf32>
    %1412 = vector.broadcast %1408 : vector<1x8x1xf32> to vector<1x8x14xf32>
    %1413 = vector.broadcast %1411 : vector<1x1x14xf32> to vector<1x8x14xf32>
    %1414 = arith.mulf %1412, %1413 : vector<1x8x14xf32>
    %1415 = arith.addf %1407, %1414 : vector<1x8x14xf32>
    %1416 = vector.shape_cast %1415 : vector<1x8x14xf32> to vector<8x14xf32>
    %c2_182 = arith.constant 2 : index
    %c0_183 = arith.constant 0 : index
    %1417 = vector.load %arg5[%c2_182, %c0_183] : memref<4x14xf32, #tpu.memory_space<vmem>>, vector<1x14xf32>
    %1418 = vector.shape_cast %1417 : vector<1x14xf32> to vector<14xf32>
    %1419 = vector.shape_cast %1418 : vector<14xf32> to vector<1x14xf32>
    %1420 = vector.broadcast %1419 : vector<1x14xf32> to vector<8x14xf32>
    %1421 = arith.addf %1416, %1420 : vector<8x14xf32>
    %1422 = arith.addf %997, %1421 : vector<8x14xf32>
    %c2_184 = arith.constant 2 : index
    %c0_185 = arith.constant 0 : index
    %1423 = vector.load %arg6[%c2_184, %c0_185] : memref<4x14xf32, #tpu.memory_space<vmem>>, vector<1x14xf32>
    %1424 = vector.shape_cast %1423 : vector<1x14xf32> to vector<14xf32>
    %c2_186 = arith.constant 2 : index
    %c0_187 = arith.constant 0 : index
    %1425 = vector.load %arg7[%c2_186, %c0_187] : memref<4x14xf32, #tpu.memory_space<vmem>>, vector<1x14xf32>
    %1426 = vector.shape_cast %1425 : vector<1x14xf32> to vector<14xf32>
    %cst_188 = arith.constant dense<0.000000e+00> : vector<8xf32>
    %1427 = vector.multi_reduction <add>, %1422, %cst_188 [1] : vector<8x14xf32> to vector<8xf32>
    %1428 = vector.shape_cast %1427 : vector<8xf32> to vector<8x1xf32>
    %cst_189 = arith.constant 1.400000e+01 : f32
    %1429 = vector.broadcast %cst_189 : f32 to vector<8x1xf32>
    %1430 = arith.divf %1428, %1429 : vector<8x1xf32>
    %1431 = vector.broadcast %1430 : vector<8x1xf32> to vector<8x14xf32>
    %1432 = arith.subf %1422, %1431 : vector<8x14xf32>
    %1433 = arith.mulf %1432, %1432 : vector<8x14xf32>
    %cst_190 = arith.constant dense<0.000000e+00> : vector<8xf32>
    %1434 = vector.multi_reduction <add>, %1433, %cst_190 [1] : vector<8x14xf32> to vector<8xf32>
    %1435 = vector.shape_cast %1434 : vector<8xf32> to vector<8x1xf32>
    %cst_191 = arith.constant 1.400000e+01 : f32
    %1436 = vector.broadcast %cst_191 : f32 to vector<8x1xf32>
    %1437 = arith.divf %1435, %1436 : vector<8x1xf32>
    %cst_192 = arith.constant 9.99999974E-6 : f32
    %1438 = vector.broadcast %cst_192 : f32 to vector<8x1xf32>
    %1439 = arith.addf %1437, %1438 : vector<8x1xf32>
    %1440 = math.rsqrt %1439 : vector<8x1xf32>
    %1441 = vector.broadcast %1440 : vector<8x1xf32> to vector<8x14xf32>
    %1442 = arith.mulf %1432, %1441 : vector<8x14xf32>
    %1443 = vector.shape_cast %1424 : vector<14xf32> to vector<1x14xf32>
    %1444 = vector.broadcast %1443 : vector<1x14xf32> to vector<8x14xf32>
    %1445 = arith.mulf %1442, %1444 : vector<8x14xf32>
    %1446 = vector.shape_cast %1426 : vector<14xf32> to vector<1x14xf32>
    %1447 = vector.broadcast %1446 : vector<1x14xf32> to vector<8x14xf32>
    %1448 = arith.addf %1445, %1447 : vector<8x14xf32>
    %1449 = arith.truncf %1448 : vector<8x14xf32> to vector<8x14xbf16>
    %c2_193 = arith.constant 2 : index
    %c0_194 = arith.constant 0 : index
    %c0_195 = arith.constant 0 : index
    %1450 = vector.load %arg10[%c2_193, %c0_194, %c0_195] : memref<4x14x2048xbf16, #tpu.memory_space<vmem>>, vector<1x14x2048xbf16>
    %1451 = vector.shape_cast %1450 : vector<1x14x2048xbf16> to vector<14x2048xbf16>
    %cst_196 = arith.constant dense<0.000000e+00> : vector<8x2048xf32>
    %1452 = tpu.matmul %1449, %1451, %cst_196 {dimension_numbers = #tpu.dot_dimension_numbers<[1], [0], [0], [1], [0, 0, 1, 1], [], []>} : vector<8x14xbf16>, vector<14x2048xbf16>, vector<8x2048xf32> -> vector<8x2048xf32>
    %c2_197 = arith.constant 2 : index
    %c0_198 = arith.constant 0 : index
    %1453 = vector.load %arg11[%c2_197, %c0_198] : memref<4x2048xf32, #tpu.memory_space<vmem>>, vector<1x2048xf32>
    %1454 = vector.shape_cast %1453 : vector<1x2048xf32> to vector<2048xf32>
    %1455 = vector.shape_cast %1454 : vector<2048xf32> to vector<1x2048xf32>
    %1456 = vector.broadcast %1455 : vector<1x2048xf32> to vector<8x2048xf32>
    %1457 = arith.addf %1452, %1456 : vector<8x2048xf32>
    %cst_199 = arith.constant 0.000000e+00 : f32
    %1458 = vector.broadcast %cst_199 : f32 to vector<8x2048xf32>
    %1459 = arith.maximumf %1457, %1458 : vector<8x2048xf32>
    %1460 = arith.truncf %1459 : vector<8x2048xf32> to vector<8x2048xbf16>
    %c2_200 = arith.constant 2 : index
    %c0_201 = arith.constant 0 : index
    %c0_202 = arith.constant 0 : index
    %1461 = vector.load %arg12[%c2_200, %c0_201, %c0_202] : memref<4x14x2048xbf16, #tpu.memory_space<vmem>>, vector<1x14x2048xbf16>
    %1462 = vector.shape_cast %1461 : vector<1x14x2048xbf16> to vector<14x2048xbf16>
    %cst_203 = arith.constant dense<0.000000e+00> : vector<8x14xf32>
    %1463 = tpu.matmul %1460, %1462, %cst_203 {dimension_numbers = #tpu.dot_dimension_numbers<[1], [1], [0], [0], [0, 0, 1, 0], [], []>} : vector<8x2048xbf16>, vector<14x2048xbf16>, vector<8x14xf32> -> vector<8x14xf32>
    %c2_204 = arith.constant 2 : index
    %c0_205 = arith.constant 0 : index
    %1464 = vector.load %arg13[%c2_204, %c0_205] : memref<4x14xf32, #tpu.memory_space<vmem>>, vector<1x14xf32>
    %1465 = vector.shape_cast %1464 : vector<1x14xf32> to vector<14xf32>
    %1466 = vector.shape_cast %1465 : vector<14xf32> to vector<1x14xf32>
    %1467 = vector.broadcast %1466 : vector<1x14xf32> to vector<8x14xf32>
    %1468 = arith.addf %1463, %1467 : vector<8x14xf32>
    %1469 = arith.addf %1448, %1468 : vector<8x14xf32>
    %c2_206 = arith.constant 2 : index
    %c0_207 = arith.constant 0 : index
    %1470 = vector.load %arg8[%c2_206, %c0_207] : memref<4x14xf32, #tpu.memory_space<vmem>>, vector<1x14xf32>
    %1471 = vector.shape_cast %1470 : vector<1x14xf32> to vector<14xf32>
    %c2_208 = arith.constant 2 : index
    %c0_209 = arith.constant 0 : index
    %1472 = vector.load %arg9[%c2_208, %c0_209] : memref<4x14xf32, #tpu.memory_space<vmem>>, vector<1x14xf32>
    %1473 = vector.shape_cast %1472 : vector<1x14xf32> to vector<14xf32>
    %cst_210 = arith.constant dense<0.000000e+00> : vector<8xf32>
    %1474 = vector.multi_reduction <add>, %1469, %cst_210 [1] : vector<8x14xf32> to vector<8xf32>
    %1475 = vector.shape_cast %1474 : vector<8xf32> to vector<8x1xf32>
    %cst_211 = arith.constant 1.400000e+01 : f32
    %1476 = vector.broadcast %cst_211 : f32 to vector<8x1xf32>
    %1477 = arith.divf %1475, %1476 : vector<8x1xf32>
    %1478 = vector.broadcast %1477 : vector<8x1xf32> to vector<8x14xf32>
    %1479 = arith.subf %1469, %1478 : vector<8x14xf32>
    %1480 = arith.mulf %1479, %1479 : vector<8x14xf32>
    %cst_212 = arith.constant dense<0.000000e+00> : vector<8xf32>
    %1481 = vector.multi_reduction <add>, %1480, %cst_212 [1] : vector<8x14xf32> to vector<8xf32>
    %1482 = vector.shape_cast %1481 : vector<8xf32> to vector<8x1xf32>
    %cst_213 = arith.constant 1.400000e+01 : f32
    %1483 = vector.broadcast %cst_213 : f32 to vector<8x1xf32>
    %1484 = arith.divf %1482, %1483 : vector<8x1xf32>
    %cst_214 = arith.constant 9.99999974E-6 : f32
    %1485 = vector.broadcast %cst_214 : f32 to vector<8x1xf32>
    %1486 = arith.addf %1484, %1485 : vector<8x1xf32>
    %1487 = math.rsqrt %1486 : vector<8x1xf32>
    %1488 = vector.broadcast %1487 : vector<8x1xf32> to vector<8x14xf32>
    %1489 = arith.mulf %1479, %1488 : vector<8x14xf32>
    %1490 = vector.shape_cast %1471 : vector<14xf32> to vector<1x14xf32>
    %1491 = vector.broadcast %1490 : vector<1x14xf32> to vector<8x14xf32>
    %1492 = arith.mulf %1489, %1491 : vector<8x14xf32>
    %1493 = vector.shape_cast %1473 : vector<14xf32> to vector<1x14xf32>
    %1494 = vector.broadcast %1493 : vector<1x14xf32> to vector<8x14xf32>
    %1495 = arith.addf %1492, %1494 : vector<8x14xf32>
    %c3 = arith.constant 3 : index
    %c0_215 = arith.constant 0 : index
    %c0_216 = arith.constant 0 : index
    %1496 = vector.load %arg2[%c3, %c0_215, %c0_216] : memref<4x14x42xf32, #tpu.memory_space<vmem>>, vector<1x14x42xf32>
    %1497 = vector.shape_cast %1496 : vector<1x14x42xf32> to vector<14x42xf32>
    %cst_217 = arith.constant dense<0.000000e+00> : vector<8x42xf32>
    %1498 = tpu.matmul %1495, %1497, %cst_217 {dimension_numbers = #tpu.dot_dimension_numbers<[1], [0], [0], [1], [0, 0, 1, 1], [], []>} : vector<8x14xf32>, vector<14x42xf32>, vector<8x42xf32> -> vector<8x42xf32>
    %c3_218 = arith.constant 3 : index
    %c0_219 = arith.constant 0 : index
    %1499 = vector.load %arg3[%c3_218, %c0_219] : memref<4x42xf32, #tpu.memory_space<vmem>>, vector<1x42xf32>
    %1500 = vector.shape_cast %1499 : vector<1x42xf32> to vector<42xf32>
    %1501 = vector.shape_cast %1500 : vector<42xf32> to vector<1x42xf32>
    %1502 = vector.broadcast %1501 : vector<1x42xf32> to vector<8x42xf32>
    %1503 = arith.addf %1498, %1502 : vector<8x42xf32>
    %1504 = vector.extract_strided_slice %1503 {offsets = [0, 0], sizes = [8, 14], strides = [1, 1]} : vector<8x42xf32> to vector<8x14xf32>
    %cst_220 = arith.constant 0.707106769 : f32
    %1505 = vector.broadcast %cst_220 : f32 to vector<8x14xf32>
    %1506 = arith.mulf %1504, %1505 : vector<8x14xf32>
    %1507 = vector.shape_cast %1506 : vector<8x14xf32> to vector<1x8x14xf32>
    %1508 = vector.extract_strided_slice %1503 {offsets = [0, 14], sizes = [8, 14], strides = [1, 1]} : vector<8x42xf32> to vector<8x14xf32>
    %1509 = vector.shape_cast %1508 : vector<8x14xf32> to vector<1x8x14xf32>
    %1510 = vector.extract_strided_slice %1503 {offsets = [0, 28], sizes = [8, 14], strides = [1, 1]} : vector<8x42xf32> to vector<8x14xf32>
    %1511 = vector.shape_cast %1510 : vector<8x14xf32> to vector<1x8x14xf32>
    %c3_221 = arith.constant 3 : index
    %c0_222 = arith.constant 0 : index
    %c0_223 = arith.constant 0 : index
    %1512 = vector.load %arg4[%c3_221, %c0_222, %c0_223] : memref<4x14x14xf32, #tpu.memory_space<vmem>>, vector<1x14x14xf32>
    %1513 = vector.shape_cast %1512 : vector<1x14x14xf32> to vector<14x14xf32>
    %cst_224 = arith.constant 0.000000e+00 : f32
    %1514 = vector.broadcast %cst_224 : f32 to vector<1x8x14xf32>
    %1515 = vector.extract_strided_slice %1507 {offsets = [0, 0, 0], sizes = [1, 8, 1], strides = [1, 1, 1]} : vector<1x8x14xf32> to vector<1x8x1xf32>
    %1516 = vector.shape_cast %1515 : vector<1x8x1xf32> to vector<1x8xf32>
    %1517 = vector.shape_cast %1516 : vector<1x8xf32> to vector<1x8x1xf32>
    %1518 = vector.extract_strided_slice %1509 {offsets = [0, 0, 0], sizes = [1, 8, 1], strides = [1, 1, 1]} : vector<1x8x14xf32> to vector<1x8x1xf32>
    %1519 = vector.shape_cast %1518 : vector<1x8x1xf32> to vector<1x8xf32>
    %1520 = vector.shape_cast %1519 : vector<1x8xf32> to vector<1x1x8xf32>
    %1521 = vector.broadcast %1517 : vector<1x8x1xf32> to vector<1x8x8xf32>
    %1522 = vector.broadcast %1520 : vector<1x1x8xf32> to vector<1x8x8xf32>
    %1523 = arith.mulf %1521, %1522 : vector<1x8x8xf32>
    %1524 = vector.extract_strided_slice %1507 {offsets = [0, 0, 1], sizes = [1, 8, 1], strides = [1, 1, 1]} : vector<1x8x14xf32> to vector<1x8x1xf32>
    %1525 = vector.shape_cast %1524 : vector<1x8x1xf32> to vector<1x8xf32>
    %1526 = vector.shape_cast %1525 : vector<1x8xf32> to vector<1x8x1xf32>
    %1527 = vector.extract_strided_slice %1509 {offsets = [0, 0, 1], sizes = [1, 8, 1], strides = [1, 1, 1]} : vector<1x8x14xf32> to vector<1x8x1xf32>
    %1528 = vector.shape_cast %1527 : vector<1x8x1xf32> to vector<1x8xf32>
    %1529 = vector.shape_cast %1528 : vector<1x8xf32> to vector<1x1x8xf32>
    %1530 = vector.broadcast %1526 : vector<1x8x1xf32> to vector<1x8x8xf32>
    %1531 = vector.broadcast %1529 : vector<1x1x8xf32> to vector<1x8x8xf32>
    %1532 = arith.mulf %1530, %1531 : vector<1x8x8xf32>
    %1533 = arith.addf %1523, %1532 : vector<1x8x8xf32>
    %cst_225 = arith.constant dense<0xFF800000> : vector<1x8xf32>
    %1534 = vector.multi_reduction <maximumf>, %1533, %cst_225 [2] : vector<1x8x8xf32> to vector<1x8xf32>
    %1535 = vector.shape_cast %1534 : vector<1x8xf32> to vector<1x8x1xf32>
    %1536 = vector.broadcast %1535 : vector<1x8x1xf32> to vector<1x8x8xf32>
    %1537 = arith.subf %1533, %1536 : vector<1x8x8xf32>
    %1538 = math.exp %1537 : vector<1x8x8xf32>
    %cst_226 = arith.constant dense<0.000000e+00> : vector<1x8xf32>
    %1539 = vector.multi_reduction <add>, %1538, %cst_226 [2] : vector<1x8x8xf32> to vector<1x8xf32>
    %1540 = vector.shape_cast %1539 : vector<1x8xf32> to vector<1x8x1xf32>
    %1541 = tpu.reciprocal %1540 {approx = true} : vector<1x8x1xf32> -> vector<1x8x1xf32>
    %1542 = vector.broadcast %1541 : vector<1x8x1xf32> to vector<1x8x8xf32>
    %1543 = arith.mulf %1538, %1542 : vector<1x8x8xf32>
    %1544 = vector.extract_strided_slice %1511 {offsets = [0, 0, 0], sizes = [1, 8, 1], strides = [1, 1, 1]} : vector<1x8x14xf32> to vector<1x8x1xf32>
    %1545 = vector.shape_cast %1544 : vector<1x8x1xf32> to vector<1x8xf32>
    %1546 = vector.shape_cast %1545 : vector<1x8xf32> to vector<1x1x8xf32>
    %1547 = vector.broadcast %1546 : vector<1x1x8xf32> to vector<1x8x8xf32>
    %1548 = arith.mulf %1543, %1547 : vector<1x8x8xf32>
    %cst_227 = arith.constant dense<0.000000e+00> : vector<1x8xf32>
    %1549 = vector.multi_reduction <add>, %1548, %cst_227 [2] : vector<1x8x8xf32> to vector<1x8xf32>
    %1550 = vector.extract_strided_slice %1511 {offsets = [0, 0, 1], sizes = [1, 8, 1], strides = [1, 1, 1]} : vector<1x8x14xf32> to vector<1x8x1xf32>
    %1551 = vector.shape_cast %1550 : vector<1x8x1xf32> to vector<1x8xf32>
    %1552 = vector.shape_cast %1551 : vector<1x8xf32> to vector<1x1x8xf32>
    %1553 = vector.broadcast %1552 : vector<1x1x8xf32> to vector<1x8x8xf32>
    %1554 = arith.mulf %1543, %1553 : vector<1x8x8xf32>
    %cst_228 = arith.constant dense<0.000000e+00> : vector<1x8xf32>
    %1555 = vector.multi_reduction <add>, %1554, %cst_228 [2] : vector<1x8x8xf32> to vector<1x8xf32>
    %1556 = vector.shape_cast %1549 : vector<1x8xf32> to vector<1x8x1xf32>
    %1557 = vector.extract_strided_slice %1513 {offsets = [0, 0], sizes = [1, 14], strides = [1, 1]} : vector<14x14xf32> to vector<1x14xf32>
    %1558 = vector.shape_cast %1557 : vector<1x14xf32> to vector<14xf32>
    %1559 = vector.shape_cast %1558 : vector<14xf32> to vector<1x1x14xf32>
    %1560 = vector.broadcast %1556 : vector<1x8x1xf32> to vector<1x8x14xf32>
    %1561 = vector.broadcast %1559 : vector<1x1x14xf32> to vector<1x8x14xf32>
    %1562 = arith.mulf %1560, %1561 : vector<1x8x14xf32>
    %1563 = arith.addf %1514, %1562 : vector<1x8x14xf32>
    %1564 = vector.shape_cast %1555 : vector<1x8xf32> to vector<1x8x1xf32>
    %1565 = vector.extract_strided_slice %1513 {offsets = [1, 0], sizes = [1, 14], strides = [1, 1]} : vector<14x14xf32> to vector<1x14xf32>
    %1566 = vector.shape_cast %1565 : vector<1x14xf32> to vector<14xf32>
    %1567 = vector.shape_cast %1566 : vector<14xf32> to vector<1x1x14xf32>
    %1568 = vector.broadcast %1564 : vector<1x8x1xf32> to vector<1x8x14xf32>
    %1569 = vector.broadcast %1567 : vector<1x1x14xf32> to vector<1x8x14xf32>
    %1570 = arith.mulf %1568, %1569 : vector<1x8x14xf32>
    %1571 = arith.addf %1563, %1570 : vector<1x8x14xf32>
    %1572 = vector.extract_strided_slice %1507 {offsets = [0, 0, 2], sizes = [1, 8, 1], strides = [1, 1, 1]} : vector<1x8x14xf32> to vector<1x8x1xf32>
    %1573 = vector.shape_cast %1572 : vector<1x8x1xf32> to vector<1x8xf32>
    %1574 = vector.shape_cast %1573 : vector<1x8xf32> to vector<1x8x1xf32>
    %1575 = vector.extract_strided_slice %1509 {offsets = [0, 0, 2], sizes = [1, 8, 1], strides = [1, 1, 1]} : vector<1x8x14xf32> to vector<1x8x1xf32>
    %1576 = vector.shape_cast %1575 : vector<1x8x1xf32> to vector<1x8xf32>
    %1577 = vector.shape_cast %1576 : vector<1x8xf32> to vector<1x1x8xf32>
    %1578 = vector.broadcast %1574 : vector<1x8x1xf32> to vector<1x8x8xf32>
    %1579 = vector.broadcast %1577 : vector<1x1x8xf32> to vector<1x8x8xf32>
    %1580 = arith.mulf %1578, %1579 : vector<1x8x8xf32>
    %1581 = vector.extract_strided_slice %1507 {offsets = [0, 0, 3], sizes = [1, 8, 1], strides = [1, 1, 1]} : vector<1x8x14xf32> to vector<1x8x1xf32>
    %1582 = vector.shape_cast %1581 : vector<1x8x1xf32> to vector<1x8xf32>
    %1583 = vector.shape_cast %1582 : vector<1x8xf32> to vector<1x8x1xf32>
    %1584 = vector.extract_strided_slice %1509 {offsets = [0, 0, 3], sizes = [1, 8, 1], strides = [1, 1, 1]} : vector<1x8x14xf32> to vector<1x8x1xf32>
    %1585 = vector.shape_cast %1584 : vector<1x8x1xf32> to vector<1x8xf32>
    %1586 = vector.shape_cast %1585 : vector<1x8xf32> to vector<1x1x8xf32>
    %1587 = vector.broadcast %1583 : vector<1x8x1xf32> to vector<1x8x8xf32>
    %1588 = vector.broadcast %1586 : vector<1x1x8xf32> to vector<1x8x8xf32>
    %1589 = arith.mulf %1587, %1588 : vector<1x8x8xf32>
    %1590 = arith.addf %1580, %1589 : vector<1x8x8xf32>
    %cst_229 = arith.constant dense<0xFF800000> : vector<1x8xf32>
    %1591 = vector.multi_reduction <maximumf>, %1590, %cst_229 [2] : vector<1x8x8xf32> to vector<1x8xf32>
    %1592 = vector.shape_cast %1591 : vector<1x8xf32> to vector<1x8x1xf32>
    %1593 = vector.broadcast %1592 : vector<1x8x1xf32> to vector<1x8x8xf32>
    %1594 = arith.subf %1590, %1593 : vector<1x8x8xf32>
    %1595 = math.exp %1594 : vector<1x8x8xf32>
    %cst_230 = arith.constant dense<0.000000e+00> : vector<1x8xf32>
    %1596 = vector.multi_reduction <add>, %1595, %cst_230 [2] : vector<1x8x8xf32> to vector<1x8xf32>
    %1597 = vector.shape_cast %1596 : vector<1x8xf32> to vector<1x8x1xf32>
    %1598 = tpu.reciprocal %1597 {approx = true} : vector<1x8x1xf32> -> vector<1x8x1xf32>
    %1599 = vector.broadcast %1598 : vector<1x8x1xf32> to vector<1x8x8xf32>
    %1600 = arith.mulf %1595, %1599 : vector<1x8x8xf32>
    %1601 = vector.extract_strided_slice %1511 {offsets = [0, 0, 2], sizes = [1, 8, 1], strides = [1, 1, 1]} : vector<1x8x14xf32> to vector<1x8x1xf32>
    %1602 = vector.shape_cast %1601 : vector<1x8x1xf32> to vector<1x8xf32>
    %1603 = vector.shape_cast %1602 : vector<1x8xf32> to vector<1x1x8xf32>
    %1604 = vector.broadcast %1603 : vector<1x1x8xf32> to vector<1x8x8xf32>
    %1605 = arith.mulf %1600, %1604 : vector<1x8x8xf32>
    %cst_231 = arith.constant dense<0.000000e+00> : vector<1x8xf32>
    %1606 = vector.multi_reduction <add>, %1605, %cst_231 [2] : vector<1x8x8xf32> to vector<1x8xf32>
    %1607 = vector.extract_strided_slice %1511 {offsets = [0, 0, 3], sizes = [1, 8, 1], strides = [1, 1, 1]} : vector<1x8x14xf32> to vector<1x8x1xf32>
    %1608 = vector.shape_cast %1607 : vector<1x8x1xf32> to vector<1x8xf32>
    %1609 = vector.shape_cast %1608 : vector<1x8xf32> to vector<1x1x8xf32>
    %1610 = vector.broadcast %1609 : vector<1x1x8xf32> to vector<1x8x8xf32>
    %1611 = arith.mulf %1600, %1610 : vector<1x8x8xf32>
    %cst_232 = arith.constant dense<0.000000e+00> : vector<1x8xf32>
    %1612 = vector.multi_reduction <add>, %1611, %cst_232 [2] : vector<1x8x8xf32> to vector<1x8xf32>
    %1613 = vector.shape_cast %1606 : vector<1x8xf32> to vector<1x8x1xf32>
    %1614 = vector.extract_strided_slice %1513 {offsets = [2, 0], sizes = [1, 14], strides = [1, 1]} : vector<14x14xf32> to vector<1x14xf32>
    %1615 = vector.shape_cast %1614 : vector<1x14xf32> to vector<14xf32>
    %1616 = vector.shape_cast %1615 : vector<14xf32> to vector<1x1x14xf32>
    %1617 = vector.broadcast %1613 : vector<1x8x1xf32> to vector<1x8x14xf32>
    %1618 = vector.broadcast %1616 : vector<1x1x14xf32> to vector<1x8x14xf32>
    %1619 = arith.mulf %1617, %1618 : vector<1x8x14xf32>
    %1620 = arith.addf %1571, %1619 : vector<1x8x14xf32>
    %1621 = vector.shape_cast %1612 : vector<1x8xf32> to vector<1x8x1xf32>
    %1622 = vector.extract_strided_slice %1513 {offsets = [3, 0], sizes = [1, 14], strides = [1, 1]} : vector<14x14xf32> to vector<1x14xf32>
    %1623 = vector.shape_cast %1622 : vector<1x14xf32> to vector<14xf32>
    %1624 = vector.shape_cast %1623 : vector<14xf32> to vector<1x1x14xf32>
    %1625 = vector.broadcast %1621 : vector<1x8x1xf32> to vector<1x8x14xf32>
    %1626 = vector.broadcast %1624 : vector<1x1x14xf32> to vector<1x8x14xf32>
    %1627 = arith.mulf %1625, %1626 : vector<1x8x14xf32>
    %1628 = arith.addf %1620, %1627 : vector<1x8x14xf32>
    %1629 = vector.extract_strided_slice %1507 {offsets = [0, 0, 4], sizes = [1, 8, 1], strides = [1, 1, 1]} : vector<1x8x14xf32> to vector<1x8x1xf32>
    %1630 = vector.shape_cast %1629 : vector<1x8x1xf32> to vector<1x8xf32>
    %1631 = vector.shape_cast %1630 : vector<1x8xf32> to vector<1x8x1xf32>
    %1632 = vector.extract_strided_slice %1509 {offsets = [0, 0, 4], sizes = [1, 8, 1], strides = [1, 1, 1]} : vector<1x8x14xf32> to vector<1x8x1xf32>
    %1633 = vector.shape_cast %1632 : vector<1x8x1xf32> to vector<1x8xf32>
    %1634 = vector.shape_cast %1633 : vector<1x8xf32> to vector<1x1x8xf32>
    %1635 = vector.broadcast %1631 : vector<1x8x1xf32> to vector<1x8x8xf32>
    %1636 = vector.broadcast %1634 : vector<1x1x8xf32> to vector<1x8x8xf32>
    %1637 = arith.mulf %1635, %1636 : vector<1x8x8xf32>
    %1638 = vector.extract_strided_slice %1507 {offsets = [0, 0, 5], sizes = [1, 8, 1], strides = [1, 1, 1]} : vector<1x8x14xf32> to vector<1x8x1xf32>
    %1639 = vector.shape_cast %1638 : vector<1x8x1xf32> to vector<1x8xf32>
    %1640 = vector.shape_cast %1639 : vector<1x8xf32> to vector<1x8x1xf32>
    %1641 = vector.extract_strided_slice %1509 {offsets = [0, 0, 5], sizes = [1, 8, 1], strides = [1, 1, 1]} : vector<1x8x14xf32> to vector<1x8x1xf32>
    %1642 = vector.shape_cast %1641 : vector<1x8x1xf32> to vector<1x8xf32>
    %1643 = vector.shape_cast %1642 : vector<1x8xf32> to vector<1x1x8xf32>
    %1644 = vector.broadcast %1640 : vector<1x8x1xf32> to vector<1x8x8xf32>
    %1645 = vector.broadcast %1643 : vector<1x1x8xf32> to vector<1x8x8xf32>
    %1646 = arith.mulf %1644, %1645 : vector<1x8x8xf32>
    %1647 = arith.addf %1637, %1646 : vector<1x8x8xf32>
    %cst_233 = arith.constant dense<0xFF800000> : vector<1x8xf32>
    %1648 = vector.multi_reduction <maximumf>, %1647, %cst_233 [2] : vector<1x8x8xf32> to vector<1x8xf32>
    %1649 = vector.shape_cast %1648 : vector<1x8xf32> to vector<1x8x1xf32>
    %1650 = vector.broadcast %1649 : vector<1x8x1xf32> to vector<1x8x8xf32>
    %1651 = arith.subf %1647, %1650 : vector<1x8x8xf32>
    %1652 = math.exp %1651 : vector<1x8x8xf32>
    %cst_234 = arith.constant dense<0.000000e+00> : vector<1x8xf32>
    %1653 = vector.multi_reduction <add>, %1652, %cst_234 [2] : vector<1x8x8xf32> to vector<1x8xf32>
    %1654 = vector.shape_cast %1653 : vector<1x8xf32> to vector<1x8x1xf32>
    %1655 = tpu.reciprocal %1654 {approx = true} : vector<1x8x1xf32> -> vector<1x8x1xf32>
    %1656 = vector.broadcast %1655 : vector<1x8x1xf32> to vector<1x8x8xf32>
    %1657 = arith.mulf %1652, %1656 : vector<1x8x8xf32>
    %1658 = vector.extract_strided_slice %1511 {offsets = [0, 0, 4], sizes = [1, 8, 1], strides = [1, 1, 1]} : vector<1x8x14xf32> to vector<1x8x1xf32>
    %1659 = vector.shape_cast %1658 : vector<1x8x1xf32> to vector<1x8xf32>
    %1660 = vector.shape_cast %1659 : vector<1x8xf32> to vector<1x1x8xf32>
    %1661 = vector.broadcast %1660 : vector<1x1x8xf32> to vector<1x8x8xf32>
    %1662 = arith.mulf %1657, %1661 : vector<1x8x8xf32>
    %cst_235 = arith.constant dense<0.000000e+00> : vector<1x8xf32>
    %1663 = vector.multi_reduction <add>, %1662, %cst_235 [2] : vector<1x8x8xf32> to vector<1x8xf32>
    %1664 = vector.extract_strided_slice %1511 {offsets = [0, 0, 5], sizes = [1, 8, 1], strides = [1, 1, 1]} : vector<1x8x14xf32> to vector<1x8x1xf32>
    %1665 = vector.shape_cast %1664 : vector<1x8x1xf32> to vector<1x8xf32>
    %1666 = vector.shape_cast %1665 : vector<1x8xf32> to vector<1x1x8xf32>
    %1667 = vector.broadcast %1666 : vector<1x1x8xf32> to vector<1x8x8xf32>
    %1668 = arith.mulf %1657, %1667 : vector<1x8x8xf32>
    %cst_236 = arith.constant dense<0.000000e+00> : vector<1x8xf32>
    %1669 = vector.multi_reduction <add>, %1668, %cst_236 [2] : vector<1x8x8xf32> to vector<1x8xf32>
    %1670 = vector.shape_cast %1663 : vector<1x8xf32> to vector<1x8x1xf32>
    %1671 = vector.extract_strided_slice %1513 {offsets = [4, 0], sizes = [1, 14], strides = [1, 1]} : vector<14x14xf32> to vector<1x14xf32>
    %1672 = vector.shape_cast %1671 : vector<1x14xf32> to vector<14xf32>
    %1673 = vector.shape_cast %1672 : vector<14xf32> to vector<1x1x14xf32>
    %1674 = vector.broadcast %1670 : vector<1x8x1xf32> to vector<1x8x14xf32>
    %1675 = vector.broadcast %1673 : vector<1x1x14xf32> to vector<1x8x14xf32>
    %1676 = arith.mulf %1674, %1675 : vector<1x8x14xf32>
    %1677 = arith.addf %1628, %1676 : vector<1x8x14xf32>
    %1678 = vector.shape_cast %1669 : vector<1x8xf32> to vector<1x8x1xf32>
    %1679 = vector.extract_strided_slice %1513 {offsets = [5, 0], sizes = [1, 14], strides = [1, 1]} : vector<14x14xf32> to vector<1x14xf32>
    %1680 = vector.shape_cast %1679 : vector<1x14xf32> to vector<14xf32>
    %1681 = vector.shape_cast %1680 : vector<14xf32> to vector<1x1x14xf32>
    %1682 = vector.broadcast %1678 : vector<1x8x1xf32> to vector<1x8x14xf32>
    %1683 = vector.broadcast %1681 : vector<1x1x14xf32> to vector<1x8x14xf32>
    %1684 = arith.mulf %1682, %1683 : vector<1x8x14xf32>
    %1685 = arith.addf %1677, %1684 : vector<1x8x14xf32>
    %1686 = vector.extract_strided_slice %1507 {offsets = [0, 0, 6], sizes = [1, 8, 1], strides = [1, 1, 1]} : vector<1x8x14xf32> to vector<1x8x1xf32>
    %1687 = vector.shape_cast %1686 : vector<1x8x1xf32> to vector<1x8xf32>
    %1688 = vector.shape_cast %1687 : vector<1x8xf32> to vector<1x8x1xf32>
    %1689 = vector.extract_strided_slice %1509 {offsets = [0, 0, 6], sizes = [1, 8, 1], strides = [1, 1, 1]} : vector<1x8x14xf32> to vector<1x8x1xf32>
    %1690 = vector.shape_cast %1689 : vector<1x8x1xf32> to vector<1x8xf32>
    %1691 = vector.shape_cast %1690 : vector<1x8xf32> to vector<1x1x8xf32>
    %1692 = vector.broadcast %1688 : vector<1x8x1xf32> to vector<1x8x8xf32>
    %1693 = vector.broadcast %1691 : vector<1x1x8xf32> to vector<1x8x8xf32>
    %1694 = arith.mulf %1692, %1693 : vector<1x8x8xf32>
    %1695 = vector.extract_strided_slice %1507 {offsets = [0, 0, 7], sizes = [1, 8, 1], strides = [1, 1, 1]} : vector<1x8x14xf32> to vector<1x8x1xf32>
    %1696 = vector.shape_cast %1695 : vector<1x8x1xf32> to vector<1x8xf32>
    %1697 = vector.shape_cast %1696 : vector<1x8xf32> to vector<1x8x1xf32>
    %1698 = vector.extract_strided_slice %1509 {offsets = [0, 0, 7], sizes = [1, 8, 1], strides = [1, 1, 1]} : vector<1x8x14xf32> to vector<1x8x1xf32>
    %1699 = vector.shape_cast %1698 : vector<1x8x1xf32> to vector<1x8xf32>
    %1700 = vector.shape_cast %1699 : vector<1x8xf32> to vector<1x1x8xf32>
    %1701 = vector.broadcast %1697 : vector<1x8x1xf32> to vector<1x8x8xf32>
    %1702 = vector.broadcast %1700 : vector<1x1x8xf32> to vector<1x8x8xf32>
    %1703 = arith.mulf %1701, %1702 : vector<1x8x8xf32>
    %1704 = arith.addf %1694, %1703 : vector<1x8x8xf32>
    %cst_237 = arith.constant dense<0xFF800000> : vector<1x8xf32>
    %1705 = vector.multi_reduction <maximumf>, %1704, %cst_237 [2] : vector<1x8x8xf32> to vector<1x8xf32>
    %1706 = vector.shape_cast %1705 : vector<1x8xf32> to vector<1x8x1xf32>
    %1707 = vector.broadcast %1706 : vector<1x8x1xf32> to vector<1x8x8xf32>
    %1708 = arith.subf %1704, %1707 : vector<1x8x8xf32>
    %1709 = math.exp %1708 : vector<1x8x8xf32>
    %cst_238 = arith.constant dense<0.000000e+00> : vector<1x8xf32>
    %1710 = vector.multi_reduction <add>, %1709, %cst_238 [2] : vector<1x8x8xf32> to vector<1x8xf32>
    %1711 = vector.shape_cast %1710 : vector<1x8xf32> to vector<1x8x1xf32>
    %1712 = tpu.reciprocal %1711 {approx = true} : vector<1x8x1xf32> -> vector<1x8x1xf32>
    %1713 = vector.broadcast %1712 : vector<1x8x1xf32> to vector<1x8x8xf32>
    %1714 = arith.mulf %1709, %1713 : vector<1x8x8xf32>
    %1715 = vector.extract_strided_slice %1511 {offsets = [0, 0, 6], sizes = [1, 8, 1], strides = [1, 1, 1]} : vector<1x8x14xf32> to vector<1x8x1xf32>
    %1716 = vector.shape_cast %1715 : vector<1x8x1xf32> to vector<1x8xf32>
    %1717 = vector.shape_cast %1716 : vector<1x8xf32> to vector<1x1x8xf32>
    %1718 = vector.broadcast %1717 : vector<1x1x8xf32> to vector<1x8x8xf32>
    %1719 = arith.mulf %1714, %1718 : vector<1x8x8xf32>
    %cst_239 = arith.constant dense<0.000000e+00> : vector<1x8xf32>
    %1720 = vector.multi_reduction <add>, %1719, %cst_239 [2] : vector<1x8x8xf32> to vector<1x8xf32>
    %1721 = vector.extract_strided_slice %1511 {offsets = [0, 0, 7], sizes = [1, 8, 1], strides = [1, 1, 1]} : vector<1x8x14xf32> to vector<1x8x1xf32>
    %1722 = vector.shape_cast %1721 : vector<1x8x1xf32> to vector<1x8xf32>
    %1723 = vector.shape_cast %1722 : vector<1x8xf32> to vector<1x1x8xf32>
    %1724 = vector.broadcast %1723 : vector<1x1x8xf32> to vector<1x8x8xf32>
    %1725 = arith.mulf %1714, %1724 : vector<1x8x8xf32>
    %cst_240 = arith.constant dense<0.000000e+00> : vector<1x8xf32>
    %1726 = vector.multi_reduction <add>, %1725, %cst_240 [2] : vector<1x8x8xf32> to vector<1x8xf32>
    %1727 = vector.shape_cast %1720 : vector<1x8xf32> to vector<1x8x1xf32>
    %1728 = vector.extract_strided_slice %1513 {offsets = [6, 0], sizes = [1, 14], strides = [1, 1]} : vector<14x14xf32> to vector<1x14xf32>
    %1729 = vector.shape_cast %1728 : vector<1x14xf32> to vector<14xf32>
    %1730 = vector.shape_cast %1729 : vector<14xf32> to vector<1x1x14xf32>
    %1731 = vector.broadcast %1727 : vector<1x8x1xf32> to vector<1x8x14xf32>
    %1732 = vector.broadcast %1730 : vector<1x1x14xf32> to vector<1x8x14xf32>
    %1733 = arith.mulf %1731, %1732 : vector<1x8x14xf32>
    %1734 = arith.addf %1685, %1733 : vector<1x8x14xf32>
    %1735 = vector.shape_cast %1726 : vector<1x8xf32> to vector<1x8x1xf32>
    %1736 = vector.extract_strided_slice %1513 {offsets = [7, 0], sizes = [1, 14], strides = [1, 1]} : vector<14x14xf32> to vector<1x14xf32>
    %1737 = vector.shape_cast %1736 : vector<1x14xf32> to vector<14xf32>
    %1738 = vector.shape_cast %1737 : vector<14xf32> to vector<1x1x14xf32>
    %1739 = vector.broadcast %1735 : vector<1x8x1xf32> to vector<1x8x14xf32>
    %1740 = vector.broadcast %1738 : vector<1x1x14xf32> to vector<1x8x14xf32>
    %1741 = arith.mulf %1739, %1740 : vector<1x8x14xf32>
    %1742 = arith.addf %1734, %1741 : vector<1x8x14xf32>
    %1743 = vector.extract_strided_slice %1507 {offsets = [0, 0, 8], sizes = [1, 8, 1], strides = [1, 1, 1]} : vector<1x8x14xf32> to vector<1x8x1xf32>
    %1744 = vector.shape_cast %1743 : vector<1x8x1xf32> to vector<1x8xf32>
    %1745 = vector.shape_cast %1744 : vector<1x8xf32> to vector<1x8x1xf32>
    %1746 = vector.extract_strided_slice %1509 {offsets = [0, 0, 8], sizes = [1, 8, 1], strides = [1, 1, 1]} : vector<1x8x14xf32> to vector<1x8x1xf32>
    %1747 = vector.shape_cast %1746 : vector<1x8x1xf32> to vector<1x8xf32>
    %1748 = vector.shape_cast %1747 : vector<1x8xf32> to vector<1x1x8xf32>
    %1749 = vector.broadcast %1745 : vector<1x8x1xf32> to vector<1x8x8xf32>
    %1750 = vector.broadcast %1748 : vector<1x1x8xf32> to vector<1x8x8xf32>
    %1751 = arith.mulf %1749, %1750 : vector<1x8x8xf32>
    %1752 = vector.extract_strided_slice %1507 {offsets = [0, 0, 9], sizes = [1, 8, 1], strides = [1, 1, 1]} : vector<1x8x14xf32> to vector<1x8x1xf32>
    %1753 = vector.shape_cast %1752 : vector<1x8x1xf32> to vector<1x8xf32>
    %1754 = vector.shape_cast %1753 : vector<1x8xf32> to vector<1x8x1xf32>
    %1755 = vector.extract_strided_slice %1509 {offsets = [0, 0, 9], sizes = [1, 8, 1], strides = [1, 1, 1]} : vector<1x8x14xf32> to vector<1x8x1xf32>
    %1756 = vector.shape_cast %1755 : vector<1x8x1xf32> to vector<1x8xf32>
    %1757 = vector.shape_cast %1756 : vector<1x8xf32> to vector<1x1x8xf32>
    %1758 = vector.broadcast %1754 : vector<1x8x1xf32> to vector<1x8x8xf32>
    %1759 = vector.broadcast %1757 : vector<1x1x8xf32> to vector<1x8x8xf32>
    %1760 = arith.mulf %1758, %1759 : vector<1x8x8xf32>
    %1761 = arith.addf %1751, %1760 : vector<1x8x8xf32>
    %cst_241 = arith.constant dense<0xFF800000> : vector<1x8xf32>
    %1762 = vector.multi_reduction <maximumf>, %1761, %cst_241 [2] : vector<1x8x8xf32> to vector<1x8xf32>
    %1763 = vector.shape_cast %1762 : vector<1x8xf32> to vector<1x8x1xf32>
    %1764 = vector.broadcast %1763 : vector<1x8x1xf32> to vector<1x8x8xf32>
    %1765 = arith.subf %1761, %1764 : vector<1x8x8xf32>
    %1766 = math.exp %1765 : vector<1x8x8xf32>
    %cst_242 = arith.constant dense<0.000000e+00> : vector<1x8xf32>
    %1767 = vector.multi_reduction <add>, %1766, %cst_242 [2] : vector<1x8x8xf32> to vector<1x8xf32>
    %1768 = vector.shape_cast %1767 : vector<1x8xf32> to vector<1x8x1xf32>
    %1769 = tpu.reciprocal %1768 {approx = true} : vector<1x8x1xf32> -> vector<1x8x1xf32>
    %1770 = vector.broadcast %1769 : vector<1x8x1xf32> to vector<1x8x8xf32>
    %1771 = arith.mulf %1766, %1770 : vector<1x8x8xf32>
    %1772 = vector.extract_strided_slice %1511 {offsets = [0, 0, 8], sizes = [1, 8, 1], strides = [1, 1, 1]} : vector<1x8x14xf32> to vector<1x8x1xf32>
    %1773 = vector.shape_cast %1772 : vector<1x8x1xf32> to vector<1x8xf32>
    %1774 = vector.shape_cast %1773 : vector<1x8xf32> to vector<1x1x8xf32>
    %1775 = vector.broadcast %1774 : vector<1x1x8xf32> to vector<1x8x8xf32>
    %1776 = arith.mulf %1771, %1775 : vector<1x8x8xf32>
    %cst_243 = arith.constant dense<0.000000e+00> : vector<1x8xf32>
    %1777 = vector.multi_reduction <add>, %1776, %cst_243 [2] : vector<1x8x8xf32> to vector<1x8xf32>
    %1778 = vector.extract_strided_slice %1511 {offsets = [0, 0, 9], sizes = [1, 8, 1], strides = [1, 1, 1]} : vector<1x8x14xf32> to vector<1x8x1xf32>
    %1779 = vector.shape_cast %1778 : vector<1x8x1xf32> to vector<1x8xf32>
    %1780 = vector.shape_cast %1779 : vector<1x8xf32> to vector<1x1x8xf32>
    %1781 = vector.broadcast %1780 : vector<1x1x8xf32> to vector<1x8x8xf32>
    %1782 = arith.mulf %1771, %1781 : vector<1x8x8xf32>
    %cst_244 = arith.constant dense<0.000000e+00> : vector<1x8xf32>
    %1783 = vector.multi_reduction <add>, %1782, %cst_244 [2] : vector<1x8x8xf32> to vector<1x8xf32>
    %1784 = vector.shape_cast %1777 : vector<1x8xf32> to vector<1x8x1xf32>
    %1785 = vector.extract_strided_slice %1513 {offsets = [8, 0], sizes = [1, 14], strides = [1, 1]} : vector<14x14xf32> to vector<1x14xf32>
    %1786 = vector.shape_cast %1785 : vector<1x14xf32> to vector<14xf32>
    %1787 = vector.shape_cast %1786 : vector<14xf32> to vector<1x1x14xf32>
    %1788 = vector.broadcast %1784 : vector<1x8x1xf32> to vector<1x8x14xf32>
    %1789 = vector.broadcast %1787 : vector<1x1x14xf32> to vector<1x8x14xf32>
    %1790 = arith.mulf %1788, %1789 : vector<1x8x14xf32>
    %1791 = arith.addf %1742, %1790 : vector<1x8x14xf32>
    %1792 = vector.shape_cast %1783 : vector<1x8xf32> to vector<1x8x1xf32>
    %1793 = vector.extract_strided_slice %1513 {offsets = [9, 0], sizes = [1, 14], strides = [1, 1]} : vector<14x14xf32> to vector<1x14xf32>
    %1794 = vector.shape_cast %1793 : vector<1x14xf32> to vector<14xf32>
    %1795 = vector.shape_cast %1794 : vector<14xf32> to vector<1x1x14xf32>
    %1796 = vector.broadcast %1792 : vector<1x8x1xf32> to vector<1x8x14xf32>
    %1797 = vector.broadcast %1795 : vector<1x1x14xf32> to vector<1x8x14xf32>
    %1798 = arith.mulf %1796, %1797 : vector<1x8x14xf32>
    %1799 = arith.addf %1791, %1798 : vector<1x8x14xf32>
    %1800 = vector.extract_strided_slice %1507 {offsets = [0, 0, 10], sizes = [1, 8, 1], strides = [1, 1, 1]} : vector<1x8x14xf32> to vector<1x8x1xf32>
    %1801 = vector.shape_cast %1800 : vector<1x8x1xf32> to vector<1x8xf32>
    %1802 = vector.shape_cast %1801 : vector<1x8xf32> to vector<1x8x1xf32>
    %1803 = vector.extract_strided_slice %1509 {offsets = [0, 0, 10], sizes = [1, 8, 1], strides = [1, 1, 1]} : vector<1x8x14xf32> to vector<1x8x1xf32>
    %1804 = vector.shape_cast %1803 : vector<1x8x1xf32> to vector<1x8xf32>
    %1805 = vector.shape_cast %1804 : vector<1x8xf32> to vector<1x1x8xf32>
    %1806 = vector.broadcast %1802 : vector<1x8x1xf32> to vector<1x8x8xf32>
    %1807 = vector.broadcast %1805 : vector<1x1x8xf32> to vector<1x8x8xf32>
    %1808 = arith.mulf %1806, %1807 : vector<1x8x8xf32>
    %1809 = vector.extract_strided_slice %1507 {offsets = [0, 0, 11], sizes = [1, 8, 1], strides = [1, 1, 1]} : vector<1x8x14xf32> to vector<1x8x1xf32>
    %1810 = vector.shape_cast %1809 : vector<1x8x1xf32> to vector<1x8xf32>
    %1811 = vector.shape_cast %1810 : vector<1x8xf32> to vector<1x8x1xf32>
    %1812 = vector.extract_strided_slice %1509 {offsets = [0, 0, 11], sizes = [1, 8, 1], strides = [1, 1, 1]} : vector<1x8x14xf32> to vector<1x8x1xf32>
    %1813 = vector.shape_cast %1812 : vector<1x8x1xf32> to vector<1x8xf32>
    %1814 = vector.shape_cast %1813 : vector<1x8xf32> to vector<1x1x8xf32>
    %1815 = vector.broadcast %1811 : vector<1x8x1xf32> to vector<1x8x8xf32>
    %1816 = vector.broadcast %1814 : vector<1x1x8xf32> to vector<1x8x8xf32>
    %1817 = arith.mulf %1815, %1816 : vector<1x8x8xf32>
    %1818 = arith.addf %1808, %1817 : vector<1x8x8xf32>
    %cst_245 = arith.constant dense<0xFF800000> : vector<1x8xf32>
    %1819 = vector.multi_reduction <maximumf>, %1818, %cst_245 [2] : vector<1x8x8xf32> to vector<1x8xf32>
    %1820 = vector.shape_cast %1819 : vector<1x8xf32> to vector<1x8x1xf32>
    %1821 = vector.broadcast %1820 : vector<1x8x1xf32> to vector<1x8x8xf32>
    %1822 = arith.subf %1818, %1821 : vector<1x8x8xf32>
    %1823 = math.exp %1822 : vector<1x8x8xf32>
    %cst_246 = arith.constant dense<0.000000e+00> : vector<1x8xf32>
    %1824 = vector.multi_reduction <add>, %1823, %cst_246 [2] : vector<1x8x8xf32> to vector<1x8xf32>
    %1825 = vector.shape_cast %1824 : vector<1x8xf32> to vector<1x8x1xf32>
    %1826 = tpu.reciprocal %1825 {approx = true} : vector<1x8x1xf32> -> vector<1x8x1xf32>
    %1827 = vector.broadcast %1826 : vector<1x8x1xf32> to vector<1x8x8xf32>
    %1828 = arith.mulf %1823, %1827 : vector<1x8x8xf32>
    %1829 = vector.extract_strided_slice %1511 {offsets = [0, 0, 10], sizes = [1, 8, 1], strides = [1, 1, 1]} : vector<1x8x14xf32> to vector<1x8x1xf32>
    %1830 = vector.shape_cast %1829 : vector<1x8x1xf32> to vector<1x8xf32>
    %1831 = vector.shape_cast %1830 : vector<1x8xf32> to vector<1x1x8xf32>
    %1832 = vector.broadcast %1831 : vector<1x1x8xf32> to vector<1x8x8xf32>
    %1833 = arith.mulf %1828, %1832 : vector<1x8x8xf32>
    %cst_247 = arith.constant dense<0.000000e+00> : vector<1x8xf32>
    %1834 = vector.multi_reduction <add>, %1833, %cst_247 [2] : vector<1x8x8xf32> to vector<1x8xf32>
    %1835 = vector.extract_strided_slice %1511 {offsets = [0, 0, 11], sizes = [1, 8, 1], strides = [1, 1, 1]} : vector<1x8x14xf32> to vector<1x8x1xf32>
    %1836 = vector.shape_cast %1835 : vector<1x8x1xf32> to vector<1x8xf32>
    %1837 = vector.shape_cast %1836 : vector<1x8xf32> to vector<1x1x8xf32>
    %1838 = vector.broadcast %1837 : vector<1x1x8xf32> to vector<1x8x8xf32>
    %1839 = arith.mulf %1828, %1838 : vector<1x8x8xf32>
    %cst_248 = arith.constant dense<0.000000e+00> : vector<1x8xf32>
    %1840 = vector.multi_reduction <add>, %1839, %cst_248 [2] : vector<1x8x8xf32> to vector<1x8xf32>
    %1841 = vector.shape_cast %1834 : vector<1x8xf32> to vector<1x8x1xf32>
    %1842 = vector.extract_strided_slice %1513 {offsets = [10, 0], sizes = [1, 14], strides = [1, 1]} : vector<14x14xf32> to vector<1x14xf32>
    %1843 = vector.shape_cast %1842 : vector<1x14xf32> to vector<14xf32>
    %1844 = vector.shape_cast %1843 : vector<14xf32> to vector<1x1x14xf32>
    %1845 = vector.broadcast %1841 : vector<1x8x1xf32> to vector<1x8x14xf32>
    %1846 = vector.broadcast %1844 : vector<1x1x14xf32> to vector<1x8x14xf32>
    %1847 = arith.mulf %1845, %1846 : vector<1x8x14xf32>
    %1848 = arith.addf %1799, %1847 : vector<1x8x14xf32>
    %1849 = vector.shape_cast %1840 : vector<1x8xf32> to vector<1x8x1xf32>
    %1850 = vector.extract_strided_slice %1513 {offsets = [11, 0], sizes = [1, 14], strides = [1, 1]} : vector<14x14xf32> to vector<1x14xf32>
    %1851 = vector.shape_cast %1850 : vector<1x14xf32> to vector<14xf32>
    %1852 = vector.shape_cast %1851 : vector<14xf32> to vector<1x1x14xf32>
    %1853 = vector.broadcast %1849 : vector<1x8x1xf32> to vector<1x8x14xf32>
    %1854 = vector.broadcast %1852 : vector<1x1x14xf32> to vector<1x8x14xf32>
    %1855 = arith.mulf %1853, %1854 : vector<1x8x14xf32>
    %1856 = arith.addf %1848, %1855 : vector<1x8x14xf32>
    %1857 = vector.extract_strided_slice %1507 {offsets = [0, 0, 12], sizes = [1, 8, 1], strides = [1, 1, 1]} : vector<1x8x14xf32> to vector<1x8x1xf32>
    %1858 = vector.shape_cast %1857 : vector<1x8x1xf32> to vector<1x8xf32>
    %1859 = vector.shape_cast %1858 : vector<1x8xf32> to vector<1x8x1xf32>
    %1860 = vector.extract_strided_slice %1509 {offsets = [0, 0, 12], sizes = [1, 8, 1], strides = [1, 1, 1]} : vector<1x8x14xf32> to vector<1x8x1xf32>
    %1861 = vector.shape_cast %1860 : vector<1x8x1xf32> to vector<1x8xf32>
    %1862 = vector.shape_cast %1861 : vector<1x8xf32> to vector<1x1x8xf32>
    %1863 = vector.broadcast %1859 : vector<1x8x1xf32> to vector<1x8x8xf32>
    %1864 = vector.broadcast %1862 : vector<1x1x8xf32> to vector<1x8x8xf32>
    %1865 = arith.mulf %1863, %1864 : vector<1x8x8xf32>
    %1866 = vector.extract_strided_slice %1507 {offsets = [0, 0, 13], sizes = [1, 8, 1], strides = [1, 1, 1]} : vector<1x8x14xf32> to vector<1x8x1xf32>
    %1867 = vector.shape_cast %1866 : vector<1x8x1xf32> to vector<1x8xf32>
    %1868 = vector.shape_cast %1867 : vector<1x8xf32> to vector<1x8x1xf32>
    %1869 = vector.extract_strided_slice %1509 {offsets = [0, 0, 13], sizes = [1, 8, 1], strides = [1, 1, 1]} : vector<1x8x14xf32> to vector<1x8x1xf32>
    %1870 = vector.shape_cast %1869 : vector<1x8x1xf32> to vector<1x8xf32>
    %1871 = vector.shape_cast %1870 : vector<1x8xf32> to vector<1x1x8xf32>
    %1872 = vector.broadcast %1868 : vector<1x8x1xf32> to vector<1x8x8xf32>
    %1873 = vector.broadcast %1871 : vector<1x1x8xf32> to vector<1x8x8xf32>
    %1874 = arith.mulf %1872, %1873 : vector<1x8x8xf32>
    %1875 = arith.addf %1865, %1874 : vector<1x8x8xf32>
    %cst_249 = arith.constant dense<0xFF800000> : vector<1x8xf32>
    %1876 = vector.multi_reduction <maximumf>, %1875, %cst_249 [2] : vector<1x8x8xf32> to vector<1x8xf32>
    %1877 = vector.shape_cast %1876 : vector<1x8xf32> to vector<1x8x1xf32>
    %1878 = vector.broadcast %1877 : vector<1x8x1xf32> to vector<1x8x8xf32>
    %1879 = arith.subf %1875, %1878 : vector<1x8x8xf32>
    %1880 = math.exp %1879 : vector<1x8x8xf32>
    %cst_250 = arith.constant dense<0.000000e+00> : vector<1x8xf32>
    %1881 = vector.multi_reduction <add>, %1880, %cst_250 [2] : vector<1x8x8xf32> to vector<1x8xf32>
    %1882 = vector.shape_cast %1881 : vector<1x8xf32> to vector<1x8x1xf32>
    %1883 = tpu.reciprocal %1882 {approx = true} : vector<1x8x1xf32> -> vector<1x8x1xf32>
    %1884 = vector.broadcast %1883 : vector<1x8x1xf32> to vector<1x8x8xf32>
    %1885 = arith.mulf %1880, %1884 : vector<1x8x8xf32>
    %1886 = vector.extract_strided_slice %1511 {offsets = [0, 0, 12], sizes = [1, 8, 1], strides = [1, 1, 1]} : vector<1x8x14xf32> to vector<1x8x1xf32>
    %1887 = vector.shape_cast %1886 : vector<1x8x1xf32> to vector<1x8xf32>
    %1888 = vector.shape_cast %1887 : vector<1x8xf32> to vector<1x1x8xf32>
    %1889 = vector.broadcast %1888 : vector<1x1x8xf32> to vector<1x8x8xf32>
    %1890 = arith.mulf %1885, %1889 : vector<1x8x8xf32>
    %cst_251 = arith.constant dense<0.000000e+00> : vector<1x8xf32>
    %1891 = vector.multi_reduction <add>, %1890, %cst_251 [2] : vector<1x8x8xf32> to vector<1x8xf32>
    %1892 = vector.extract_strided_slice %1511 {offsets = [0, 0, 13], sizes = [1, 8, 1], strides = [1, 1, 1]} : vector<1x8x14xf32> to vector<1x8x1xf32>
    %1893 = vector.shape_cast %1892 : vector<1x8x1xf32> to vector<1x8xf32>
    %1894 = vector.shape_cast %1893 : vector<1x8xf32> to vector<1x1x8xf32>
    %1895 = vector.broadcast %1894 : vector<1x1x8xf32> to vector<1x8x8xf32>
    %1896 = arith.mulf %1885, %1895 : vector<1x8x8xf32>
    %cst_252 = arith.constant dense<0.000000e+00> : vector<1x8xf32>
    %1897 = vector.multi_reduction <add>, %1896, %cst_252 [2] : vector<1x8x8xf32> to vector<1x8xf32>
    %1898 = vector.shape_cast %1891 : vector<1x8xf32> to vector<1x8x1xf32>
    %1899 = vector.extract_strided_slice %1513 {offsets = [12, 0], sizes = [1, 14], strides = [1, 1]} : vector<14x14xf32> to vector<1x14xf32>
    %1900 = vector.shape_cast %1899 : vector<1x14xf32> to vector<14xf32>
    %1901 = vector.shape_cast %1900 : vector<14xf32> to vector<1x1x14xf32>
    %1902 = vector.broadcast %1898 : vector<1x8x1xf32> to vector<1x8x14xf32>
    %1903 = vector.broadcast %1901 : vector<1x1x14xf32> to vector<1x8x14xf32>
    %1904 = arith.mulf %1902, %1903 : vector<1x8x14xf32>
    %1905 = arith.addf %1856, %1904 : vector<1x8x14xf32>
    %1906 = vector.shape_cast %1897 : vector<1x8xf32> to vector<1x8x1xf32>
    %1907 = vector.extract_strided_slice %1513 {offsets = [13, 0], sizes = [1, 14], strides = [1, 1]} : vector<14x14xf32> to vector<1x14xf32>
    %1908 = vector.shape_cast %1907 : vector<1x14xf32> to vector<14xf32>
    %1909 = vector.shape_cast %1908 : vector<14xf32> to vector<1x1x14xf32>
    %1910 = vector.broadcast %1906 : vector<1x8x1xf32> to vector<1x8x14xf32>
    %1911 = vector.broadcast %1909 : vector<1x1x14xf32> to vector<1x8x14xf32>
    %1912 = arith.mulf %1910, %1911 : vector<1x8x14xf32>
    %1913 = arith.addf %1905, %1912 : vector<1x8x14xf32>
    %1914 = vector.shape_cast %1913 : vector<1x8x14xf32> to vector<8x14xf32>
    %c3_253 = arith.constant 3 : index
    %c0_254 = arith.constant 0 : index
    %1915 = vector.load %arg5[%c3_253, %c0_254] : memref<4x14xf32, #tpu.memory_space<vmem>>, vector<1x14xf32>
    %1916 = vector.shape_cast %1915 : vector<1x14xf32> to vector<14xf32>
    %1917 = vector.shape_cast %1916 : vector<14xf32> to vector<1x14xf32>
    %1918 = vector.broadcast %1917 : vector<1x14xf32> to vector<8x14xf32>
    %1919 = arith.addf %1914, %1918 : vector<8x14xf32>
    %1920 = arith.addf %1495, %1919 : vector<8x14xf32>
    %c3_255 = arith.constant 3 : index
    %c0_256 = arith.constant 0 : index
    %1921 = vector.load %arg6[%c3_255, %c0_256] : memref<4x14xf32, #tpu.memory_space<vmem>>, vector<1x14xf32>
    %1922 = vector.shape_cast %1921 : vector<1x14xf32> to vector<14xf32>
    %c3_257 = arith.constant 3 : index
    %c0_258 = arith.constant 0 : index
    %1923 = vector.load %arg7[%c3_257, %c0_258] : memref<4x14xf32, #tpu.memory_space<vmem>>, vector<1x14xf32>
    %1924 = vector.shape_cast %1923 : vector<1x14xf32> to vector<14xf32>
    %cst_259 = arith.constant dense<0.000000e+00> : vector<8xf32>
    %1925 = vector.multi_reduction <add>, %1920, %cst_259 [1] : vector<8x14xf32> to vector<8xf32>
    %1926 = vector.shape_cast %1925 : vector<8xf32> to vector<8x1xf32>
    %cst_260 = arith.constant 1.400000e+01 : f32
    %1927 = vector.broadcast %cst_260 : f32 to vector<8x1xf32>
    %1928 = arith.divf %1926, %1927 : vector<8x1xf32>
    %1929 = vector.broadcast %1928 : vector<8x1xf32> to vector<8x14xf32>
    %1930 = arith.subf %1920, %1929 : vector<8x14xf32>
    %1931 = arith.mulf %1930, %1930 : vector<8x14xf32>
    %cst_261 = arith.constant dense<0.000000e+00> : vector<8xf32>
    %1932 = vector.multi_reduction <add>, %1931, %cst_261 [1] : vector<8x14xf32> to vector<8xf32>
    %1933 = vector.shape_cast %1932 : vector<8xf32> to vector<8x1xf32>
    %cst_262 = arith.constant 1.400000e+01 : f32
    %1934 = vector.broadcast %cst_262 : f32 to vector<8x1xf32>
    %1935 = arith.divf %1933, %1934 : vector<8x1xf32>
    %cst_263 = arith.constant 9.99999974E-6 : f32
    %1936 = vector.broadcast %cst_263 : f32 to vector<8x1xf32>
    %1937 = arith.addf %1935, %1936 : vector<8x1xf32>
    %1938 = math.rsqrt %1937 : vector<8x1xf32>
    %1939 = vector.broadcast %1938 : vector<8x1xf32> to vector<8x14xf32>
    %1940 = arith.mulf %1930, %1939 : vector<8x14xf32>
    %1941 = vector.shape_cast %1922 : vector<14xf32> to vector<1x14xf32>
    %1942 = vector.broadcast %1941 : vector<1x14xf32> to vector<8x14xf32>
    %1943 = arith.mulf %1940, %1942 : vector<8x14xf32>
    %1944 = vector.shape_cast %1924 : vector<14xf32> to vector<1x14xf32>
    %1945 = vector.broadcast %1944 : vector<1x14xf32> to vector<8x14xf32>
    %1946 = arith.addf %1943, %1945 : vector<8x14xf32>
    %1947 = arith.truncf %1946 : vector<8x14xf32> to vector<8x14xbf16>
    %c3_264 = arith.constant 3 : index
    %c0_265 = arith.constant 0 : index
    %c0_266 = arith.constant 0 : index
    %1948 = vector.load %arg10[%c3_264, %c0_265, %c0_266] : memref<4x14x2048xbf16, #tpu.memory_space<vmem>>, vector<1x14x2048xbf16>
    %1949 = vector.shape_cast %1948 : vector<1x14x2048xbf16> to vector<14x2048xbf16>
    %cst_267 = arith.constant dense<0.000000e+00> : vector<8x2048xf32>
    %1950 = tpu.matmul %1947, %1949, %cst_267 {dimension_numbers = #tpu.dot_dimension_numbers<[1], [0], [0], [1], [0, 0, 1, 1], [], []>} : vector<8x14xbf16>, vector<14x2048xbf16>, vector<8x2048xf32> -> vector<8x2048xf32>
    %c3_268 = arith.constant 3 : index
    %c0_269 = arith.constant 0 : index
    %1951 = vector.load %arg11[%c3_268, %c0_269] : memref<4x2048xf32, #tpu.memory_space<vmem>>, vector<1x2048xf32>
    %1952 = vector.shape_cast %1951 : vector<1x2048xf32> to vector<2048xf32>
    %1953 = vector.shape_cast %1952 : vector<2048xf32> to vector<1x2048xf32>
    %1954 = vector.broadcast %1953 : vector<1x2048xf32> to vector<8x2048xf32>
    %1955 = arith.addf %1950, %1954 : vector<8x2048xf32>
    %cst_270 = arith.constant 0.000000e+00 : f32
    %1956 = vector.broadcast %cst_270 : f32 to vector<8x2048xf32>
    %1957 = arith.maximumf %1955, %1956 : vector<8x2048xf32>
    %1958 = arith.truncf %1957 : vector<8x2048xf32> to vector<8x2048xbf16>
    %c3_271 = arith.constant 3 : index
    %c0_272 = arith.constant 0 : index
    %c0_273 = arith.constant 0 : index
    %1959 = vector.load %arg12[%c3_271, %c0_272, %c0_273] : memref<4x14x2048xbf16, #tpu.memory_space<vmem>>, vector<1x14x2048xbf16>
    %1960 = vector.shape_cast %1959 : vector<1x14x2048xbf16> to vector<14x2048xbf16>
    %cst_274 = arith.constant dense<0.000000e+00> : vector<8x14xf32>
    %1961 = tpu.matmul %1958, %1960, %cst_274 {dimension_numbers = #tpu.dot_dimension_numbers<[1], [1], [0], [0], [0, 0, 1, 0], [], []>} : vector<8x2048xbf16>, vector<14x2048xbf16>, vector<8x14xf32> -> vector<8x14xf32>
    %c3_275 = arith.constant 3 : index
    %c0_276 = arith.constant 0 : index
    %1962 = vector.load %arg13[%c3_275, %c0_276] : memref<4x14xf32, #tpu.memory_space<vmem>>, vector<1x14xf32>
    %1963 = vector.shape_cast %1962 : vector<1x14xf32> to vector<14xf32>
    %1964 = vector.shape_cast %1963 : vector<14xf32> to vector<1x14xf32>
    %1965 = vector.broadcast %1964 : vector<1x14xf32> to vector<8x14xf32>
    %1966 = arith.addf %1961, %1965 : vector<8x14xf32>
    %1967 = arith.addf %1946, %1966 : vector<8x14xf32>
    %c3_277 = arith.constant 3 : index
    %c0_278 = arith.constant 0 : index
    %1968 = vector.load %arg8[%c3_277, %c0_278] : memref<4x14xf32, #tpu.memory_space<vmem>>, vector<1x14xf32>
    %1969 = vector.shape_cast %1968 : vector<1x14xf32> to vector<14xf32>
    %c3_279 = arith.constant 3 : index
    %c0_280 = arith.constant 0 : index
    %1970 = vector.load %arg9[%c3_279, %c0_280] : memref<4x14xf32, #tpu.memory_space<vmem>>, vector<1x14xf32>
    %1971 = vector.shape_cast %1970 : vector<1x14xf32> to vector<14xf32>
    %cst_281 = arith.constant dense<0.000000e+00> : vector<8xf32>
    %1972 = vector.multi_reduction <add>, %1967, %cst_281 [1] : vector<8x14xf32> to vector<8xf32>
    %1973 = vector.shape_cast %1972 : vector<8xf32> to vector<8x1xf32>
    %cst_282 = arith.constant 1.400000e+01 : f32
    %1974 = vector.broadcast %cst_282 : f32 to vector<8x1xf32>
    %1975 = arith.divf %1973, %1974 : vector<8x1xf32>
    %1976 = vector.broadcast %1975 : vector<8x1xf32> to vector<8x14xf32>
    %1977 = arith.subf %1967, %1976 : vector<8x14xf32>
    %1978 = arith.mulf %1977, %1977 : vector<8x14xf32>
    %cst_283 = arith.constant dense<0.000000e+00> : vector<8xf32>
    %1979 = vector.multi_reduction <add>, %1978, %cst_283 [1] : vector<8x14xf32> to vector<8xf32>
    %1980 = vector.shape_cast %1979 : vector<8xf32> to vector<8x1xf32>
    %cst_284 = arith.constant 1.400000e+01 : f32
    %1981 = vector.broadcast %cst_284 : f32 to vector<8x1xf32>
    %1982 = arith.divf %1980, %1981 : vector<8x1xf32>
    %cst_285 = arith.constant 9.99999974E-6 : f32
    %1983 = vector.broadcast %cst_285 : f32 to vector<8x1xf32>
    %1984 = arith.addf %1982, %1983 : vector<8x1xf32>
    %1985 = math.rsqrt %1984 : vector<8x1xf32>
    %1986 = vector.broadcast %1985 : vector<8x1xf32> to vector<8x14xf32>
    %1987 = arith.mulf %1977, %1986 : vector<8x14xf32>
    %1988 = vector.shape_cast %1969 : vector<14xf32> to vector<1x14xf32>
    %1989 = vector.broadcast %1988 : vector<1x14xf32> to vector<8x14xf32>
    %1990 = arith.mulf %1987, %1989 : vector<8x14xf32>
    %1991 = vector.shape_cast %1971 : vector<14xf32> to vector<1x14xf32>
    %1992 = vector.broadcast %1991 : vector<1x14xf32> to vector<8x14xf32>
    %1993 = arith.addf %1990, %1992 : vector<8x14xf32>
    %1994 = vector.shape_cast %1993 : vector<8x14xf32> to vector<1x8x14xf32>
    %c0_286 = arith.constant 0 : index
    %c0_287 = arith.constant 0 : index
    %c0_288 = arith.constant 0 : index
    %1995 = vector.load %arg14[%c0_286, %c0_287, %c0_288] : memref<1x8x14xf32, #tpu.memory_space<vmem>>, vector<1x8x14xf32>
    tpu.vector_store %arg14[%c0_286, %c0_287, %c0_288], %1994 {strides = array<i32>} : memref<1x8x14xf32, #tpu.memory_space<vmem>>, vector<1x8x14xf32>,
    return
  }
  func.func @transform_0(%arg0: i32) -> (i32, i32, i32) {
    %c0_i32 = arith.constant 0 : i32
    %c0_i32_0 = arith.constant 0 : i32
    %c0_i32_1 = arith.constant 0 : i32
    return %arg0, %c0_i32, %c0_i32_0 : i32, i32, i32
  }
  func.func @transform_1(%arg0: i32) -> (i32, i32, i32) {
    %c0_i32 = arith.constant 0 : i32
    %c0_i32_0 = arith.constant 0 : i32
    %c0_i32_1 = arith.constant 0 : i32
    %c0_i32_2 = arith.constant 0 : i32
    return %c0_i32, %c0_i32_0, %c0_i32_1 : i32, i32, i32
  }
  func.func @transform_2(%arg0: i32) -> (i32, i32) {
    %c0_i32 = arith.constant 0 : i32
    %c0_i32_0 = arith.constant 0 : i32
    %c0_i32_1 = arith.constant 0 : i32
    return %c0_i32, %c0_i32_0 : i32, i32
  }
  func.func @transform_3(%arg0: i32) -> (i32, i32, i32) {
    %c0_i32 = arith.constant 0 : i32
    %c0_i32_0 = arith.constant 0 : i32
    %c0_i32_1 = arith.constant 0 : i32
    %c0_i32_2 = arith.constant 0 : i32
    return %c0_i32, %c0_i32_0, %c0_i32_1 : i32, i32, i32
  }
  func.func @transform_4(%arg0: i32) -> (i32, i32) {
    %c0_i32 = arith.constant 0 : i32
    %c0_i32_0 = arith.constant 0 : i32
    %c0_i32_1 = arith.constant 0 : i32
    return %c0_i32, %c0_i32_0 : i32, i32
  }
  func.func @transform_5(%arg0: i32) -> (i32, i32) {
    %c0_i32 = arith.constant 0 : i32
    %c0_i32_0 = arith.constant 0 : i32
    %c0_i32_1 = arith.constant 0 : i32
    return %c0_i32, %c0_i32_0 : i32, i32
  }
  func.func @transform_6(%arg0: i32) -> (i32, i32) {
    %c0_i32 = arith.constant 0 : i32
    %c0_i32_0 = arith.constant 0 : i32
    %c0_i32_1 = arith.constant 0 : i32
    return %c0_i32, %c0_i32_0 : i32, i32
  }
  func.func @transform_7(%arg0: i32) -> (i32, i32) {
    %c0_i32 = arith.constant 0 : i32
    %c0_i32_0 = arith.constant 0 : i32
    %c0_i32_1 = arith.constant 0 : i32
    return %c0_i32, %c0_i32_0 : i32, i32
  }
  func.func @transform_8(%arg0: i32) -> (i32, i32) {
    %c0_i32 = arith.constant 0 : i32
    %c0_i32_0 = arith.constant 0 : i32
    %c0_i32_1 = arith.constant 0 : i32
    return %c0_i32, %c0_i32_0 : i32, i32
  }
  func.func @transform_9(%arg0: i32) -> (i32, i32, i32) {
    %c0_i32 = arith.constant 0 : i32
    %c0_i32_0 = arith.constant 0 : i32
    %c0_i32_1 = arith.constant 0 : i32
    %c0_i32_2 = arith.constant 0 : i32
    return %c0_i32, %c0_i32_0, %c0_i32_1 : i32, i32, i32
  }
  func.func @transform_10(%arg0: i32) -> (i32, i32) {
    %c0_i32 = arith.constant 0 : i32
    %c0_i32_0 = arith.constant 0 : i32
    %c0_i32_1 = arith.constant 0 : i32
    return %c0_i32, %c0_i32_0 : i32, i32
  }
  func.func @transform_11(%arg0: i32) -> (i32, i32, i32) {
    %c0_i32 = arith.constant 0 : i32
    %c0_i32_0 = arith.constant 0 : i32
    %c0_i32_1 = arith.constant 0 : i32
    %c0_i32_2 = arith.constant 0 : i32
    return %c0_i32, %c0_i32_0, %c0_i32_1 : i32, i32, i32
  }
  func.func @transform_12(%arg0: i32) -> (i32, i32) {
    %c0_i32 = arith.constant 0 : i32
    %c0_i32_0 = arith.constant 0 : i32
    %c0_i32_1 = arith.constant 0 : i32
    return %c0_i32, %c0_i32_0 : i32, i32
  }
  func.func @transform_13(%arg0: i32) -> (i32, i32, i32) {
    %c0_i32 = arith.constant 0 : i32
    %c0_i32_0 = arith.constant 0 : i32
    %c0_i32_1 = arith.constant 0 : i32
    return %arg0, %c0_i32, %c0_i32_0 : i32, i32, i32
  }
}

</mosaic_0001>

<bundles_post_ra>
// kernel: tpu_custom_call.1
= control target key start
LH: loop header
LB: loop body
LE: loop exit
PB: predicated region body
PF: predicated region fallthrough
CT: control target
= control target key end

     0   :  { %s9524_s0 = inlined_call_operand.vmem [shape: f32[2,8,14], index: 0, kind: input, shape index: {}]   ;;  %s9525_s1 = inlined_call_operand.vmem [shape: f32[4,14,42], index: 1, kind: input, shape index: {}]   ;;  %s9526_s2 = inlined_call_operand.vmem [shape: f32[4,42], index: 2, kind: input, shape index: {}]   ;;  %s9527_s3 = inlined_call_operand.vmem [shape: f32[4,14,14], index: 3, kind: input, shape index: {}]   ;;  %s9528_s4 = inlined_call_operand.vmem [shape: f32[4,14], index: 4, kind: input, shape index: {}]   ;;  %s9529_s5 = inlined_call_operand.vmem [shape: f32[4,14], index: 5, kind: input, shape index: {}]   ;;  %s9530_s6 = inlined_call_operand.vmem [shape: f32[4,14], index: 6, kind: input, shape index: {}]   ;;  %s9531_s7 = inlined_call_operand.vmem [shape: f32[4,14], index: 7, kind: input, shape index: {}]   ;;  %s9532_s8 = inlined_call_operand.vmem [shape: f32[4,14], index: 8, kind: input, shape index: {}]   ;;  %s9533_s9 = inlined_call_operand.vmem [shape: bf16[4,14,2048], index: 9, kind: input, shape index: {}]   ;;  %s9534_s10 = inlined_call_operand.vmem [shape: f32[4,2048], index: 10, kind: input, shape index: {}]   ;;  %s9535_s11 = inlined_call_operand.vmem [shape: bf16[4,14,2048], index: 11, kind: input, shape index: {}]   ;;  %s9536_s12 = inlined_call_operand.vmem [shape: f32[4,14], index: 12, kind: input, shape index: {}]   ;;  %s9537_s13 = inlined_call_operand.hbm [shape: f32[2,8,14], index: 13, kind: output, shape index: {}]  }
   0x1   :  { %9626 = sst [smem:[#allocation8_spill]] %s9524_s0 }
   0x2   :  { %18 = vsyncpa [#allocation3], 0 }
   0x3   :  { %20 = vsyncpa [#allocation3 + $0x1], 0  ;;  %s7454_s25 = smov 0   ;;  %s7456_s26 = smov 0  }
   0x4   :  { %s7458_s27 = smov 0   ;;  %s7460_s28 = smov 0  }
   0x5 LB: > { %9627 = sst [smem:[#allocation5_spill]] %s7335_s27  ;;  %s7475_s29 = sadd.s32 4294967295, %s7339_s28   ;;  %s7339_s28 = sphi %s7460_s28, %s9686_s28   ;;  %s7335_s27 = sphi %s7458_s27, %s9688_s27   ;;  %s7331_s26 = sphi %s7456_s26, %s9690_s26   ;;  %s7327_s25 = sphi %s7454_s25, %s9689_s25  }
   0x6   : > { %s6032_s30 = sadd.s32 4294967294, %s7339_s28   ;;  %s7479_s14 = sadd.s32 1, %s7339_s28  }
   0x7   : > { %9628 = sst [smem:[#allocation6_spill]] %s7479_s14  ;;  %s311_s15 = sadd.s32 1, %s7335_s27 }
   0x8   : > { %s308_s16 = ssub.s32 %s7339_s28, %s7479_s14  ;;  %p321_p0 = scmp.ne.s32.totalorder %s7335_s27, %s7331_s26 }
   0x9   : > { %p309_p1 = scmp.eq.s32.totalorder %s308_s16, 0  ;;  %p322_p2 = scmp.eq.s32.totalorder %s7475_s29, 1 }
   0xa   : > { %p327_p3 = scmp.ne.s32.totalorder %s7331_s26, %s7327_s25  ;;  %p328_p4 = scmp.eq.s32.totalorder %s6032_s30, 1 }
   0xb   : > { %s7490_s17 = scalar_select %p309_p1, %s7335_s27, %s311_s15  }
   0xc   : > { %p7492_p5 = por %p322_p2, %p321_p0  ;;  %p7496_p6 = por %p328_p4, %p327_p3 }
   0xd   : > { %9629 = sst [smem:[#allocation7_spill]] %s7490_s17  ;;  %p6035_p7 = scmp.ge.s32.totalorder %s7339_s28, 1 }
   0xe   : > { %p389_p8 = scmp.lt.s32.totalorder %s7339_s28, 3 }
  0x10   : > { %p390_p9 = pnand %p6035_p7, %p389_p8 }
  0x11   : > { %p432_p10 = scmp.lt.s32.totalorder (!%p390_p9), %s7475_s29, 1  ;;  %s9632_s0 = sld [smem:[#allocation8_spill]] (!%p390_p9) }
  0x12   : > { %393 = sbr.rel (%p390_p9) target bundleno = 6737 (0x1a51), region = 72 }
  0x17   : > { %v439_v0 = vld [vmem:[%s9525_s1 + $0x8] sm:$0x3f]  ;;  %vm446_vm0 = vcmask 1045504   ;;  %v438_v1 = vld [vmem:[%s9525_s1] sm:$0xff]  ;;  %s433_s24 = scalar_select %p432_p10, %s7475_s29, 1  ;;  %vm442_vm1 = vcmask 113664   ;;  %v482_v59 = vlaneseq }
  0x18   : > { %6038 = vmatpush.msk.msra.mxu0 %vm446_vm0, %v439_v0  ;;  %v9593_v3 = vmov 19   ;;  %v9608_v4 = vmov 16   ;;  %v9612_v5 = vmov 14   ;;  %v7119_v6 = vld [vmem:[%s9526_s2] ss:$0 sm:$0xff]  ;;  %v9595_v9 = vmov 22  }
  0x19   : > { %s6037_s30 = sshll.u32 %s433_s24, 3  ;;  %6956 = vset.pattern.permute.xlu1 %v9593_v3  ;;  %6953 = vset.pattern.permute.xlu2 %v9608_v4  ;;  %v9611_v10 = vmov 17   ;;  %v9613_v11 = vmov 15   ;;  %v9603_v12 = vmov 25   ;;  %v9583_v13 = vmov 20  }
  0x1a   : > { %465 = vmatpush.msra.mxu0 %v438_v1  ;;  %s435_s17 = scalar_lea.vmem %s9632_s0, %s6037_s30  ;;  %6951 = vset.pattern.permute.xlu0 %v9612_v5  ;;  %v9599_v14 = vmov 18   ;;  %v9597_v15 = vmov 26   ;;  %v9579_v16 = vmov 23   ;;  %v9581_v17 = vmov 21   ;;  %s6738_s0 = sshll.u32 %s7475_s29, 3 }
  0x1b   : > { %v7514_v2 = vld [vmem:[%s435_s17] sm:$0xff]  ;;  %v9610_v18 = vmov 29   ;;  %v9577_v19 = vmov 24   ;;  %v9616_v20 = vmov 28   ;;  %v9589_v21 = vmov 0   ;;  %s429_s17 = sand.u32 1, %s7331_s26   ;;  %s5968_s30 = scalar_lea.hbm %s9537_s13, %s6738_s0 }
  0x1c   : > { %6039 = vmatmul.msk.f32.vlgmr.msra.gmra.mxu0 %vm442_vm1, %v7514_v2  ;;  %v9575_v22 = vmov 27   ;;  %v9569_v24 = vmov 8   ;;  %v9609_v25 = vmov 30   ;;  %v9567_v26 = vmov 11   ;;  %s6036_s22 = sshll.u32 %s429_s17, 3  ;;  %s5972_s21 = sshll.u32 %s5968_s30, 4  ;;  %s5973_s21 = int_to_ptr.hbm [resolvable:$true] %s5972_s21 }
  0x1d   : > { %v9585_v27 = vmov 1   ;;  %v9605_v28 = vmov 31   ;;  %v9556_v29 = vmov 2   ;;  %v9607_v30 = vmov 32   ;;  %s431_s20 = scalar_lea.vmem [#allocation2], %s6036_s22  ;;  %s5958_s27 = scalar_lea.sflag [#allocation3], %s429_s17 }
  0x1e   : > { %v9552_v31 = vmov 5   ;;  %v9587_v32 = vmov 33   ;;  %v9548_v33 = vmov 6   ;;  %v9601_v35 = vmov 34   ;;  %s5970_s29 = sshll.u32 %s431_s20, 4  ;;  %s7291_s14 = sshra.s32 %s5973_s21, 4  ;;  %s5971_s29 = int_to_ptr.vmem [resolvable:$true] %s5970_s29  ;;  %s7292_s14 = int_to_ptr.hbm [resolvable:$true] %s7291_s14 }
  0x1f   : > { %v9544_v36 = vmov 9   ;;  %v9554_v38 = vmov 3   ;;  %v9540_v39 = vmov 12   ;;  %v9550_v41 = vmov 4   ;;  %s7293_s0 = scalar_lea.hbm %s7292_s14, 8  ;;  %s7297_s22 = scalar_lea.hbm %s9537_s13, 16 }
  0x20   : > { %v9546_v43 = vmov 7   ;;  %v9542_v46 = vmov 10   ;;  %v9538_v49 = vmov 13   ;;  %v9573_v52 = vmov 37   ;;  %p7294_p11 = scmp.ne.s32.totalorder %s7292_s14, %s7293_s0  ;;  %p7298_p0 = scmp.lt.s32.totalorder %s7292_s14, %s9537_s13 }
  0x21   : > { %v9591_v58 = vmov 36   ;;  %v7623_v62 = vand.u32 127, %v482_v59  ;;  %vm516_vm2 = vcmask 64512   ;;  %vm1204_vm4 = vcmask 1046528   ;;  %p7299_p1 = scmp.lt.s32.totalorder %s7297_s22, %s7293_s0 }
  0x22   : > { %p7295_p12 = pnand %p7294_p11, %p7492_p5 }
  0x23   : > { %p7300_p2 = por %p7299_p1, %p7298_p0 }
  0x24   : > { %p7296_p13 = pneg %p7295_p12 }
  0x26   : > { %p7301_p3 = pnand %p7300_p2, %p7296_p13 }
  0x99   : > { %v467_v7 = vpop.f32.mrf.mxu0 }
  0x9a   : > { %v7524_v8 = vadd.f32 %v7119_v6, %v467_v7 }
  0x9c   : > { %665 = vperm.xlu1 %6956, %v7524_v8   ;;  %569 = vperm.xlu2 %6953, %v7524_v8   ;;  %v7556_v23 = vmul.f32 0.70710677, %v7524_v8 }
  0x9d   : > { %480 = vperm.xlu0 %6951, %v7524_v8  }
  0xa4   : > { %6959 = vset.pattern.permute.xlu1 %v9595_v9  ;;  %6954 = vset.pattern.permute.xlu2 %v9611_v10 }
  0xa5   : > { %6952 = vset.pattern.permute.xlu0 %v9613_v11  ;;  %809 = vperm.xlu1 %6959, %v7524_v8  }
  0xa6   : > { %585 = vperm.xlu2 %6954, %v7524_v8   ;;  %504 = vperm.xlu0 %6952, %v7524_v8  }
  0xad   : > { %6962 = vset.pattern.permute.xlu1 %v9603_v12 }
  0xae   : > { %6957 = vset.pattern.permute.xlu2 %v9583_v13  ;;  %6955 = vset.pattern.permute.xlu0 %v9599_v14 }
  0xaf   : > { %905 = vperm.xlu1 %6962, %v7524_v8   ;;  %729 = vperm.xlu2 %6957, %v7524_v8  }
  0xb0   : > { %649 = vperm.xlu0 %6955, %v7524_v8  }
  0xb7   : > { %6963 = vset.pattern.permute.xlu1 %v9597_v15  ;;  %6960 = vset.pattern.permute.xlu2 %v9579_v16 }
  0xb8   : > { %6958 = vset.pattern.permute.xlu0 %v9581_v17  ;;  %969 = vperm.xlu1 %6963, %v7524_v8  }
  0xb9   : > { %825 = vperm.xlu2 %6960, %v7524_v8   ;;  %745 = vperm.xlu0 %6958, %v7524_v8  }
  0xc0   : > { %6966 = vset.pattern.permute.xlu1 %v9610_v18 }
  0xc1   : > { %6961 = vset.pattern.permute.xlu2 %v9577_v19  ;;  %6965 = vset.pattern.permute.xlu0 %v9616_v20 }
  0xc2   : > { %544 = vperm.xlu1 %6966, %v7524_v8   ;;  %889 = vperm.xlu2 %6961, %v7524_v8  }
  0xc3   : > { %529 = vperm.xlu0 %6965, %v7524_v8  }
  0xca   : > { %6972 = vset.pattern.permute.xlu1 %v9589_v21  ;;  %6964 = vset.pattern.permute.xlu2 %v9575_v22 }
  0xcb   : > { %6980 = vset.pattern.permute.xlu0 %v9569_v24  ;;  %985 = vperm.xlu2 %6964, %v7524_v8  }
  0xcc   : > { %805 = vperm.xlu0 %6980, %v7556_v23   ;;  %475 = vperm.xlu1 %6972, %v7556_v23  }
  0xd3   : > { %6967 = vset.pattern.permute.xlu2 %v9609_v25 }
  0xd4   : > { %6983 = vset.pattern.permute.xlu0 %v9567_v26  ;;  %6973 = vset.pattern.permute.xlu1 %v9585_v27 }
  0xd5   : > { %609 = vperm.xlu2 %6967, %v7524_v8   ;;  %901 = vperm.xlu0 %6983, %v7556_v23  }
  0xd6   : > { %500 = vperm.xlu1 %6973, %v7556_v23  }
  0xdd   : > { %6968 = vset.pattern.permute.xlu2 %v9605_v28  ;;  %6987 = vset.pattern.permute.xlu0 %v9591_v58 }
  0xde   : > { %6974 = vset.pattern.permute.xlu1 %v9556_v29  ;;  %624 = vperm.xlu2 %6968, %v7524_v8  }
  0xdf   : > { %565 = vperm.xlu1 %6974, %v7556_v23  }
  0xe6   : > { %6969 = vset.pattern.permute.xlu2 %v9607_v30 }
  0xe7   : > { %6977 = vset.pattern.permute.xlu1 %v9552_v31  ;;  %689 = vperm.xlu2 %6969, %v7524_v8  }
  0xe8   : > { %661 = vperm.xlu1 %6977, %v7556_v23  }
  0xef   : > { %6970 = vset.pattern.permute.xlu2 %v9587_v32 }
  0xf0   : > { %6978 = vset.pattern.permute.xlu1 %v9548_v33  ;;  %704 = vperm.xlu2 %6970, %v7524_v8  }
  0xf1   : > { %725 = vperm.xlu1 %6978, %v7556_v23  }
  0xf6   : > { %v7580_v34 = vpop.permute.xlu2 %569 }
  0xf8   : > { %6971 = vset.pattern.permute.xlu2 %v9601_v35 }
  0xf9   : > { %6981 = vset.pattern.permute.xlu1 %v9544_v36  ;;  %769 = vperm.xlu2 %6971, %v7524_v8   ;;  %v9571_v36 = vmov 35  }
  0xfa   : > { %821 = vperm.xlu1 %6981, %v7556_v23  }
 0x100   : > { %v586_v37 = vpop.permute.xlu2 %585 }
 0x101   : > { %6975 = vset.pattern.permute.xlu2 %v9554_v38 }
 0x102   : > { %6984 = vset.pattern.permute.xlu1 %v9540_v39  ;;  %581 = vperm.xlu2 %6975, %v7556_v23  }
 0x103   : > { %965 = vperm.xlu1 %6984, %v7556_v23  }
 0x109   : > { %v7590_v40 = vpop.permute.xlu2 %729 }
 0x10a   : > { %6976 = vset.pattern.permute.xlu2 %v9550_v41 }
 0x10b   : > { %645 = vperm.xlu2 %6976, %v7556_v23   ;;  %6986 = vset.pattern.permute.xlu1 %v9571_v36 }
 0x10e   : > { %v666_v42 = vpop.permute.xlu1 %665 }
 0x10f   : > { %v481_v56 = vpop.permute.xlu0 %480 }
 0x110   : > { %v484_v63 = vperm.slane %v481_v56, %v7623_v62  ;;  %v571_v56 = vperm.slane %v7580_v34, %v7623_v62 }
 0x113   : > { %6979 = vset.pattern.permute.xlu2 %v9546_v43  ;;  %v7595_v44 = vpop.permute.xlu2 %825  ;;  %v667_v43 = vperm.slane %v666_v42, %v7623_v62 }
 0x114   : > { %741 = vperm.xlu2 %6979, %v7556_v23  }
 0x117   : > { %v7598_v45 = vpop.permute.xlu1 %809 }
 0x118   : > { %v505_v61 = vpop.permute.xlu0 %504 }
 0x119   : > { %v506_v0 = vperm.slane %v505_v61, %v7623_v62 }
 0x11c   : > { %6982 = vset.pattern.permute.xlu2 %v9542_v46  ;;  %v7601_v47 = vpop.permute.xlu2 %889 }
 0x11d   : > { %885 = vperm.xlu2 %6982, %v7556_v23  }
 0x121   : > { %v7604_v48 = vpop.permute.xlu1 %905 }
 0x125   : > { %6985 = vset.pattern.permute.xlu2 %v9538_v49  ;;  %v7607_v50 = vpop.permute.xlu2 %985 }
 0x126   : > { %981 = vperm.xlu2 %6985, %v7556_v23  }
 0x12a   : > { %v7610_v51 = vpop.permute.xlu1 %969 }
 0x12e   : > { %6988 = vset.pattern.permute.xlu2 %v9573_v52 }
 0x12f   : > { %v7613_v53 = vpop.permute.xlu2 %609  ;;  %864 = vperm.xlu2 %6988, %v7524_v8  }
 0x134   : > { %v7616_v54 = vpop.permute.xlu1 %544 }
 0x138   : > { %v7618_v55 = vpop.permute.xlu2 %624 }
 0x13e   : > { %v476_v57 = vpop.permute.xlu1 %475 }
 0x13f   : > { %v498_v6 = vmul.f32 %v484_v63, %v476_v57  ;;  %v587_v57 = vperm.slane %v586_v37, %v7623_v62 }
 0x141   : > { %v7621_v60 = vpop.permute.xlu2 %689 }
 0x148   : > { %v501_v1 = vpop.permute.xlu1 %500 }
 0x149   : > { %v514_v7 = vmul.f32 %v506_v0, %v501_v1 }
 0x14a   : > { %v7627_v23 = vpop.permute.xlu2 %704 }
 0x14b   : > { %v7629_v49 = vadd.f32 %v514_v7, %v498_v6  ;;  %v650_v6 = vpop.permute.xlu0 %649 }
 0x14c   : > { %v651_v33 = vperm.slane %v650_v6, %v7623_v62 }
 0x14d   : > { %v517_v39 = vsel %vm516_vm2, %v7629_v49, -inf }
 0x14e   : > { %518 = vmax.xlane.f32.xlu0 %v517_v39 }
 0x151   : > { %v566_v59 = vpop.permute.xlu1 %565 }
 0x152   : > { %v579_v63 = vmul.f32 %v571_v56, %v566_v59 }
 0x153   : > { %v7633_v46 = vpop.permute.xlu2 %769  ;;  %v746_v59 = vpop.permute.xlu0 %745 }
 0x15a   : > { %v662_v7 = vpop.permute.xlu1 %661 }
 0x15b   : > { %v675_v41 = vmul.f32 %v667_v43, %v662_v7  ;;  %v987_v7 = vperm.slane %v7607_v50, %v7623_v62 }
 0x15c   : > { %v582_v61 = vpop.permute.xlu2 %581 }
 0x15d   : > { %v595_v0 = vmul.f32 %v587_v57, %v582_v61  ;;  %v731_v61 = vperm.slane %v7590_v40, %v7623_v62  ;;  %v971_v40 = vperm.slane %v7610_v51, %v7623_v62  ;;  %v891_v51 = vperm.slane %v7601_v47, %v7623_v62 }
 0x15f   : > { %v7639_v1 = vadd.f32 %v595_v0, %v579_v63  ;;  %v747_v63 = vperm.slane %v746_v59, %v7623_v62 }
 0x161   : > { %v597_v39 = vsel %vm516_vm2, %v7639_v1, -inf }
 0x162   : > { %849 = vperm.xlu0 %6987, %v7524_v8   ;;  %598 = vmax.xlane.f32.xlu1 %v597_v39 }
 0x163   : > { %v726_v56 = vpop.permute.xlu1 %725 }
 0x164   : > { %v739_v39 = vmul.f32 %v731_v61, %v726_v56 }
 0x165   : > { %v646_v34 = vpop.permute.xlu2 %645 }
 0x166   : > { %v659_v37 = vmul.f32 %v651_v33, %v646_v34 }
 0x168   : > { %v676_v31 = vadd.f32 %v675_v41, %v659_v37  ;;  %v7651_v41 = vpop.permute.xlu0 %529 }
 0x16a   : > { %v677_v57 = vsel %vm516_vm2, %v676_v31, -inf }
 0x16b   : > { %678 = vmax.xlane.f32.xlu2 %v677_v57  ;;  %v811_v57 = vperm.slane %v7598_v45, %v7623_v62 }
 0x16c   : > { %v822_v29 = vpop.permute.xlu1 %821 }
 0x16e   : > { %v742_v0 = vpop.permute.xlu2 %741 }
 0x16f   : > { %v755_v38 = vmul.f32 %v747_v63, %v742_v0 }
 0x170   : > { %v806_v56 = vpop.permute.xlu0 %805 }
 0x171   : > { %v756_v42 = vadd.f32 %v755_v38, %v739_v39  ;;  %v827_v38 = vperm.slane %v7595_v44, %v7623_v62  ;;  %v819_v0 = vmul.f32 %v811_v57, %v806_v56 }
 0x173   : > { %v757_v6 = vsel %vm516_vm2, %v756_v42, -inf  ;;  %v835_v61 = vmul.f32 %v827_v38, %v822_v29 }
 0x174   : > { %758 = vmax.xlane.f32.xlu2 %v757_v6 }
 0x175   : > { %v966_v43 = vpop.permute.xlu1 %965  ;;  %v836_v50 = vadd.f32 %v835_v61, %v819_v0 }
 0x176   : > { %v979_v37 = vmul.f32 %v971_v40, %v966_v43  ;;  %v907_v43 = vperm.slane %v7604_v48, %v7623_v62 }
 0x177   : > { %v886_v33 = vpop.permute.xlu2 %885  ;;  %v837_v6 = vsel %vm516_vm2, %v836_v50, -inf }
 0x178   : > { %v902_v44 = vpop.permute.xlu0 %901 }
 0x179   : > { %v915_v40 = vmul.f32 %v907_v43, %v902_v44 }
 0x17b   : > { %784 = vperm.xlu1 %6986, %v7524_v8  }
 0x180   : > { %v982_v34 = vpop.permute.xlu2 %981 }
 0x181   : > { %v995_v59 = vmul.f32 %v987_v7, %v982_v34  ;;  %v899_v7 = vmul.f32 %v891_v51, %v886_v33  ;;  %v9563_v51 = vmov 39  }
 0x182   : > { %6990 = vset.pattern.permute.xlu2 %v9563_v51 }
 0x183   : > { %v996_v63 = vadd.f32 %v995_v59, %v979_v37  ;;  %v916_v45 = vadd.f32 %v915_v40, %v899_v7 }
 0x185   : > { %v997_v39 = vsel %vm516_vm2, %v996_v63, -inf  ;;  %v917_v29 = vsel %vm516_vm2, %v916_v45, -inf }
 0x186   : > { %998 = vmax.xlane.f32.xlu2 %v997_v39 }
 0x189   : > { %v7674_v57 = vpop.permute.xlu2 %864 }
 0x18c   : > { %838 = vmax.xlane.f32.xlu0 %v837_v6 }
 0x1a5   : > { %918 = vmax.xlane.f32.xlu1 %v917_v29 }
 0x1c1   : > { %v519_v34 = vpop.xlane.xlu0 %518 }
 0x1c2   : > { %v520_v38 = vsub.f32 %v7629_v49, %v519_v34 }
 0x1c4   : > { %v521_v37 = vmul.f32 1.442695, %v520_v38 }
 0x1c6   : > { %7147 = vpow2.f32 %v521_v37 }
 0x1cc   : > { %v7670_v59 = vpop.eup %7147 }
 0x1cd   : > { %v523_v47 = vsel %vm516_vm2, %v7670_v59, 0.0 }
 0x1ce   : > { %524 = vadd.xlane.f32.xlu0 %v523_v47 }
 0x1d4   : > { %v7690_v34 = vpop.permute.xlu0 %849 }
 0x1d5   : > { %v599_v56 = vpop.xlane.xlu1 %598 }
 0x1d6   : > { %v600_v48 = vsub.f32 %v7639_v1, %v599_v56  ;;  %v9614_v56 = vmov 40  }
 0x1d7   : > { %6991 = vset.pattern.permute.xlu1 %v9614_v56 }
 0x1d8   : > { %v601_v33 = vmul.f32 1.442695, %v600_v48 }
 0x1da   : > { %7149 = vpow2.f32 %v601_v33 }
 0x1de   : > { %v679_v61 = vpop.xlane.xlu2 %678 }
 0x1df   : > { %v680_v0 = vsub.f32 %v676_v31, %v679_v61 }
 0x1e0   : > { %v7677_v39 = vpop.eup %7149 }
 0x1e1   : > { %v681_v49 = vmul.f32 1.442695, %v680_v0  ;;  %v603_v6 = vsel %vm516_vm2, %v7677_v39, 0.0 }
 0x1e2   : > { %604 = vadd.xlane.f32.xlu1 %v603_v6 }
 0x1e3   : > { %7151 = vpow2.f32 %v681_v49 }
 0x1e7   : > { %v759_v44 = vpop.xlane.xlu2 %758 }
 0x1e8   : > { %v760_v43 = vsub.f32 %v756_v42, %v759_v44  ;;  %v9565_v42 = vmov 38  }
 0x1e9   : > { %v7682_v7 = vpop.eup %7151  ;;  %6989 = vset.pattern.permute.xlu0 %v9565_v42 }
 0x1ea   : > { %v761_v1 = vmul.f32 1.442695, %v760_v43  ;;  %v683_v40 = vsel %vm516_vm2, %v7682_v7, 0.0 }
 0x1eb   : > { %684 = vadd.xlane.f32.xlu2 %v683_v40  ;;  %v9561_v40 = vmov 41  }
 0x1ec   : > { %7153 = vpow2.f32 %v761_v1 }
 0x1ed   : > { %v785_v44 = vpop.permute.xlu1 %784 }
 0x1f2   : > { %v7686_v31 = vpop.eup %7153 }
 0x1f3   : > { %v763_v29 = vsel %vm516_vm2, %v7686_v31, 0.0 }
 0x1f4   : > { %764 = vadd.xlane.f32.xlu1 %v763_v29 }
 0x1f9   : > { %v999_v38 = vpop.xlane.xlu2 %998 }
 0x1fa   : > { %v1000_v37 = vsub.f32 %v996_v63, %v999_v38 }
 0x1fc   : > { %v1001_v47 = vmul.f32 1.442695, %v1000_v37 }
 0x1fe   : > { %7155 = vpow2.f32 %v1001_v47  ;;  %v531_v47 = vperm.slane %v7651_v41, %v7623_v62 }
 0x1ff   : > { %v839_v48 = vpop.xlane.xlu0 %838 }
 0x200   : > { %v840_v33 = vsub.f32 %v836_v50, %v839_v48 }
 0x202   : > { %v841_v61 = vmul.f32 1.442695, %v840_v33 }
 0x203   : > { %944 = vperm.xlu2 %6990, %v7524_v8  }
 0x204   : > { %v7695_v0 = vpop.eup %7155  ;;  %7157 = vpow2.f32 %v841_v61 }
 0x205   : > { %v1003_v49 = vsel %vm516_vm2, %v7695_v0, 0.0 }
 0x206   : > { %1004 = vadd.xlane.f32.xlu1 %v1003_v49 }
 0x20a   : > { %v7699_v63 = vpop.eup %7157 }
 0x20b   : > { %v843_v6 = vsel %vm516_vm2, %v7699_v63, 0.0  ;;  %6992 = vset.pattern.permute.xlu2 %v9561_v40 }
 0x20c   : > { %844 = vadd.xlane.f32.xlu0 %v843_v6 }
 0x218   : > { %v919_v43 = vpop.xlane.xlu1 %918 }
 0x219   : > { %v920_v1 = vsub.f32 %v916_v45, %v919_v43  ;;  %v611_v43 = vperm.slane %v7613_v53, %v7623_v62  ;;  %v706_v53 = vperm.slane %v7627_v23, %v7623_v62 }
 0x21b   : > { %v921_v50 = vmul.f32 1.442695, %v920_v1 }
 0x21d   : > { %7159 = vpow2.f32 %v921_v50 }
 0x21f   : > { %1009 = vperm.xlu1 %6991, %v7524_v8  }
 0x220   : > { %929 = vperm.xlu0 %6989, %v7524_v8  }
 0x223   : > { %v7707_v29 = vpop.eup %7159 }
 0x224   : > { %v923_v38 = vsel %vm516_vm2, %v7707_v29, 0.0 }
 0x227   : > { %6996 = vset.pattern.permute.xlu1 %v9611_v10 }
 0x228   : > { %6994 = vset.pattern.permute.xlu0 %v9613_v11 }
 0x22c   : > { %924 = vadd.xlane.f32.xlu2 %v923_v38 }
 0x241   : > { %v525_v45 = vpop.xlane.xlu0 %524 }
 0x242   : > { %7161 = vrcp.f32 %v525_v45 }
 0x244   : > { %1024 = vperm.xlu2 %6992, %v7524_v8   ;;  %v626_v8 = vperm.slane %v7618_v55, %v7623_v62 }
 0x248   : > { %v7162_v37 = vpop.eup %7161 }
 0x249   : > { %v527_v48 = vmul.f32 %v7162_v37, %v7670_v59 }
 0x24b   : > { %v539_v33 = vmul.f32 %v531_v47, %v527_v48  ;;  %v546_v47 = vperm.slane %v7616_v54, %v7623_v62  ;;  %v786_v54 = vperm.slane %v785_v44, %v7623_v62 }
 0x24c   : > { %6993 = vset.pattern.permute.xlu2 %v9612_v5 }
 0x24d   : > { %v540_v61 = vsel %vm516_vm2, %v539_v33, 0.0 }
 0x24e   : > { %541 = vadd.xlane.f32.xlu0 %v540_v61  ;;  %v554_v61 = vmul.f32 %v546_v47, %v527_v48 }
 0x255   : > { %v605_v49 = vpop.xlane.xlu1 %604 }
 0x256   : > { %7163 = vrcp.f32 %v605_v49 }
 0x25c   : > { %v7164_v6 = vpop.eup %7163 }
 0x25d   : > { %v607_v1 = vmul.f32 %v7164_v6, %v7677_v39  ;;  %v555_v6 = vsel %vm516_vm2, %v554_v61, 0.0 }
 0x25e   : > { %v685_v41 = vpop.xlane.xlu2 %684 }
 0x25f   : > { %7165 = vrcp.f32 %v685_v41  ;;  %v634_v59 = vmul.f32 %v626_v8, %v607_v1  ;;  %v619_v50 = vmul.f32 %v611_v43, %v607_v1  ;;  %v691_v8 = vperm.slane %v7621_v60, %v7623_v62 }
 0x261   : > { %v635_v38 = vsel %vm516_vm2, %v634_v59, 0.0  ;;  %v620_v45 = vsel %vm516_vm2, %v619_v50, 0.0  ;;  %v771_v59 = vperm.slane %v7633_v46, %v7623_v62 }
 0x262   : > { %636 = vadd.xlane.f32.xlu0 %v635_v38  ;;  %621 = vadd.xlane.f32.xlu1 %v620_v45 }
 0x265   : > { %v7166_v37 = vpop.eup %7165 }
 0x266   : > { %v687_v55 = vmul.f32 %v7166_v37, %v7682_v7  ;;  %v851_v37 = vperm.slane %v7690_v34, %v7623_v62 }
 0x267   : > { %v765_v39 = vpop.xlane.xlu1 %764 }
 0x268   : > { %7167 = vrcp.f32 %v765_v39  ;;  %v714_v33 = vmul.f32 %v706_v53, %v687_v55  ;;  %v699_v1 = vmul.f32 %v691_v8, %v687_v55 }
 0x26a   : > { %v715_v49 = vsel %vm516_vm2, %v714_v33, 0.0  ;;  %v700_v48 = vsel %vm516_vm2, %v699_v1, 0.0 }
 0x26b   : > { %716 = vadd.xlane.f32.xlu0 %v715_v49 }
 0x26d   : > { %556 = vadd.xlane.f32.xlu2 %v555_v6 }
 0x26e   : > { %v7168_v43 = vpop.eup %7167 }
 0x26f   : > { %v767_v23 = vmul.f32 %v7168_v43, %v7686_v31  ;;  %v866_v31 = vperm.slane %v7674_v57, %v7623_v62  ;;  %v945_v43 = vpop.permute.xlu2 %944 }
 0x271   : > { %v794_v7 = vmul.f32 %v786_v54, %v767_v23  ;;  %v779_v50 = vmul.f32 %v771_v59, %v767_v23  ;;  %v946_v23 = vperm.slane %v945_v43, %v7623_v62 }
 0x273   : > { %v795_v41 = vsel %vm516_vm2, %v794_v7, 0.0  ;;  %v780_v38 = vsel %vm516_vm2, %v779_v50, 0.0 }
 0x274   : > { %796 = vadd.xlane.f32.xlu0 %v795_v41 }
 0x275   : > { %701 = vadd.xlane.f32.xlu2 %v700_v48 }
 0x279   : > { %v1005_v45 = vpop.xlane.xlu1 %1004 }
 0x27d   : > { %781 = vadd.xlane.f32.xlu2 %v780_v38 }
 0x27f   : > { %v845_v60 = vpop.xlane.xlu0 %844 }
 0x280   : > { %7169 = vrcp.f32 %v845_v60 }
 0x281   : > { %7171 = vrcp.f32 %v1005_v45 }
 0x286   : > { %v7170_v44 = vpop.eup %7169 }
 0x287   : > { %v847_v47 = vmul.f32 %v7170_v44, %v7699_v63  ;;  %v7172_v33 = vpop.eup %7171 }
 0x288   : > { %v1007_v57 = vmul.f32 %v7172_v33, %v7695_v0 }
 0x289   : > { %v859_v53 = vmul.f32 %v851_v37, %v847_v47  ;;  %v874_v55 = vmul.f32 %v866_v31, %v847_v47 }
 0x28b   : > { %v860_v46 = vsel %vm516_vm2, %v859_v53, 0.0  ;;  %v875_v39 = vsel %vm516_vm2, %v874_v55, 0.0 }
 0x28c   : > { %861 = vadd.xlane.f32.xlu1 %v860_v46  ;;  %876 = vadd.xlane.f32.xlu2 %v875_v39 }
 0x291   : > { %v1010_v61 = vpop.permute.xlu1 %1009 }
 0x292   : > { %v1011_v49 = vperm.slane %v1010_v61, %v7623_v62  ;;  %v930_v8 = vpop.permute.xlu0 %929 }
 0x293   : > { %v931_v1 = vperm.slane %v930_v8, %v7623_v62 }
 0x294   : > { %v1019_v6 = vmul.f32 %v1011_v49, %v1007_v57 }
 0x296   : > { %v1020_v34 = vsel %vm516_vm2, %v1019_v6, 0.0 }
 0x297   : > { %1021 = vadd.xlane.f32.xlu2 %v1020_v34 }
 0x29f   : > { %v925_v63 = vpop.xlane.xlu2 %924 }
 0x2a0   : > { %7173 = vrcp.f32 %v925_v63 }
 0x2a6   : > { %v7174_v54 = vpop.eup %7173 }
 0x2a7   : > { %v927_v7 = vmul.f32 %v7174_v54, %v7707_v29  ;;  %v1025_v41 = vpop.permute.xlu2 %1024  ;;  %v471_v29 = vld [vmem:[%s9527_s3] sm:$0xff] }
 0x2a8   : > { %v1026_v0 = vperm.slane %v1025_v41, %v7623_v62  ;;  %v561_v37 = vperm.slane %v471_v29, 1  ;;  %v558_v47 = vperm.slane %v471_v29, 0  ;;  %v638_v39 = vperm.slane %v471_v29, 2 }
 0x2a9   : > { %v954_v48 = vmul.f32 %v946_v23, %v927_v7  ;;  %v939_v59 = vmul.f32 %v931_v1, %v927_v7  ;;  %v641_v6 = vperm.slane %v471_v29, 3  ;;  %v718_v34 = vperm.slane %v471_v29, 4 }
 0x2aa   : > { %v1034_v60 = vmul.f32 %v1026_v0, %v1007_v57  ;;  %v721_v23 = vperm.slane %v471_v29, 5  ;;  %v798_v7 = vperm.slane %v471_v29, 6 }
 0x2ab   : > { %v955_v50 = vsel %vm516_vm2, %v954_v48, 0.0  ;;  %v940_v38 = vsel %vm516_vm2, %v939_v59, 0.0  ;;  %v472_v59 = vld [vmem:[%s9527_s3 + $0x8] sm:$0x3f] }
 0x2ac   : > { %956 = vadd.xlane.f32.xlu1 %v955_v50  ;;  %941 = vadd.xlane.f32.xlu0 %v940_v38  ;;  %v1035_v44 = vsel %vm516_vm2, %v1034_v60, 0.0  ;;  %v801_v38 = vperm.slane %v471_v29, 7 }
 0x2b4   : > { %1036 = vadd.xlane.f32.xlu0 %v1035_v44  ;;  %v878_v44 = vperm.slane %v472_v59, 0 }
 0x2c1   : > { %v542_v45 = vpop.xlane.xlu0 %541 }
 0x2c2   : > { %v559_v46 = vmul.f32 %v558_v47, %v542_v45 }
 0x2d5   : > { %v637_v53 = vpop.xlane.xlu0 %636  ;;  %v622_v33 = vpop.xlane.xlu1 %621 }
 0x2d6   : > { %v639_v57 = vmul.f32 %v638_v39, %v622_v33  ;;  %v642_v8 = vmul.f32 %v641_v6, %v637_v53  ;;  %v961_v6 = vperm.slane %v472_v59, 3 }
 0x2de   : > { %v717_v63 = vpop.xlane.xlu0 %716 }
 0x2df   : > { %v722_v0 = vmul.f32 %v721_v23, %v717_v63 }
 0x2e0   : > { %v557_v31 = vpop.xlane.xlu2 %556 }
 0x2e1   : > { %v562_v55 = vmul.f32 %v561_v37, %v557_v31 }
 0x2e3   : > { %v563_v49 = vadd.f32 %v562_v55, %v559_v46  ;;  %v881_v55 = vperm.slane %v472_v59, 1 }
 0x2e5   : > { %v640_v43 = vadd.f32 %v639_v57, %v563_v49 }
 0x2e7   : > { %v643_v1 = vadd.f32 %v642_v8, %v640_v43  ;;  %v797_v45 = vpop.xlane.xlu0 %796  ;;  %v1038_v8 = vperm.slane %v472_v59, 4 }
 0x2e8   : > { %v702_v61 = vpop.xlane.xlu2 %701  ;;  %v802_v47 = vmul.f32 %v801_v38, %v797_v45  ;;  %v7120_v38 = vld [vmem:[%s9528_s4] ss:$0 sm:$0xff] }
 0x2e9   : > { %v719_v54 = vmul.f32 %v718_v34, %v702_v61  ;;  %v958_v61 = vperm.slane %v472_v59, 2 }
 0x2eb   : > { %v720_v48 = vadd.f32 %v719_v54, %v643_v1 }
 0x2ed   : > { %v723_v60 = vadd.f32 %v722_v0, %v720_v48 }
 0x2f0   : > { %v782_v41 = vpop.xlane.xlu2 %781 }
 0x2f1   : > { %v799_v50 = vmul.f32 %v798_v7, %v782_v41  ;;  %v1041_v7 = vperm.slane %v472_v59, 5 }
 0x2f3   : > { %v800_v37 = vadd.f32 %v799_v50, %v723_v60 }
 0x2f5   : > { %v803_v46 = vadd.f32 %v802_v47, %v800_v37  ;;  %v7383_v37 = vmov 14.0  }
 0x2f6   : > { %7175 = vrcp.f32 %v7383_v37  ;;  %v6067_v37 = vld [vmem:[%s9533_s9 + $0x18] sm:$0xf] }
 0x2fc   : > { %v7176_v47 = vpop.eup %7175 }
 0x2fd   : > { %vm1058_vm3 = vweird.f32 %v7176_v47 }
 0x2ff   : > { %v862_v31 = vpop.xlane.xlu1 %861  ;;  %v877_v39 = vpop.xlane.xlu2 %876 }
 0x300   : > { %v879_v53 = vmul.f32 %v878_v44, %v862_v31  ;;  %v882_v49 = vmul.f32 %v881_v55, %v877_v39 }
 0x302   : > { %v880_v33 = vadd.f32 %v879_v53, %v803_v46  ;;  %v1054_v53 = vmul.f32 14.0, %v7176_v47 }
 0x304   : > { %v883_v43 = vadd.f32 %v882_v49, %v880_v33  ;;  %v1055_v59 = vsub.f32 1.0, %v1054_v53 }
 0x306   : > { %v1056_v55 = vmul.f32 %v7176_v47, %v1055_v59  ;;  %v6752_v59 = vld [vmem:[%s9533_s9 + $0x54] sm:$0x70] }
 0x308   : > { %v1057_v46 = vadd.f32 %v7176_v47, %v1056_v55  ;;  %v6059_v55 = vld [vmem:[%s9533_s9 + $0x10] sm:$0xf] }
 0x30a   : > { %v1022_v23 = vpop.xlane.xlu2 %1021  ;;  %v7769_v39 = vsel %vm1058_vm3, %v7176_v47, %v1057_v46  ;;  %v6751_v46 = vld [vmem:[%s9533_s9 + $0x4c] sm:$0x70] }
 0x30b   : > { %v1039_v41 = vmul.f32 %v1038_v8, %v1022_v23  ;;  %v6045_v8 = vld [vmem:[%s9533_s9 + $0x40] sm:$0x70] }
 0x31f   : > { %v942_v57 = vpop.xlane.xlu0 %941  ;;  %v957_v34 = vpop.xlane.xlu1 %956 }
 0x320   : > { %v959_v63 = vmul.f32 %v958_v61, %v942_v57  ;;  %v962_v54 = vmul.f32 %v961_v6, %v957_v34  ;;  %v6043_v57 = vld [vmem:[%s9533_s9] sm:$0xf] }
 0x321   : > { %v6749_v34 = vld [vmem:[%s9533_s9 + $0x3c] sm:$0x70] }
 0x322   : > { %v960_v29 = vadd.f32 %v959_v63, %v883_v43  ;;  %v6741_v43 = vld [vmem:[%s9533_s9 + $0x4] sm:$0xf]  ;;  %v6044_v63 = vor.u32 %v6749_v34, %v6043_v57 }
 0x323   : > { %v6048_v23 = vor.u32 %v6741_v43, %v6045_v8 }
 0x324   : > { %v963_v1 = vadd.f32 %v962_v54, %v960_v29  ;;  %v6051_v29 = vld [vmem:[%s9533_s9 + $0x8] sm:$0xf] }
 0x325   : > { %v6750_v54 = vld [vmem:[%s9533_s9 + $0x44] sm:$0x70] }
 0x326   : > { %v1040_v0 = vadd.f32 %v1039_v41, %v963_v1  ;;  %v6052_v1 = vor.u32 %v6750_v54, %v6051_v29  ;;  %v6053_v41 = vld [vmem:[%s9533_s9 + $0x48] sm:$0x70] }
 0x327   : > { %v1037_v48 = vpop.xlane.xlu0 %1036 }
 0x328   : > { %v1042_v50 = vmul.f32 %v1041_v7, %v1037_v48  ;;  %v6742_v7 = vld [vmem:[%s9533_s9 + $0xc] sm:$0xf]  ;;  %v1206_v48 = vsel %vm1204_vm4, %v6044_v63, 0 }
 0x329   : > { %1260 = vmatpush.bf16.msra.mxu1 %v1206_v48 }
 0x32a   : > { %v1043_v60 = vadd.f32 %v1042_v50, %v1040_v0  ;;  %v6056_v0 = vor.u32 %v6742_v7, %v6053_v41  ;;  %v1209_v50 = vsel %vm1204_vm4, %v6048_v23, 0 }
 0x32b   : > { %1273 = vmatpush.bf16.msra.mxu2 %v1209_v50  ;;  %v7122_v50 = vld [vmem:[%s9530_s6] ss:$0 sm:$0xff] }
 0x32c   : > { %v1046_v44 = vadd.f32 %v7120_v38, %v1043_v60  ;;  %v1212_v38 = vsel %vm1204_vm4, %v6052_v1, 0  ;;  %v1215_v60 = vsel %vm1204_vm4, %v6056_v0, 0  ;;  %v7121_v0 = vld [vmem:[%s9529_s5] ss:$0 sm:$0xff] }
 0x32d   : > { %1286 = vmatpush.bf16.msra.mxu3 %v1212_v38  ;;  %1299 = vmatpush.bf16.msrb.mxu0 %v1215_v60  ;;  %v6745_v60 = vld [vmem:[%s9533_s9 + $0x24] sm:$0xf] }
 0x32e   : > { %v1047_v45 = vadd.f32 %v1046_v44, %v7514_v2 }
 0x330   : > { %v1050_v31 = vsel %vm442_vm1, %v1047_v45, 0.0 }
 0x331   : > { %1051 = vadd.xlane.f32.xlu1 %v1050_v31  ;;  %v6061_v31 = vld [vmem:[%s9533_s9 + $0x50] sm:$0x70] }
 0x3a4   : > { %v1052_v33 = vpop.xlane.xlu1 %1051 }
 0x3a5   : > { %v1060_v61 = vmul.f32 %v7769_v39, %v1052_v33  ;;  %v6068_v33 = vor.u32 %v6752_v59, %v6067_v37  ;;  %v6754_v37 = vld [vmem:[%s9533_s9 + $0x64] sm:$0x70]  ;;  %v6085_v59 = vld [vmem:[%s9533_s9 + $0x68] sm:$0x70] }
 0x3a7   : > { %v7772_v49 = vsub.f32 %v1047_v45, %v1060_v61  ;;  %v6743_v45 = vld [vmem:[%s9533_s9 + $0x14] sm:$0xf]  ;;  %v6060_v61 = vor.u32 %v6751_v46, %v6059_v55  ;;  %v1224_v63 = vsel %vm1204_vm4, %v6068_v33, 0 }
 0x3a8   : > { %v6064_v53 = vor.u32 %v6743_v45, %v6061_v31  ;;  %1338 = vmatpush.bf16.msrb.mxu3 %v1224_v63  ;;  %v6083_v31 = vld [vmem:[%s9533_s9 + $0x28] sm:$0xf] }
 0x3a9   : > { %v1062_v2 = vmul.f32 %v7772_v49, %v7772_v49  ;;  %v1218_v8 = vsel %vm1204_vm4, %v6060_v61, 0  ;;  %v6084_v33 = vor.u32 %v6754_v37, %v6083_v31 }
 0x3aa   : > { %v1221_v34 = vsel %vm1204_vm4, %v6064_v53, 0  ;;  %1312 = vmatpush.bf16.msrb.mxu1 %v1218_v8  ;;  %v6753_v53 = vld [vmem:[%s9533_s9 + $0x5c] sm:$0x70] }
 0x3ab   : > { %v1063_v6 = vsel %vm442_vm1, %v1062_v2, 0.0  ;;  %v6744_v2 = vld [vmem:[%s9533_s9 + $0x1c] sm:$0xf]  ;;  %1325 = vmatpush.bf16.msrb.mxu2 %v1221_v34 }
 0x3ac   : > { %1064 = vadd.xlane.f32.xlu2 %v1063_v6  ;;  %v6069_v6 = vld [vmem:[%s9533_s9 + $0x58] sm:$0x70] }
 0x3ad   : > { %v6072_v43 = vor.u32 %v6744_v2, %v6069_v6 }
 0x3af   : > { %v1227_v29 = vsel %vm1204_vm4, %v6072_v43, 0  ;;  %v1236_v43 = vsel %vm1204_vm4, %v6084_v33, 0 }
 0x3b0   : > { %1351 = vmatpush.bf16.msra.mxu0 %v1227_v29  ;;  %v6747_v29 = vld [vmem:[%s9533_s9 + $0x34] sm:$0xf] }
 0x41f   : > { %v1065_v44 = vpop.xlane.xlu2 %1064 }
 0x420   : > { %v1066_v47 = vmul.f32 %v1065_v44, %v7769_v39  ;;  %v6077_v44 = vld [vmem:[%s9533_s9 + $0x60] sm:$0x70] }
 0x421   : > { %v6080_v46 = vor.u32 %v6745_v60, %v6077_v44 }
 0x422   : > { %v1067_v57 = vadd.f32 1e-05, %v1066_v47  ;;  %v6075_v47 = vld [vmem:[%s9533_s9 + $0x20] sm:$0xf] }
 0x423   : > { %v6076_v2 = vor.u32 %v6753_v53, %v6075_v47  ;;  %v1233_v34 = vsel %vm1204_vm4, %v6080_v46, 0  ;;  %v6757_v53 = vld [vmem:[%s9535_s11 + $0x4] sm:$0xf] }
 0x424   : > { %7177 = vrsqrt.f32 %v1067_v57  ;;  %vm1074_vm6 = vweird.f32 %v1067_v57 }
 0x425   : > { %v1230_v63 = vsel %vm1204_vm4, %v6076_v2, 0  ;;  %v6123_v2 = vld [vmem:[%s9535_s11] sm:$0xf] }
 0x42a   : > { %v7178_v54 = vpop.eup %7177 }
 0x42b   : > { %v1069_v23 = vmul.f32 %v7178_v54, %v1067_v57  ;;  %vm1075_vm5 = vweird.f32 %v7178_v54 }
 0x42c   : > { %vm1076_vm7 = vmor %vm1074_vm6, %vm1075_vm5 }
 0x42d   : > { %v1070_v1 = vmul.f32 %v7178_v54, %v1069_v23  ;;  %v6099_v23 = vld [vmem:[%s9533_s9 + $0x38] sm:$0xf] }
 0x42f   : > { %v1071_v7 = vmul.f32 0.5, %v1070_v1  ;;  %v6756_v1 = vld [vmem:[%s9533_s9 + $0x74] sm:$0x70] }
 0x431   : > { %v1072_v41 = vsub.f32 1.5, %v1071_v7  ;;  %v6091_v7 = vld [vmem:[%s9533_s9 + $0x30] sm:$0xf] }
 0x433   : > { %v1073_v48 = vmul.f32 %v7178_v54, %v1072_v41  ;;  %v6755_v41 = vld [vmem:[%s9533_s9 + $0x6c] sm:$0x70] }
 0x434   : > { %v6092_v60 = vor.u32 %v6755_v41, %v6091_v7  ;;  %v6768_v7 = vld [vmem:[%s9535_s11 + $0x54] sm:$0x70] }
 0x435   : > { %v1077_v38 = vsel %vm1076_vm7, %v7178_v54, %v1073_v48  ;;  %v6093_v54 = vld [vmem:[%s9533_s9 + $0x70] sm:$0x70]  ;;  %v6748_v48 = vld [vmem:[%s9533_s9 + $0x3c] sm:$0xf] }
 0x436   : > { %v1078_v45 = vmul.f32 %v1077_v38, %v7772_v49  ;;  %v6746_v49 = vld [vmem:[%s9533_s9 + $0x2c] sm:$0xf]  ;;  %v6100_v38 = vor.u32 %v6756_v1, %v6099_v23  ;;  %v1242_v37 = vsel %vm1204_vm4, %v6092_v60, 0  ;;  %v6147_v1 = vld [vmem:[%s9535_s11 + $0x18] sm:$0xf] }
 0x437   : > { %v6088_v6 = vor.u32 %v6746_v49, %v6085_v59  ;;  %v6125_v49 = vld [vmem:[%s9535_s11 + $0x40] sm:$0x70]  ;;  %v6131_v59 = vld [vmem:[%s9535_s11 + $0x8] sm:$0xf]  ;;  %v6148_v41 = vor.u32 %v6768_v7, %v6147_v1 }
 0x438   : > { %v1080_v55 = vmul.f32 %v7121_v0, %v1078_v45  ;;  %v6101_v0 = vld [vmem:[%s9533_s9 + $0x78] sm:$0x70]  ;;  %v1248_v31 = vsel %vm1204_vm4, %v6100_v38, 0  ;;  %v6128_v46 = vor.u32 %v6757_v53, %v6125_v49  ;;  %v6155_v49 = vld [vmem:[%s9535_s11 + $0x20] sm:$0xf] }
 0x439   : > { %v1239_v8 = vsel %vm1204_vm4, %v6088_v6, 0  ;;  %v6104_v44 = vor.u32 %v6748_v48, %v6101_v0  ;;  %v6765_v6 = vld [vmem:[%s9535_s11 + $0x3c] sm:$0x70]  ;;  %v6767_v48 = vld [vmem:[%s9535_s11 + $0x4c] sm:$0x70] }
 0x43a   : > { %v7865_v61 = vadd.f32 %v7122_v50, %v1080_v55  ;;  %v6096_v50 = vor.u32 %v6747_v29, %v6093_v54  ;;  %v6766_v55 = vld [vmem:[%s9535_s11 + $0x44] sm:$0x70]  ;;  %v6141_v29 = vld [vmem:[%s9535_s11 + $0x50] sm:$0x70]  ;;  %v6139_v54 = vld [vmem:[%s9535_s11 + $0x10] sm:$0xf] }
 0x43b   : > { %v1251_v47 = vsel %vm1204_vm4, %v6104_v44, 0  ;;  %v6132_v33 = vor.u32 %v6766_v55, %v6131_v59  ;;  %v6760_v0 = vld [vmem:[%s9535_s11 + $0x1c] sm:$0xf]  ;;  %v6769_v59 = vld [vmem:[%s9535_s11 + $0x5c] sm:$0x70] }
 0x43c   : > { %v1083_v57 = vpack.c.bf16 %v7865_v61, %v7865_v61  ;;  %v1245_v45 = vsel %vm1204_vm4, %v6096_v50, 0  ;;  %v6140_v50 = vor.u32 %v6767_v48, %v6139_v54  ;;  %v6149_v38 = vld [vmem:[%s9535_s11 + $0x58] sm:$0x70]  ;;  %v6761_v7 = vld [vmem:[%s9535_s11 + $0x24] sm:$0xf] }
 0x43d   : > { %v6152_v60 = vor.u32 %v6760_v0, %v6149_v38  ;;  %v7968_v44 = vld [vmem:[%s9534_s10] ss:$4 sm:$0xff] }
 0x43e   : > { %6105 = vmatmul.msk.bf16.vlgmr.msra.gmra.mxu1 %vm442_vm1, %v1083_v57  ;;  %6106 = vmatmul.msk.bf16.vlgmr.msra.gmra.mxu2 %vm442_vm1, %v1083_v57  ;;  %v6770_v38 = vld [vmem:[%s9535_s11 + $0x64] sm:$0x70] }
 0x43f   : > { %6107 = vmatmul.msk.bf16.vlgmr.msra.gmra.mxu3 %vm442_vm1, %v1083_v57  ;;  %6108 = vmatmul.msk.bf16.vlgmr.msrb.gmra.mxu0 %vm442_vm1, %v1083_v57 }
 0x440   : > { %1377 = vmatpush.bf16.msra.mxu2 %v1233_v34  ;;  %1390 = vmatpush.bf16.msra.mxu3 %v1236_v43  ;;  %v6758_v34 = vld [vmem:[%s9535_s11 + $0xc] sm:$0xf]  ;;  %v6124_v43 = vor.u32 %v6765_v6, %v6123_v2  ;;  %v1106_v6 = vperm.slane %v7968_v44, 1 }
 0x441   : > { %1364 = vmatpush.bf16.msra.mxu1 %v1230_v63  ;;  %1403 = vmatpush.bf16.msrb.mxu0 %v1239_v8  ;;  %v6133_v63 = vld [vmem:[%s9535_s11 + $0x48] sm:$0x70] }
 0x442   : > { %v6136_v8 = vor.u32 %v6758_v34, %v6133_v63  ;;  %v6156_v63 = vor.u32 %v6769_v59, %v6155_v49  ;;  %v1109_v59 = vperm.slane %v7968_v44, 4 }
 0x44e   : > { %6109 = vmatmul.msk.bf16.vlgmr.msrb.gmra.mxu1 %vm442_vm1, %v1083_v57  ;;  %6110 = vmatmul.msk.bf16.vlgmr.msrb.gmra.mxu2 %vm442_vm1, %v1083_v57 }
 0x44f   : > { %6111 = vmatmul.msk.bf16.vlgmr.msrb.gmra.mxu3 %vm442_vm1, %v1083_v57  ;;  %6112 = vmatmul.msk.bf16.vlgmr.msra.gmra.mxu0 %vm442_vm1, %v1083_v57 }
 0x450   : > { %1429 = vmatpush.bf16.msrb.mxu2 %v1245_v45  ;;  %1442 = vmatpush.bf16.msrb.mxu3 %v1248_v31  ;;  %v1105_v45 = vperm.slane %v7968_v44, 0  ;;  %v1108_v31 = vperm.slane %v7968_v44, 3 }
 0x451   : > { %1416 = vmatpush.bf16.msrb.mxu1 %v1242_v37  ;;  %1455 = vmatpush.bf16.msra.mxu0 %v1251_v47 }
 0x45e   : > { %6113 = vmatmul.msk.bf16.vlgmr.msra.gmra.mxu1 %vm442_vm1, %v1083_v57  ;;  %6114 = vmatmul.msk.bf16.vlgmr.msra.gmra.mxu2 %vm442_vm1, %v1083_v57 }
 0x45f   : > { %6115 = vmatmul.msk.bf16.vlgmr.msra.gmra.mxu3 %vm442_vm1, %v1083_v57  ;;  %6116 = vmatmul.msk.bf16.vlgmr.msrb.gmra.mxu0 %vm442_vm1, %v1083_v57 }
 0x460   : > { %1611 = vmatpush.bf16.xpose.msra.mxu2 %v6128_v46  ;;  %1624 = vmatpush.bf16.xpose.msra.mxu3 %v6132_v33  ;;  %v6762_v46 = vld [vmem:[%s9535_s11 + $0x2c] sm:$0xf] }
 0x461   : > { %1598 = vmatpush.bf16.xpose.msra.mxu1 %v6124_v43  ;;  %1637 = vmatpush.bf16.xpose.msrb.mxu0 %v6136_v8  ;;  %v6165_v33 = vld [vmem:[%s9535_s11 + $0x68] sm:$0x70]  ;;  %v1107_v43 = vperm.slane %v7968_v44, 2 }
 0x46e   : > { %6117 = vmatmul.msk.bf16.vlgmr.msrb.gmra.mxu1 %vm442_vm1, %v1083_v57  ;;  %6118 = vmatmul.msk.bf16.vlgmr.msrb.gmra.mxu2 %vm442_vm1, %v1083_v57 }
 0x46f   : > { %6119 = vmatmul.msk.bf16.vlgmr.msrb.gmra.mxu3 %vm442_vm1, %v1083_v57  ;;  %6120 = vmatmul.msk.bf16.vlgmr.msra.gmra.mxu0 %vm442_vm1, %v1083_v57  ;;  %v6759_v57 = vld [vmem:[%s9535_s11 + $0x14] sm:$0xf] }
 0x470   : > { %v6144_v23 = vor.u32 %v6759_v57, %v6141_v29  ;;  %1676 = vmatpush.bf16.xpose.msrb.mxu3 %v6148_v41  ;;  %1650 = vmatpush.bf16.xpose.msrb.mxu1 %v6140_v50  ;;  %v6168_v57 = vor.u32 %v6762_v46, %v6165_v33  ;;  %v6157_v41 = vld [vmem:[%s9535_s11 + $0x60] sm:$0x70]  ;;  %v6163_v50 = vld [vmem:[%s9535_s11 + $0x28] sm:$0xf]  ;;  %v1112_v46 = vperm.slane %v7968_v44, 7 }
 0x471   : > { %1689 = vmatpush.bf16.xpose.msra.mxu0 %v6152_v60 }
 0x472   : > { %1663 = vmatpush.bf16.xpose.msrb.mxu2 %v6144_v23 }
 0x4bb   : > { %v1262_v37 = vpop.f32.mrf.mxu1 }
 0x4bc   : > { %v1263_v47 = vadd.f32 %v1262_v37, %v1105_v45  ;;  %v1301_v53 = vpop.f32.mrf.mxu0  ;;  %v6160_v37 = vor.u32 %v6761_v7, %v6157_v41  ;;  %v1111_v7 = vperm.slane %v7968_v44, 6 }
 0x4bd   : > { %v1302_v55 = vadd.f32 %v1301_v53, %v1108_v31  ;;  %v6164_v53 = vor.u32 %v6770_v38, %v6163_v50 }
 0x4be   : > { %v1461_v2 = vmax.f32 %v1263_v47, 0.0 }
 0x4bf   : > { %v1464_v34 = vmax.f32 %v1302_v55, 0.0 }
 0x4c0   : > { %v1477_v8 = vpack.c.bf16 %v1461_v2, %v1461_v2 }
 0x4c1   : > { %v1480_v29 = vpack.c.bf16 %v1464_v34, %v1464_v34  ;;  %v1275_v54 = vpop.f32.mrf.mxu2 }
 0x4c2   : > { %v1276_v23 = vadd.f32 %v1275_v54, %v1106_v6  ;;  %v1288_v1 = vpop.f32.mrf.mxu3  ;;  %1599 = vmatmul.bf16.vlgmr.msra.gmra.mxu1 %v1477_v8 }
 0x4c3   : > { %v1289_v48 = vadd.f32 %v1288_v1, %v1107_v43  ;;  %1638 = vmatmul.bf16.vlgmr.msrb.gmra.mxu0 %v1480_v29  ;;  %v1264_v0 = vpop.f32.mrf.mxu1  ;;  %1702 = vmatpush.bf16.xpose.msra.mxu1 %v6156_v63  ;;  %v6171_v43 = vld [vmem:[%s9535_s11 + $0x30] sm:$0xf]  ;;  %v6181_v29 = vld [vmem:[%s9535_s11 + $0x78] sm:$0x70] }
 0x4c4   : > { %v1462_v60 = vmax.f32 %v1276_v23, 0.0  ;;  %v1303_v45 = vpop.f32.mrf.mxu0  ;;  %1741 = vmatpush.bf16.xpose.msrb.mxu0 %v6168_v57  ;;  %v6771_v63 = vld [vmem:[%s9535_s11 + $0x6c] sm:$0x70]  ;;  %v6764_v57 = vld [vmem:[%s9535_s11 + $0x3c] sm:$0xf]  ;;  %v1110_v23 = vperm.slane %v7968_v44, 5 }
 0x4c5   : > { %v1463_v31 = vmax.f32 %v1289_v48, 0.0  ;;  %v6172_v41 = vor.u32 %v6771_v63, %v6171_v43  ;;  %v6184_v0 = vor.u32 %v6764_v57, %v6181_v29  ;;  %v6179_v44 = vld [vmem:[%s9535_s11 + $0x38] sm:$0xf] }
 0x4c6   : > { %v1478_v47 = vpack.c.bf16 %v1462_v60, %v1462_v60 }
 0x4c7   : > { %v1479_v49 = vpack.c.bf16 %v1463_v31, %v1463_v31  ;;  %v6763_v31 = vld [vmem:[%s9535_s11 + $0x34] sm:$0xf] }
 0x4c8   : > { %1612 = vmatmul.bf16.vlgmr.msra.gmra.mxu2 %v1478_v47 }
 0x4c9   : > { %1625 = vmatmul.bf16.vlgmr.msra.gmra.mxu3 %v1479_v49  ;;  %v1277_v55 = vpop.f32.mrf.mxu2  ;;  %1715 = vmatpush.bf16.xpose.msra.mxu2 %v6160_v37  ;;  %v6173_v37 = vld [vmem:[%s9535_s11 + $0x70] sm:$0x70]  ;;  %v6772_v49 = vld [vmem:[%s9535_s11 + $0x74] sm:$0x70] }
 0x4ca   : > { %v1290_v33 = vpop.f32.mrf.mxu3  ;;  %1728 = vmatpush.bf16.xpose.msra.mxu3 %v6164_v53 }
 0x4cb   : > { %v1314_v2 = vpop.f32.mrf.mxu1  ;;  %v6040_v33 = vld [vmem:[%s9534_s10 + $0x20] ss:$4 sm:$0xff] }
 0x4cc   : > { %v1315_v6 = vadd.f32 %v1314_v2, %v1109_v59  ;;  %v1353_v34 = vpop.f32.mrf.mxu0  ;;  %v6176_v2 = vor.u32 %v6763_v31, %v6173_v37  ;;  %v1113_v63 = vperm.slane %v6040_v33, 0  ;;  %v1116_v57 = vperm.slane %v6040_v33, 3 }
 0x4cd   : > { %v1354_v8 = vadd.f32 %v1353_v34, %v1112_v46  ;;  %v6180_v34 = vor.u32 %v6772_v49, %v6179_v44 }
 0x4ce   : > { %v1465_v54 = vmax.f32 %v1315_v6, 0.0 }
 0x4cf   : > { %v1468_v1 = vmax.f32 %v1354_v8, 0.0 }
 0x4d0   : > { %v1481_v48 = vpack.c.bf16 %v1465_v54, %v1465_v54 }
 0x4d1   : > { %v1484_v50 = vpack.c.bf16 %v1468_v1, %v1468_v1  ;;  %v1327_v38 = vpop.f32.mrf.mxu2 }
 0x4d2   : > { %v1328_v60 = vadd.f32 %v1327_v38, %v1110_v23  ;;  %v1340_v45 = vpop.f32.mrf.mxu3  ;;  %1651 = vmatmul.bf16.vlgmr.msrb.gmra.mxu1 %v1481_v48  ;;  %v1114_v48 = vperm.slane %v6040_v33, 1 }
 0x4d3   : > { %v1341_v47 = vadd.f32 %v1340_v45, %v1111_v7  ;;  %1690 = vmatmul.bf16.vlgmr.msra.gmra.mxu0 %v1484_v50  ;;  %v1316_v53 = vpop.f32.mrf.mxu1  ;;  %1754 = vmatpush.bf16.xpose.msrb.mxu1 %v6172_v41  ;;  %v1115_v50 = vperm.slane %v6040_v33, 2 }
 0x4d4   : > { %v1466_v59 = vmax.f32 %v1328_v60, 0.0  ;;  %v1355_v55 = vpop.f32.mrf.mxu0  ;;  %1793 = vmatpush.bf16.xpose.msra.mxu0 %v6184_v0 }
 0x4d5   : > { %v1467_v46 = vmax.f32 %v1341_v47, 0.0 }
 0x4d6   : > { %v1482_v6 = vpack.c.bf16 %v1466_v59, %v1466_v59 }
 0x4d7   : > { %v1483_v43 = vpack.c.bf16 %v1467_v46, %v1467_v46 }
 0x4d8   : > { %1664 = vmatmul.bf16.vlgmr.msrb.gmra.mxu2 %v1482_v6 }
 0x4d9   : > { %1677 = vmatmul.bf16.vlgmr.msrb.gmra.mxu3 %v1483_v43  ;;  %v1329_v8 = vpop.f32.mrf.mxu2  ;;  %1767 = vmatpush.bf16.xpose.msrb.mxu2 %v6176_v2  ;;  %v1117_v2 = vperm.slane %v6040_v33, 4 }
 0x4da   : > { %v1342_v29 = vpop.f32.mrf.mxu3  ;;  %1780 = vmatpush.bf16.xpose.msrb.mxu3 %v6180_v34  ;;  %v1120_v34 = vperm.slane %v6040_v33, 7 }
 0x4db   : > { %v1366_v54 = vpop.f32.mrf.mxu1 }
 0x4dc   : > { %v1367_v23 = vadd.f32 %v1366_v54, %v1113_v63  ;;  %v1405_v1 = vpop.f32.mrf.mxu0 }
 0x4dd   : > { %v1406_v7 = vadd.f32 %v1405_v1, %v1116_v57 }
 0x4de   : > { %v1469_v41 = vmax.f32 %v1367_v23, 0.0  ;;  %v1118_v23 = vperm.slane %v6040_v33, 5 }
 0x4df   : > { %v1472_v0 = vmax.f32 %v1406_v7, 0.0  ;;  %v1119_v7 = vperm.slane %v6040_v33, 6 }
 0x4e0   : > { %v1485_v38 = vpack.c.bf16 %v1469_v41, %v1469_v41 }
 0x4e1   : > { %v1488_v60 = vpack.c.bf16 %v1472_v0, %v1472_v0  ;;  %v1379_v45 = vpop.f32.mrf.mxu2 }
 0x4e2   : > { %v1380_v31 = vadd.f32 %v1379_v45, %v1114_v48  ;;  %v1392_v37 = vpop.f32.mrf.mxu3  ;;  %1703 = vmatmul.bf16.vlgmr.msra.gmra.mxu1 %v1485_v38 }
 0x4e3   : > { %v1393_v47 = vadd.f32 %v1392_v37, %v1115_v50  ;;  %1742 = vmatmul.bf16.vlgmr.msrb.gmra.mxu0 %v1488_v60  ;;  %v1368_v53 = vpop.f32.mrf.mxu1 }
 0x4e4   : > { %v1470_v44 = vmax.f32 %v1380_v31, 0.0  ;;  %v1407_v49 = vpop.f32.mrf.mxu0 }
 0x4e5   : > { %v1471_v59 = vmax.f32 %v1393_v47, 0.0 }
 0x4e6   : > { %v1486_v55 = vpack.c.bf16 %v1470_v44, %v1470_v44 }
 0x4e7   : > { %v1487_v46 = vpack.c.bf16 %v1471_v59, %v1471_v59 }
 0x4e8   : > { %1716 = vmatmul.bf16.vlgmr.msra.gmra.mxu2 %v1486_v55 }
 0x4e9   : > { %1729 = vmatmul.bf16.vlgmr.msra.gmra.mxu3 %v1487_v46  ;;  %v1381_v6 = vpop.f32.mrf.mxu2 }
 0x4ea   : > { %v1394_v43 = vpop.f32.mrf.mxu3 }
 0x4eb   : > { %v1418_v63 = vpop.f32.mrf.mxu1 }
 0x4ec   : > { %v1419_v8 = vadd.f32 %v1418_v63, %v1117_v2  ;;  %v1457_v57 = vpop.f32.mrf.mxu0 }
 0x4ed   : > { %v1458_v29 = vadd.f32 %v1457_v57, %v1120_v34  ;;  %v7123_v34 = vld [vmem:[%s9536_s12] ss:$0 sm:$0xff] }
 0x4ee   : > { %v1473_v54 = vmax.f32 %v1419_v8, 0.0 }
 0x4ef   : > { %v1476_v1 = vmax.f32 %v1458_v29, 0.0 }
 0x4f0   : > { %v1489_v41 = vpack.c.bf16 %v1473_v54, %v1473_v54 }
 0x4f1   : > { %v1492_v48 = vpack.c.bf16 %v1476_v1, %v1476_v1  ;;  %v1431_v0 = vpop.f32.mrf.mxu2 }
 0x4f2   : > { %v1432_v50 = vadd.f32 %v1431_v0, %v1118_v23  ;;  %v1444_v38 = vpop.f32.mrf.mxu3  ;;  %1755 = vmatmul.bf16.vlgmr.msrb.gmra.mxu1 %v1489_v41 }
 0x4f3   : > { %v1445_v60 = vadd.f32 %v1444_v38, %v1119_v7  ;;  %1794 = vmatmul.bf16.vlgmr.msra.gmra.mxu0 %v1492_v48  ;;  %v1420_v45 = vpop.f32.mrf.mxu1 }
 0x4f4   : > { %v1474_v31 = vmax.f32 %v1432_v50, 0.0  ;;  %v1459_v37 = vpop.f32.mrf.mxu0 }
 0x4f5   : > { %v1475_v47 = vmax.f32 %v1445_v60, 0.0 }
 0x4f6   : > { %v1490_v53 = vpack.c.bf16 %v1474_v31, %v1474_v31 }
 0x4f7   : > { %v1491_v44 = vpack.c.bf16 %v1475_v47, %v1475_v47 }
 0x4f8   : > { %1768 = vmatmul.bf16.vlgmr.msrb.gmra.mxu2 %v1490_v53 }
 0x4f9   : > { %1781 = vmatmul.bf16.vlgmr.msrb.gmra.mxu3 %v1491_v44  ;;  %v1433_v49 = vpop.f32.mrf.mxu2 }
 0x4fa   : > { %v1446_v59 = vpop.f32.mrf.mxu3 }
 0x53f   : > { %v1600_v55 = vpop.f32.mrf.mxu1 }
 0x540   : > { %v1639_v33 = vpop.f32.mrf.mxu0  ;;  %v1601_v8 = vadd.f32 %v7123_v34, %v1600_v55 }
 0x547   : > { %v1602_v46 = vpop.f32.mrf.mxu1 }
 0x548   : > { %v1641_v2 = vpop.f32.mrf.mxu0 }
 0x54b   : > { %v1613_v6 = vpop.f32.mrf.mxu2 }
 0x54c   : > { %v1626_v43 = vpop.f32.mrf.mxu3  ;;  %v1614_v29 = vadd.f32 %v1613_v6, %v1601_v8 }
 0x54e   : > { %v1627_v1 = vadd.f32 %v1626_v43, %v1614_v29 }
 0x54f   : > { %v1652_v63 = vpop.f32.mrf.mxu1 }
 0x550   : > { %v1691_v57 = vpop.f32.mrf.mxu0  ;;  %v1640_v48 = vadd.f32 %v1639_v33, %v1627_v1 }
 0x552   : > { %v1653_v38 = vadd.f32 %v1652_v63, %v1640_v48 }
 0x553   : > { %v1615_v54 = vpop.f32.mrf.mxu2 }
 0x554   : > { %v1628_v23 = vpop.f32.mrf.mxu3 }
 0x557   : > { %v1654_v7 = vpop.f32.mrf.mxu1 }
 0x558   : > { %v1693_v41 = vpop.f32.mrf.mxu0 }
 0x55b   : > { %v1665_v0 = vpop.f32.mrf.mxu2 }
 0x55c   : > { %v1678_v50 = vpop.f32.mrf.mxu3  ;;  %v1666_v45 = vadd.f32 %v1665_v0, %v1653_v38 }
 0x55e   : > { %v1679_v47 = vadd.f32 %v1678_v50, %v1666_v45 }
 0x55f   : > { %v1704_v60 = vpop.f32.mrf.mxu1 }
 0x560   : > { %v1743_v31 = vpop.f32.mrf.mxu0  ;;  %v1692_v49 = vadd.f32 %v1691_v57, %v1679_v47 }
 0x562   : > { %v1705_v46 = vadd.f32 %v1704_v60, %v1692_v49  ;;  %v6186_v49 = vld [vmem:[%s9525_s1 + $0x18] sm:$0x3f] }
 0x563   : > { %v1667_v37 = vpop.f32.mrf.mxu2  ;;  %6187 = vmatpush.msk.msra.mxu1 %vm446_vm0, %v6186_v49  ;;  %v9639_v49 = vmov 9  }
 0x564   : > { %v1680_v53 = vpop.f32.mrf.mxu3 }
 0x567   : > { %v1706_v44 = vpop.f32.mrf.mxu1 }
 0x568   : > { %v1745_v59 = vpop.f32.mrf.mxu0 }
 0x56b   : > { %v1717_v55 = vpop.f32.mrf.mxu2 }
 0x56c   : > { %v1730_v2 = vpop.f32.mrf.mxu3  ;;  %v1718_v6 = vadd.f32 %v1717_v55, %v1705_v46 }
 0x56e   : > { %v1731_v8 = vadd.f32 %v1730_v2, %v1718_v6 }
 0x56f   : > { %v1756_v34 = vpop.f32.mrf.mxu1 }
 0x570   : > { %v1795_v43 = vpop.f32.mrf.mxu0  ;;  %v1744_v54 = vadd.f32 %v1743_v31, %v1731_v8 }
 0x572   : > { %v1757_v1 = vadd.f32 %v1756_v34, %v1744_v54 }
 0x573   : > { %v1719_v33 = vpop.f32.mrf.mxu2 }
 0x574   : > { %v1732_v29 = vpop.f32.mrf.mxu3 }
 0x575   : > { %v7124_v29 = vld [vmem:[%s9531_s7] ss:$0 sm:$0xff] }
 0x577   : > { %v1758_v63 = vpop.f32.mrf.mxu1 }
 0x578   : > { %v1797_v23 = vpop.f32.mrf.mxu0 }
 0x579   : > { %v7125_v23 = vld [vmem:[%s9532_s8] ss:$0 sm:$0xff] }
 0x57b   : > { %v1769_v7 = vpop.f32.mrf.mxu2 }
 0x57c   : > { %v1770_v41 = vadd.f32 %v1769_v7, %v1757_v1  ;;  %v1782_v48 = vpop.f32.mrf.mxu3 }
 0x57e   : > { %v1783_v0 = vadd.f32 %v1782_v48, %v1770_v41  ;;  %v7126_v41 = vld [vmem:[%s9526_s2 + $0x1] ss:$0 sm:$0xff] }
 0x580   : > { %v1796_v50 = vadd.f32 %v1795_v43, %v1783_v0 }
 0x582   : > { %v1799_v57 = vadd.f32 %v1796_v50, %v7865_v61  ;;  %v6185_v61 = vld [vmem:[%s9525_s1 + $0x10] sm:$0xff] }
 0x583   : > { %v1771_v38 = vpop.f32.mrf.mxu2  ;;  %1854 = vmatpush.msra.mxu1 %v6185_v61  ;;  %v9640_v61 = vmov 10  }
 0x584   : > { %v1784_v60 = vpop.f32.mrf.mxu3  ;;  %v1802_v45 = vsel %vm442_vm1, %v1799_v57, 0.0  ;;  %v9634_v38 = vmov 3  }
 0x585   : > { %1803 = vadd.xlane.f32.xlu0 %v1802_v45  ;;  %v9635_v45 = vmov 5  }
 0x5f8   : > { %v1804_v37 = vpop.xlane.xlu0 %1803 }
 0x5f9   : > { %v1805_v47 = vmul.f32 %v1804_v37, %v7769_v39  ;;  %v9636_v37 = vmov 4  }
 0x5fb   : > { %v1806_v53 = vsub.f32 %v1799_v57, %v1805_v47  ;;  %v9633_v57 = vmov 2  }
 0x5fd   : > { %v1807_v31 = vmul.f32 %v1806_v53, %v1806_v53 }
 0x5ff   : > { %v1808_v44 = vsel %vm442_vm1, %v1807_v31, 0.0  ;;  %v9638_v31 = vmov 7  }
 0x600   : > { %1809 = vadd.xlane.f32.xlu1 %v1808_v44 }
 0x673   : > { %v1810_v59 = vpop.xlane.xlu1 %1809 }
 0x674   : > { %v1811_v55 = vmul.f32 %v1810_v59, %v7769_v39 }
 0x676   : > { %v1812_v46 = vadd.f32 1e-05, %v1811_v55 }
 0x678   : > { %7179 = vrsqrt.f32 %v1812_v46  ;;  %vm1819_vm9 = vweird.f32 %v1812_v46 }
 0x67e   : > { %v7180_v2 = vpop.eup %7179 }
 0x67f   : > { %v1814_v6 = vmul.f32 %v7180_v2, %v1812_v46  ;;  %vm1820_vm8 = vweird.f32 %v7180_v2  ;;  %v9641_v46 = vmov 12  }
 0x680   : > { %vm1821_vm10 = vmor %vm1819_vm9, %vm1820_vm8 }
 0x681   : > { %v1815_v34 = vmul.f32 %v7180_v2, %v1814_v6 }
 0x683   : > { %v1816_v43 = vmul.f32 0.5, %v1815_v34 }
 0x685   : > { %v1817_v8 = vsub.f32 1.5, %v1816_v43 }
 0x687   : > { %v1818_v33 = vmul.f32 %v7180_v2, %v1817_v8 }
 0x689   : > { %v1822_v54 = vsel %vm1821_vm10, %v7180_v2, %v1818_v33  ;;  %v9642_v2 = vmov 13  }
 0x68a   : > { %v1823_v63 = vmul.f32 %v1822_v54, %v1806_v53  ;;  %v9637_v53 = vmov 6  }
 0x68c   : > { %v1825_v1 = vmul.f32 %v7124_v29, %v1823_v63 }
 0x68e   : > { %v8050_v7 = vadd.f32 %v7125_v23, %v1825_v1 }
 0x690   : > { %6188 = vmatmul.msk.f32.vlgmr.msra.gmra.mxu1 %vm442_vm1, %v8050_v7 }
 0x70d   : > { %v1856_v48 = vpop.f32.mrf.mxu1 }
 0x70e   : > { %v8057_v0 = vadd.f32 %v7126_v41, %v1856_v48 }
 0x710   : > { %1966 = vperm.xlu1 %6996, %v8057_v0   ;;  %1886 = vperm.xlu0 %6994, %v8057_v0   ;;  %v1859_v50 = vmul.f32 0.70710677, %v8057_v0 }
 0x711   : > { %1870 = vperm.xlu2 %6993, %v8057_v0  }
 0x718   : > { %6999 = vset.pattern.permute.xlu1 %v9583_v13  ;;  %6997 = vset.pattern.permute.xlu0 %v9599_v14 }
 0x719   : > { %6995 = vset.pattern.permute.xlu2 %v9608_v4  ;;  %2110 = vperm.xlu1 %6999, %v8057_v0  }
 0x71a   : > { %2030 = vperm.xlu0 %6997, %v8057_v0   ;;  %1950 = vperm.xlu2 %6995, %v8057_v0  }
 0x721   : > { %7002 = vset.pattern.permute.xlu1 %v9579_v16 }
 0x722   : > { %7000 = vset.pattern.permute.xlu0 %v9581_v17  ;;  %6998 = vset.pattern.permute.xlu2 %v9593_v3 }
 0x723   : > { %2206 = vperm.xlu1 %7002, %v8057_v0   ;;  %2126 = vperm.xlu0 %7000, %v8057_v0  }
 0x724   : > { %2046 = vperm.xlu2 %6998, %v8057_v0  }
 0x72b   : > { %7003 = vset.pattern.permute.xlu1 %v9577_v19  ;;  %7009 = vset.pattern.permute.xlu0 %v9609_v25 }
 0x72c   : > { %7001 = vset.pattern.permute.xlu2 %v9595_v9  ;;  %2270 = vperm.xlu1 %7003, %v8057_v0  }
 0x72d   : > { %1990 = vperm.xlu0 %7009, %v8057_v0   ;;  %2190 = vperm.xlu2 %7001, %v8057_v0  }
 0x734   : > { %7006 = vset.pattern.permute.xlu1 %v9575_v22 }
 0x735   : > { %7012 = vset.pattern.permute.xlu0 %v9587_v32  ;;  %7004 = vset.pattern.permute.xlu2 %v9603_v12 }
 0x736   : > { %2366 = vperm.xlu1 %7006, %v8057_v0   ;;  %2085 = vperm.xlu0 %7012, %v8057_v0  }
 0x737   : > { %2286 = vperm.xlu2 %7004, %v8057_v0  }
 0x73e   : > { %7008 = vset.pattern.permute.xlu1 %v9610_v18  ;;  %7013 = vset.pattern.permute.xlu0 %v9601_v35 }
 0x73f   : > { %7005 = vset.pattern.permute.xlu2 %v9597_v15  ;;  %1925 = vperm.xlu1 %7008, %v8057_v0  }
 0x740   : > { %2150 = vperm.xlu0 %7013, %v8057_v0   ;;  %2350 = vperm.xlu2 %7005, %v8057_v0  }
 0x747   : > { %7010 = vset.pattern.permute.xlu1 %v9605_v28 }
 0x748   : > { %7015 = vset.pattern.permute.xlu0 %v9591_v58  ;;  %7007 = vset.pattern.permute.xlu2 %v9616_v20 }
 0x749   : > { %2005 = vperm.xlu1 %7010, %v8057_v0   ;;  %2230 = vperm.xlu0 %7015, %v8057_v0  }
 0x74a   : > { %1910 = vperm.xlu2 %7007, %v8057_v0  }
 0x751   : > { %7011 = vset.pattern.permute.xlu1 %v9607_v30  ;;  %7016 = vset.pattern.permute.xlu0 %v9573_v52 }
 0x752   : > { %7014 = vset.pattern.permute.xlu2 %v9571_v36  ;;  %2070 = vperm.xlu1 %7011, %v8057_v0  }
 0x753   : > { %2245 = vperm.xlu0 %7016, %v8057_v0   ;;  %2165 = vperm.xlu2 %7014, %v8057_v0  }
 0x75a   : > { %7017 = vset.pattern.permute.xlu1 %v9589_v21 }
 0x75b   : > { %7025 = vset.pattern.permute.xlu0 %v9569_v24  ;;  %7018 = vset.pattern.permute.xlu2 %v9585_v27 }
 0x75c   : > { %2186 = vperm.xlu0 %7025, %v1859_v50   ;;  %1882 = vperm.xlu2 %7018, %v1859_v50  }
 0x75d   : > { %1865 = vperm.xlu1 %7017, %v1859_v50  }
 0x764   : > { %7028 = vset.pattern.permute.xlu0 %v9567_v26  ;;  %7019 = vset.pattern.permute.xlu2 %v9633_v57 }
 0x765   : > { %7020 = vset.pattern.permute.xlu1 %v9634_v38  ;;  %2282 = vperm.xlu0 %7028, %v1859_v50  }
 0x766   : > { %1946 = vperm.xlu2 %7019, %v1859_v50   ;;  %1962 = vperm.xlu1 %7020, %v1859_v50  }
 0x76b   : > { %v1871_v60 = vpop.permute.xlu2 %1870 }
 0x76c   : > { %v1872_v19 = vperm.slane %v1871_v60, %v7623_v62 }
 0x76d   : > { %7034 = vset.pattern.permute.xlu0 %v9561_v40 }
 0x76e   : > { %7022 = vset.pattern.permute.xlu2 %v9635_v45  ;;  %7021 = vset.pattern.permute.xlu1 %v9636_v37 }
 0x76f   : > { %2042 = vperm.xlu2 %7022, %v1859_v50   ;;  %2026 = vperm.xlu1 %7021, %v1859_v50  }
 0x774   : > { %v1951_v47 = vpop.permute.xlu2 %1950 }
 0x775   : > { %v1952_v9 = vperm.slane %v1951_v47, %v7623_v62 }
 0x777   : > { %7023 = vset.pattern.permute.xlu2 %v9637_v53  ;;  %7024 = vset.pattern.permute.xlu1 %v9638_v31 }
 0x778   : > { %2106 = vperm.xlu2 %7023, %v1859_v50   ;;  %2122 = vperm.xlu1 %7024, %v1859_v50  }
 0x77e   : > { %v8116_v44 = vpop.permute.xlu2 %2046 }
 0x780   : > { %7026 = vset.pattern.permute.xlu2 %v9639_v49  ;;  %7027 = vset.pattern.permute.xlu1 %v9640_v61 }
 0x781   : > { %2202 = vperm.xlu2 %7026, %v1859_v50   ;;  %2266 = vperm.xlu1 %7027, %v1859_v50  }
 0x782   : > { %v1967_v59 = vpop.permute.xlu1 %1966  ;;  %v1887_v34 = vpop.permute.xlu0 %1886 }
 0x783   : > { %v1888_v16 = vperm.slane %v1887_v34, %v7623_v62  ;;  %v1968_v15 = vperm.slane %v1967_v59, %v7623_v62 }
 0x787   : > { %v2191_v55 = vpop.permute.xlu2 %2190 }
 0x789   : > { %7029 = vset.pattern.permute.xlu2 %v9641_v46  ;;  %7030 = vset.pattern.permute.xlu1 %v9642_v2 }
 0x78a   : > { %2346 = vperm.xlu2 %7029, %v1859_v50   ;;  %2362 = vperm.xlu1 %7030, %v1859_v50  }
 0x78b   : > { %v2111_v6 = vpop.permute.xlu1 %2110 }
 0x78c   : > { %v2031_v33 = vpop.permute.xlu0 %2030  ;;  %v2112_v59 = vperm.slane %v2111_v6, %v7623_v62 }
 0x791   : > { %v8122_v43 = vpop.permute.xlu2 %2286 }
 0x792   : > { %7032 = vset.pattern.permute.xlu2 %v9563_v51  ;;  %7031 = vset.pattern.permute.xlu1 %v9565_v42 }
 0x795   : > { %v2207_v8 = vpop.permute.xlu1 %2206  ;;  %v2127_v63 = vpop.permute.xlu0 %2126 }
 0x796   : > { %v2208_v60 = vperm.slane %v2207_v8, %v7623_v62 }
 0x79a   : > { %v8126_v29 = vpop.permute.xlu2 %2350 }
 0x79e   : > { %v8128_v54 = vpop.permute.xlu1 %2270 }
 0x79f   : > { %v8134_v41 = vpop.permute.xlu0 %1990 }
 0x7a4   : > { %v8130_v23 = vpop.permute.xlu2 %1910 }
 0x7a8   : > { %v8132_v1 = vpop.permute.xlu1 %2366  ;;  %v8140_v40 = vpop.permute.xlu0 %2085 }
 0x7ad   : > { %v8136_v48 = vpop.permute.xlu2 %2165 }
 0x7b1   : > { %v8138_v50 = vpop.permute.xlu1 %1925 }
 0x7b2   : > { %v8144_v26 = vpop.permute.xlu0 %2150 }
 0x7b6   : > { %v1883_v51 = vpop.permute.xlu2 %1882 }
 0x7b7   : > { %v1896_v13 = vmul.f32 %v1888_v16, %v1883_v51  ;;  %v2032_v51 = vperm.slane %v2031_v33, %v7623_v62 }
 0x7bb   : > { %v8142_v42 = vpop.permute.xlu1 %2005  ;;  %v8148_v52 = vpop.permute.xlu0 %2230 }
 0x7c0   : > { %v1947_v24 = vpop.permute.xlu2 %1946 }
 0x7c1   : > { %v1960_v35 = vmul.f32 %v1952_v9, %v1947_v24 }
 0x7c4   : > { %v8146_v36 = vpop.permute.xlu1 %2070 }
 0x7c5   : > { %v8152_v32 = vpop.permute.xlu0 %2245 }
 0x7c9   : > { %v2043_v22 = vpop.permute.xlu2 %2042 }
 0x7ce   : > { %v2187_v16 = vpop.permute.xlu0 %2186 }
 0x7cf   : > { %v1866_v17 = vpop.permute.xlu1 %1865 }
 0x7d0   : > { %v1880_v27 = vmul.f32 %v1872_v19, %v1866_v17  ;;  %v2192_v17 = vperm.slane %v2191_v55, %v7623_v62  ;;  %v2128_v55 = vperm.slane %v2127_v63, %v7623_v62 }
 0x7d2   : > { %v2107_v21 = vpop.permute.xlu2 %2106  ;;  %v1897_v58 = vadd.f32 %v1896_v13, %v1880_v27  ;;  %v2200_v27 = vmul.f32 %v2192_v17, %v2187_v16  ;;  %v2288_v16 = vperm.slane %v8122_v43, %v7623_v62  ;;  %v2272_v17 = vperm.slane %v8128_v54, %v7623_v62 }
 0x7d4   : > { %v1898_v3 = vsel %vm516_vm2, %v1897_v58, -inf }
 0x7d5   : > { %1899 = vmax.xlane.f32.xlu0 %v1898_v3  ;;  %v2048_v3 = vperm.slane %v8116_v44, %v7623_v62 }
 0x7d8   : > { %v1963_v14 = vpop.permute.xlu1 %1962 }
 0x7d9   : > { %v1976_v12 = vmul.f32 %v1968_v15, %v1963_v14  ;;  %v2056_v14 = vmul.f32 %v2048_v3, %v2043_v22  ;;  %v2283_v22 = vpop.permute.xlu0 %2282  ;;  %v2352_v3 = vperm.slane %v8126_v29, %v7623_v62 }
 0x7db   : > { %v2203_v34 = vpop.permute.xlu2 %2202  ;;  %v1977_v28 = vadd.f32 %v1976_v12, %v1960_v35 }
 0x7dc   : > { %v2216_v19 = vmul.f32 %v2208_v60, %v2203_v34  ;;  %v2120_v60 = vmul.f32 %v2112_v59, %v2107_v21 }
 0x7dd   : > { %v1978_v13 = vsel %vm516_vm2, %v1977_v28, -inf }
 0x7de   : > { %1979 = vmax.xlane.f32.xlu2 %v1978_v13  ;;  %v2217_v9 = vadd.f32 %v2216_v19, %v2200_v27  ;;  %v2296_v13 = vmul.f32 %v2288_v16, %v2283_v22 }
 0x7e0   : > { %v2218_v12 = vsel %vm516_vm2, %v2217_v9, -inf }
 0x7e1   : > { %v2027_v47 = vpop.permute.xlu1 %2026 }
 0x7e2   : > { %v2040_v15 = vmul.f32 %v2032_v51, %v2027_v47  ;;  %v2368_v51 = vperm.slane %v8132_v1, %v7623_v62 }
 0x7e4   : > { %v2057_v24 = vadd.f32 %v2056_v14, %v2040_v15  ;;  %v2347_v21 = vpop.permute.xlu2 %2346 }
 0x7e5   : > { %v2360_v14 = vmul.f32 %v2352_v3, %v2347_v21 }
 0x7e6   : > { %2219 = vmax.xlane.f32.xlu2 %v2218_v12  ;;  %v2058_v35 = vsel %vm516_vm2, %v2057_v24, -inf }
 0x7e7   : > { %2059 = vmax.xlane.f32.xlu1 %v2058_v35 }
 0x7ea   : > { %v2123_v8 = vpop.permute.xlu1 %2122 }
 0x7eb   : > { %v2136_v44 = vmul.f32 %v2128_v55, %v2123_v8 }
 0x7ed   : > { %v2137_v34 = vadd.f32 %v2136_v44, %v2120_v60 }
 0x7ef   : > { %v2138_v33 = vsel %vm516_vm2, %v2137_v34, -inf }
 0x7f0   : > { %2139 = vmax.xlane.f32.xlu0 %v2138_v33 }
 0x7f3   : > { %v2267_v19 = vpop.permute.xlu1 %2266 }
 0x7f4   : > { %v2280_v27 = vmul.f32 %v2272_v17, %v2267_v19 }
 0x7f6   : > { %v2297_v6 = vadd.f32 %v2296_v13, %v2280_v27 }
 0x7f8   : > { %v2298_v63 = vsel %vm516_vm2, %v2297_v6, -inf }
 0x7f9   : > { %2299 = vmax.xlane.f32.xlu1 %v2298_v63 }
 0x7fc   : > { %v2363_v47 = vpop.permute.xlu1 %2362 }
 0x7fd   : > { %v2376_v43 = vmul.f32 %v2368_v51, %v2363_v47 }
 0x7ff   : > { %v2377_v15 = vadd.f32 %v2376_v43, %v2360_v14 }
 0x801   : > { %v2378_v54 = vsel %vm516_vm2, %v2377_v15, -inf }
 0x802   : > { %2379 = vmax.xlane.f32.xlu0 %v2378_v54 }
 0x848   : > { %v1900_v12 = vpop.xlane.xlu0 %1899 }
 0x849   : > { %v1901_v35 = vsub.f32 %v1897_v58, %v1900_v12 }
 0x84b   : > { %v1902_v59 = vmul.f32 1.442695, %v1901_v35 }
 0x84d   : > { %7181 = vpow2.f32 %v1902_v59 }
 0x851   : > { %v1980_v55 = vpop.xlane.xlu2 %1979 }
 0x852   : > { %v1981_v8 = vsub.f32 %v1977_v28, %v1980_v55 }
 0x853   : > { %v7182_v60 = vpop.eup %7181 }
 0x854   : > { %v1982_v44 = vmul.f32 1.442695, %v1981_v8  ;;  %v1904_v29 = vsel %vm516_vm2, %v7182_v60, 0.0 }
 0x855   : > { %1905 = vadd.xlane.f32.xlu2 %v1904_v29  ;;  %v1912_v29 = vperm.slane %v8130_v23, %v7623_v62  ;;  %v2007_v23 = vperm.slane %v8142_v42, %v7623_v62  ;;  %v2072_v42 = vperm.slane %v8146_v36, %v7623_v62 }
 0x856   : > { %7183 = vpow2.f32 %v1982_v44 }
 0x859   : > { %v2220_v1 = vpop.xlane.xlu2 %2219 }
 0x85a   : > { %v2221_v33 = vsub.f32 %v2217_v9, %v2220_v1  ;;  %v2060_v22 = vpop.xlane.xlu1 %2059  ;;  %v1927_v1 = vperm.slane %v8138_v50, %v7623_v62 }
 0x85b   : > { %v2061_v16 = vsub.f32 %v2057_v24, %v2060_v22 }
 0x85c   : > { %v7184_v17 = vpop.eup %7183  ;;  %v2222_v19 = vmul.f32 1.442695, %v2221_v33 }
 0x85d   : > { %v2062_v13 = vmul.f32 1.442695, %v2061_v16  ;;  %v1984_v27 = vsel %vm516_vm2, %v7184_v17, 0.0 }
 0x85e   : > { %7185 = vpow2.f32 %v2222_v19  ;;  %1985 = vadd.xlane.f32.xlu1 %v1984_v27 }
 0x85f   : > { %7187 = vpow2.f32 %v2062_v13 }
 0x863   : > { %v2140_v58 = vpop.xlane.xlu0 %2139 }
 0x864   : > { %v8180_v28 = vpop.eup %7185  ;;  %v2141_v63 = vsub.f32 %v2137_v34, %v2140_v58  ;;  %v1992_v58 = vperm.slane %v8134_v41, %v7623_v62  ;;  %v2087_v41 = vperm.slane %v8140_v40, %v7623_v62  ;;  %v2232_v40 = vperm.slane %v8148_v52, %v7623_v62 }
 0x865   : > { %v8182_v21 = vpop.eup %7187  ;;  %v2224_v3 = vsel %vm516_vm2, %v8180_v28, 0.0 }
 0x866   : > { %v2142_v9 = vmul.f32 1.442695, %v2141_v63  ;;  %2225 = vadd.xlane.f32.xlu1 %v2224_v3  ;;  %v2064_v24 = vsel %vm516_vm2, %v8182_v21, 0.0 }
 0x867   : > { %2065 = vadd.xlane.f32.xlu0 %v2064_v24 }
 0x868   : > { %7189 = vpow2.f32 %v2142_v9 }
 0x86c   : > { %v2300_v51 = vpop.xlane.xlu1 %2299 }
 0x86d   : > { %v2301_v47 = vsub.f32 %v2297_v6, %v2300_v51 }
 0x86e   : > { %v8188_v14 = vpop.eup %7189 }
 0x86f   : > { %v2302_v43 = vmul.f32 1.442695, %v2301_v47  ;;  %v2144_v34 = vsel %vm516_vm2, %v8188_v14, 0.0 }
 0x870   : > { %2145 = vadd.xlane.f32.xlu2 %v2144_v34 }
 0x871   : > { %7191 = vpow2.f32 %v2302_v43 }
 0x875   : > { %v2380_v54 = vpop.xlane.xlu0 %2379 }
 0x876   : > { %v2381_v12 = vsub.f32 %v2377_v15, %v2380_v54 }
 0x877   : > { %v8192_v35 = vpop.eup %7191 }
 0x878   : > { %v2382_v59 = vmul.f32 1.442695, %v2381_v12  ;;  %v2304_v55 = vsel %vm516_vm2, %v8192_v35, 0.0 }
 0x879   : > { %2305 = vadd.xlane.f32.xlu2 %v2304_v55 }
 0x87a   : > { %7193 = vpow2.f32 %v2382_v59 }
 0x87b   : > { %2405 = vperm.xlu0 %7034, %v8057_v0  }
 0x880   : > { %v8197_v6 = vpop.eup %7193 }
 0x881   : > { %v2384_v8 = vsel %vm516_vm2, %v8197_v6, 0.0 }
 0x882   : > { %2385 = vadd.xlane.f32.xlu1 %v2384_v8 }
 0x883   : > { %7037 = vset.pattern.permute.xlu0 %v9616_v20 }
 0x891   : > { %2325 = vperm.xlu2 %7032, %v8057_v0  }
 0x899   : > { %7033 = vset.pattern.permute.xlu2 %v9614_v56 }
 0x89a   : > { %2390 = vperm.xlu2 %7033, %v8057_v0  }
 0x89b   : > { %2310 = vperm.xlu1 %7031, %v8057_v0  }
 0x8a2   : > { %7038 = vset.pattern.permute.xlu2 %v9610_v18 }
 0x8a3   : > { %7035 = vset.pattern.permute.xlu1 %v9612_v5 }
 0x8c8   : > { %v1906_v15 = vpop.xlane.xlu2 %1905 }
 0x8c9   : > { %7195 = vrcp.f32 %v1906_v15 }
 0x8cf   : > { %v7196_v44 = vpop.eup %7195 }
 0x8d0   : > { %v1908_v33 = vmul.f32 %v7196_v44, %v7182_v60  ;;  %v2152_v44 = vperm.slane %v8144_v26, %v7623_v62 }
 0x8d1   : > { %v1986_v22 = vpop.xlane.xlu1 %1985 }
 0x8d2   : > { %7197 = vrcp.f32 %v1986_v22  ;;  %v1935_v16 = vmul.f32 %v1927_v1, %v1908_v33  ;;  %v1920_v19 = vmul.f32 %v1912_v29, %v1908_v33 }
 0x8d4   : > { %v1936_v0 = vsel %vm516_vm2, %v1935_v16, 0.0  ;;  %v1921_v13 = vsel %vm516_vm2, %v1920_v19, 0.0 }
 0x8d5   : > { %1937 = vadd.xlane.f32.xlu1 %v1936_v0  ;;  %1922 = vadd.xlane.f32.xlu2 %v1921_v13 }
 0x8d8   : > { %v7198_v27 = vpop.eup %7197 }
 0x8d9   : > { %v1988_v63 = vmul.f32 %v7198_v27, %v7184_v17  ;;  %v2226_v50 = vpop.xlane.xlu1 %2225 }
 0x8da   : > { %v2066_v60 = vpop.xlane.xlu0 %2065 }
 0x8db   : > { %7199 = vrcp.f32 %v2066_v60  ;;  %v2015_v3 = vmul.f32 %v2007_v23, %v1988_v63  ;;  %v2000_v9 = vmul.f32 %v1992_v58, %v1988_v63 }
 0x8dc   : > { %7201 = vrcp.f32 %v2226_v50 }
 0x8dd   : > { %v2016_v24 = vsel %vm516_vm2, %v2015_v3, 0.0  ;;  %v2001_v51 = vsel %vm516_vm2, %v2000_v9, 0.0 }
 0x8de   : > { %2017 = vadd.xlane.f32.xlu2 %v2016_v24  ;;  %2002 = vadd.xlane.f32.xlu0 %v2001_v51 }
 0x8e1   : > { %v7200_v47 = vpop.eup %7199 }
 0x8e2   : > { %v2068_v17 = vmul.f32 %v7200_v47, %v8182_v21  ;;  %v7202_v43 = vpop.eup %7201  ;;  %v2167_v21 = vperm.slane %v8136_v48, %v7623_v62  ;;  %v2247_v48 = vperm.slane %v8152_v32, %v7623_v62 }
 0x8e3   : > { %v2146_v34 = vpop.xlane.xlu2 %2145  ;;  %v2228_v8 = vmul.f32 %v7202_v43, %v8180_v28 }
 0x8e4   : > { %7203 = vrcp.f32 %v2146_v34  ;;  %v2080_v54 = vmul.f32 %v2072_v42, %v2068_v17  ;;  %v2095_v12 = vmul.f32 %v2087_v41, %v2068_v17 }
 0x8e5   : > { %v2240_v36 = vmul.f32 %v2232_v40, %v2228_v8  ;;  %v2255_v26 = vmul.f32 %v2247_v48, %v2228_v8 }
 0x8e6   : > { %v2081_v59 = vsel %vm516_vm2, %v2080_v54, 0.0  ;;  %v2096_v55 = vsel %vm516_vm2, %v2095_v12, 0.0 }
 0x8e7   : > { %2082 = vadd.xlane.f32.xlu1 %v2081_v59  ;;  %2097 = vadd.xlane.f32.xlu2 %v2096_v55  ;;  %v2241_v28 = vsel %vm516_vm2, %v2240_v36, 0.0  ;;  %v2256_v58 = vsel %vm516_vm2, %v2255_v26, 0.0 }
 0x8ea   : > { %v7204_v15 = vpop.eup %7203 }
 0x8eb   : > { %v2148_v29 = vmul.f32 %v7204_v15, %v8188_v14 }
 0x8ec   : > { %v2306_v1 = vpop.xlane.xlu2 %2305 }
 0x8ed   : > { %7205 = vrcp.f32 %v2306_v1  ;;  %v2175_v33 = vmul.f32 %v2167_v21, %v2148_v29  ;;  %v2160_v22 = vmul.f32 %v2152_v44, %v2148_v29  ;;  %v2406_v41 = vpop.permute.xlu0 %2405 }
 0x8ee   : > { %v2407_v17 = vperm.slane %v2406_v41, %v7623_v62 }
 0x8ef   : > { %2242 = vadd.xlane.f32.xlu2 %v2241_v28  ;;  %v2176_v16 = vsel %vm516_vm2, %v2175_v33, 0.0  ;;  %v2161_v52 = vsel %vm516_vm2, %v2160_v22, 0.0 }
 0x8f0   : > { %2177 = vadd.xlane.f32.xlu1 %v2176_v16  ;;  %2162 = vadd.xlane.f32.xlu0 %v2161_v52 }
 0x8f3   : > { %v7206_v19 = vpop.eup %7205 }
 0x8f4   : > { %v2326_v0 = vpop.permute.xlu2 %2325  ;;  %v2308_v14 = vmul.f32 %v7206_v19, %v8192_v35 }
 0x8f5   : > { %v2327_v13 = vperm.slane %v2326_v0, %v7623_v62  ;;  %v2386_v27 = vpop.xlane.xlu1 %2385 }
 0x8f6   : > { %7207 = vrcp.f32 %v2386_v27 }
 0x8f7   : > { %v2335_v23 = vmul.f32 %v2327_v13, %v2308_v14 }
 0x8f8   : > { %2257 = vadd.xlane.f32.xlu0 %v2256_v58 }
 0x8f9   : > { %v2336_v63 = vsel %vm516_vm2, %v2335_v23, 0.0 }
 0x8fa   : > { %2337 = vadd.xlane.f32.xlu2 %v2336_v63 }
 0x8fc   : > { %v7208_v50 = vpop.eup %7207  ;;  %v2391_v60 = vpop.permute.xlu2 %2390 }
 0x8fd   : > { %v2392_v32 = vperm.slane %v2391_v60, %v7623_v62  ;;  %v2388_v3 = vmul.f32 %v7208_v50, %v8197_v6  ;;  %v6189_v6 = vld [vmem:[%s9527_s3 + $0x10] sm:$0xff]  ;;  %v6190_v50 = vld [vmem:[%s9527_s3 + $0x18] sm:$0x3f] }
 0x8fe   : > { %v1939_v12 = vperm.slane %v6189_v6, 0  ;;  %v1942_v59 = vperm.slane %v6189_v6, 1  ;;  %v2019_v8 = vperm.slane %v6189_v6, 2  ;;  %v2022_v1 = vperm.slane %v6189_v6, 3 }
 0x8ff   : > { %v2400_v9 = vmul.f32 %v2392_v32, %v2388_v3  ;;  %v2415_v43 = vmul.f32 %v2407_v17, %v2388_v3  ;;  %v2099_v33 = vperm.slane %v6189_v6, 4  ;;  %v2102_v26 = vperm.slane %v6189_v6, 5 }
 0x900   : > { %v2179_v0 = vperm.slane %v6189_v6, 6  ;;  %v2182_v63 = vperm.slane %v6189_v6, 7  ;;  %v2339_v17 = vperm.slane %v6190_v50, 2 }
 0x901   : > { %v2401_v35 = vsel %vm516_vm2, %v2400_v9, 0.0  ;;  %v2416_v34 = vsel %vm516_vm2, %v2415_v43, 0.0  ;;  %v2259_v9 = vperm.slane %v6190_v50, 0 }
 0x902   : > { %2402 = vadd.xlane.f32.xlu0 %v2401_v35 }
 0x90d   : > { %v2311_v24 = vpop.permute.xlu1 %2310 }
 0x90e   : > { %v2312_v51 = vperm.slane %v2311_v24, %v7623_v62  ;;  %v2262_v24 = vperm.slane %v6190_v50, 1 }
 0x910   : > { %v2320_v47 = vmul.f32 %v2312_v51, %v2308_v14 }
 0x912   : > { %v2321_v42 = vsel %vm516_vm2, %v2320_v47, 0.0 }
 0x913   : > { %2322 = vadd.xlane.f32.xlu1 %v2321_v42 }
 0x91b   : > { %2417 = vadd.xlane.f32.xlu1 %v2416_v34  ;;  %v2342_v34 = vperm.slane %v6190_v50, 3 }
 0x948   : > { %v1923_v54 = vpop.xlane.xlu2 %1922  ;;  %v1938_v55 = vpop.xlane.xlu1 %1937 }
 0x949   : > { %v1940_v36 = vmul.f32 %v1939_v12, %v1923_v54  ;;  %v1943_v21 = vmul.f32 %v1942_v59, %v1938_v55 }
 0x94b   : > { %v1944_v29 = vadd.f32 %v1943_v21, %v1940_v36  ;;  %v2422_v21 = vperm.slane %v6190_v50, 5 }
 0x951   : > { %v2018_v40 = vpop.xlane.xlu2 %2017  ;;  %v2003_v15 = vpop.xlane.xlu0 %2002 }
 0x952   : > { %v2020_v44 = vmul.f32 %v2019_v8, %v2003_v15  ;;  %v2023_v16 = vmul.f32 %v2022_v1, %v2018_v40  ;;  %v2419_v8 = vperm.slane %v6190_v50, 4  ;;  %v6219_v50 = vld [vmem:[%s9533_s9 + $0x88] sm:$0xf] }
 0x954   : > { %v2021_v28 = vadd.f32 %v2020_v44, %v1944_v29 }
 0x956   : > { %v2024_v19 = vadd.f32 %v2023_v16, %v2021_v28 }
 0x95a   : > { %v2083_v22 = vpop.xlane.xlu1 %2082  ;;  %v2098_v48 = vpop.xlane.xlu2 %2097 }
 0x95b   : > { %v2100_v52 = vmul.f32 %v2099_v33, %v2083_v22  ;;  %v2103_v27 = vmul.f32 %v2102_v26, %v2098_v48  ;;  %v7127_v22 = vld [vmem:[%s9528_s4 + $0x1] ss:$0 sm:$0xff] }
 0x95d   : > { %v2101_v13 = vadd.f32 %v2100_v52, %v2024_v19 }
 0x95f   : > { %v2104_v23 = vadd.f32 %v2103_v27, %v2101_v13  ;;  %v6211_v27 = vld [vmem:[%s9533_s9 + $0x80] sm:$0xf] }
 0x962   : > { %v2243_v3 = vpop.xlane.xlu2 %2242 }
 0x963   : > { %v2163_v14 = vpop.xlane.xlu0 %2162  ;;  %v2178_v60 = vpop.xlane.xlu1 %2177  ;;  %v2260_v41 = vmul.f32 %v2259_v9, %v2243_v3  ;;  %v6774_v9 = vld [vmem:[%s9533_s9 + $0x8c] sm:$0xf] }
 0x964   : > { %v2180_v58 = vmul.f32 %v2179_v0, %v2163_v14  ;;  %v2183_v35 = vmul.f32 %v2182_v63, %v2178_v60  ;;  %v6213_v63 = vld [vmem:[%s9533_s9 + $0xc0] sm:$0x70]  ;;  %v6782_v60 = vld [vmem:[%s9533_s9 + $0xc4] sm:$0x70] }
 0x965   : > { %v6220_v3 = vor.u32 %v6782_v60, %v6219_v50  ;;  %v6777_v50 = vld [vmem:[%s9533_s9 + $0xa4] sm:$0xf] }
 0x966   : > { %v2181_v32 = vadd.f32 %v2180_v58, %v2104_v23  ;;  %v6781_v58 = vld [vmem:[%s9533_s9 + $0xbc] sm:$0x70]  ;;  %v6245_v60 = vld [vmem:[%s9533_s9 + $0xe0] sm:$0x70] }
 0x967   : > { %v6212_v23 = vor.u32 %v6781_v58, %v6211_v27  ;;  %v7129_v27 = vld [vmem:[%s9530_s6 + $0x1] ss:$0 sm:$0xff] }
 0x968   : > { %v2184_v47 = vadd.f32 %v2183_v35, %v2181_v32  ;;  %v6221_v35 = vld [vmem:[%s9533_s9 + $0xc8] sm:$0x70] }
 0x96a   : > { %v2261_v43 = vadd.f32 %v2260_v41, %v2184_v47  ;;  %v2587_v41 = vsel %vm1204_vm4, %v6220_v3, 0  ;;  %v6786_v3 = vld [vmem:[%s9533_s9 + $0xe4] sm:$0x70] }
 0x96b   : > { %v2258_v51 = vpop.xlane.xlu0 %2257  ;;  %2661 = vmatpush.bf16.msrb.mxu0 %v2587_v41 }
 0x96c   : > { %v2263_v42 = vmul.f32 %v2262_v24, %v2258_v51  ;;  %v2581_v24 = vsel %vm1204_vm4, %v6212_v23, 0  ;;  %v6224_v51 = vor.u32 %v6774_v9, %v6221_v35  ;;  %v6785_v23 = vld [vmem:[%s9533_s9 + $0xdc] sm:$0x70]  ;;  %v6253_v9 = vld [vmem:[%s9533_s9 + $0xe8] sm:$0x70] }
 0x96d   : > { %v2338_v54 = vpop.xlane.xlu2 %2337  ;;  %2635 = vmatpush.bf16.msra.mxu2 %v2581_v24 }
 0x96e   : > { %v2264_v6 = vadd.f32 %v2263_v42, %v2261_v43  ;;  %v2343_v55 = vmul.f32 %v2342_v34, %v2338_v54  ;;  %v2590_v42 = vsel %vm1204_vm4, %v6224_v51, 0  ;;  %v6227_v43 = vld [vmem:[%s9533_s9 + $0x90] sm:$0xf]  ;;  %v6775_v54 = vld [vmem:[%s9533_s9 + $0x94] sm:$0xf]  ;;  %v6248_v51 = vor.u32 %v6777_v50, %v6245_v60 }
 0x96f   : > { %2674 = vmatpush.bf16.msrb.mxu1 %v2590_v42  ;;  %v6783_v34 = vld [vmem:[%s9533_s9 + $0xcc] sm:$0x70]  ;;  %v6317_v50 = vld [vmem:[%s9535_s11 + $0xc8] sm:$0x70] }
 0x975   : > { %v2403_v15 = vpop.xlane.xlu0 %2402 }
 0x976   : > { %v2420_v44 = vmul.f32 %v2419_v8, %v2403_v15  ;;  %v6784_v8 = vld [vmem:[%s9533_s9 + $0xd4] sm:$0x70] }
 0x986   : > { %v2323_v12 = vpop.xlane.xlu1 %2322 }
 0x987   : > { %v2340_v59 = vmul.f32 %v2339_v17, %v2323_v12 }
 0x989   : > { %v2341_v40 = vadd.f32 %v2340_v59, %v2264_v6  ;;  %v6228_v6 = vor.u32 %v6783_v34, %v6227_v43  ;;  %v6229_v59 = vld [vmem:[%s9533_s9 + $0xd0] sm:$0x70]  ;;  %v2608_v34 = vsel %vm1204_vm4, %v6248_v51, 0  ;;  %v6331_v51 = vld [vmem:[%s9535_s11 + $0x98] sm:$0xf] }
 0x98b   : > { %v2344_v36 = vadd.f32 %v2343_v55, %v2341_v40  ;;  %v6235_v55 = vld [vmem:[%s9533_s9 + $0x98] sm:$0xf]  ;;  %v6232_v40 = vor.u32 %v6775_v54, %v6229_v59  ;;  %v6787_v59 = vld [vmem:[%s9533_s9 + $0xec] sm:$0x70] }
 0x98c   : > { %v6236_v15 = vor.u32 %v6784_v8, %v6235_v55  ;;  %v6779_v55 = vld [vmem:[%s9533_s9 + $0xb4] sm:$0xf] }
 0x98d   : > { %v2421_v1 = vadd.f32 %v2420_v44, %v2344_v36  ;;  %v6776_v36 = vld [vmem:[%s9533_s9 + $0x9c] sm:$0xf]  ;;  %v6261_v8 = vld [vmem:[%s9533_s9 + $0xf0] sm:$0x70] }
 0x98e   : > { %v2418_v29 = vpop.xlane.xlu1 %2417 }
 0x98f   : > { %v2423_v33 = vmul.f32 %v2422_v21, %v2418_v29  ;;  %v6237_v21 = vld [vmem:[%s9533_s9 + $0xd8] sm:$0x70]  ;;  %v2593_v29 = vsel %vm1204_vm4, %v6228_v6, 0  ;;  %v6259_v6 = vld [vmem:[%s9533_s9 + $0xb0] sm:$0xf] }
 0x990   : > { %2687 = vmatpush.bf16.msrb.mxu2 %v2593_v29  ;;  %v6264_v29 = vor.u32 %v6779_v55, %v6261_v8  ;;  %v6347_v8 = vld [vmem:[%s9535_s11 + $0xa8] sm:$0xf] }
 0x991   : > { %v2424_v28 = vadd.f32 %v2423_v33, %v2421_v1  ;;  %v6240_v1 = vor.u32 %v6776_v36, %v6237_v21  ;;  %v2596_v33 = vsel %vm1204_vm4, %v6232_v40, 0  ;;  %v6267_v40 = vld [vmem:[%s9533_s9 + $0xb8] sm:$0xf]  ;;  %v6780_v36 = vld [vmem:[%s9533_s9 + $0xbc] sm:$0xf] }
 0x992   : > { %v6269_v21 = vld [vmem:[%s9533_s9 + $0xf8] sm:$0x70] }
 0x993   : > { %v2427_v16 = vadd.f32 %v7127_v22, %v2424_v28  ;;  %v2599_v22 = vsel %vm1204_vm4, %v6236_v15, 0  ;;  %v2602_v28 = vsel %vm1204_vm4, %v6240_v1, 0  ;;  %v6788_v15 = vld [vmem:[%s9533_s9 + $0xf4] sm:$0x70] }
 0x994   : > { %2713 = vmatpush.bf16.msra.mxu0 %v2599_v22  ;;  %2726 = vmatpush.bf16.msra.mxu1 %v2602_v28  ;;  %v6268_v1 = vor.u32 %v6788_v15, %v6267_v40  ;;  %v2620_v28 = vsel %vm1204_vm4, %v6264_v29, 0 }
 0x995   : > { %v2428_v52 = vadd.f32 %v2427_v16, %v8050_v7  ;;  %v6773_v7 = vld [vmem:[%s9533_s9 + $0x84] sm:$0xf] }
 0x996   : > { %v6216_v32 = vor.u32 %v6773_v7, %v6213_v63  ;;  %v6243_v7 = vld [vmem:[%s9533_s9 + $0xa0] sm:$0xf] }
 0x997   : > { %v2431_v48 = vsel %vm442_vm1, %v2428_v52, 0.0  ;;  %v6244_v24 = vor.u32 %v6785_v23, %v6243_v7  ;;  %v6798_v7 = vld [vmem:[%s9535_s11 + $0xc4] sm:$0x70]  ;;  %v6790_v23 = vld [vmem:[%s9535_s11 + $0x8c] sm:$0xf] }
 0x998   : > { %2432 = vadd.xlane.f32.xlu2 %v2431_v48  ;;  %v2584_v47 = vsel %vm1204_vm4, %v6216_v32, 0  ;;  %v6251_v32 = vld [vmem:[%s9533_s9 + $0xa8] sm:$0xf]  ;;  %v6320_v60 = vor.u32 %v6790_v23, %v6317_v50  ;;  %v6341_v23 = vld [vmem:[%s9535_s11 + $0xe0] sm:$0x70] }
 0x999   : > { %2648 = vmatpush.bf16.msra.mxu3 %v2584_v47  ;;  %v6252_v41 = vor.u32 %v6786_v3, %v6251_v32  ;;  %v2605_v43 = vsel %vm1204_vm4, %v6244_v24, 0  ;;  %v6323_v32 = vld [vmem:[%s9535_s11 + $0x90] sm:$0xf] }
 0x99a   : > { %v6799_v3 = vld [vmem:[%s9535_s11 + $0xcc] sm:$0x70] }
 0x99b   : > { %v2611_v54 = vsel %vm1204_vm4, %v6252_v41, 0  ;;  %v6800_v41 = vld [vmem:[%s9535_s11 + $0xd4] sm:$0x70] }
 0x99d   : > { %2700 = vmatpush.bf16.msrb.mxu3 %v2596_v33  ;;  %v6272_v33 = vor.u32 %v6780_v36, %v6269_v21  ;;  %v6802_v36 = vld [vmem:[%s9535_s11 + $0xe4] sm:$0x70]  ;;  %v6794_v21 = vld [vmem:[%s9535_s11 + $0xac] sm:$0xf] }
 0xa0b   : > { %v2433_v19 = vpop.xlane.xlu2 %2432 }
 0xa0c   : > { %v2434_v26 = vmul.f32 %v2433_v19, %v7769_v39 }
 0xa0e   : > { %v2435_v0 = vsub.f32 %v2428_v52, %v2434_v26 }
 0xa10   : > { %v2436_v14 = vmul.f32 %v2435_v0, %v2435_v0 }
 0xa12   : > { %v2437_v13 = vsel %vm442_vm1, %v2436_v14, 0.0 }
 0xa13   : > { %2438 = vadd.xlane.f32.xlu0 %v2437_v13  ;;  %v7128_v13 = vld [vmem:[%s9529_s5 + $0x1] ss:$0 sm:$0xff] }
 0xa86   : > { %v2439_v17 = vpop.xlane.xlu0 %2438 }
 0xa87   : > { %v2440_v12 = vmul.f32 %v2439_v17, %v7769_v39 }
 0xa89   : > { %v2441_v44 = vadd.f32 1e-05, %v2440_v12 }
 0xa8b   : > { %7209 = vrsqrt.f32 %v2441_v44  ;;  %vm2448_vm12 = vweird.f32 %v2441_v44 }
 0xa91   : > { %v7210_v16 = vpop.eup %7209 }
 0xa92   : > { %v2443_v52 = vmul.f32 %v7210_v16, %v2441_v44  ;;  %vm2449_vm11 = vweird.f32 %v7210_v16  ;;  %v6260_v44 = vor.u32 %v6787_v59, %v6259_v6 }
 0xa93   : > { %vm2450_vm13 = vmor %vm2448_vm12, %vm2449_vm11 }
 0xa94   : > { %v2444_v48 = vmul.f32 %v7210_v16, %v2443_v52  ;;  %v2617_v22 = vsel %vm1204_vm4, %v6260_v44, 0  ;;  %v2626_v52 = vsel %vm1204_vm4, %v6272_v33, 0  ;;  %v6349_v44 = vld [vmem:[%s9535_s11 + $0xe8] sm:$0x70] }
 0xa96   : > { %v2445_v19 = vmul.f32 0.5, %v2444_v48  ;;  %v6307_v48 = vld [vmem:[%s9535_s11 + $0x80] sm:$0xf] }
 0xa98   : > { %v2446_v26 = vsub.f32 1.5, %v2445_v19  ;;  %v6797_v19 = vld [vmem:[%s9535_s11 + $0xbc] sm:$0x70] }
 0xa9a   : > { %v2447_v14 = vmul.f32 %v7210_v16, %v2446_v26  ;;  %v6789_v26 = vld [vmem:[%s9535_s11 + $0x84] sm:$0xf] }
 0xa9c   : > { %v2451_v58 = vsel %vm2450_vm13, %v7210_v16, %v2447_v14  ;;  %v2623_v16 = vsel %vm1204_vm4, %v6268_v1, 0  ;;  %v6309_v14 = vld [vmem:[%s9535_s11 + $0xc0] sm:$0x70] }
 0xa9d   : > { %v2452_v63 = vmul.f32 %v2451_v58, %v2435_v0  ;;  %v6778_v0 = vld [vmem:[%s9533_s9 + $0xac] sm:$0xf]  ;;  %v6315_v58 = vld [vmem:[%s9535_s11 + $0x88] sm:$0xf] }
 0xa9e   : > { %v6256_v42 = vor.u32 %v6778_v0, %v6253_v9  ;;  %v6324_v0 = vor.u32 %v6799_v3, %v6323_v32  ;;  %v6791_v9 = vld [vmem:[%s9535_s11 + $0x94] sm:$0xf] }
 0xa9f   : > { %v2454_v35 = vmul.f32 %v7128_v13, %v2452_v63  ;;  %v6308_v13 = vor.u32 %v6797_v19, %v6307_v48  ;;  %v6316_v63 = vor.u32 %v6798_v7, %v6315_v58  ;;  %v6801_v58 = vld [vmem:[%s9535_s11 + $0xdc] sm:$0x70]  ;;  %v6793_v7 = vld [vmem:[%s9535_s11 + $0xa4] sm:$0xf] }
 0xaa0   : > { %v2614_v12 = vsel %vm1204_vm4, %v6256_v42, 0  ;;  %v6792_v42 = vld [vmem:[%s9535_s11 + $0x9c] sm:$0xf] }
 0xaa1   : > { %v8351_v47 = vadd.f32 %v7129_v27, %v2454_v35  ;;  %v6312_v27 = vor.u32 %v6789_v26, %v6309_v14  ;;  %v6325_v35 = vld [vmem:[%s9535_s11 + $0xd0] sm:$0x70]  ;;  %v6339_v14 = vld [vmem:[%s9535_s11 + $0xa0] sm:$0xf] }
 0xaa2   : > { %v6328_v24 = vor.u32 %v6791_v9, %v6325_v35  ;;  %v6340_v3 = vor.u32 %v6801_v58, %v6339_v14 }
 0xaa3   : > { %v2457_v17 = vpack.c.bf16 %v8351_v47, %v8351_v47 }
 0xaa5   : > { %6273 = vmatmul.msk.bf16.vlgmr.msra.gmra.mxu2 %vm442_vm1, %v2457_v17  ;;  %6274 = vmatmul.msk.bf16.vlgmr.msra.gmra.mxu3 %vm442_vm1, %v2457_v17 }
 0xaa6   : > { %6275 = vmatmul.msk.bf16.vlgmr.msrb.gmra.mxu0 %vm442_vm1, %v2457_v17  ;;  %6276 = vmatmul.msk.bf16.vlgmr.msrb.gmra.mxu1 %vm442_vm1, %v2457_v17 }
 0xaa7   : > { %2739 = vmatpush.bf16.msra.mxu2 %v2605_v43  ;;  %2752 = vmatpush.bf16.msra.mxu3 %v2608_v34  ;;  %v6333_v43 = vld [vmem:[%s9535_s11 + $0xd8] sm:$0x70] }
 0xaa8   : > { %2765 = vmatpush.bf16.msrb.mxu0 %v2611_v54  ;;  %2778 = vmatpush.bf16.msrb.mxu1 %v2614_v12  ;;  %v6336_v34 = vor.u32 %v6792_v42, %v6333_v43  ;;  %v8454_v54 = vld [vmem:[%s9534_s10 + $0x1] ss:$4 sm:$0xff] }
 0xaa9   : > { %v2483_v12 = vperm.slane %v8454_v54, 2  ;;  %v2484_v6 = vperm.slane %v8454_v54, 3  ;;  %v2481_v29 = vperm.slane %v8454_v54, 0  ;;  %v2482_v1 = vperm.slane %v8454_v54, 1 }
 0xaaa   : > { %v2488_v42 = vperm.slane %v8454_v54, 7 }
 0xab5   : > { %6277 = vmatmul.msk.bf16.vlgmr.msrb.gmra.mxu2 %vm442_vm1, %v2457_v17  ;;  %6278 = vmatmul.msk.bf16.vlgmr.msrb.gmra.mxu3 %vm442_vm1, %v2457_v17 }
 0xab6   : > { %6279 = vmatmul.msk.bf16.vlgmr.msra.gmra.mxu0 %vm442_vm1, %v2457_v17  ;;  %6280 = vmatmul.msk.bf16.vlgmr.msra.gmra.mxu1 %vm442_vm1, %v2457_v17 }
 0xab7   : > { %2791 = vmatpush.bf16.msrb.mxu2 %v2617_v22  ;;  %2804 = vmatpush.bf16.msrb.mxu3 %v2620_v28  ;;  %v6348_v28 = vor.u32 %v6802_v36, %v6347_v8  ;;  %v6365_v8 = vld [vmem:[%s9535_s11 + $0xf8] sm:$0x70] }
 0xab8   : > { %2817 = vmatpush.bf16.msra.mxu0 %v2623_v16  ;;  %2830 = vmatpush.bf16.msra.mxu1 %v2626_v52  ;;  %v6352_v16 = vor.u32 %v6794_v21, %v6349_v44 }
 0xac5   : > { %6281 = vmatmul.msk.bf16.vlgmr.msra.gmra.mxu2 %vm442_vm1, %v2457_v17  ;;  %6282 = vmatmul.msk.bf16.vlgmr.msra.gmra.mxu3 %vm442_vm1, %v2457_v17 }
 0xac6   : > { %6283 = vmatmul.msk.bf16.vlgmr.msrb.gmra.mxu0 %vm442_vm1, %v2457_v17  ;;  %6284 = vmatmul.msk.bf16.vlgmr.msrb.gmra.mxu1 %vm442_vm1, %v2457_v17 }
 0xac7   : > { %2974 = vmatpush.bf16.xpose.msra.mxu2 %v6308_v13  ;;  %2987 = vmatpush.bf16.xpose.msra.mxu3 %v6312_v27 }
 0xac8   : > { %3000 = vmatpush.bf16.xpose.msrb.mxu0 %v6316_v63  ;;  %3013 = vmatpush.bf16.xpose.msrb.mxu1 %v6320_v60 }
 0xad5   : > { %6285 = vmatmul.msk.bf16.vlgmr.msrb.gmra.mxu2 %vm442_vm1, %v2457_v17  ;;  %6286 = vmatmul.msk.bf16.vlgmr.msrb.gmra.mxu3 %vm442_vm1, %v2457_v17 }
 0xad6   : > { %6287 = vmatmul.msk.bf16.vlgmr.msra.gmra.mxu0 %vm442_vm1, %v2457_v17  ;;  %6288 = vmatmul.msk.bf16.vlgmr.msra.gmra.mxu1 %vm442_vm1, %v2457_v17  ;;  %v6332_v17 = vor.u32 %v6800_v41, %v6331_v51  ;;  %v2487_v41 = vperm.slane %v8454_v54, 6 }
 0xad7   : > { %3026 = vmatpush.bf16.xpose.msrb.mxu2 %v6324_v0  ;;  %3039 = vmatpush.bf16.xpose.msrb.mxu3 %v6328_v24  ;;  %v6344_v0 = vor.u32 %v6793_v7, %v6341_v23 }
 0xad8   : > { %3052 = vmatpush.bf16.xpose.msra.mxu0 %v6332_v17  ;;  %3065 = vmatpush.bf16.xpose.msra.mxu1 %v6336_v34  ;;  %v6363_v34 = vld [vmem:[%s9535_s11 + $0xb8] sm:$0xf] }
 0xb23   : > { %v2663_v59 = vpop.f32.mrf.mxu0  ;;  %v2676_v55 = vpop.f32.mrf.mxu1 }
 0xb24   : > { %v2664_v40 = vadd.f32 %v2663_v59, %v2483_v12  ;;  %v2677_v15 = vadd.f32 %v2676_v55, %v2484_v6  ;;  %v6804_v59 = vld [vmem:[%s9535_s11 + $0xf4] sm:$0x70]  ;;  %v6796_v55 = vld [vmem:[%s9535_s11 + $0xbc] sm:$0xf] }
 0xb25   : > { %v6364_v44 = vor.u32 %v6804_v59, %v6363_v34 }
 0xb26   : > { %v2838_v33 = vmax.f32 %v2664_v40, 0.0  ;;  %v2839_v22 = vmax.f32 %v2677_v15, 0.0  ;;  %v2485_v40 = vperm.slane %v8454_v54, 4  ;;  %v2486_v15 = vperm.slane %v8454_v54, 5  ;;  %v6795_v54 = vld [vmem:[%s9535_s11 + $0xb4] sm:$0xf] }
 0xb28   : > { %v2854_v52 = vpack.c.bf16 %v2838_v33, %v2838_v33  ;;  %v2855_v48 = vpack.c.bf16 %v2839_v22, %v2839_v22  ;;  %v2637_v19 = vpop.f32.mrf.mxu2  ;;  %v2650_v26 = vpop.f32.mrf.mxu3 }
 0xb29   : > { %v2638_v13 = vadd.f32 %v2637_v19, %v2481_v29  ;;  %v2651_v27 = vadd.f32 %v2650_v26, %v2482_v1  ;;  %v6368_v29 = vor.u32 %v6796_v55, %v6365_v8  ;;  %v6803_v19 = vld [vmem:[%s9535_s11 + $0xec] sm:$0x70]  ;;  %v6357_v26 = vld [vmem:[%s9535_s11 + $0xf0] sm:$0x70] }
 0xb2a   : > { %3001 = vmatmul.bf16.vlgmr.msrb.gmra.mxu0 %v2854_v52  ;;  %3014 = vmatmul.bf16.vlgmr.msrb.gmra.mxu1 %v2855_v48  ;;  %v6360_v23 = vor.u32 %v6795_v54, %v6357_v26 }
 0xb2b   : > { %v2836_v63 = vmax.f32 %v2638_v13, 0.0  ;;  %v2837_v50 = vmax.f32 %v2651_v27, 0.0  ;;  %v2665_v60 = vpop.f32.mrf.mxu0  ;;  %v2678_v32 = vpop.f32.mrf.mxu1  ;;  %3104 = vmatpush.bf16.xpose.msrb.mxu0 %v6348_v28  ;;  %3117 = vmatpush.bf16.xpose.msrb.mxu1 %v6352_v16  ;;  %v6355_v16 = vld [vmem:[%s9535_s11 + $0xb0] sm:$0xf] }
 0xb2c   : > { %v6356_v7 = vor.u32 %v6803_v19, %v6355_v16  ;;  %v6208_v60 = vld [vmem:[%s9534_s10 + $0x21] ss:$4 sm:$0xff] }
 0xb2d   : > { %v2852_v9 = vpack.c.bf16 %v2836_v63, %v2836_v63  ;;  %v2853_v35 = vpack.c.bf16 %v2837_v50, %v2837_v50  ;;  %v2496_v16 = vperm.slane %v6208_v60, 7  ;;  %v2493_v26 = vperm.slane %v6208_v60, 4 }
 0xb2f   : > { %2975 = vmatmul.bf16.vlgmr.msra.gmra.mxu2 %v2852_v9  ;;  %2988 = vmatmul.bf16.vlgmr.msra.gmra.mxu3 %v2853_v35  ;;  %v2492_v9 = vperm.slane %v6208_v60, 3 }
 0xb30   : > { %v2639_v24 = vpop.f32.mrf.mxu2  ;;  %v2652_v51 = vpop.f32.mrf.mxu3  ;;  %3078 = vmatpush.bf16.xpose.msra.mxu2 %v6340_v3  ;;  %3091 = vmatpush.bf16.xpose.msra.mxu3 %v6344_v0  ;;  %v2491_v0 = vperm.slane %v6208_v60, 2 }
 0xb33   : > { %v2715_v17 = vpop.f32.mrf.mxu0  ;;  %v2728_v43 = vpop.f32.mrf.mxu1 }
 0xb34   : > { %v2716_v12 = vadd.f32 %v2715_v17, %v2487_v41  ;;  %v2729_v6 = vadd.f32 %v2728_v43, %v2488_v42  ;;  %v2489_v42 = vperm.slane %v6208_v60, 0  ;;  %v2490_v17 = vperm.slane %v6208_v60, 1 }
 0xb36   : > { %v2842_v36 = vmax.f32 %v2716_v12, 0.0  ;;  %v2843_v21 = vmax.f32 %v2729_v6, 0.0 }
 0xb38   : > { %v2858_v1 = vpack.c.bf16 %v2842_v36, %v2842_v36  ;;  %v2859_v33 = vpack.c.bf16 %v2843_v21, %v2843_v21  ;;  %v2689_v22 = vpop.f32.mrf.mxu2  ;;  %v2702_v28 = vpop.f32.mrf.mxu3 }
 0xb39   : > { %v2690_v52 = vadd.f32 %v2689_v22, %v2485_v40  ;;  %v2703_v48 = vadd.f32 %v2702_v28, %v2486_v15  ;;  %v2495_v28 = vperm.slane %v6208_v60, 6 }
 0xb3a   : > { %3053 = vmatmul.bf16.vlgmr.msra.gmra.mxu0 %v2858_v1  ;;  %3066 = vmatmul.bf16.vlgmr.msra.gmra.mxu1 %v2859_v33 }
 0xb3b   : > { %v2840_v14 = vmax.f32 %v2690_v52, 0.0  ;;  %v2841_v13 = vmax.f32 %v2703_v48, 0.0  ;;  %v2717_v27 = vpop.f32.mrf.mxu0  ;;  %v2730_v58 = vpop.f32.mrf.mxu1  ;;  %3156 = vmatpush.bf16.xpose.msra.mxu0 %v6364_v44  ;;  %3169 = vmatpush.bf16.xpose.msra.mxu1 %v6368_v29 }
 0xb3d   : > { %v2856_v63 = vpack.c.bf16 %v2840_v14, %v2840_v14  ;;  %v2857_v50 = vpack.c.bf16 %v2841_v13, %v2841_v13  ;;  %v2494_v14 = vperm.slane %v6208_v60, 5 }
 0xb3f   : > { %3027 = vmatmul.bf16.vlgmr.msrb.gmra.mxu2 %v2856_v63  ;;  %3040 = vmatmul.bf16.vlgmr.msrb.gmra.mxu3 %v2857_v50 }
 0xb40   : > { %v2691_v32 = vpop.f32.mrf.mxu2  ;;  %v2704_v3 = vpop.f32.mrf.mxu3  ;;  %3130 = vmatpush.bf16.xpose.msrb.mxu2 %v6356_v7  ;;  %3143 = vmatpush.bf16.xpose.msrb.mxu3 %v6360_v23 }
 0xb43   : > { %v2767_v35 = vpop.f32.mrf.mxu0  ;;  %v2780_v24 = vpop.f32.mrf.mxu1 }
 0xb44   : > { %v2768_v51 = vadd.f32 %v2767_v35, %v2491_v0  ;;  %v2781_v41 = vadd.f32 %v2780_v24, %v2492_v9 }
 0xb46   : > { %v2846_v43 = vmax.f32 %v2768_v51, 0.0  ;;  %v2847_v34 = vmax.f32 %v2781_v41, 0.0 }
 0xb48   : > { %v2862_v12 = vpack.c.bf16 %v2846_v43, %v2846_v43  ;;  %v2863_v6 = vpack.c.bf16 %v2847_v34, %v2847_v34  ;;  %v2741_v59 = vpop.f32.mrf.mxu2  ;;  %v2754_v55 = vpop.f32.mrf.mxu3 }
 0xb49   : > { %v2742_v8 = vadd.f32 %v2741_v59, %v2489_v42  ;;  %v2755_v40 = vadd.f32 %v2754_v55, %v2490_v17  ;;  %v7130_v59 = vld [vmem:[%s9536_s12 + $0x1] ss:$0 sm:$0xff] }
 0xb4a   : > { %3105 = vmatmul.bf16.vlgmr.msrb.gmra.mxu0 %v2862_v12  ;;  %3118 = vmatmul.bf16.vlgmr.msrb.gmra.mxu1 %v2863_v6 }
 0xb4b   : > { %v2844_v15 = vmax.f32 %v2742_v8, 0.0  ;;  %v2845_v36 = vmax.f32 %v2755_v40, 0.0  ;;  %v2769_v21 = vpop.f32.mrf.mxu0  ;;  %v2782_v44 = vpop.f32.mrf.mxu1 }
 0xb4d   : > { %v2860_v29 = vpack.c.bf16 %v2844_v15, %v2844_v15  ;;  %v2861_v1 = vpack.c.bf16 %v2845_v36, %v2845_v36 }
 0xb4f   : > { %3079 = vmatmul.bf16.vlgmr.msra.gmra.mxu2 %v2860_v29  ;;  %3092 = vmatmul.bf16.vlgmr.msra.gmra.mxu3 %v2861_v1 }
 0xb50   : > { %v2743_v33 = vpop.f32.mrf.mxu2  ;;  %v2756_v22 = vpop.f32.mrf.mxu3 }
 0xb53   : > { %v2819_v52 = vpop.f32.mrf.mxu0  ;;  %v2832_v48 = vpop.f32.mrf.mxu1 }
 0xb54   : > { %v2820_v19 = vadd.f32 %v2819_v52, %v2495_v28  ;;  %v2833_v54 = vadd.f32 %v2832_v48, %v2496_v16 }
 0xb56   : > { %v2850_v13 = vmax.f32 %v2820_v19, 0.0  ;;  %v2851_v27 = vmax.f32 %v2833_v54, 0.0 }
 0xb58   : > { %v2866_v58 = vpack.c.bf16 %v2850_v13, %v2850_v13  ;;  %v2867_v7 = vpack.c.bf16 %v2851_v27, %v2851_v27  ;;  %v2793_v23 = vpop.f32.mrf.mxu2  ;;  %v2806_v63 = vpop.f32.mrf.mxu3 }
 0xb59   : > { %v2794_v50 = vadd.f32 %v2793_v23, %v2493_v26  ;;  %v2807_v32 = vadd.f32 %v2806_v63, %v2494_v14 }
 0xb5a   : > { %3157 = vmatmul.bf16.vlgmr.msra.gmra.mxu0 %v2866_v58  ;;  %3170 = vmatmul.bf16.vlgmr.msra.gmra.mxu1 %v2867_v7 }
 0xb5b   : > { %v2848_v3 = vmax.f32 %v2794_v50, 0.0  ;;  %v2849_v0 = vmax.f32 %v2807_v32, 0.0  ;;  %v2821_v9 = vpop.f32.mrf.mxu0  ;;  %v2834_v35 = vpop.f32.mrf.mxu1 }
 0xb5d   : > { %v2864_v24 = vpack.c.bf16 %v2848_v3, %v2848_v3  ;;  %v2865_v51 = vpack.c.bf16 %v2849_v0, %v2849_v0 }
 0xb5f   : > { %3131 = vmatmul.bf16.vlgmr.msrb.gmra.mxu2 %v2864_v24  ;;  %3144 = vmatmul.bf16.vlgmr.msrb.gmra.mxu3 %v2865_v51 }
 0xb60   : > { %v2795_v41 = vpop.f32.mrf.mxu2  ;;  %v2808_v60 = vpop.f32.mrf.mxu3 }
 0xba7   : > { %v3002_v42 = vpop.f32.mrf.mxu0  ;;  %v3015_v17 = vpop.f32.mrf.mxu1 }
 0xbaf   : > { %v3004_v43 = vpop.f32.mrf.mxu0  ;;  %v3017_v34 = vpop.f32.mrf.mxu1 }
 0xbb2   : > { %v2976_v12 = vpop.f32.mrf.mxu2  ;;  %v2989_v6 = vpop.f32.mrf.mxu3 }
 0xbb3   : > { %v2977_v40 = vadd.f32 %v7130_v59, %v2976_v12 }
 0xbb5   : > { %v2990_v21 = vadd.f32 %v2989_v6, %v2977_v40 }
 0xbb7   : > { %v3054_v55 = vpop.f32.mrf.mxu0  ;;  %v3067_v8 = vpop.f32.mrf.mxu1  ;;  %v3003_v1 = vadd.f32 %v3002_v42, %v2990_v21 }
 0xbb9   : > { %v3016_v28 = vadd.f32 %v3015_v17, %v3003_v1 }
 0xbba   : > { %v2978_v15 = vpop.f32.mrf.mxu2  ;;  %v2991_v36 = vpop.f32.mrf.mxu3 }
 0xbbf   : > { %v3056_v44 = vpop.f32.mrf.mxu0  ;;  %v3069_v29 = vpop.f32.mrf.mxu1 }
 0xbc0   : > { %v6370_v29 = vld [vmem:[%s9525_s1 + $0x28] sm:$0x3f] }
 0xbc1   : > { %6371 = vmatpush.msk.msra.mxu2 %vm446_vm0, %v6370_v29 }
 0xbc2   : > { %v3028_v33 = vpop.f32.mrf.mxu2  ;;  %v3041_v22 = vpop.f32.mrf.mxu3 }
 0xbc3   : > { %v3029_v16 = vadd.f32 %v3028_v33, %v3016_v28 }
 0xbc5   : > { %v3042_v26 = vadd.f32 %v3041_v22, %v3029_v16 }
 0xbc7   : > { %v3106_v52 = vpop.f32.mrf.mxu0  ;;  %v3119_v48 = vpop.f32.mrf.mxu1  ;;  %v3055_v14 = vadd.f32 %v3054_v55, %v3042_v26  ;;  %v7131_v26 = vld [vmem:[%s9531_s7 + $0x1] ss:$0 sm:$0xff] }
 0xbc9   : > { %v3068_v23 = vadd.f32 %v3067_v8, %v3055_v14 }
 0xbca   : > { %v3030_v19 = vpop.f32.mrf.mxu2  ;;  %v3043_v54 = vpop.f32.mrf.mxu3 }
 0xbcf   : > { %v3108_v13 = vpop.f32.mrf.mxu0  ;;  %v3121_v27 = vpop.f32.mrf.mxu1 }
 0xbd0   : > { %v7132_v13 = vld [vmem:[%s9532_s8 + $0x1] ss:$0 sm:$0xff] }
 0xbd2   : > { %v3080_v58 = vpop.f32.mrf.mxu2  ;;  %v3093_v7 = vpop.f32.mrf.mxu3 }
 0xbd3   : > { %v3081_v63 = vadd.f32 %v3080_v58, %v3068_v23  ;;  %v7133_v23 = vld [vmem:[%s9526_s2 + $0x2] ss:$0 sm:$0xff] }
 0xbd5   : > { %v3094_v3 = vadd.f32 %v3093_v7, %v3081_v63 }
 0xbd7   : > { %v3158_v50 = vpop.f32.mrf.mxu0  ;;  %v3171_v32 = vpop.f32.mrf.mxu1  ;;  %v3107_v35 = vadd.f32 %v3106_v52, %v3094_v3  ;;  %v9644_v3 = vmov 25  }
 0xbd9   : > { %v3120_v41 = vadd.f32 %v3119_v48, %v3107_v35  ;;  %v9647_v35 = vmov 26  }
 0xbda   : > { %v3082_v0 = vpop.f32.mrf.mxu2  ;;  %v3095_v9 = vpop.f32.mrf.mxu3 }
 0xbdb   : > { %v9645_v0 = vmov 34   ;;  %v9646_v9 = vmov 18  }
 0xbdf   : > { %v3160_v24 = vpop.f32.mrf.mxu0  ;;  %v3173_v51 = vpop.f32.mrf.mxu1 }
 0xbe0   : > { %v9648_v24 = vmov 22   ;;  %v9649_v51 = vmov 19  }
 0xbe2   : > { %v3132_v60 = vpop.f32.mrf.mxu2  ;;  %v3145_v42 = vpop.f32.mrf.mxu3 }
 0xbe3   : > { %v3133_v17 = vadd.f32 %v3132_v60, %v3120_v41  ;;  %v9650_v41 = vmov 36   ;;  %v9651_v60 = vmov 0  }
 0xbe5   : > { %v3146_v43 = vadd.f32 %v3145_v42, %v3133_v17  ;;  %v9652_v17 = vmov 33  }
 0xbe7   : > { %v3159_v34 = vadd.f32 %v3158_v50, %v3146_v43  ;;  %v9653_v43 = vmov 1  }
 0xbe9   : > { %v3172_v12 = vadd.f32 %v3171_v32, %v3159_v34  ;;  %v9643_v32 = vmov 31   ;;  %v9654_v34 = vmov 20  }
 0xbea   : > { %v3134_v6 = vpop.f32.mrf.mxu2  ;;  %v3147_v59 = vpop.f32.mrf.mxu3 }
 0xbeb   : > { %v3175_v55 = vadd.f32 %v3172_v12, %v8351_v47  ;;  %v6369_v47 = vld [vmem:[%s9525_s1 + $0x20] sm:$0xff]  ;;  %v9655_v12 = vmov 21   ;;  %v9656_v6 = vmov 23   ;;  %v9657_v59 = vmov 24  }
 0xbec   : > { %3230 = vmatpush.msra.mxu2 %v6369_v47 }
 0xbed   : > { %v3178_v8 = vsel %vm442_vm1, %v3175_v55, 0.0 }
 0xbee   : > { %3179 = vadd.xlane.f32.xlu1 %v3178_v8  ;;  %v9658_v8 = vmov 27  }
 0xc61   : > { %v3180_v40 = vpop.xlane.xlu1 %3179 }
 0xc62   : > { %v3181_v15 = vmul.f32 %v3180_v40, %v7769_v39  ;;  %v9659_v40 = vmov 37  }
 0xc64   : > { %v3182_v36 = vsub.f32 %v3175_v55, %v3181_v15 }
 0xc66   : > { %v3183_v21 = vmul.f32 %v3182_v36, %v3182_v36 }
 0xc68   : > { %v3184_v44 = vsel %vm442_vm1, %v3183_v21, 0.0  ;;  %v9661_v21 = vmov 8  }
 0xc69   : > { %3185 = vadd.xlane.f32.xlu2 %v3184_v44 }
 0xcdc   : > { %v3186_v1 = vpop.xlane.xlu2 %3185 }
 0xcdd   : > { %v3187_v33 = vmul.f32 %v3186_v1, %v7769_v39 }
 0xcdf   : > { %v3188_v22 = vadd.f32 1e-05, %v3187_v33  ;;  %v9662_v33 = vmov 11  }
 0xce1   : > { %7211 = vrsqrt.f32 %v3188_v22  ;;  %vm3195_vm15 = vweird.f32 %v3188_v22 }
 0xce7   : > { %v7212_v28 = vpop.eup %7211 }
 0xce8   : > { %v3190_v16 = vmul.f32 %v7212_v28, %v3188_v22  ;;  %vm3196_vm14 = vweird.f32 %v7212_v28  ;;  %v9663_v22 = vmov 38  }
 0xce9   : > { %vm3197_vm3 = vmor %vm3195_vm15, %vm3196_vm14 }
 0xcea   : > { %v3191_v52 = vmul.f32 %v7212_v28, %v3190_v16 }
 0xcec   : > { %v3192_v48 = vmul.f32 0.5, %v3191_v52 }
 0xcee   : > { %v3193_v19 = vsub.f32 1.5, %v3192_v48  ;;  %v9664_v48 = vmov 39  }
 0xcf0   : > { %v3194_v54 = vmul.f32 %v7212_v28, %v3193_v19 }
 0xcf2   : > { %v3198_v14 = vsel %vm3197_vm3, %v7212_v28, %v3194_v54 }
 0xcf3   : > { %v3199_v27 = vmul.f32 %v3198_v14, %v3182_v36  ;;  %v9660_v36 = vmov 35  }
 0xcf5   : > { %v3201_v58 = vmul.f32 %v7131_v26, %v3199_v27 }
 0xcf7   : > { %v8536_v7 = vadd.f32 %v7132_v13, %v3201_v58 }
 0xcf9   : > { %6372 = vmatmul.msk.f32.vlgmr.msra.gmra.mxu2 %vm442_vm1, %v8536_v7 }
 0xd7c   : > { %v3232_v63 = vpop.f32.mrf.mxu2 }
 0xd7d   : > { %v8543_v50 = vadd.f32 %v7133_v23, %v3232_v63 }
 0xd7f   : > { %3301 = vperm.xlu2 %7038, %v8543_v50   ;;  %3286 = vperm.xlu0 %7037, %v8543_v50   ;;  %v3235_v42 = vmul.f32 0.70710677, %v8543_v50 }
 0xd80   : > { %3246 = vperm.xlu1 %7035, %v8543_v50  }
 0xd87   : > { %7039 = vset.pattern.permute.xlu2 %v9608_v4  ;;  %7041 = vset.pattern.permute.xlu0 %v9609_v25 }
 0xd88   : > { %7036 = vset.pattern.permute.xlu1 %v9613_v11  ;;  %3326 = vperm.xlu2 %7039, %v8543_v50  }
 0xd89   : > { %3366 = vperm.xlu0 %7041, %v8543_v50   ;;  %3262 = vperm.xlu1 %7036, %v8543_v50  }
 0xd90   : > { %7040 = vset.pattern.permute.xlu2 %v9611_v10 }
 0xd91   : > { %7045 = vset.pattern.permute.xlu0 %v9607_v30  ;;  %7042 = vset.pattern.permute.xlu1 %v9643_v32 }
 0xd92   : > { %3342 = vperm.xlu2 %7040, %v8543_v50   ;;  %3446 = vperm.xlu0 %7045, %v8543_v50  }
 0xd93   : > { %3381 = vperm.xlu1 %7042, %v8543_v50  }
 0xd9a   : > { %7053 = vset.pattern.permute.xlu2 %v9644_v3  ;;  %7049 = vset.pattern.permute.xlu0 %v9645_v0 }
 0xd9b   : > { %7043 = vset.pattern.permute.xlu1 %v9646_v9  ;;  %3662 = vperm.xlu2 %7053, %v8543_v50  }
 0xd9c   : > { %3526 = vperm.xlu0 %7049, %v8543_v50   ;;  %3406 = vperm.xlu1 %7043, %v8543_v50  }
 0xda3   : > { %7054 = vset.pattern.permute.xlu2 %v9647_v35 }
 0xda4   : > { %7050 = vset.pattern.permute.xlu0 %v9648_v24  ;;  %7044 = vset.pattern.permute.xlu1 %v9649_v51 }
 0xda5   : > { %3726 = vperm.xlu2 %7054, %v8543_v50   ;;  %3566 = vperm.xlu0 %7050, %v8543_v50  }
 0xda6   : > { %3422 = vperm.xlu1 %7044, %v8543_v50  }
 0xdad   : > { %7057 = vset.pattern.permute.xlu2 %v9650_v41  ;;  %7058 = vset.pattern.permute.xlu0 %v9651_v60 }
 0xdae   : > { %7046 = vset.pattern.permute.xlu1 %v9652_v17  ;;  %3606 = vperm.xlu2 %7057, %v8543_v50  }
 0xdaf   : > { %3461 = vperm.xlu1 %7046, %v8543_v50   ;;  %3241 = vperm.xlu0 %7058, %v3235_v42  }
 0xdb6   : > { %7059 = vset.pattern.permute.xlu2 %v9653_v43 }
 0xdb7   : > { %7047 = vset.pattern.permute.xlu1 %v9654_v34  ;;  %7061 = vset.pattern.permute.xlu0 %v9634_v38 }
 0xdb8   : > { %3486 = vperm.xlu1 %7047, %v8543_v50   ;;  %3258 = vperm.xlu2 %7059, %v3235_v42  }
 0xdb9   : > { %3338 = vperm.xlu0 %7061, %v3235_v42  }
 0xdc0   : > { %7048 = vset.pattern.permute.xlu1 %v9655_v12  ;;  %7062 = vset.pattern.permute.xlu2 %v9636_v37 }
 0xdc1   : > { %7067 = vset.pattern.permute.xlu0 %v9639_v49  ;;  %3502 = vperm.xlu1 %7048, %v8543_v50  }
 0xdc2   : > { %3402 = vperm.xlu2 %7062, %v3235_v42   ;;  %3578 = vperm.xlu0 %7067, %v3235_v42  }
 0xdc9   : > { %7051 = vset.pattern.permute.xlu1 %v9656_v6 }
 0xdca   : > { %7063 = vset.pattern.permute.xlu2 %v9635_v45  ;;  %7068 = vset.pattern.permute.xlu0 %v9640_v61 }
 0xdcb   : > { %3582 = vperm.xlu1 %7051, %v8543_v50   ;;  %3418 = vperm.xlu2 %7063, %v3235_v42  }
 0xdcc   : > { %3642 = vperm.xlu0 %7068, %v3235_v42  }
 0xdd3   : > { %7052 = vset.pattern.permute.xlu1 %v9657_v59  ;;  %7064 = vset.pattern.permute.xlu2 %v9637_v53 }
 0xdd4   : > { %7071 = vset.pattern.permute.xlu0 %v9642_v2  ;;  %3646 = vperm.xlu1 %7052, %v8543_v50  }
 0xdd5   : > { %3482 = vperm.xlu2 %7064, %v3235_v42   ;;  %3738 = vperm.xlu0 %7071, %v3235_v42  }
 0xdd9   : > { %v8594_v55 = vpop.permute.xlu2 %3301 }
 0xddc   : > { %7055 = vset.pattern.permute.xlu1 %v9658_v8 }
 0xddd   : > { %7065 = vset.pattern.permute.xlu2 %v9638_v31  ;;  %3742 = vperm.xlu1 %7055, %v8543_v50  }
 0xdde   : > { %3498 = vperm.xlu2 %7065, %v3235_v42   ;;  %7072 = vset.pattern.permute.xlu0 %v9659_v40 }
 0xde2   : > { %v8600_v15 = vpop.permute.xlu2 %3326 }
 0xde5   : > { %7056 = vset.pattern.permute.xlu1 %v9660_v36 }
 0xde6   : > { %7066 = vset.pattern.permute.xlu2 %v9661_v21  ;;  %3541 = vperm.xlu1 %7056, %v8543_v50  }
 0xde7   : > { %3562 = vperm.xlu2 %7066, %v3235_v42  }
 0xdec   : > { %v8605_v44 = vpop.permute.xlu2 %3342 }
 0xdee   : > { %7060 = vset.pattern.permute.xlu1 %v9633_v57 }
 0xdef   : > { %7070 = vset.pattern.permute.xlu2 %v9641_v46  ;;  %3322 = vperm.xlu1 %7060, %v3235_v42  }
 0xdf0   : > { %3722 = vperm.xlu2 %7070, %v3235_v42  }
 0xdf1   : > { %v8609_v29 = vpop.permute.xlu0 %3286 }
 0xdf2   : > { %v3247_v47 = vpop.permute.xlu1 %3246 }
 0xdf5   : > { %v8611_v1 = vpop.permute.xlu2 %3662 }
 0xdf7   : > { %7069 = vset.pattern.permute.xlu1 %v9662_v33 }
 0xdf8   : > { %3658 = vperm.xlu1 %7069, %v3235_v42   ;;  %7073 = vset.pattern.permute.xlu2 %v9663_v22  ;;  %v3248_v42 = vperm.slane %v3247_v47, %v7623_v62 }
 0xdfb   : > { %v8615_v28 = vpop.permute.xlu0 %3366  ;;  %v3263_v16 = vpop.permute.xlu1 %3262 }
 0xdfc   : > { %v3264_v30 = vperm.slane %v3263_v16, %v7623_v62 }
 0xdff   : > { %v3727_v52 = vpop.permute.xlu2 %3726 }
 0xe00   : > { %7074 = vset.pattern.permute.xlu1 %v9664_v48  ;;  %v3728_v37 = vperm.slane %v3727_v52, %v7623_v62 }
 0xe04   : > { %v8618_v19 = vpop.permute.xlu0 %3446 }
 0xe05   : > { %v8620_v54 = vpop.permute.xlu1 %3381 }
 0xe08   : > { %v8622_v26 = vpop.permute.xlu2 %3606 }
 0xe0e   : > { %v8624_v14 = vpop.permute.xlu0 %3526  ;;  %v3407_v13 = vpop.permute.xlu1 %3406 }
 0xe12   : > { %v3259_v27 = vpop.permute.xlu2 %3258 }
 0xe13   : > { %v3272_v18 = vmul.f32 %v3264_v30, %v3259_v27 }
 0xe17   : > { %v3567_v58 = vpop.permute.xlu0 %3566 }
 0xe18   : > { %v3423_v23 = vpop.permute.xlu1 %3422 }
 0xe1c   : > { %v3403_v63 = vpop.permute.xlu2 %3402 }
 0xe21   : > { %v8628_v4 = vpop.permute.xlu1 %3461  ;;  %v3242_v25 = vpop.permute.xlu0 %3241 }
 0xe22   : > { %v3256_v10 = vmul.f32 %v3248_v42, %v3242_v25 }
 0xe24   : > { %v8630_v5 = vadd.f32 %v3272_v18, %v3256_v10  ;;  %v3568_v10 = vperm.slane %v3567_v58, %v7623_v62 }
 0xe25   : > { %v3419_v11 = vpop.permute.xlu2 %3418 }
 0xe26   : > { %v3274_v56 = vsel %vm516_vm2, %v8630_v5, -inf }
 0xe27   : > { %3275 = vmax.xlane.f32.xlu2 %v3274_v56 }
 0xe2a   : > { %v3487_v20 = vpop.permute.xlu1 %3486 }
 0xe2b   : > { %v3488_v8 = vperm.slane %v3487_v20, %v7623_v62  ;;  %v3339_v47 = vpop.permute.xlu0 %3338 }
 0xe2f   : > { %v3483_v61 = vpop.permute.xlu2 %3482 }
 0xe30   : > { %v3496_v31 = vmul.f32 %v3488_v8, %v3483_v61 }
 0xe33   : > { %v3503_v53 = vpop.permute.xlu1 %3502 }
 0xe34   : > { %v3579_v2 = vpop.permute.xlu0 %3578 }
 0xe38   : > { %v3499_v16 = vpop.permute.xlu2 %3498 }
 0xe3d   : > { %v3583_v45 = vpop.permute.xlu1 %3582 }
 0xe3e   : > { %v3584_v30 = vperm.slane %v3583_v45, %v7623_v62  ;;  %v3643_v46 = vpop.permute.xlu0 %3642 }
 0xe40   : > { %v3592_v18 = vmul.f32 %v3584_v30, %v3579_v2 }
 0xe41   : > { %v3563_v25 = vpop.permute.xlu2 %3562 }
 0xe42   : > { %v3576_v27 = vmul.f32 %v3568_v10, %v3563_v25  ;;  %v3344_v25 = vperm.slane %v8605_v44, %v7623_v62 }
 0xe44   : > { %v8637_v42 = vadd.f32 %v3592_v18, %v3576_v27  ;;  %v3328_v18 = vperm.slane %v8600_v15, %v7623_v62 }
 0xe46   : > { %v3647_v56 = vpop.permute.xlu1 %3646  ;;  %v3594_v20 = vsel %vm516_vm2, %v8637_v42, -inf }
 0xe47   : > { %3595 = vmax.xlane.f32.xlu1 %v3594_v20  ;;  %v3739_v45 = vpop.permute.xlu0 %3738  ;;  %v3352_v20 = vmul.f32 %v3344_v25, %v3339_v47 }
 0xe4a   : > { %v3723_v61 = vpop.permute.xlu2 %3722 }
 0xe4b   : > { %v3736_v57 = vmul.f32 %v3728_v37, %v3723_v61  ;;  %v3408_v37 = vperm.slane %v3407_v13, %v7623_v62 }
 0xe4d   : > { %v3416_v61 = vmul.f32 %v3408_v37, %v3403_v63 }
 0xe4f   : > { %v3743_v8 = vpop.permute.xlu1 %3742 }
 0xe50   : > { %v3744_v49 = vperm.slane %v3743_v8, %v7623_v62  ;;  %v3424_v8 = vperm.slane %v3423_v23, %v7623_v62  ;;  %v3664_v23 = vperm.slane %v8611_v1, %v7623_v62 }
 0xe52   : > { %v3752_v58 = vmul.f32 %v3744_v49, %v3739_v45 }
 0xe54   : > { %v3753_v2 = vadd.f32 %v3752_v58, %v3736_v57  ;;  %v3432_v57 = vmul.f32 %v3424_v8, %v3419_v11  ;;  %v3504_v58 = vperm.slane %v3503_v53, %v7623_v62 }
 0xe56   : > { %v3754_v30 = vsel %vm516_vm2, %v3753_v2, -inf  ;;  %v3433_v45 = vadd.f32 %v3432_v57, %v3416_v61  ;;  %v3512_v15 = vmul.f32 %v3504_v58, %v3499_v16 }
 0xe57   : > { %3755 = vmax.xlane.f32.xlu0 %v3754_v30 }
 0xe58   : > { %v8644_v10 = vpop.permute.xlu1 %3541  ;;  %v3434_v30 = vsel %vm516_vm2, %v3433_v45, -inf  ;;  %v3513_v44 = vadd.f32 %v3512_v15, %v3496_v31 }
 0xe5a   : > { %v3514_v11 = vsel %vm516_vm2, %v3513_v44, -inf }
 0xe61   : > { %v3323_v27 = vpop.permute.xlu1 %3322 }
 0xe62   : > { %v3336_v52 = vmul.f32 %v3328_v18, %v3323_v27  ;;  %v3648_v18 = vperm.slane %v3647_v56, %v7623_v62 }
 0xe64   : > { %v3353_v21 = vadd.f32 %v3352_v20, %v3336_v52  ;;  %v3656_v25 = vmul.f32 %v3648_v18, %v3643_v46 }
 0xe66   : > { %v3354_v49 = vsel %vm516_vm2, %v3353_v21, -inf }
 0xe67   : > { %3355 = vmax.xlane.f32.xlu2 %v3354_v49 }
 0xe6a   : > { %v3659_v47 = vpop.permute.xlu1 %3658 }
 0xe6b   : > { %v3672_v13 = vmul.f32 %v3664_v23, %v3659_v47 }
 0xe6d   : > { %v3673_v63 = vadd.f32 %v3672_v13, %v3656_v25 }
 0xe6f   : > { %3435 = vmax.xlane.f32.xlu2 %v3434_v30  ;;  %v3674_v27 = vsel %vm516_vm2, %v3673_v63, -inf }
 0xe77   : > { %3515 = vmax.xlane.f32.xlu2 %v3514_v11 }
 0xe7f   : > { %3675 = vmax.xlane.f32.xlu2 %v3674_v27 }
 0xe9a   : > { %v3276_v53 = vpop.xlane.xlu2 %3275 }
 0xe9b   : > { %v3277_v16 = vsub.f32 %v8630_v5, %v3276_v53 }
 0xe9d   : > { %v3278_v20 = vmul.f32 1.442695, %v3277_v16  ;;  %v9665_v16 = vmov 28  }
 0xe9f   : > { %7213 = vpow2.f32 %v3278_v20 }
 0xea5   : > { %v7214_v31 = vpop.eup %7213 }
 0xea6   : > { %v3280_v52 = vsel %vm516_vm2, %v7214_v31, 0.0 }
 0xea7   : > { %3281 = vadd.xlane.f32.xlu1 %v3280_v52 }
 0xeca   : > { %v3756_v1 = vpop.xlane.xlu0 %3755 }
 0xecb   : > { %v3757_v56 = vsub.f32 %v3753_v2, %v3756_v1  ;;  %v3596_v2 = vpop.xlane.xlu1 %3595 }
 0xecc   : > { %v3597_v11 = vsub.f32 %v8637_v42, %v3596_v2  ;;  %v9669_v2 = vmov 14  }
 0xecd   : > { %v3758_v8 = vmul.f32 1.442695, %v3757_v56 }
 0xecf   : > { %7215 = vpow2.f32 %v3758_v8 }
 0xed5   : > { %v8662_v37 = vpop.eup %7215 }
 0xed6   : > { %v3760_v46 = vsel %vm516_vm2, %v8662_v37, 0.0 }
 0xed7   : > { %3761 = vadd.xlane.f32.xlu0 %v3760_v46  ;;  %v9666_v46 = vmov 40  }
 0xeda   : > { %v3356_v57 = vpop.xlane.xlu2 %3355 }
 0xedb   : > { %v3357_v49 = vsub.f32 %v3353_v21, %v3356_v57  ;;  %v9667_v57 = vmov 41  }
 0xedd   : > { %v3358_v61 = vmul.f32 1.442695, %v3357_v49 }
 0xedf   : > { %7217 = vpow2.f32 %v3358_v61  ;;  %v3288_v61 = vperm.slane %v8609_v29, %v7623_v62  ;;  %v3368_v29 = vperm.slane %v8615_v28, %v7623_v62  ;;  %v3463_v28 = vperm.slane %v8628_v4, %v7623_v62 }
 0xee2   : > { %v3436_v5 = vpop.xlane.xlu2 %3435 }
 0xee3   : > { %v3437_v58 = vsub.f32 %v3433_v45, %v3436_v5  ;;  %v3598_v45 = vmul.f32 1.442695, %v3597_v11 }
 0xee5   : > { %v7218_v15 = vpop.eup %7217  ;;  %v3438_v30 = vmul.f32 1.442695, %v3437_v58 }
 0xee6   : > { %v3360_v47 = vsel %vm516_vm2, %v7218_v15, 0.0 }
 0xee7   : > { %7219 = vpow2.f32 %v3438_v30  ;;  %3361 = vadd.xlane.f32.xlu1 %v3360_v47  ;;  %v9668_v47 = vmov 15  }
 0xeea   : > { %v3516_v23 = vpop.xlane.xlu2 %3515 }
 0xeeb   : > { %v3517_v18 = vsub.f32 %v3513_v44, %v3516_v23  ;;  %3621 = vperm.xlu0 %7072, %v8543_v50   ;;  %v3303_v23 = vperm.slane %v8594_v55, %v7623_v62 }
 0xeed   : > { %v7220_v13 = vpop.eup %7219  ;;  %v3518_v25 = vmul.f32 1.442695, %v3517_v18 }
 0xeee   : > { %v3440_v21 = vsel %vm516_vm2, %v7220_v13, 0.0 }
 0xeef   : > { %7221 = vpow2.f32 %v3518_v25  ;;  %3441 = vadd.xlane.f32.xlu1 %v3440_v21 }
 0xef0   : > { %7223 = vpow2.f32 %v3598_v45 }
 0xef2   : > { %v3676_v27 = vpop.xlane.xlu2 %3675 }
 0xef3   : > { %v3677_v53 = vsub.f32 %v3673_v63, %v3676_v27  ;;  %7079 = vset.pattern.permute.xlu0 %v9665_v16 }
 0xef5   : > { %v8671_v20 = vpop.eup %7221  ;;  %v3678_v52 = vmul.f32 1.442695, %v3677_v53 }
 0xef6   : > { %v3520_v44 = vsel %vm516_vm2, %v8671_v20, 0.0  ;;  %v8675_v42 = vpop.eup %7223 }
 0xef7   : > { %7225 = vpow2.f32 %v3678_v52  ;;  %3521 = vadd.xlane.f32.xlu1 %v3520_v44  ;;  %v3600_v56 = vsel %vm516_vm2, %v8675_v42, 0.0  ;;  %v3448_v44 = vperm.slane %v8618_v19, %v7623_v62 }
 0xefd   : > { %v8677_v1 = vpop.eup %7225 }
 0xefe   : > { %v3680_v63 = vsel %vm516_vm2, %v8677_v1, 0.0 }
 0xeff   : > { %3601 = vadd.xlane.f32.xlu1 %v3600_v56  ;;  %3681 = vadd.xlane.f32.xlu2 %v3680_v63 }
 0xf17   : > { %3686 = vperm.xlu2 %7073, %v8543_v50  }
 0xf18   : > { %3701 = vperm.xlu1 %7074, %v8543_v50  }
 0xf1a   : > { %v3282_v8 = vpop.xlane.xlu1 %3281 }
 0xf1b   : > { %7227 = vrcp.f32 %v3282_v8 }
 0xf1f   : > { %7075 = vset.pattern.permute.xlu2 %v9666_v46 }
 0xf20   : > { %7076 = vset.pattern.permute.xlu1 %v9667_v57  ;;  %3766 = vperm.xlu2 %7075, %v8543_v50  }
 0xf21   : > { %v7228_v49 = vpop.eup %7227  ;;  %3781 = vperm.xlu1 %7076, %v8543_v50  }
 0xf22   : > { %v3284_v5 = vmul.f32 %v7228_v49, %v7214_v31  ;;  %v3383_v31 = vperm.slane %v8620_v54, %v7623_v62 }
 0xf24   : > { %v3296_v58 = vmul.f32 %v3288_v61, %v3284_v5  ;;  %v3311_v18 = vmul.f32 %v3303_v23, %v3284_v5 }
 0xf26   : > { %v3297_v30 = vsel %vm516_vm2, %v3296_v58, 0.0  ;;  %v3312_v11 = vsel %vm516_vm2, %v3311_v18, 0.0  ;;  %v3528_v58 = vperm.slane %v8624_v14, %v7623_v62 }
 0xf27   : > { %3298 = vadd.xlane.f32.xlu0 %v3297_v30 }
 0xf28   : > { %7078 = vset.pattern.permute.xlu2 %v9668_v47 }
 0xf29   : > { %7077 = vset.pattern.permute.xlu1 %v9669_v2  ;;  %v3543_v2 = vperm.slane %v8644_v10, %v7623_v62 }
 0xf4a   : > { %v3762_v61 = vpop.xlane.xlu0 %3761 }
 0xf4b   : > { %3313 = vadd.xlane.f32.xlu1 %v3312_v11 }
 0xf5a   : > { %v3362_v50 = vpop.xlane.xlu1 %3361 }
 0xf5b   : > { %7229 = vrcp.f32 %v3362_v50  ;;  %v3608_v50 = vperm.slane %v8622_v26, %v7623_v62 }
 0xf5d   : > { %v3622_v23 = vpop.permute.xlu0 %3621 }
 0xf5e   : > { %v3623_v14 = vperm.slane %v3622_v23, %v7623_v62 }
 0xf61   : > { %v7230_v25 = vpop.eup %7229 }
 0xf62   : > { %v3442_v21 = vpop.xlane.xlu1 %3441  ;;  %v3364_v45 = vmul.f32 %v7230_v25, %v7218_v15 }
 0xf63   : > { %7231 = vrcp.f32 %v3442_v21 }
 0xf64   : > { %v3376_v27 = vmul.f32 %v3368_v29, %v3364_v45  ;;  %v3391_v53 = vmul.f32 %v3383_v31, %v3364_v45 }
 0xf66   : > { %v3377_v55 = vsel %vm516_vm2, %v3376_v27, 0.0  ;;  %v3392_v16 = vsel %vm516_vm2, %v3391_v53, 0.0 }
 0xf67   : > { %3378 = vadd.xlane.f32.xlu2 %v3377_v55  ;;  %3393 = vadd.xlane.f32.xlu0 %v3392_v16 }
 0xf69   : > { %v7232_v52 = vpop.eup %7231 }
 0xf6a   : > { %v3522_v56 = vpop.xlane.xlu1 %3521  ;;  %v3444_v54 = vmul.f32 %v7232_v52, %v7220_v13 }
 0xf6b   : > { %7233 = vrcp.f32 %v3522_v56 }
 0xf6c   : > { %v3456_v15 = vmul.f32 %v3448_v44, %v3444_v54  ;;  %v3471_v63 = vmul.f32 %v3463_v28, %v3444_v54 }
 0xf6e   : > { %v3457_v8 = vsel %vm516_vm2, %v3456_v15, 0.0  ;;  %v3472_v49 = vsel %vm516_vm2, %v3471_v63, 0.0 }
 0xf6f   : > { %3458 = vadd.xlane.f32.xlu2 %v3457_v8  ;;  %3473 = vadd.xlane.f32.xlu0 %v3472_v49 }
 0xf71   : > { %v7234_v5 = vpop.eup %7233 }
 0xf72   : > { %v3602_v19 = vpop.xlane.xlu1 %3601  ;;  %v3682_v30 = vpop.xlane.xlu2 %3681  ;;  %v3524_v4 = vmul.f32 %v7234_v5, %v8671_v20 }
 0xf73   : > { %7235 = vrcp.f32 %v3602_v19 }
 0xf74   : > { %v3536_v13 = vmul.f32 %v3528_v58, %v3524_v4  ;;  %7237 = vrcp.f32 %v3682_v30  ;;  %v3551_v11 = vmul.f32 %v3543_v2, %v3524_v4  ;;  %v6373_v4 = vld [vmem:[%s9527_s3 + $0x20] sm:$0xff] }
 0xf75   : > { %7239 = vrcp.f32 %v3762_v61  ;;  %v3315_v2 = vperm.slane %v6373_v4, 0  ;;  %v3395_v23 = vperm.slane %v6373_v4, 2 }
 0xf76   : > { %v3537_v47 = vsel %vm516_vm2, %v3536_v13, 0.0  ;;  %v3552_v45 = vsel %vm516_vm2, %v3551_v11, 0.0  ;;  %v3318_v13 = vperm.slane %v6373_v4, 1 }
 0xf77   : > { %3538 = vadd.xlane.f32.xlu2 %v3537_v47 }
 0xf79   : > { %v7236_v18 = vpop.eup %7235 }
 0xf7a   : > { %v3687_v25 = vpop.permute.xlu2 %3686  ;;  %v3604_v20 = vmul.f32 %v7236_v18, %v8675_v42  ;;  %v7238_v29 = vpop.eup %7237 }
 0xf7b   : > { %v3684_v27 = vmul.f32 %v7238_v29, %v8677_v1  ;;  %v3688_v10 = vperm.slane %v3687_v25, %v7623_v62  ;;  %v7240_v42 = vpop.eup %7239  ;;  %v3398_v29 = vperm.slane %v6373_v4, 3 }
 0xf7c   : > { %v3616_v31 = vmul.f32 %v3608_v50, %v3604_v20  ;;  %v3631_v21 = vmul.f32 %v3623_v14, %v3604_v20  ;;  %v3764_v1 = vmul.f32 %v7240_v42, %v8662_v37 }
 0xf7d   : > { %v3696_v26 = vmul.f32 %v3688_v10, %v3684_v27 }
 0xf7e   : > { %v3617_v53 = vsel %vm516_vm2, %v3616_v31, 0.0  ;;  %v3632_v55 = vsel %vm516_vm2, %v3631_v21, 0.0  ;;  %v3475_v31 = vperm.slane %v6373_v4, 4 }
 0xf7f   : > { %3618 = vadd.xlane.f32.xlu1 %v3617_v53  ;;  %3553 = vadd.xlane.f32.xlu2 %v3552_v45  ;;  %v3697_v44 = vsel %vm516_vm2, %v3696_v26, 0.0  ;;  %v3478_v53 = vperm.slane %v6373_v4, 5 }
 0xf80   : > { %3633 = vadd.xlane.f32.xlu0 %v3632_v55  ;;  %v3555_v55 = vperm.slane %v6373_v4, 6 }
 0xf82   : > { %v3767_v16 = vpop.permute.xlu2 %3766 }
 0xf83   : > { %v3768_v52 = vperm.slane %v3767_v16, %v7623_v62 }
 0xf85   : > { %v3776_v28 = vmul.f32 %v3768_v52, %v3764_v1  ;;  %v3558_v52 = vperm.slane %v6373_v4, 7 }
 0xf87   : > { %3698 = vadd.xlane.f32.xlu2 %v3697_v44  ;;  %v3777_v63 = vsel %vm516_vm2, %v3776_v28, 0.0  ;;  %v6374_v28 = vld [vmem:[%s9527_s3 + $0x28] sm:$0x3f] }
 0xf8a   : > { %v3702_v56 = vpop.permute.xlu1 %3701 }
 0xf8b   : > { %v3703_v54 = vperm.slane %v3702_v56, %v7623_v62 }
 0xf8d   : > { %v3711_v15 = vmul.f32 %v3703_v54, %v3684_v27 }
 0xf8f   : > { %3778 = vadd.xlane.f32.xlu2 %v3777_v63  ;;  %v3712_v8 = vsel %vm516_vm2, %v3711_v15, 0.0  ;;  %v3635_v63 = vperm.slane %v6374_v28, 0 }
 0xf90   : > { %3713 = vadd.xlane.f32.xlu1 %v3712_v8 }
 0xf93   : > { %v3782_v49 = vpop.permute.xlu1 %3781 }
 0xf94   : > { %v3783_v61 = vperm.slane %v3782_v49, %v7623_v62 }
 0xf96   : > { %v3791_v5 = vmul.f32 %v3783_v61, %v3764_v1 }
 0xf98   : > { %v3792_v58 = vsel %vm516_vm2, %v3791_v5, 0.0 }
 0xf99   : > { %3793 = vadd.xlane.f32.xlu1 %v3792_v58  ;;  %v3638_v58 = vperm.slane %v6374_v28, 1 }
 0xf9a   : > { %v3299_v37 = vpop.xlane.xlu0 %3298 }
 0xf9b   : > { %v3316_v14 = vmul.f32 %v3315_v2, %v3299_v37 }
 0xfbe   : > { %v3314_v47 = vpop.xlane.xlu1 %3313 }
 0xfbf   : > { %v3319_v18 = vmul.f32 %v3318_v13, %v3314_v47  ;;  %v3718_v13 = vperm.slane %v6374_v28, 3 }
 0xfc1   : > { %v3320_v20 = vadd.f32 %v3319_v18, %v3316_v14 }
 0xfda   : > { %v3379_v19 = vpop.xlane.xlu2 %3378  ;;  %v3394_v11 = vpop.xlane.xlu0 %3393 }
 0xfdb   : > { %v3396_v25 = vmul.f32 %v3395_v23, %v3379_v19  ;;  %v3399_v45 = vmul.f32 %v3398_v29, %v3394_v11  ;;  %v3715_v19 = vperm.slane %v6374_v28, 2 }
 0xfdd   : > { %v3397_v21 = vadd.f32 %v3396_v25, %v3320_v20  ;;  %v3798_v20 = vperm.slane %v6374_v28, 5 }
 0xfdf   : > { %v3400_v10 = vadd.f32 %v3399_v45, %v3397_v21  ;;  %v7134_v21 = vld [vmem:[%s9528_s4 + $0x2] ss:$0 sm:$0xff] }
 0xfe2   : > { %v3459_v30 = vpop.xlane.xlu2 %3458  ;;  %v3474_v26 = vpop.xlane.xlu0 %3473 }
 0xfe3   : > { %v3476_v27 = vmul.f32 %v3475_v31, %v3459_v30  ;;  %v3479_v44 = vmul.f32 %v3478_v53, %v3474_v26 }
 0xfe5   : > { %v3477_v42 = vadd.f32 %v3476_v27, %v3400_v10 }
 0xfe7   : > { %v3480_v56 = vadd.f32 %v3479_v44, %v3477_v42 }
 0xfea   : > { %v3539_v50 = vpop.xlane.xlu2 %3538 }
 0xfeb   : > { %v3556_v1 = vmul.f32 %v3555_v55, %v3539_v50  ;;  %v3795_v50 = vperm.slane %v6374_v28, 4  ;;  %v6395_v28 = vld [vmem:[%s9533_s9 + $0x100] sm:$0xf] }
 0xfed   : > { %v3557_v15 = vadd.f32 %v3556_v1, %v3480_v56  ;;  %v6813_v56 = vld [vmem:[%s9533_s9 + $0x13c] sm:$0x70] }
 0xff2   : > { %v3554_v16 = vpop.xlane.xlu2 %3553  ;;  %v3619_v8 = vpop.xlane.xlu1 %3618 }
 0xff3   : > { %v3559_v54 = vmul.f32 %v3558_v52, %v3554_v16  ;;  %v3636_v5 = vmul.f32 %v3635_v63, %v3619_v8  ;;  %v3634_v37 = vpop.xlane.xlu0 %3633  ;;  %v6403_v63 = vld [vmem:[%s9533_s9 + $0x108] sm:$0xf] }
 0xff4   : > { %v3639_v4 = vmul.f32 %v3638_v58, %v3634_v37  ;;  %v6814_v8 = vld [vmem:[%s9533_s9 + $0x144] sm:$0x70]  ;;  %v6405_v58 = vld [vmem:[%s9533_s9 + $0x148] sm:$0x70] }
 0xff5   : > { %v3560_v49 = vadd.f32 %v3559_v54, %v3557_v15  ;;  %v6396_v54 = vor.u32 %v6813_v56, %v6395_v28  ;;  %v6397_v15 = vld [vmem:[%s9533_s9 + $0x140] sm:$0x70] }
 0xff7   : > { %v3637_v30 = vadd.f32 %v3636_v5, %v3560_v49  ;;  %v6806_v5 = vld [vmem:[%s9533_s9 + $0x10c] sm:$0xf] }
 0xff8   : > { %v6408_v37 = vor.u32 %v6806_v5, %v6405_v58  ;;  %v6810_v5 = vld [vmem:[%s9533_s9 + $0x12c] sm:$0xf] }
 0xff9   : > { %v3640_v23 = vadd.f32 %v3639_v4, %v3637_v30  ;;  %v6437_v58 = vld [vmem:[%s9533_s9 + $0x168] sm:$0x70] }
 0xffa   : > { %v3699_v61 = vpop.xlane.xlu2 %3698  ;;  %v3966_v4 = vsel %vm1204_vm4, %v6408_v37, 0  ;;  %v6429_v37 = vld [vmem:[%s9533_s9 + $0x160] sm:$0x70] }
 0xffb   : > { %v3716_v47 = vmul.f32 %v3715_v19, %v3699_v61  ;;  %v6404_v61 = vor.u32 %v6814_v8, %v6403_v63  ;;  %v3957_v19 = vsel %vm1204_vm4, %v6396_v54, 0  ;;  %4050 = vmatpush.bf16.msrb.mxu2 %v3966_v4  ;;  %v7135_v54 = vld [vmem:[%s9529_s5 + $0x2] ss:$0 sm:$0xff] }
 0xffc   : > { %4011 = vmatpush.bf16.msra.mxu3 %v3957_v19  ;;  %v6427_v8 = vld [vmem:[%s9533_s9 + $0x120] sm:$0xf]  ;;  %v6809_v19 = vld [vmem:[%s9533_s9 + $0x124] sm:$0xf] }
 0xffd   : > { %v3717_v11 = vadd.f32 %v3716_v47, %v3640_v23  ;;  %v6815_v23 = vld [vmem:[%s9533_s9 + $0x14c] sm:$0x70] }
0x1002   : > { %v3779_v14 = vpop.xlane.xlu2 %3778 }
0x1003   : > { %v3714_v2 = vpop.xlane.xlu1 %3713  ;;  %v3796_v29 = vmul.f32 %v3795_v50, %v3779_v14  ;;  %v6421_v14 = vld [vmem:[%s9533_s9 + $0x158] sm:$0x70] }
0x1004   : > { %v3719_v18 = vmul.f32 %v3718_v13, %v3714_v2  ;;  %v3963_v13 = vsel %vm1204_vm4, %v6404_v61, 0  ;;  %v6411_v2 = vld [vmem:[%s9533_s9 + $0x110] sm:$0xf] }
0x1005   : > { %4037 = vmatpush.bf16.msrb.mxu1 %v3963_v13  ;;  %v6412_v50 = vor.u32 %v6815_v23, %v6411_v2  ;;  %v6432_v23 = vor.u32 %v6809_v19, %v6429_v37  ;;  %v6822_v37 = vld [vmem:[%s9535_s11 + $0x10c] sm:$0xf] }
0x1006   : > { %v3720_v25 = vadd.f32 %v3719_v18, %v3717_v11  ;;  %v6808_v18 = vld [vmem:[%s9533_s9 + $0x11c] sm:$0xf] }
0x1008   : > { %v3797_v45 = vadd.f32 %v3796_v29, %v3720_v25  ;;  %v6807_v25 = vld [vmem:[%s9533_s9 + $0x114] sm:$0xf]  ;;  %v6424_v29 = vor.u32 %v6808_v18, %v6421_v14 }
0x100c   : > { %v3794_v31 = vpop.xlane.xlu1 %3793 }
0x100d   : > { %v3799_v27 = vmul.f32 %v3798_v20, %v3794_v31  ;;  %v6413_v20 = vld [vmem:[%s9533_s9 + $0x150] sm:$0x70] }
0x100e   : > { %v6416_v31 = vor.u32 %v6807_v25, %v6413_v20  ;;  %v3984_v25 = vsel %vm1204_vm4, %v6432_v23, 0 }
0x100f   : > { %v3800_v10 = vadd.f32 %v3799_v27, %v3797_v45  ;;  %v6816_v45 = vld [vmem:[%s9533_s9 + $0x154] sm:$0x70] }
0x1011   : > { %v3803_v53 = vadd.f32 %v7134_v21, %v3800_v10  ;;  %v6419_v21 = vld [vmem:[%s9533_s9 + $0x118] sm:$0xf]  ;;  %v3969_v10 = vsel %vm1204_vm4, %v6412_v50, 0 }
0x1012   : > { %4063 = vmatpush.bf16.msrb.mxu3 %v3969_v10  ;;  %v6445_v10 = vld [vmem:[%s9533_s9 + $0x170] sm:$0x70] }
0x1013   : > { %v3804_v55 = vadd.f32 %v3803_v53, %v8536_v7  ;;  %v6805_v7 = vld [vmem:[%s9533_s9 + $0x104] sm:$0xf]  ;;  %v6420_v53 = vor.u32 %v6816_v45, %v6419_v21  ;;  %v6812_v21 = vld [vmem:[%s9533_s9 + $0x13c] sm:$0xf] }
0x1014   : > { %v6400_v49 = vor.u32 %v6805_v7, %v6397_v15  ;;  %v7136_v15 = vld [vmem:[%s9530_s6 + $0x2] ss:$0 sm:$0xff]  ;;  %v6453_v45 = vld [vmem:[%s9533_s9 + $0x178] sm:$0x70] }
0x1015   : > { %v3807_v26 = vsel %vm442_vm1, %v3804_v55, 0.0 }
0x1016   : > { %3808 = vadd.xlane.f32.xlu0 %v3807_v26  ;;  %v3960_v30 = vsel %vm1204_vm4, %v6400_v49, 0  ;;  %v3972_v26 = vsel %vm1204_vm4, %v6416_v31, 0  ;;  %v6817_v49 = vld [vmem:[%s9533_s9 + $0x15c] sm:$0x70]  ;;  %v6819_v31 = vld [vmem:[%s9533_s9 + $0x16c] sm:$0x70] }
0x1017   : > { %4024 = vmatpush.bf16.msrb.mxu0 %v3960_v30  ;;  %v6818_v30 = vld [vmem:[%s9533_s9 + $0x164] sm:$0x70]  ;;  %v6428_v4 = vor.u32 %v6817_v49, %v6427_v8  ;;  %v6821_v8 = vld [vmem:[%s9535_s11 + $0x104] sm:$0xf] }
0x1018   : > { %v6493_v49 = vld [vmem:[%s9535_s11 + $0x140] sm:$0x70] }
0x1019   : > { %v3981_v50 = vsel %vm1204_vm4, %v6428_v4, 0  ;;  %v6831_v4 = vld [vmem:[%s9535_s11 + $0x14c] sm:$0x70] }
0x101b   : > { %4076 = vmatpush.bf16.msra.mxu0 %v3972_v26 }
0x1089   : > { %v3809_v16 = vpop.xlane.xlu0 %3808 }
0x108a   : > { %v3810_v42 = vmul.f32 %v3809_v16, %v7769_v39  ;;  %v3975_v16 = vsel %vm1204_vm4, %v6420_v53, 0  ;;  %v6451_v53 = vld [vmem:[%s9533_s9 + $0x138] sm:$0xf] }
0x108b   : > { %4089 = vmatpush.bf16.msra.mxu1 %v3975_v16  ;;  %v6456_v16 = vor.u32 %v6812_v21, %v6453_v45  ;;  %v8935_v21 = vld [vmem:[%s9534_s10 + $0x2] ss:$4 sm:$0xff] }
0x108c   : > { %v3811_v52 = vsub.f32 %v3804_v55, %v3810_v42  ;;  %v3978_v55 = vsel %vm1204_vm4, %v6424_v29, 0  ;;  %v6443_v29 = vld [vmem:[%s9533_s9 + $0x130] sm:$0xf]  ;;  %v3858_v45 = vperm.slane %v8935_v21, 1 }
0x108d   : > { %4102 = vmatpush.bf16.msra.mxu2 %v3978_v55  ;;  %v6820_v55 = vld [vmem:[%s9533_s9 + $0x174] sm:$0x70]  ;;  %v6444_v26 = vor.u32 %v6819_v31, %v6443_v29  ;;  %v6517_v29 = vld [vmem:[%s9535_s11 + $0x158] sm:$0x70] }
0x108e   : > { %v3812_v44 = vmul.f32 %v3811_v52, %v3811_v52 }
0x1090   : > { %v3813_v1 = vsel %vm442_vm1, %v3812_v44, 0.0 }
0x1091   : > { %3814 = vadd.xlane.f32.xlu2 %v3813_v1 }
0x1104   : > { %v3815_v47 = vpop.xlane.xlu2 %3814 }
0x1105   : > { %v3816_v11 = vmul.f32 %v3815_v47, %v7769_v39  ;;  %v6440_v47 = vor.u32 %v6810_v5, %v6437_v58  ;;  %v6496_v5 = vor.u32 %v6821_v8, %v6493_v49  ;;  %v6830_v58 = vld [vmem:[%s9535_s11 + $0x144] sm:$0x70] }
0x1107   : > { %v3817_v27 = vadd.f32 1e-05, %v3816_v11  ;;  %v3990_v14 = vsel %vm1204_vm4, %v6440_v47, 0  ;;  %v6823_v47 = vld [vmem:[%s9535_s11 + $0x114] sm:$0xf] }
0x1109   : > { %7241 = vrsqrt.f32 %v3817_v27  ;;  %vm3824_vm6 = vweird.f32 %v3817_v27 }
0x110f   : > { %v7242_v42 = vpop.eup %7241 }
0x1110   : > { %v3819_v44 = vmul.f32 %v7242_v42, %v3817_v27  ;;  %vm3825_vm5 = vweird.f32 %v7242_v42  ;;  %v6811_v27 = vld [vmem:[%s9533_s9 + $0x134] sm:$0xf] }
0x1111   : > { %vm3826_vm7 = vmor %vm3824_vm6, %vm3825_vm5 }
0x1112   : > { %v3820_v1 = vmul.f32 %v7242_v42, %v3819_v44  ;;  %v6452_v44 = vor.u32 %v6820_v55, %v6451_v53 }
0x1114   : > { %v3821_v28 = vmul.f32 0.5, %v3820_v1  ;;  %v3993_v1 = vsel %vm1204_vm4, %v6444_v26, 0  ;;  %v6825_v26 = vld [vmem:[%s9535_s11 + $0x124] sm:$0xf] }
0x1116   : > { %v3822_v56 = vsub.f32 1.5, %v3821_v28  ;;  %v4002_v28 = vsel %vm1204_vm4, %v6456_v16, 0  ;;  %v6525_v16 = vld [vmem:[%s9535_s11 + $0x160] sm:$0x70] }
0x1118   : > { %v3823_v7 = vmul.f32 %v7242_v42, %v3822_v56 }
0x111a   : > { %v3827_v63 = vsel %vm3826_vm7, %v7242_v42, %v3823_v7  ;;  %v6448_v42 = vor.u32 %v6811_v27, %v6445_v10  ;;  %v3999_v7 = vsel %vm1204_vm4, %v6452_v44, 0  ;;  %v3859_v27 = vperm.slane %v8935_v21, 2  ;;  %v6531_v44 = vld [vmem:[%s9535_s11 + $0x128] sm:$0xf] }
0x111b   : > { %v3828_v61 = vmul.f32 %v3827_v63, %v3811_v52  ;;  %v6435_v52 = vld [vmem:[%s9533_s9 + $0x128] sm:$0xf] }
0x111c   : > { %v6436_v18 = vor.u32 %v6818_v30, %v6435_v52  ;;  %v3996_v56 = vsel %vm1204_vm4, %v6448_v42, 0  ;;  %v6501_v52 = vld [vmem:[%s9535_s11 + $0x148] sm:$0x70] }
0x111d   : > { %v3830_v13 = vmul.f32 %v7135_v54, %v3828_v61  ;;  %v6491_v54 = vld [vmem:[%s9535_s11 + $0x100] sm:$0xf]  ;;  %v6499_v61 = vld [vmem:[%s9535_s11 + $0x108] sm:$0xf]  ;;  %v6504_v30 = vor.u32 %v6822_v37, %v6501_v52 }
0x111e   : > { %v3987_v20 = vsel %vm1204_vm4, %v6436_v18, 0  ;;  %v6500_v19 = vor.u32 %v6830_v58, %v6499_v61  ;;  %v6509_v18 = vld [vmem:[%s9535_s11 + $0x150] sm:$0x70]  ;;  %v6833_v37 = vld [vmem:[%s9535_s11 + $0x15c] sm:$0x70] }
0x111f   : > { %v8832_v2 = vadd.f32 %v7136_v15, %v3830_v13  ;;  %v6829_v15 = vld [vmem:[%s9535_s11 + $0x13c] sm:$0x70]  ;;  %v6507_v13 = vld [vmem:[%s9535_s11 + $0x110] sm:$0xf] }
0x1120   : > { %v6492_v63 = vor.u32 %v6829_v15, %v6491_v54  ;;  %v6508_v23 = vor.u32 %v6831_v4, %v6507_v13  ;;  %v3860_v54 = vperm.slane %v8935_v21, 3  ;;  %v6528_v15 = vor.u32 %v6825_v26, %v6525_v16  ;;  %v6826_v13 = vld [vmem:[%s9535_s11 + $0x12c] sm:$0xf]  ;;  %v6541_v26 = vld [vmem:[%s9535_s11 + $0x170] sm:$0x70] }
0x1121   : > { %v3833_v11 = vpack.c.bf16 %v8832_v2, %v8832_v2  ;;  %v6533_v4 = vld [vmem:[%s9535_s11 + $0x168] sm:$0x70] }
0x1123   : > { %6457 = vmatmul.msk.bf16.vlgmr.msra.gmra.mxu3 %vm442_vm1, %v3833_v11  ;;  %6458 = vmatmul.msk.bf16.vlgmr.msrb.gmra.mxu0 %vm442_vm1, %v3833_v11 }
0x1124   : > { %6459 = vmatmul.msk.bf16.vlgmr.msrb.gmra.mxu1 %vm442_vm1, %v3833_v11  ;;  %6460 = vmatmul.msk.bf16.vlgmr.msrb.gmra.mxu2 %vm442_vm1, %v3833_v11 }
0x1125   : > { %4115 = vmatpush.bf16.msra.mxu3 %v3981_v50  ;;  %4154 = vmatpush.bf16.msrb.mxu2 %v3990_v14  ;;  %v6512_v50 = vor.u32 %v6823_v47, %v6509_v18  ;;  %v6832_v14 = vld [vmem:[%s9535_s11 + $0x154] sm:$0x70] }
0x1126   : > { %4128 = vmatpush.bf16.msrb.mxu0 %v3984_v25  ;;  %4141 = vmatpush.bf16.msrb.mxu1 %v3987_v20  ;;  %v6824_v20 = vld [vmem:[%s9535_s11 + $0x11c] sm:$0xf] }
0x1127   : > { %v6520_v31 = vor.u32 %v6824_v20, %v6517_v29  ;;  %v3862_v20 = vperm.slane %v8935_v21, 5 }
0x1133   : > { %6461 = vmatmul.msk.bf16.vlgmr.msrb.gmra.mxu3 %vm442_vm1, %v3833_v11  ;;  %6462 = vmatmul.msk.bf16.vlgmr.msra.gmra.mxu0 %vm442_vm1, %v3833_v11 }
0x1134   : > { %6463 = vmatmul.msk.bf16.vlgmr.msra.gmra.mxu1 %vm442_vm1, %v3833_v11  ;;  %6464 = vmatmul.msk.bf16.vlgmr.msra.gmra.mxu2 %vm442_vm1, %v3833_v11 }
0x1135   : > { %4167 = vmatpush.bf16.msrb.mxu3 %v3993_v1  ;;  %4206 = vmatpush.bf16.msra.mxu2 %v4002_v28  ;;  %v6834_v1 = vld [vmem:[%s9535_s11 + $0x164] sm:$0x70] }
0x1136   : > { %4180 = vmatpush.bf16.msra.mxu0 %v3996_v56  ;;  %4193 = vmatpush.bf16.msra.mxu1 %v3999_v7  ;;  %v3857_v56 = vperm.slane %v8935_v21, 0  ;;  %v6532_v8 = vor.u32 %v6834_v1, %v6531_v44  ;;  %v6836_v44 = vld [vmem:[%s9535_s11 + $0x174] sm:$0x70] }
0x1143   : > { %6465 = vmatmul.msk.bf16.vlgmr.msra.gmra.mxu3 %vm442_vm1, %v3833_v11  ;;  %6466 = vmatmul.msk.bf16.vlgmr.msrb.gmra.mxu0 %vm442_vm1, %v3833_v11 }
0x1144   : > { %6467 = vmatmul.msk.bf16.vlgmr.msrb.gmra.mxu1 %vm442_vm1, %v3833_v11  ;;  %6468 = vmatmul.msk.bf16.vlgmr.msrb.gmra.mxu2 %vm442_vm1, %v3833_v11 }
0x1145   : > { %4350 = vmatpush.bf16.xpose.msra.mxu3 %v6492_v63  ;;  %4363 = vmatpush.bf16.xpose.msrb.mxu0 %v6496_v5 }
0x1146   : > { %4376 = vmatpush.bf16.xpose.msrb.mxu1 %v6500_v19  ;;  %4389 = vmatpush.bf16.xpose.msrb.mxu2 %v6504_v30  ;;  %v6523_v19 = vld [vmem:[%s9535_s11 + $0x120] sm:$0xf] }
0x1153   : > { %6469 = vmatmul.msk.bf16.vlgmr.msrb.gmra.mxu3 %vm442_vm1, %v3833_v11  ;;  %6470 = vmatmul.msk.bf16.vlgmr.msra.gmra.mxu0 %vm442_vm1, %v3833_v11 }
0x1154   : > { %6471 = vmatmul.msk.bf16.vlgmr.msra.gmra.mxu1 %vm442_vm1, %v3833_v11  ;;  %6472 = vmatmul.msk.bf16.vlgmr.msra.gmra.mxu2 %vm442_vm1, %v3833_v11  ;;  %v6515_v11 = vld [vmem:[%s9535_s11 + $0x118] sm:$0xf] }
0x1155   : > { %4402 = vmatpush.bf16.xpose.msrb.mxu3 %v6508_v23  ;;  %v6516_v25 = vor.u32 %v6832_v14, %v6515_v11  ;;  %4415 = vmatpush.bf16.xpose.msra.mxu0 %v6512_v50  ;;  %v6524_v11 = vor.u32 %v6833_v37, %v6523_v19  ;;  %v6536_v14 = vor.u32 %v6826_v13, %v6533_v4  ;;  %v6835_v19 = vld [vmem:[%s9535_s11 + $0x16c] sm:$0x70] }
0x1156   : > { %4441 = vmatpush.bf16.xpose.msra.mxu2 %v6520_v31  ;;  %v3863_v31 = vperm.slane %v8935_v21, 6 }
0x1157   : > { %4428 = vmatpush.bf16.xpose.msra.mxu1 %v6516_v25 }
0x11a0   : > { %v4026_v10 = vpop.f32.mrf.mxu0 }
0x11a1   : > { %v4027_v53 = vadd.f32 %v4026_v10, %v3858_v45  ;;  %v4039_v55 = vpop.f32.mrf.mxu1 }
0x11a2   : > { %v4040_v42 = vadd.f32 %v4039_v55, %v3859_v27  ;;  %v6827_v55 = vld [vmem:[%s9535_s11 + $0x134] sm:$0xf] }
0x11a3   : > { %v4213_v28 = vmax.f32 %v4027_v53, 0.0 }
0x11a4   : > { %v4214_v7 = vmax.f32 %v4040_v42, 0.0  ;;  %v6547_v42 = vld [vmem:[%s9535_s11 + $0x138] sm:$0xf] }
0x11a5   : > { %v4229_v63 = vpack.c.bf16 %v4213_v28, %v4213_v28  ;;  %v3861_v28 = vperm.slane %v8935_v21, 4 }
0x11a6   : > { %v4230_v49 = vpack.c.bf16 %v4214_v7, %v4214_v7  ;;  %v4013_v61 = vpop.f32.mrf.mxu3  ;;  %v3864_v7 = vperm.slane %v8935_v21, 7  ;;  %v6828_v21 = vld [vmem:[%s9535_s11 + $0x13c] sm:$0xf] }
0x11a7   : > { %v4014_v5 = vadd.f32 %v4013_v61, %v3857_v56  ;;  %v4052_v58 = vpop.f32.mrf.mxu2  ;;  %4364 = vmatmul.bf16.vlgmr.msrb.gmra.mxu0 %v4229_v63  ;;  %v6548_v63 = vor.u32 %v6836_v44, %v6547_v42 }
0x11a8   : > { %v4053_v52 = vadd.f32 %v4052_v58, %v3860_v54  ;;  %4377 = vmatmul.bf16.vlgmr.msrb.gmra.mxu1 %v4230_v49  ;;  %v4028_v30 = vpop.f32.mrf.mxu0  ;;  %4467 = vmatpush.bf16.xpose.msrb.mxu0 %v6528_v15  ;;  %v6544_v54 = vor.u32 %v6827_v55, %v6541_v26  ;;  %v6539_v58 = vld [vmem:[%s9535_s11 + $0x130] sm:$0xf] }
0x11a9   : > { %v4212_v47 = vmax.f32 %v4014_v5, 0.0  ;;  %v4041_v23 = vpop.f32.mrf.mxu1  ;;  %4480 = vmatpush.bf16.xpose.msrb.mxu1 %v6532_v8  ;;  %v6549_v30 = vld [vmem:[%s9535_s11 + $0x178] sm:$0x70] }
0x11aa   : > { %v4215_v18 = vmax.f32 %v4053_v52, 0.0  ;;  %v6392_v23 = vld [vmem:[%s9534_s10 + $0x22] ss:$4 sm:$0xff] }
0x11ab   : > { %v4228_v50 = vpack.c.bf16 %v4212_v47, %v4212_v47  ;;  %v3865_v26 = vperm.slane %v6392_v23, 0  ;;  %v3868_v42 = vperm.slane %v6392_v23, 3 }
0x11ac   : > { %v4231_v25 = vpack.c.bf16 %v4215_v18, %v4215_v18  ;;  %v6540_v18 = vor.u32 %v6835_v19, %v6539_v58  ;;  %v3870_v58 = vperm.slane %v6392_v23, 5 }
0x11ad   : > { %4351 = vmatmul.bf16.vlgmr.msra.gmra.mxu3 %v4228_v50  ;;  %v6552_v50 = vor.u32 %v6828_v21, %v6549_v30 }
0x11ae   : > { %4390 = vmatmul.bf16.vlgmr.msrb.gmra.mxu2 %v4231_v25  ;;  %v4015_v29 = vpop.f32.mrf.mxu3  ;;  %4454 = vmatpush.bf16.xpose.msra.mxu3 %v6524_v11  ;;  %v3866_v25 = vperm.slane %v6392_v23, 1 }
0x11af   : > { %v4054_v45 = vpop.f32.mrf.mxu2  ;;  %4493 = vmatpush.bf16.xpose.msrb.mxu2 %v6536_v14  ;;  %v3867_v29 = vperm.slane %v6392_v23, 2 }
0x11b0   : > { %v4078_v27 = vpop.f32.mrf.mxu0 }
0x11b1   : > { %v4079_v10 = vadd.f32 %v4078_v27, %v3862_v20  ;;  %v4091_v53 = vpop.f32.mrf.mxu1 }
0x11b2   : > { %v4092_v16 = vadd.f32 %v4091_v53, %v3863_v31 }
0x11b3   : > { %v4217_v1 = vmax.f32 %v4079_v10, 0.0 }
0x11b4   : > { %v4218_v56 = vmax.f32 %v4092_v16, 0.0 }
0x11b5   : > { %v4233_v15 = vpack.c.bf16 %v4217_v1, %v4217_v1 }
0x11b6   : > { %v4234_v8 = vpack.c.bf16 %v4218_v56, %v4218_v56  ;;  %v4065_v49 = vpop.f32.mrf.mxu3 }
0x11b7   : > { %v4066_v61 = vadd.f32 %v4065_v49, %v3861_v28  ;;  %v4104_v5 = vpop.f32.mrf.mxu2  ;;  %4416 = vmatmul.bf16.vlgmr.msra.gmra.mxu0 %v4233_v15 }
0x11b8   : > { %v4105_v37 = vadd.f32 %v4104_v5, %v3864_v7  ;;  %4429 = vmatmul.bf16.vlgmr.msra.gmra.mxu1 %v4234_v8  ;;  %v4080_v52 = vpop.f32.mrf.mxu0  ;;  %4519 = vmatpush.bf16.xpose.msra.mxu0 %v6544_v54 }
0x11b9   : > { %v4216_v13 = vmax.f32 %v4066_v61, 0.0  ;;  %v4093_v4 = vpop.f32.mrf.mxu1  ;;  %4532 = vmatpush.bf16.xpose.msra.mxu1 %v6548_v63 }
0x11ba   : > { %v4219_v47 = vmax.f32 %v4105_v37, 0.0  ;;  %v3871_v37 = vperm.slane %v6392_v23, 6 }
0x11bb   : > { %v4232_v11 = vpack.c.bf16 %v4216_v13, %v4216_v13 }
0x11bc   : > { %v4235_v14 = vpack.c.bf16 %v4219_v47, %v4219_v47 }
0x11bd   : > { %4403 = vmatmul.bf16.vlgmr.msrb.gmra.mxu3 %v4232_v11 }
0x11be   : > { %4442 = vmatmul.bf16.vlgmr.msra.gmra.mxu2 %v4235_v14  ;;  %v4067_v20 = vpop.f32.mrf.mxu3  ;;  %4506 = vmatpush.bf16.xpose.msrb.mxu3 %v6540_v18  ;;  %v3869_v18 = vperm.slane %v6392_v23, 4 }
0x11bf   : > { %v4106_v31 = vpop.f32.mrf.mxu2  ;;  %4545 = vmatpush.bf16.xpose.msra.mxu2 %v6552_v50  ;;  %v3872_v50 = vperm.slane %v6392_v23, 7 }
0x11c0   : > { %v4130_v45 = vpop.f32.mrf.mxu0 }
0x11c1   : > { %v4131_v27 = vadd.f32 %v4130_v45, %v3866_v25  ;;  %v4143_v10 = vpop.f32.mrf.mxu1 }
0x11c2   : > { %v4144_v53 = vadd.f32 %v4143_v10, %v3867_v29 }
0x11c3   : > { %v4221_v55 = vmax.f32 %v4131_v27, 0.0 }
0x11c4   : > { %v4222_v16 = vmax.f32 %v4144_v53, 0.0 }
0x11c5   : > { %v4237_v44 = vpack.c.bf16 %v4221_v55, %v4221_v55 }
0x11c6   : > { %v4238_v1 = vpack.c.bf16 %v4222_v16, %v4222_v16  ;;  %v4117_v28 = vpop.f32.mrf.mxu3 }
0x11c7   : > { %v4118_v56 = vadd.f32 %v4117_v28, %v3865_v26  ;;  %v4156_v7 = vpop.f32.mrf.mxu2  ;;  %4468 = vmatmul.bf16.vlgmr.msrb.gmra.mxu0 %v4237_v44 }
0x11c8   : > { %v4157_v54 = vadd.f32 %v4156_v7, %v3868_v42  ;;  %4481 = vmatmul.bf16.vlgmr.msrb.gmra.mxu1 %v4238_v1  ;;  %v4132_v15 = vpop.f32.mrf.mxu0 }
0x11c9   : > { %v4220_v63 = vmax.f32 %v4118_v56, 0.0  ;;  %v4145_v8 = vpop.f32.mrf.mxu1  ;;  %v7137_v15 = vld [vmem:[%s9536_s12 + $0x2] ss:$0 sm:$0xff] }
0x11ca   : > { %v4223_v49 = vmax.f32 %v4157_v54, 0.0 }
0x11cb   : > { %v4236_v61 = vpack.c.bf16 %v4220_v63, %v4220_v63 }
0x11cc   : > { %v4239_v5 = vpack.c.bf16 %v4223_v49, %v4223_v49 }
0x11cd   : > { %4455 = vmatmul.bf16.vlgmr.msra.gmra.mxu3 %v4236_v61 }
0x11ce   : > { %4494 = vmatmul.bf16.vlgmr.msrb.gmra.mxu2 %v4239_v5  ;;  %v4119_v19 = vpop.f32.mrf.mxu3 }
0x11cf   : > { %v4158_v52 = vpop.f32.mrf.mxu2 }
0x11d0   : > { %v4182_v21 = vpop.f32.mrf.mxu0 }
0x11d1   : > { %v4183_v30 = vadd.f32 %v4182_v21, %v3870_v58  ;;  %v4195_v13 = vpop.f32.mrf.mxu1 }
0x11d2   : > { %v4196_v4 = vadd.f32 %v4195_v13, %v3871_v37 }
0x11d3   : > { %v4225_v47 = vmax.f32 %v4183_v30, 0.0 }
0x11d4   : > { %v4226_v11 = vmax.f32 %v4196_v4, 0.0 }
0x11d5   : > { %v4241_v14 = vpack.c.bf16 %v4225_v47, %v4225_v47 }
0x11d6   : > { %v4242_v25 = vpack.c.bf16 %v4226_v11, %v4226_v11  ;;  %v4169_v20 = vpop.f32.mrf.mxu3 }
0x11d7   : > { %v4170_v29 = vadd.f32 %v4169_v20, %v3869_v18  ;;  %v4208_v31 = vpop.f32.mrf.mxu2  ;;  %4520 = vmatmul.bf16.vlgmr.msra.gmra.mxu0 %v4241_v14 }
0x11d8   : > { %v4209_v45 = vadd.f32 %v4208_v31, %v3872_v50  ;;  %4533 = vmatmul.bf16.vlgmr.msra.gmra.mxu1 %v4242_v25  ;;  %v4184_v27 = vpop.f32.mrf.mxu0 }
0x11d9   : > { %v4224_v10 = vmax.f32 %v4170_v29, 0.0  ;;  %v4197_v53 = vpop.f32.mrf.mxu1 }
0x11da   : > { %v4227_v55 = vmax.f32 %v4209_v45, 0.0 }
0x11db   : > { %v4240_v26 = vpack.c.bf16 %v4224_v10, %v4224_v10 }
0x11dc   : > { %v4243_v16 = vpack.c.bf16 %v4227_v55, %v4227_v55 }
0x11dd   : > { %4507 = vmatmul.bf16.vlgmr.msrb.gmra.mxu3 %v4240_v26 }
0x11de   : > { %4546 = vmatmul.bf16.vlgmr.msra.gmra.mxu2 %v4243_v16  ;;  %v4171_v42 = vpop.f32.mrf.mxu3 }
0x11df   : > { %v4210_v44 = vpop.f32.mrf.mxu2 }
0x1224   : > { %v4365_v1 = vpop.f32.mrf.mxu0 }
0x1225   : > { %v4378_v23 = vpop.f32.mrf.mxu1 }
0x122c   : > { %v4367_v28 = vpop.f32.mrf.mxu0 }
0x122d   : > { %v4380_v56 = vpop.f32.mrf.mxu1 }
0x1230   : > { %v4352_v7 = vpop.f32.mrf.mxu3 }
0x1231   : > { %v4391_v54 = vpop.f32.mrf.mxu2  ;;  %v4353_v49 = vadd.f32 %v7137_v15, %v4352_v7 }
0x1233   : > { %v4366_v58 = vadd.f32 %v4365_v1, %v4353_v49 }
0x1234   : > { %v4417_v63 = vpop.f32.mrf.mxu0 }
0x1235   : > { %v4430_v8 = vpop.f32.mrf.mxu1  ;;  %v4379_v52 = vadd.f32 %v4378_v23, %v4366_v58 }
0x1237   : > { %v4392_v13 = vadd.f32 %v4391_v54, %v4379_v52 }
0x1238   : > { %v4354_v61 = vpop.f32.mrf.mxu3 }
0x1239   : > { %v4393_v5 = vpop.f32.mrf.mxu2 }
0x123c   : > { %v4419_v19 = vpop.f32.mrf.mxu0 }
0x123d   : > { %v4432_v37 = vpop.f32.mrf.mxu1 }
0x1240   : > { %v4404_v21 = vpop.f32.mrf.mxu3 }
0x1241   : > { %v4443_v30 = vpop.f32.mrf.mxu2  ;;  %v4405_v47 = vadd.f32 %v4404_v21, %v4392_v13  ;;  %v6554_v13 = vld [vmem:[%s9525_s1 + $0x38] sm:$0x3f] }
0x1242   : > { %6555 = vmatpush.msk.msra.mxu3 %vm446_vm0, %v6554_v13 }
0x1243   : > { %v4418_v50 = vadd.f32 %v4417_v63, %v4405_v47 }
0x1244   : > { %v4469_v4 = vpop.f32.mrf.mxu0 }
0x1245   : > { %v4482_v18 = vpop.f32.mrf.mxu1  ;;  %v4431_v20 = vadd.f32 %v4430_v8, %v4418_v50 }
0x1247   : > { %v4444_v45 = vadd.f32 %v4443_v30, %v4431_v20 }
0x1248   : > { %v4406_v11 = vpop.f32.mrf.mxu3 }
0x1249   : > { %v4445_v14 = vpop.f32.mrf.mxu2 }
0x124c   : > { %v4471_v25 = vpop.f32.mrf.mxu0 }
0x124d   : > { %v4484_v29 = vpop.f32.mrf.mxu1 }
0x1250   : > { %v4456_v31 = vpop.f32.mrf.mxu3 }
0x1251   : > { %v4495_v27 = vpop.f32.mrf.mxu2  ;;  %v4457_v10 = vadd.f32 %v4456_v31, %v4444_v45  ;;  %v7138_v31 = vld [vmem:[%s9531_s7 + $0x2] ss:$0 sm:$0xff] }
0x1253   : > { %v4470_v26 = vadd.f32 %v4469_v4, %v4457_v10 }
0x1254   : > { %v4521_v53 = vpop.f32.mrf.mxu0 }
0x1255   : > { %v4534_v55 = vpop.f32.mrf.mxu1  ;;  %v4483_v44 = vadd.f32 %v4482_v18, %v4470_v26  ;;  %v7140_v26 = vld [vmem:[%s9526_s2 + $0x3] ss:$0 sm:$0xff] }
0x1257   : > { %v4496_v28 = vadd.f32 %v4495_v27, %v4483_v44  ;;  %v7139_v27 = vld [vmem:[%s9532_s8 + $0x2] ss:$0 sm:$0xff]  ;;  %v9670_v44 = vmov 17  }
0x1258   : > { %v4458_v16 = vpop.f32.mrf.mxu3 }
0x1259   : > { %v4497_v42 = vpop.f32.mrf.mxu2 }
0x125c   : > { %v4523_v1 = vpop.f32.mrf.mxu0 }
0x125d   : > { %v4536_v23 = vpop.f32.mrf.mxu1  ;;  %v9671_v1 = vmov 29  }
0x125e   : > { %v9672_v23 = vmov 30  }
0x1260   : > { %v4508_v56 = vpop.f32.mrf.mxu3 }
0x1261   : > { %v4509_v7 = vadd.f32 %v4508_v56, %v4496_v28  ;;  %v4547_v54 = vpop.f32.mrf.mxu2  ;;  %v9673_v28 = vmov 16  }
0x1263   : > { %v4522_v15 = vadd.f32 %v4521_v53, %v4509_v7 }
0x1265   : > { %v4535_v63 = vadd.f32 %v4534_v55, %v4522_v15 }
0x1267   : > { %v4548_v8 = vadd.f32 %v4547_v54, %v4535_v63  ;;  %v9684_v54 = vmov 10  }
0x1268   : > { %v4510_v49 = vpop.f32.mrf.mxu3 }
0x1269   : > { %v4551_v61 = vadd.f32 %v4548_v8, %v8832_v2  ;;  %v4549_v5 = vpop.f32.mrf.mxu2  ;;  %v6553_v2 = vld [vmem:[%s9525_s1 + $0x30] sm:$0xff]  ;;  %v9685_v49 = vmov 27  }
0x126a   : > { %4606 = vmatpush.msra.mxu3 %v6553_v2 }
0x126b   : > { %v4554_v58 = vsel %vm442_vm1, %v4551_v61, 0.0 }
0x126c   : > { %4555 = vadd.xlane.f32.xlu1 %v4554_v58 }
0x12df   : > { %v4556_v19 = vpop.xlane.xlu1 %4555 }
0x12e0   : > { %v4557_v37 = vmul.f32 %v4556_v19, %v7769_v39 }
0x12e2   : > { %v4558_v52 = vsub.f32 %v4551_v61, %v4557_v37 }
0x12e4   : > { %v4559_v21 = vmul.f32 %v4558_v52, %v4558_v52 }
0x12e6   : > { %v4560_v30 = vsel %vm442_vm1, %v4559_v21, 0.0 }
0x12e7   : > { %4561 = vadd.xlane.f32.xlu0 %v4560_v30 }
0x135a   : > { %v4562_v4 = vpop.xlane.xlu0 %4561 }
0x135b   : > { %v4563_v47 = vmul.f32 %v4562_v4, %v7769_v39 }
0x135d   : > { %v4564_v18 = vadd.f32 1e-05, %v4563_v47 }
0x135f   : > { %7243 = vrsqrt.f32 %v4564_v18  ;;  %vm4571_vm9 = vweird.f32 %v4564_v18 }
0x1365   : > { %v7244_v11 = vpop.eup %7243 }
0x1366   : > { %v4566_v50 = vmul.f32 %v7244_v11, %v4564_v18  ;;  %vm4572_vm8 = vweird.f32 %v7244_v11 }
0x1367   : > { %vm4573_vm0 = vmor %vm4571_vm9, %vm4572_vm8 }
0x1368   : > { %v4567_v14 = vmul.f32 %v7244_v11, %v4566_v50 }
0x136a   : > { %v4568_v25 = vmul.f32 0.5, %v4567_v14 }
0x136c   : > { %v4569_v20 = vsub.f32 1.5, %v4568_v25 }
0x136e   : > { %v4570_v29 = vmul.f32 %v7244_v11, %v4569_v20 }
0x1370   : > { %v4574_v45 = vsel %vm4573_vm0, %v7244_v11, %v4570_v29 }
0x1371   : > { %v4575_v10 = vmul.f32 %v4574_v45, %v4558_v52 }
0x1373   : > { %v4577_v53 = vmul.f32 %v7138_v31, %v4575_v10 }
0x1375   : > { %v9017_v55 = vadd.f32 %v7139_v27, %v4577_v53 }
0x1377   : > { %6556 = vmatmul.msk.f32.vlgmr.msra.gmra.mxu3 %vm442_vm1, %v9017_v55 }
0x13fa   : > { %v4608_v16 = vpop.f32.mrf.mxu3 }
0x13fb   : > { %v9024_v42 = vadd.f32 %v7140_v26, %v4608_v16 }
0x13fd   : > { %4662 = vperm.xlu0 %7079, %v9024_v42   ;;  %4638 = vperm.xlu2 %7078, %v9024_v42  }
0x13fe   : > { %4622 = vperm.xlu1 %7077, %v9024_v42  }
0x1405   : > { %7085 = vset.pattern.permute.xlu0 %v9646_v9  ;;  %7082 = vset.pattern.permute.xlu2 %v9670_v44  ;;  %v9674_v9 = vmov 32  }
0x1406   : > { %7080 = vset.pattern.permute.xlu1 %v9671_v1  ;;  %4782 = vperm.xlu0 %7085, %v9024_v42  }
0x1407   : > { %4718 = vperm.xlu2 %7082, %v9024_v42   ;;  %4677 = vperm.xlu1 %7080, %v9024_v42  }
0x140e   : > { %7089 = vset.pattern.permute.xlu0 %v9654_v34 }
0x140f   : > { %7083 = vset.pattern.permute.xlu2 %v9672_v23  ;;  %7081 = vset.pattern.permute.xlu1 %v9673_v28 }
0x1410   : > { %4862 = vperm.xlu0 %7089, %v9024_v42   ;;  %4742 = vperm.xlu2 %7083, %v9024_v42  }
0x1411   : > { %4702 = vperm.xlu1 %7081, %v9024_v42  }
0x1418   : > { %7095 = vset.pattern.permute.xlu0 %v9650_v41  ;;  %7084 = vset.pattern.permute.xlu2 %v9643_v32  ;;  %v9063_v32 = vmul.f32 0.70710677, %v9024_v42  ;;  %v9677_v41 = vmov 9  }
0x1419   : > { %7087 = vset.pattern.permute.xlu1 %v9674_v9  ;;  %4982 = vperm.xlu0 %7095, %v9024_v42  }
0x141a   : > { %4757 = vperm.xlu2 %7084, %v9024_v42   ;;  %4822 = vperm.xlu1 %7087, %v9024_v42  }
0x1421   : > { %7096 = vset.pattern.permute.xlu0 %v9659_v40  ;;  %v9682_v40 = vmov 6  }
0x1422   : > { %7086 = vset.pattern.permute.xlu2 %v9649_v51  ;;  %7088 = vset.pattern.permute.xlu1 %v9652_v17  ;;  %v9676_v51 = vmov 2  }
0x1423   : > { %4997 = vperm.xlu0 %7096, %v9024_v42   ;;  %4798 = vperm.xlu2 %7086, %v9024_v42  }
0x1424   : > { %4837 = vperm.xlu1 %7088, %v9024_v42  }
0x142b   : > { %7100 = vset.pattern.permute.xlu0 %v9664_v48  ;;  %7090 = vset.pattern.permute.xlu2 %v9655_v12  ;;  %v9681_v12 = vmov 13   ;;  %v9683_v48 = vmov 7  }
0x142c   : > { %7091 = vset.pattern.permute.xlu1 %v9645_v0  ;;  %5077 = vperm.xlu0 %7100, %v9024_v42   ;;  %v9675_v0 = vmov 8  }
0x142d   : > { %4878 = vperm.xlu2 %7090, %v9024_v42   ;;  %4902 = vperm.xlu1 %7091, %v9024_v42  }
0x1434   : > { %7103 = vset.pattern.permute.xlu0 %v9653_v43  ;;  %v9680_v43 = vmov 5  }
0x1435   : > { %7093 = vset.pattern.permute.xlu2 %v9648_v24  ;;  %7092 = vset.pattern.permute.xlu1 %v9660_v36 }
0x1436   : > { %4942 = vperm.xlu2 %7093, %v9024_v42   ;;  %4917 = vperm.xlu1 %7092, %v9024_v42  }
0x1437   : > { %4634 = vperm.xlu0 %7103, %v9063_v32  }
0x143e   : > { %7098 = vset.pattern.permute.xlu2 %v9644_v3  ;;  %7094 = vset.pattern.permute.xlu1 %v9656_v6 }
0x143f   : > { %7113 = vset.pattern.permute.xlu0 %v9662_v33  ;;  %5038 = vperm.xlu2 %7098, %v9024_v42  }
0x1440   : > { %4958 = vperm.xlu1 %7094, %v9024_v42   ;;  %5034 = vperm.xlu0 %7113, %v9063_v32  }
0x1447   : > { %7099 = vset.pattern.permute.xlu2 %v9663_v22 }
0x1448   : > { %7097 = vset.pattern.permute.xlu1 %v9657_v59  ;;  %5062 = vperm.xlu2 %7099, %v9024_v42  }
0x1449   : > { %5022 = vperm.xlu1 %7097, %v9024_v42   ;;  %7118 = vset.pattern.permute.xlu0 %v9667_v57 }
0x1450   : > { %7101 = vset.pattern.permute.xlu2 %v9647_v35  ;;  %v9678_v35 = vmov 4  }
0x1451   : > { %7105 = vset.pattern.permute.xlu1 %v9634_v38  ;;  %5102 = vperm.xlu2 %7101, %v9024_v42  }
0x1452   : > { %4714 = vperm.xlu1 %7105, %v9063_v32  }
0x1457   : > { %v4639_v3 = vpop.permute.xlu2 %4638 }
0x1458   : > { %v4640_v2 = vperm.slane %v4639_v3, %v7623_v62 }
0x1459   : > { %7102 = vset.pattern.permute.xlu2 %v9651_v60  ;;  %v9679_v60 = vmov 12  }
0x145a   : > { %7110 = vset.pattern.permute.xlu1 %v9675_v0  ;;  %4617 = vperm.xlu2 %7102, %v9063_v32  }
0x145b   : > { %4938 = vperm.xlu1 %7110, %v9063_v32  }
0x1461   : > { %v4719_v24 = vpop.permute.xlu2 %4718 }
0x1462   : > { %7104 = vset.pattern.permute.xlu2 %v9676_v51  ;;  %v4720_v29 = vperm.slane %v4719_v24, %v7623_v62 }
0x1463   : > { %7111 = vset.pattern.permute.xlu1 %v9677_v41  ;;  %4698 = vperm.xlu2 %7104, %v9063_v32  }
0x1464   : > { %4954 = vperm.xlu1 %7111, %v9063_v32  }
0x146a   : > { %v9091_v38 = vpop.permute.xlu2 %4742 }
0x146b   : > { %7106 = vset.pattern.permute.xlu2 %v9678_v35 }
0x146c   : > { %7114 = vset.pattern.permute.xlu1 %v9679_v60  ;;  %4778 = vperm.xlu2 %7106, %v9063_v32  }
0x146d   : > { %5098 = vperm.xlu1 %7114, %v9063_v32  }
0x146f   : > { %v9102_v6 = vpop.permute.xlu0 %4662 }
0x1470   : > { %v4623_v17 = vpop.permute.xlu1 %4622 }
0x1471   : > { %v4624_v4 = vperm.slane %v4623_v17, %v7623_v62 }
0x1474   : > { %7107 = vset.pattern.permute.xlu2 %v9680_v43  ;;  %v9098_v34 = vpop.permute.xlu2 %4757 }
0x1475   : > { %4794 = vperm.xlu2 %7107, %v9063_v32   ;;  %7115 = vset.pattern.permute.xlu1 %v9681_v12 }
0x1478   : > { %v4783_v33 = vpop.permute.xlu0 %4782 }
0x1479   : > { %v9104_v59 = vpop.permute.xlu1 %4677  ;;  %v4784_v1 = vperm.slane %v4783_v33, %v7623_v62 }
0x147d   : > { %7108 = vset.pattern.permute.xlu2 %v9682_v40  ;;  %v4799_v36 = vpop.permute.xlu2 %4798 }
0x147e   : > { %4858 = vperm.xlu2 %7108, %v9063_v32   ;;  %v4800_v23 = vperm.slane %v4799_v36, %v7623_v62 }
0x1482   : > { %v4863_v56 = vpop.permute.xlu0 %4862 }
0x1483   : > { %v4703_v22 = vpop.permute.xlu1 %4702  ;;  %v4864_v36 = vperm.slane %v4863_v56, %v7623_v62 }
0x1484   : > { %v4704_v31 = vperm.slane %v4703_v22, %v7623_v62 }
0x1486   : > { %7109 = vset.pattern.permute.xlu2 %v9683_v48 }
0x1487   : > { %v4879_v57 = vpop.permute.xlu2 %4878  ;;  %4874 = vperm.xlu2 %7109, %v9063_v32  }
0x1488   : > { %v4880_v33 = vperm.slane %v4879_v57, %v7623_v62 }
0x148b   : > { %v9114_v63 = vpop.permute.xlu0 %4982 }
0x148c   : > { %v9110_v7 = vpop.permute.xlu1 %4822 }
0x148f   : > { %7112 = vset.pattern.permute.xlu2 %v9684_v54 }
0x1490   : > { %v4943_v15 = vpop.permute.xlu2 %4942  ;;  %5018 = vperm.xlu2 %7112, %v9063_v32  }
0x1491   : > { %v4944_v51 = vperm.slane %v4943_v15, %v7623_v62 }
0x1495   : > { %v9119_v5 = vpop.permute.xlu0 %4997 }
0x1496   : > { %v9116_v8 = vpop.permute.xlu1 %4837 }
0x1498   : > { %7116 = vset.pattern.permute.xlu2 %v9685_v49 }
0x1499   : > { %v5039_v61 = vpop.permute.xlu2 %5038 }
0x149e   : > { %v9125_v37 = vpop.permute.xlu0 %5077 }
0x149f   : > { %v9121_v58 = vpop.permute.xlu1 %4902 }
0x14a2   : > { %v9123_v19 = vpop.permute.xlu2 %5062 }
0x14a8   : > { %v9127_v52 = vpop.permute.xlu1 %4917 }
0x14a9   : > { %v4635_v30 = vpop.permute.xlu0 %4634 }
0x14aa   : > { %v4648_v18 = vmul.f32 %v4640_v2, %v4635_v30 }
0x14ab   : > { %v9129_v21 = vpop.permute.xlu2 %5102 }
0x14b2   : > { %v4959_v13 = vpop.permute.xlu1 %4958  ;;  %v5035_v30 = vpop.permute.xlu0 %5034 }
0x14b3   : > { %v4960_v41 = vperm.slane %v4959_v13, %v7623_v62  ;;  %v5040_v13 = vperm.slane %v5039_v61, %v7623_v62 }
0x14b4   : > { %v4618_v47 = vpop.permute.xlu2 %4617 }
0x14b5   : > { %v4632_v11 = vmul.f32 %v4624_v4, %v4618_v47  ;;  %v5048_v47 = vmul.f32 %v5040_v13, %v5035_v30  ;;  %v4664_v13 = vperm.slane %v9102_v6, %v7623_v62 }
0x14b7   : > { %v4649_v50 = vadd.f32 %v4648_v18, %v4632_v11 }
0x14b9   : > { %v4650_v14 = vsel %vm516_vm2, %v4649_v50, -inf }
0x14ba   : > { %4651 = vmax.xlane.f32.xlu1 %v4650_v14 }
0x14bb   : > { %v5023_v25 = vpop.permute.xlu1 %5022 }
0x14bc   : > { %v5024_v2 = vperm.slane %v5023_v25, %v7623_v62 }
0x14bd   : > { %v4699_v20 = vpop.permute.xlu2 %4698 }
0x14be   : > { %v4712_v27 = vmul.f32 %v4704_v31, %v4699_v20 }
0x14c4   : > { %v4715_v45 = vpop.permute.xlu1 %4714 }
0x14c5   : > { %v4728_v10 = vmul.f32 %v4720_v29, %v4715_v45 }
0x14c6   : > { %v4779_v53 = vpop.permute.xlu2 %4778 }
0x14c7   : > { %v4729_v26 = vadd.f32 %v4728_v10, %v4712_v27  ;;  %v4792_v9 = vmul.f32 %v4784_v1, %v4779_v53 }
0x14c9   : > { %v4730_v16 = vsel %vm516_vm2, %v4729_v26, -inf }
0x14ca   : > { %4731 = vmax.xlane.f32.xlu0 %v4730_v16 }
0x14cd   : > { %v4939_v44 = vpop.permute.xlu1 %4938 }
0x14ce   : > { %v4952_v60 = vmul.f32 %v4944_v51, %v4939_v44 }
0x14cf   : > { %v4795_v28 = vpop.permute.xlu2 %4794 }
0x14d0   : > { %v4808_v3 = vmul.f32 %v4800_v23, %v4795_v28 }
0x14d2   : > { %v4809_v0 = vadd.f32 %v4808_v3, %v4792_v9 }
0x14d4   : > { %v4810_v24 = vsel %vm516_vm2, %v4809_v0, -inf }
0x14d5   : > { %4811 = vmax.xlane.f32.xlu1 %v4810_v24 }
0x14d6   : > { %v4955_v35 = vpop.permute.xlu1 %4954 }
0x14d7   : > { %v4968_v17 = vmul.f32 %v4960_v41, %v4955_v35 }
0x14d8   : > { %v4859_v43 = vpop.permute.xlu2 %4858 }
0x14d9   : > { %v4969_v12 = vadd.f32 %v4968_v17, %v4952_v60  ;;  %v4872_v48 = vmul.f32 %v4864_v36, %v4859_v43 }
0x14db   : > { %v4970_v40 = vsel %vm516_vm2, %v4969_v12, -inf }
0x14dc   : > { %4971 = vmax.xlane.f32.xlu0 %v4970_v40 }
0x14df   : > { %v5099_v56 = vpop.permute.xlu1 %5098 }
0x14e1   : > { %v4875_v22 = vpop.permute.xlu2 %4874 }
0x14e2   : > { %v4888_v54 = vmul.f32 %v4880_v33, %v4875_v22 }
0x14e4   : > { %v4889_v49 = vadd.f32 %v4888_v54, %v4872_v48 }
0x14e6   : > { %v4890_v15 = vsel %vm516_vm2, %v4889_v49, -inf }
0x14e7   : > { %4891 = vmax.xlane.f32.xlu2 %v4890_v15 }
0x14ea   : > { %v5019_v4 = vpop.permute.xlu2 %5018 }
0x14eb   : > { %v5032_v18 = vmul.f32 %v5024_v2, %v5019_v4  ;;  %v4679_v2 = vperm.slane %v9104_v59, %v7623_v62 }
0x14ed   : > { %v5049_v11 = vadd.f32 %v5048_v47, %v5032_v18 }
0x14ee   : > { %5114 = vperm.xlu1 %7115, %v9063_v32  }
0x14ef   : > { %v5050_v57 = vsel %vm516_vm2, %v5049_v11, -inf }
0x14f0   : > { %5051 = vmax.xlane.f32.xlu0 %v5050_v57 }
0x14ff   : > { %5118 = vperm.xlu2 %7116, %v9024_v42  }
0x1507   : > { %7117 = vset.pattern.permute.xlu2 %v9666_v46 }
0x152d   : > { %v4652_v14 = vpop.xlane.xlu1 %4651 }
0x152e   : > { %v4653_v20 = vsub.f32 %v4649_v50, %v4652_v14 }
0x1530   : > { %v4654_v29 = vmul.f32 1.442695, %v4653_v20  ;;  %v4744_v20 = vperm.slane %v9091_v38, %v7623_v62 }
0x1532   : > { %7245 = vpow2.f32 %v4654_v29 }
0x1538   : > { %v7246_v61 = vpop.eup %7245 }
0x1539   : > { %v4656_v25 = vsel %vm516_vm2, %v7246_v61, 0.0 }
0x153a   : > { %4657 = vadd.xlane.f32.xlu2 %v4656_v25 }
0x153d   : > { %v4732_v31 = vpop.xlane.xlu0 %4731 }
0x153e   : > { %v4733_v45 = vsub.f32 %v4729_v26, %v4732_v31 }
0x1540   : > { %v4734_v27 = vmul.f32 1.442695, %v4733_v45 }
0x1542   : > { %7247 = vpow2.f32 %v4734_v27 }
0x1548   : > { %v7248_v32 = vpop.eup %7247  ;;  %v4812_v10 = vpop.xlane.xlu1 %4811 }
0x1549   : > { %v4813_v53 = vsub.f32 %v4809_v0, %v4812_v10  ;;  %v4736_v16 = vsel %vm516_vm2, %v7248_v32, 0.0  ;;  %v5104_v0 = vperm.slane %v9129_v21, %v7623_v62 }
0x154a   : > { %4737 = vadd.xlane.f32.xlu1 %v4736_v16 }
0x154b   : > { %v4814_v46 = vmul.f32 1.442695, %v4813_v53  ;;  %v5112_v17 = vmul.f32 %v5104_v0, %v5099_v56  ;;  %v4824_v53 = vperm.slane %v9110_v7, %v7623_v62 }
0x154d   : > { %7249 = vpow2.f32 %v4814_v46 }
0x154f   : > { %v4972_v1 = vpop.xlane.xlu0 %4971 }
0x1550   : > { %v4973_v9 = vsub.f32 %v4969_v12, %v4972_v1 }
0x1552   : > { %v4974_v26 = vmul.f32 1.442695, %v4973_v9 }
0x1553   : > { %v7250_v44 = vpop.eup %7249 }
0x1554   : > { %v4816_v50 = vsel %vm516_vm2, %v7250_v44, 0.0 }
0x1555   : > { %4817 = vadd.xlane.f32.xlu2 %v4816_v50 }
0x155a   : > { %v4892_v23 = vpop.xlane.xlu2 %4891 }
0x155b   : > { %v4893_v28 = vsub.f32 %v4889_v49, %v4892_v23 }
0x155d   : > { %v4894_v3 = vmul.f32 1.442695, %v4893_v28 }
0x155f   : > { %7251 = vpow2.f32 %v4894_v3 }
0x1560   : > { %v5115_v35 = vpop.permute.xlu1 %5114  ;;  %7253 = vpow2.f32 %v4974_v26 }
0x1562   : > { %v5119_v24 = vpop.permute.xlu2 %5118 }
0x1563   : > { %v5120_v51 = vperm.slane %v5119_v24, %v7623_v62  ;;  %v5052_v41 = vpop.xlane.xlu0 %5051 }
0x1564   : > { %v5053_v40 = vsub.f32 %v5049_v11, %v5052_v41 }
0x1565   : > { %v7252_v60 = vpop.eup %7251  ;;  %v5128_v43 = vmul.f32 %v5120_v51, %v5115_v35 }
0x1566   : > { %v4896_v36 = vsel %vm516_vm2, %v7252_v60, 0.0  ;;  %v5054_v33 = vmul.f32 1.442695, %v5053_v40  ;;  %v9160_v48 = vpop.eup %7253 }
0x1567   : > { %4897 = vadd.xlane.f32.xlu1 %v4896_v36  ;;  %v5129_v12 = vadd.f32 %v5128_v43, %v5112_v17  ;;  %v4976_v21 = vsel %vm516_vm2, %v9160_v48, 0.0 }
0x1568   : > { %7255 = vpow2.f32 %v5054_v33  ;;  %v5064_v33 = vperm.slane %v9123_v19, %v7623_v62 }
0x1569   : > { %v5130_v22 = vsel %vm516_vm2, %v5129_v12, -inf }
0x156a   : > { %5131 = vmax.xlane.f32.xlu0 %v5130_v22  ;;  %v4999_v22 = vperm.slane %v9119_v5, %v7623_v62  ;;  %v6557_v5 = vld [vmem:[%s9527_s3 + $0x30] sm:$0xff] }
0x156d   : > { %5142 = vperm.xlu2 %7117, %v9024_v42  }
0x156e   : > { %v9165_v54 = vpop.eup %7255 }
0x156f   : > { %4977 = vadd.xlane.f32.xlu1 %v4976_v21  ;;  %v5056_v49 = vsel %vm516_vm2, %v9165_v54, 0.0 }
0x1577   : > { %5057 = vadd.xlane.f32.xlu1 %v5056_v49 }
0x15ad   : > { %v4658_v15 = vpop.xlane.xlu2 %4657 }
0x15ae   : > { %7257 = vrcp.f32 %v4658_v15  ;;  %v5079_v15 = vperm.slane %v9125_v37, %v7623_v62 }
0x15b4   : > { %v7258_v30 = vpop.eup %7257 }
0x15b5   : > { %v4660_v4 = vmul.f32 %v7258_v30, %v7246_v61  ;;  %v4759_v61 = vperm.slane %v9098_v34, %v7623_v62  ;;  %v4904_v34 = vperm.slane %v9121_v58, %v7623_v62  ;;  %v4984_v58 = vperm.slane %v9114_v63, %v7623_v62 }
0x15b7   : > { %v4687_v47 = vmul.f32 %v4679_v2, %v4660_v4  ;;  %v4672_v18 = vmul.f32 %v4664_v13, %v4660_v4  ;;  %v4691_v2 = vperm.slane %v6557_v5, 0  ;;  %v4694_v4 = vperm.slane %v6557_v5, 1 }
0x15b9   : > { %v4688_v11 = vsel %vm516_vm2, %v4687_v47, 0.0  ;;  %v4673_v57 = vsel %vm516_vm2, %v4672_v18, 0.0 }
0x15ba   : > { %4689 = vadd.xlane.f32.xlu2 %v4688_v11  ;;  %4674 = vadd.xlane.f32.xlu0 %v4673_v57  ;;  %v4771_v57 = vperm.slane %v6557_v5, 2 }
0x15bd   : > { %v4738_v56 = vpop.xlane.xlu1 %4737 }
0x15be   : > { %7259 = vrcp.f32 %v4738_v56 }
0x15c4   : > { %v7260_v14 = vpop.eup %7259 }
0x15c5   : > { %v4740_v29 = vmul.f32 %v7260_v14, %v7248_v32 }
0x15c7   : > { %v4752_v6 = vmul.f32 %v4744_v20, %v4740_v29  ;;  %v4767_v31 = vmul.f32 %v4759_v61, %v4740_v29  ;;  %v4774_v20 = vperm.slane %v6557_v5, 3 }
0x15c8   : > { %v4818_v25 = vpop.xlane.xlu2 %4817 }
0x15c9   : > { %7261 = vrcp.f32 %v4818_v25  ;;  %v4753_v59 = vsel %vm516_vm2, %v4752_v6, 0.0  ;;  %v4768_v27 = vsel %vm516_vm2, %v4767_v31, 0.0 }
0x15ca   : > { %4754 = vadd.xlane.f32.xlu0 %v4753_v59  ;;  %v4851_v59 = vperm.slane %v6557_v5, 4 }
0x15cf   : > { %v7262_v45 = vpop.eup %7261 }
0x15d0   : > { %v4820_v10 = vmul.f32 %v7262_v45, %v7250_v44  ;;  %v4919_v44 = vperm.slane %v9127_v52, %v7623_v62 }
0x15d2   : > { %4769 = vadd.xlane.f32.xlu0 %v4768_v27  ;;  %v4832_v38 = vmul.f32 %v4824_v53, %v4820_v10 }
0x15d4   : > { %v4833_v32 = vsel %vm516_vm2, %v4832_v38, 0.0  ;;  %v4931_v38 = vperm.slane %v6557_v5, 6 }
0x15da   : > { %4834 = vadd.xlane.f32.xlu0 %v4833_v32  ;;  %v4898_v16 = vpop.xlane.xlu1 %4897 }
0x15db   : > { %7263 = vrcp.f32 %v4898_v16 }
0x15dd   : > { %v5132_v46 = vpop.xlane.xlu0 %5131 }
0x15de   : > { %v5133_v50 = vsub.f32 %v5129_v12, %v5132_v46 }
0x15e0   : > { %v5134_v1 = vmul.f32 1.442695, %v5133_v50 }
0x15e1   : > { %v7264_v23 = vpop.eup %7263 }
0x15e2   : > { %7265 = vpow2.f32 %v5134_v1  ;;  %v4978_v28 = vpop.xlane.xlu1 %4977  ;;  %v4900_v9 = vmul.f32 %v7264_v23, %v7252_v60  ;;  %v4839_v60 = vperm.slane %v9116_v8, %v7623_v62 }
0x15e3   : > { %7267 = vrcp.f32 %v4978_v28 }
0x15e4   : > { %v4927_v7 = vmul.f32 %v4919_v44, %v4900_v9  ;;  %v4912_v3 = vmul.f32 %v4904_v34, %v4900_v9  ;;  %v4847_v43 = vmul.f32 %v4839_v60, %v4820_v10  ;;  %v4854_v10 = vperm.slane %v6557_v5, 5 }
0x15e6   : > { %v4928_v26 = vsel %vm516_vm2, %v4927_v7, 0.0  ;;  %v4913_v24 = vsel %vm516_vm2, %v4912_v3, 0.0  ;;  %v4848_v12 = vsel %vm516_vm2, %v4847_v43, 0.0 }
0x15e7   : > { %4929 = vadd.xlane.f32.xlu2 %v4928_v26  ;;  %4914 = vadd.xlane.f32.xlu0 %v4913_v24 }
0x15e8   : > { %v7266_v0 = vpop.eup %7265 }
0x15e9   : > { %v7268_v51 = vpop.eup %7267  ;;  %v5136_v41 = vsel %vm516_vm2, %v7266_v0, 0.0 }
0x15ea   : > { %v5058_v52 = vpop.xlane.xlu1 %5057  ;;  %5137 = vadd.xlane.f32.xlu1 %v5136_v41  ;;  %v4980_v35 = vmul.f32 %v7268_v51, %v9160_v48 }
0x15eb   : > { %7269 = vrcp.f32 %v5058_v52 }
0x15ec   : > { %v4992_v17 = vmul.f32 %v4984_v58, %v4980_v35  ;;  %v5007_v8 = vmul.f32 %v4999_v22, %v4980_v35  ;;  %v4934_v58 = vperm.slane %v6557_v5, 7 }
0x15ee   : > { %v4993_v40 = vsel %vm516_vm2, %v4992_v17, 0.0  ;;  %v5008_v49 = vsel %vm516_vm2, %v5007_v8, 0.0 }
0x15ef   : > { %4994 = vadd.xlane.f32.xlu2 %v4993_v40 }
0x15f1   : > { %v7270_v36 = vpop.eup %7269 }
0x15f2   : > { %4849 = vadd.xlane.f32.xlu1 %v4848_v12  ;;  %v5060_v63 = vmul.f32 %v7270_v36, %v9165_v54  ;;  %v5143_v54 = vpop.permute.xlu2 %5142 }
0x15f3   : > { %v5144_v32 = vperm.slane %v5143_v54, %v7623_v62 }
0x15f4   : > { %v5072_v48 = vmul.f32 %v5064_v33, %v5060_v63  ;;  %v5087_v19 = vmul.f32 %v5079_v15, %v5060_v63 }
0x15f6   : > { %v5073_v21 = vsel %vm516_vm2, %v5072_v48, 0.0  ;;  %v5088_v30 = vsel %vm516_vm2, %v5087_v19, 0.0 }
0x15f7   : > { %5074 = vadd.xlane.f32.xlu2 %v5073_v21 }
0x15fa   : > { %5009 = vadd.xlane.f32.xlu1 %v5008_v49 }
0x15fb   : > { %5157 = vperm.xlu0 %7118, %v9024_v42  }
0x1602   : > { %5089 = vadd.xlane.f32.xlu1 %v5088_v30 }
0x162d   : > { %v4675_v13 = vpop.xlane.xlu0 %4674  ;;  %v4690_v47 = vpop.xlane.xlu2 %4689 }
0x162e   : > { %v4692_v18 = vmul.f32 %v4691_v2, %v4675_v13  ;;  %v4695_v11 = vmul.f32 %v4694_v4, %v4690_v47  ;;  %v7141_v4 = vld [vmem:[%s9528_s4 + $0x3] ss:$0 sm:$0xff] }
0x1630   : > { %v4696_v37 = vadd.f32 %v4695_v11, %v4692_v18 }
0x163d   : > { %v4755_v56 = vpop.xlane.xlu0 %4754 }
0x163e   : > { %v4772_v14 = vmul.f32 %v4771_v57, %v4755_v56 }
0x1640   : > { %v4773_v42 = vadd.f32 %v4772_v14, %v4696_v37 }
0x1645   : > { %v4770_v29 = vpop.xlane.xlu0 %4769 }
0x1646   : > { %v4775_v6 = vmul.f32 %v4774_v20, %v4770_v29 }
0x1648   : > { %v4776_v25 = vadd.f32 %v4775_v6, %v4773_v42  ;;  %v6587_v6 = vld [vmem:[%s9533_s9 + $0x188] sm:$0xf] }
0x164d   : > { %v4835_v61 = vpop.xlane.xlu0 %4834 }
0x164e   : > { %v4852_v31 = vmul.f32 %v4851_v59, %v4835_v61  ;;  %v6845_v61 = vld [vmem:[%s9533_s9 + $0x1bc] sm:$0x70] }
0x1650   : > { %v4853_v45 = vadd.f32 %v4852_v31, %v4776_v25  ;;  %v6846_v25 = vld [vmem:[%s9533_s9 + $0x1c4] sm:$0x70]  ;;  %v6837_v31 = vld [vmem:[%s9533_s9 + $0x184] sm:$0xf] }
0x1651   : > { %v6588_v59 = vor.u32 %v6846_v25, %v6587_v6  ;;  %v6635_v25 = vld [vmem:[%s9533_s9 + $0x1b8] sm:$0xf] }
0x165a   : > { %v4915_v16 = vpop.xlane.xlu0 %4914  ;;  %v4930_v51 = vpop.xlane.xlu2 %4929 }
0x165b   : > { %v4932_v34 = vmul.f32 %v4931_v38, %v4915_v16  ;;  %v4935_v35 = vmul.f32 %v4934_v58, %v4930_v51  ;;  %v6589_v38 = vld [vmem:[%s9533_s9 + $0x1c8] sm:$0x70]  ;;  %v6839_v58 = vld [vmem:[%s9533_s9 + $0x194] sm:$0xf] }
0x165d   : > { %v5138_v27 = vpop.xlane.xlu1 %5137 }
0x165e   : > { %7271 = vrcp.f32 %v5138_v27 }
0x1662   : > { %v4995_v41 = vpop.xlane.xlu2 %4994 }
0x1664   : > { %v7272_v53 = vpop.eup %7271 }
0x1665   : > { %v4850_v46 = vpop.xlane.xlu1 %4849  ;;  %v5140_v50 = vmul.f32 %v7272_v53, %v7266_v0  ;;  %v6558_v0 = vld [vmem:[%s9527_s3 + $0x38] sm:$0x3f]  ;;  %v6838_v53 = vld [vmem:[%s9533_s9 + $0x18c] sm:$0xf] }
0x1666   : > { %v4855_v1 = vmul.f32 %v4854_v10, %v4850_v46  ;;  %v5011_v60 = vperm.slane %v6558_v0, 0  ;;  %v5014_v17 = vperm.slane %v6558_v0, 1  ;;  %v5091_v33 = vperm.slane %v6558_v0, 2 }
0x1667   : > { %v5152_v23 = vmul.f32 %v5144_v32, %v5140_v50  ;;  %v5094_v63 = vperm.slane %v6558_v0, 3  ;;  %v5171_v8 = vperm.slane %v6558_v0, 4  ;;  %v5174_v54 = vperm.slane %v6558_v0, 5  ;;  %v6597_v0 = vld [vmem:[%s9533_s9 + $0x1d0] sm:$0x70] }
0x1668   : > { %v4856_v44 = vadd.f32 %v4855_v1, %v4853_v45  ;;  %v5012_v36 = vmul.f32 %v5011_v60, %v4995_v41  ;;  %v6581_v45 = vld [vmem:[%s9533_s9 + $0x1c0] sm:$0x70]  ;;  %v5339_v32 = vsel %vm1204_vm4, %v6588_v59, 0  ;;  %v6592_v16 = vor.u32 %v6838_v53, %v6589_v38  ;;  %v6844_v59 = vld [vmem:[%s9533_s9 + $0x1bc] sm:$0xf] }
0x1669   : > { %v5153_v28 = vsel %vm516_vm2, %v5152_v23, 0.0  ;;  %v6584_v10 = vor.u32 %v6837_v31, %v6581_v45  ;;  %5413 = vmatpush.bf16.msrb.mxu2 %v5339_v32  ;;  %v6600_v60 = vor.u32 %v6839_v58, %v6597_v0  ;;  %v6627_v31 = vld [vmem:[%s9533_s9 + $0x1b0] sm:$0xf]  ;;  %v6677_v58 = vld [vmem:[%s9535_s11 + $0x1c0] sm:$0x70] }
0x166a   : > { %v4933_v9 = vadd.f32 %v4932_v34, %v4856_v44  ;;  %5154 = vadd.xlane.f32.xlu2 %v5153_v28  ;;  %v5075_v40 = vpop.xlane.xlu2 %5074  ;;  %v5342_v1 = vsel %vm1204_vm4, %v6592_v16, 0  ;;  %v6603_v34 = vld [vmem:[%s9533_s9 + $0x198] sm:$0xf]  ;;  %v6840_v28 = vld [vmem:[%s9533_s9 + $0x19c] sm:$0xf] }
0x166b   : > { %v5092_v49 = vmul.f32 %v5091_v33, %v5075_v40  ;;  %5426 = vmatpush.bf16.msrb.mxu3 %v5342_v1  ;;  %v6848_v44 = vld [vmem:[%s9533_s9 + $0x1d4] sm:$0x70]  ;;  %v5348_v40 = vsel %vm1204_vm4, %v6600_v60, 0  ;;  %v6851_v45 = vld [vmem:[%s9533_s9 + $0x1ec] sm:$0x70] }
0x166c   : > { %v4936_v43 = vadd.f32 %v4935_v35, %v4933_v9  ;;  %v6628_v32 = vor.u32 %v6851_v45, %v6627_v31  ;;  %v6691_v60 = vld [vmem:[%s9535_s11 + $0x190] sm:$0xf]  ;;  %v6866_v31 = vld [vmem:[%s9535_s11 + $0x1e4] sm:$0x70]  ;;  %v6858_v45 = vld [vmem:[%s9535_s11 + $0x1ac] sm:$0xf] }
0x166d   : > { %v5158_v7 = vpop.permute.xlu0 %5157  ;;  %v5010_v52 = vpop.xlane.xlu1 %5009 }
0x166e   : > { %v5159_v3 = vperm.slane %v5158_v7, %v7623_v62  ;;  %v5013_v12 = vadd.f32 %v5012_v36, %v4936_v43  ;;  %v5015_v62 = vmul.f32 %v5014_v17, %v5010_v52  ;;  %v6604_v7 = vor.u32 %v6848_v44, %v6603_v34  ;;  %v6683_v34 = vld [vmem:[%s9535_s11 + $0x188] sm:$0xf] }
0x166f   : > { %v5369_v1 = vsel %vm1204_vm4, %v6628_v32, 0  ;;  %v6862_v44 = vld [vmem:[%s9535_s11 + $0x1c4] sm:$0x70] }
0x1670   : > { %v5167_v26 = vmul.f32 %v5159_v3, %v5140_v50  ;;  %v5016_v48 = vadd.f32 %v5015_v62, %v5013_v12  ;;  %v5336_v50 = vsel %vm1204_vm4, %v6584_v10, 0  ;;  %v6605_v3 = vld [vmem:[%s9533_s9 + $0x1d8] sm:$0x70]  ;;  %v5351_v35 = vsel %vm1204_vm4, %v6604_v7, 0  ;;  %v6629_v10 = vld [vmem:[%s9533_s9 + $0x1f0] sm:$0x70] }
0x1671   : > { %5400 = vmatpush.bf16.msrb.mxu1 %v5336_v50  ;;  %v6608_v51 = vor.u32 %v6840_v28, %v6605_v3  ;;  %5465 = vmatpush.bf16.msra.mxu2 %v5351_v35  ;;  %v6675_v28 = vld [vmem:[%s9535_s11 + $0x180] sm:$0xf]  ;;  %v6854_v7 = vld [vmem:[%s9535_s11 + $0x18c] sm:$0xf]  ;;  %v6864_v35 = vld [vmem:[%s9535_s11 + $0x1d4] sm:$0x70] }
0x1672   : > { %v5168_v24 = vsel %vm516_vm2, %v5167_v26, 0.0  ;;  %v5093_v19 = vadd.f32 %v5092_v49, %v5016_v48  ;;  %v6595_v26 = vld [vmem:[%s9533_s9 + $0x190] sm:$0xf]  ;;  %v7142_v48 = vld [vmem:[%s9529_s5 + $0x3] ss:$0 sm:$0xff] }
0x1673   : > { %5169 = vadd.xlane.f32.xlu1 %v5168_v24  ;;  %v6847_v24 = vld [vmem:[%s9533_s9 + $0x1cc] sm:$0x70]  ;;  %v5354_v17 = vsel %vm1204_vm4, %v6608_v51, 0  ;;  %v6619_v49 = vld [vmem:[%s9533_s9 + $0x1a8] sm:$0xf] }
0x1674   : > { %v6596_v41 = vor.u32 %v6847_v24, %v6595_v26  ;;  %5478 = vmatpush.bf16.msra.mxu3 %v5354_v17  ;;  %v6685_v3 = vld [vmem:[%s9535_s11 + $0x1c8] sm:$0x70]  ;;  %v6684_v26 = vor.u32 %v6862_v44, %v6683_v34 }
0x1675   : > { %v5090_v22 = vpop.xlane.xlu1 %5089  ;;  %5452 = vmatpush.bf16.msra.mxu1 %v5348_v40  ;;  %v6688_v51 = vor.u32 %v6854_v7, %v6685_v3  ;;  %v6856_v40 = vld [vmem:[%s9535_s11 + $0x19c] sm:$0xf] }
0x1676   : > { %v5095_v15 = vmul.f32 %v5094_v63, %v5090_v22  ;;  %v5345_v43 = vsel %vm1204_vm4, %v6596_v41, 0  ;;  %v6853_v41 = vld [vmem:[%s9535_s11 + $0x184] sm:$0xf] }
0x1677   : > { %v6680_v0 = vor.u32 %v6853_v41, %v6677_v58 }
0x1678   : > { %v5096_v5 = vadd.f32 %v5095_v15, %v5093_v19  ;;  %v6850_v15 = vld [vmem:[%s9533_s9 + $0x1e4] sm:$0x70] }
0x16dd   : > { %v5155_v21 = vpop.xlane.xlu2 %5154 }
0x16de   : > { %v5172_v30 = vmul.f32 %v5171_v8, %v5155_v21  ;;  %v7143_v8 = vld [vmem:[%s9530_s6 + $0x3] ss:$0 sm:$0xff] }
0x16e0   : > { %v5173_v2 = vadd.f32 %v5172_v30, %v5096_v5  ;;  %v6842_v30 = vld [vmem:[%s9533_s9 + $0x1ac] sm:$0xf]  ;;  %v6611_v5 = vld [vmem:[%s9533_s9 + $0x1a0] sm:$0xf] }
0x16e6   : > { %v5170_v13 = vpop.xlane.xlu1 %5169 }
0x16e7   : > { %v5175_v47 = vmul.f32 %v5174_v54, %v5170_v13  ;;  %v6621_v54 = vld [vmem:[%s9533_s9 + $0x1e8] sm:$0x70]  ;;  %v6849_v13 = vld [vmem:[%s9533_s9 + $0x1dc] sm:$0x70] }
0x16e9   : > { %v5176_v18 = vadd.f32 %v5175_v47, %v5173_v2  ;;  %v6841_v2 = vld [vmem:[%s9533_s9 + $0x1a4] sm:$0xf] }
0x16eb   : > { %v5179_v11 = vadd.f32 %v7141_v4, %v5176_v18  ;;  %v6613_v4 = vld [vmem:[%s9533_s9 + $0x1e0] sm:$0x70]  ;;  %v6620_v18 = vor.u32 %v6850_v15, %v6619_v49 }
0x16ed   : > { %v5180_v57 = vadd.f32 %v5179_v11, %v9017_v55  ;;  %v6579_v55 = vld [vmem:[%s9533_s9 + $0x180] sm:$0xf]  ;;  %v6624_v11 = vor.u32 %v6842_v30, %v6621_v54 }
0x16ee   : > { %v6580_v27 = vor.u32 %v6845_v61, %v6579_v55  ;;  %v6852_v55 = vld [vmem:[%s9533_s9 + $0x1f4] sm:$0x70]  ;;  %v6637_v61 = vld [vmem:[%s9533_s9 + $0x1f8] sm:$0x70] }
0x16ef   : > { %v5183_v56 = vsel %vm442_vm1, %v5180_v57, 0.0  ;;  %v6636_v53 = vor.u32 %v6852_v55, %v6635_v25  ;;  %v6640_v38 = vor.u32 %v6844_v59, %v6637_v61 }
0x16f0   : > { %5184 = vadd.xlane.f32.xlu1 %v5183_v56  ;;  %v5333_v46 = vsel %vm1204_vm4, %v6580_v27, 0  ;;  %v6612_v56 = vor.u32 %v6849_v13, %v6611_v5  ;;  %v6843_v27 = vld [vmem:[%s9533_s9 + $0x1b4] sm:$0xf]  ;;  %v6865_v5 = vld [vmem:[%s9535_s11 + $0x1dc] sm:$0x70] }
0x16f1   : > { %5387 = vmatpush.bf16.msrb.mxu0 %v5333_v46  ;;  %v6632_v16 = vor.u32 %v6843_v27, %v6629_v10  ;;  %v5375_v46 = vsel %vm1204_vm4, %v6636_v53, 0  ;;  %v5378_v50 = vsel %vm1204_vm4, %v6640_v38, 0  ;;  %v6857_v13 = vld [vmem:[%s9535_s11 + $0x1a4] sm:$0xf]  ;;  %v6717_v27 = vld [vmem:[%s9535_s11 + $0x1e8] sm:$0x70] }
0x16f2   : > { %v6720_v32 = vor.u32 %v6858_v45, %v6717_v27 }
0x16f5   : > { %5439 = vmatpush.bf16.msra.mxu0 %v5345_v43  ;;  %v6863_v43 = vld [vmem:[%s9535_s11 + $0x1cc] sm:$0x70] }
0x1763   : > { %v5185_v37 = vpop.xlane.xlu1 %5184 }
0x1764   : > { %v5186_v14 = vmul.f32 %v5185_v37, %v7769_v39  ;;  %v6616_v37 = vor.u32 %v6841_v2, %v6613_v4  ;;  %v6709_v2 = vld [vmem:[%s9535_s11 + $0x1e0] sm:$0x70] }
0x1766   : > { %v5187_v42 = vsub.f32 %v5180_v57, %v5186_v14  ;;  %v5360_v6 = vsel %vm1204_vm4, %v6616_v37, 0  ;;  %v6712_v37 = vor.u32 %v6857_v13, %v6709_v2 }
0x1768   : > { %v5188_v20 = vmul.f32 %v5187_v42, %v5187_v42 }
0x176a   : > { %v5189_v29 = vsel %vm442_vm1, %v5188_v20, 0.0  ;;  %v5366_v20 = vsel %vm1204_vm4, %v6624_v11, 0 }
0x176b   : > { %5190 = vadd.xlane.f32.xlu2 %v5189_v29  ;;  %v5357_v29 = vsel %vm1204_vm4, %v6612_v56, 0 }
0x17de   : > { %v5191_v23 = vpop.xlane.xlu2 %5190 }
0x17df   : > { %v5192_v9 = vmul.f32 %v5191_v23, %v7769_v39  ;;  %v5372_v23 = vsel %vm1204_vm4, %v6632_v16, 0 }
0x17e1   : > { %v5193_v52 = vadd.f32 1e-05, %v5192_v9  ;;  %v6861_v9 = vld [vmem:[%s9535_s11 + $0x1bc] sm:$0x70] }
0x17e2   : > { %v6676_v24 = vor.u32 %v6861_v9, %v6675_v28  ;;  %v6723_v9 = vld [vmem:[%s9535_s11 + $0x1b0] sm:$0xf] }
0x17e3   : > { %7273 = vrsqrt.f32 %v5193_v52  ;;  %vm5200_vm10 = vweird.f32 %v5193_v52 }
0x17e9   : > { %v7274_v36 = vpop.eup %7273 }
0x17ea   : > { %v5195_v12 = vmul.f32 %v7274_v36, %v5193_v52  ;;  %vm5201_vm2 = vweird.f32 %v7274_v36  ;;  %v6699_v52 = vld [vmem:[%s9535_s11 + $0x198] sm:$0xf] }
0x17eb   : > { %vm5202_vm11 = vmor %vm5200_vm10, %vm5201_vm2  ;;  %v6700_v17 = vor.u32 %v6864_v35, %v6699_v52 }
0x17ec   : > { %v5196_v62 = vmul.f32 %v7274_v36, %v5195_v12  ;;  %v6692_v12 = vor.u32 %v6863_v43, %v6691_v60 }
0x17ee   : > { %v5197_v33 = vmul.f32 0.5, %v5196_v62 }
0x17f0   : > { %v5198_v63 = vsub.f32 1.5, %v5197_v33  ;;  %v6855_v33 = vld [vmem:[%s9535_s11 + $0x194] sm:$0xf] }
0x17f2   : > { %v5199_v22 = vmul.f32 %v7274_v36, %v5198_v63  ;;  %v6693_v63 = vld [vmem:[%s9535_s11 + $0x1d0] sm:$0x70] }
0x17f4   : > { %v5203_v21 = vsel %vm5202_vm11, %v7274_v36, %v5199_v22  ;;  %v6701_v36 = vld [vmem:[%s9535_s11 + $0x1d8] sm:$0x70]  ;;  %v6696_v22 = vor.u32 %v6855_v33, %v6693_v63 }
0x17f5   : > { %v5204_v19 = vmul.f32 %v5203_v21, %v5187_v42  ;;  %v5363_v42 = vsel %vm1204_vm4, %v6620_v18, 0  ;;  %v6704_v62 = vor.u32 %v6856_v40, %v6701_v36 }
0x17f7   : > { %v5206_v47 = vmul.f32 %v7142_v48, %v5204_v19  ;;  %v9416_v48 = vld [vmem:[%s9534_s10 + $0x3] ss:$4 sm:$0xff] }
0x17f8   : > { %v5234_v21 = vperm.slane %v9416_v48, 1  ;;  %v6707_v19 = vld [vmem:[%s9535_s11 + $0x1a0] sm:$0xf]  ;;  %v5235_v18 = vperm.slane %v9416_v48, 2  ;;  %v5236_v11 = vperm.slane %v9416_v48, 3  ;;  %v5240_v52 = vperm.slane %v9416_v48, 7 }
0x17f9   : > { %v9313_v57 = vadd.f32 %v7143_v8, %v5206_v47  ;;  %v5233_v8 = vperm.slane %v9416_v48, 0  ;;  %v6708_v56 = vor.u32 %v6865_v5, %v6707_v19  ;;  %v6576_v19 = vld [vmem:[%s9534_s10 + $0x23] ss:$4 sm:$0xff] }
0x17fa   : > { %v5241_v2 = vperm.slane %v6576_v19, 0 }
0x17fb   : > { %v5209_v14 = vpack.c.bf16 %v9313_v57, %v9313_v57 }
0x17fd   : > { %6641 = vmatmul.msk.bf16.vlgmr.msrb.gmra.mxu0 %vm442_vm1, %v5209_v14  ;;  %6642 = vmatmul.msk.bf16.vlgmr.msrb.gmra.mxu1 %vm442_vm1, %v5209_v14 }
0x17fe   : > { %6643 = vmatmul.msk.bf16.vlgmr.msrb.gmra.mxu2 %vm442_vm1, %v5209_v14  ;;  %6644 = vmatmul.msk.bf16.vlgmr.msrb.gmra.mxu3 %vm442_vm1, %v5209_v14 }
0x17ff   : > { %5517 = vmatpush.bf16.msrb.mxu2 %v5363_v42  ;;  %5530 = vmatpush.bf16.msrb.mxu3 %v5366_v20 }
0x1800   : > { %5491 = vmatpush.bf16.msrb.mxu0 %v5357_v29  ;;  %5504 = vmatpush.bf16.msrb.mxu1 %v5360_v6  ;;  %v6715_v6 = vld [vmem:[%s9535_s11 + $0x1a8] sm:$0xf] }
0x1801   : > { %v6716_v38 = vor.u32 %v6866_v31, %v6715_v6  ;;  %v5244_v6 = vperm.slane %v6576_v19, 3 }
0x180d   : > { %6645 = vmatmul.msk.bf16.vlgmr.msra.gmra.mxu0 %vm442_vm1, %v5209_v14  ;;  %6646 = vmatmul.msk.bf16.vlgmr.msra.gmra.mxu1 %vm442_vm1, %v5209_v14 }
0x180e   : > { %6647 = vmatmul.msk.bf16.vlgmr.msra.gmra.mxu2 %vm442_vm1, %v5209_v14  ;;  %6648 = vmatmul.msk.bf16.vlgmr.msra.gmra.mxu3 %vm442_vm1, %v5209_v14 }
0x180f   : > { %5569 = vmatpush.bf16.msra.mxu2 %v5375_v46  ;;  %5582 = vmatpush.bf16.msra.mxu3 %v5378_v50  ;;  %v5237_v50 = vperm.slane %v9416_v48, 4 }
0x1810   : > { %5543 = vmatpush.bf16.msra.mxu0 %v5369_v1  ;;  %5556 = vmatpush.bf16.msra.mxu1 %v5372_v23  ;;  %v5238_v1 = vperm.slane %v9416_v48, 5 }
0x181d   : > { %6649 = vmatmul.msk.bf16.vlgmr.msrb.gmra.mxu0 %vm442_vm1, %v5209_v14  ;;  %6650 = vmatmul.msk.bf16.vlgmr.msrb.gmra.mxu1 %vm442_vm1, %v5209_v14 }
0x181e   : > { %6651 = vmatmul.msk.bf16.vlgmr.msrb.gmra.mxu2 %vm442_vm1, %v5209_v14  ;;  %6652 = vmatmul.msk.bf16.vlgmr.msrb.gmra.mxu3 %vm442_vm1, %v5209_v14 }
0x181f   : > { %5752 = vmatpush.bf16.xpose.msrb.mxu2 %v6684_v26  ;;  %5726 = vmatpush.bf16.xpose.msrb.mxu0 %v6676_v24  ;;  %v6867_v26 = vld [vmem:[%s9535_s11 + $0x1ec] sm:$0x70]  ;;  %v6859_v24 = vld [vmem:[%s9535_s11 + $0x1b4] sm:$0xf] }
0x1820   : > { %5765 = vmatpush.bf16.xpose.msrb.mxu3 %v6688_v51  ;;  %5739 = vmatpush.bf16.xpose.msrb.mxu1 %v6680_v0  ;;  %v6725_v51 = vld [vmem:[%s9535_s11 + $0x1f0] sm:$0x70]  ;;  %v5239_v0 = vperm.slane %v9416_v48, 6  ;;  %v6724_v35 = vor.u32 %v6867_v26, %v6723_v9  ;;  %v6868_v48 = vld [vmem:[%s9535_s11 + $0x1f4] sm:$0x70]  ;;  %v5247_v26 = vperm.slane %v6576_v19, 6 }
0x1821   : > { %v6728_v60 = vor.u32 %v6859_v24, %v6725_v51  ;;  %v5248_v24 = vperm.slane %v6576_v19, 7 }
0x182d   : > { %6653 = vmatmul.msk.bf16.vlgmr.msra.gmra.mxu0 %vm442_vm1, %v5209_v14  ;;  %6654 = vmatmul.msk.bf16.vlgmr.msra.gmra.mxu1 %vm442_vm1, %v5209_v14 }
0x182e   : > { %6655 = vmatmul.msk.bf16.vlgmr.msra.gmra.mxu2 %vm442_vm1, %v5209_v14  ;;  %6656 = vmatmul.msk.bf16.vlgmr.msra.gmra.mxu3 %vm442_vm1, %v5209_v14 }
0x182f   : > { %5804 = vmatpush.bf16.xpose.msra.mxu2 %v6700_v17  ;;  %5778 = vmatpush.bf16.xpose.msra.mxu0 %v6692_v12  ;;  %v6731_v12 = vld [vmem:[%s9535_s11 + $0x1b8] sm:$0xf] }
0x1830   : > { %5817 = vmatpush.bf16.xpose.msra.mxu3 %v6704_v62  ;;  %5791 = vmatpush.bf16.xpose.msra.mxu1 %v6696_v22 }
0x187a   : > { %v5389_v49 = vpop.f32.mrf.mxu0  ;;  %v5402_v15 = vpop.f32.mrf.mxu1 }
0x187b   : > { %v5390_v30 = vadd.f32 %v5389_v49, %v5233_v8  ;;  %v5403_v54 = vadd.f32 %v5402_v15, %v5234_v21  ;;  %v6860_v8 = vld [vmem:[%s9535_s11 + $0x1bc] sm:$0xf] }
0x187c   : > { %v6733_v21 = vld [vmem:[%s9535_s11 + $0x1f8] sm:$0x70] }
0x187d   : > { %v5588_v4 = vmax.f32 %v5390_v30, 0.0  ;;  %v5589_v47 = vmax.f32 %v5403_v54, 0.0  ;;  %v6732_v30 = vor.u32 %v6868_v48, %v6731_v12  ;;  %v6736_v54 = vor.u32 %v6860_v8, %v6733_v21  ;;  %v7144_v21 = vld [vmem:[%s9536_s12 + $0x3] ss:$0 sm:$0xff] }
0x187f   : > { %v5604_v14 = vpack.c.bf16 %v5588_v4, %v5588_v4  ;;  %v5605_v42 = vpack.c.bf16 %v5589_v47, %v5589_v47  ;;  %v5242_v4 = vperm.slane %v6576_v19, 1 }
0x1881   : > { %v5415_v20 = vpop.f32.mrf.mxu2  ;;  %v5428_v29 = vpop.f32.mrf.mxu3  ;;  %5727 = vmatmul.bf16.vlgmr.msrb.gmra.mxu0 %v5604_v14  ;;  %5740 = vmatmul.bf16.vlgmr.msrb.gmra.mxu1 %v5605_v42 }
0x1882   : > { %v5416_v25 = vadd.f32 %v5415_v20, %v5235_v18  ;;  %v5429_v55 = vadd.f32 %v5428_v29, %v5236_v11  ;;  %v5391_v59 = vpop.f32.mrf.mxu0  ;;  %v5404_v61 = vpop.f32.mrf.mxu1  ;;  %5830 = vmatpush.bf16.xpose.msrb.mxu0 %v6708_v56  ;;  %5843 = vmatpush.bf16.xpose.msrb.mxu1 %v6712_v37  ;;  %v5243_v29 = vperm.slane %v6576_v19, 2 }
0x1884   : > { %v5590_v10 = vmax.f32 %v5416_v25, 0.0  ;;  %v5591_v53 = vmax.f32 %v5429_v55, 0.0 }
0x1886   : > { %v5606_v16 = vpack.c.bf16 %v5590_v10, %v5590_v10  ;;  %v5607_v46 = vpack.c.bf16 %v5591_v53, %v5591_v53 }
0x1888   : > { %5753 = vmatmul.bf16.vlgmr.msrb.gmra.mxu2 %v5606_v16  ;;  %5766 = vmatmul.bf16.vlgmr.msrb.gmra.mxu3 %v5607_v46  ;;  %v5245_v46 = vperm.slane %v6576_v19, 4 }
0x1889   : > { %v5417_v23 = vpop.f32.mrf.mxu2  ;;  %v5430_v34 = vpop.f32.mrf.mxu3  ;;  %5856 = vmatpush.bf16.xpose.msrb.mxu2 %v6716_v38  ;;  %5869 = vmatpush.bf16.xpose.msrb.mxu3 %v6720_v32 }
0x188a   : > { %v5441_v44 = vpop.f32.mrf.mxu0  ;;  %v5454_v28 = vpop.f32.mrf.mxu1 }
0x188b   : > { %v5442_v7 = vadd.f32 %v5441_v44, %v5237_v50  ;;  %v5455_v3 = vadd.f32 %v5454_v28, %v5238_v1  ;;  %v5246_v50 = vperm.slane %v6576_v19, 5 }
0x188d   : > { %v5592_v41 = vmax.f32 %v5442_v7, 0.0  ;;  %v5593_v58 = vmax.f32 %v5455_v3, 0.0 }
0x188f   : > { %v5608_v17 = vpack.c.bf16 %v5592_v41, %v5592_v41  ;;  %v5609_v43 = vpack.c.bf16 %v5593_v58, %v5593_v58 }
0x1891   : > { %v5467_v40 = vpop.f32.mrf.mxu2  ;;  %v5480_v36 = vpop.f32.mrf.mxu3  ;;  %5779 = vmatmul.bf16.vlgmr.msra.gmra.mxu0 %v5608_v17  ;;  %5792 = vmatmul.bf16.vlgmr.msra.gmra.mxu1 %v5609_v43 }
0x1892   : > { %v5468_v62 = vadd.f32 %v5467_v40, %v5239_v0  ;;  %v5481_v33 = vadd.f32 %v5480_v36, %v5240_v52  ;;  %v5443_v63 = vpop.f32.mrf.mxu0  ;;  %v5456_v22 = vpop.f32.mrf.mxu1  ;;  %5882 = vmatpush.bf16.xpose.msra.mxu0 %v6724_v35  ;;  %5895 = vmatpush.bf16.xpose.msra.mxu1 %v6728_v60 }
0x1894   : > { %v5594_v49 = vmax.f32 %v5468_v62, 0.0  ;;  %v5595_v15 = vmax.f32 %v5481_v33, 0.0 }
0x1896   : > { %v5610_v5 = vpack.c.bf16 %v5594_v49, %v5594_v49  ;;  %v5611_v13 = vpack.c.bf16 %v5595_v15, %v5595_v15 }
0x1898   : > { %5805 = vmatmul.bf16.vlgmr.msra.gmra.mxu2 %v5610_v5  ;;  %5818 = vmatmul.bf16.vlgmr.msra.gmra.mxu3 %v5611_v13 }
0x1899   : > { %v5469_v47 = vpop.f32.mrf.mxu2  ;;  %v5482_v18 = vpop.f32.mrf.mxu3  ;;  %5908 = vmatpush.bf16.xpose.msra.mxu2 %v6732_v30  ;;  %5921 = vmatpush.bf16.xpose.msra.mxu3 %v6736_v54 }
0x189a   : > { %v5493_v11 = vpop.f32.mrf.mxu0  ;;  %v5506_v56 = vpop.f32.mrf.mxu1 }
0x189b   : > { %v5494_v37 = vadd.f32 %v5493_v11, %v5241_v2  ;;  %v5507_v14 = vadd.f32 %v5506_v56, %v5242_v4 }
0x189d   : > { %v5596_v42 = vmax.f32 %v5494_v37, 0.0  ;;  %v5597_v20 = vmax.f32 %v5507_v14, 0.0 }
0x189f   : > { %v5612_v25 = vpack.c.bf16 %v5596_v42, %v5596_v42  ;;  %v5613_v55 = vpack.c.bf16 %v5597_v20, %v5597_v20 }
0x18a1   : > { %v5519_v59 = vpop.f32.mrf.mxu2  ;;  %v5532_v61 = vpop.f32.mrf.mxu3  ;;  %5831 = vmatmul.bf16.vlgmr.msrb.gmra.mxu0 %v5612_v25  ;;  %5844 = vmatmul.bf16.vlgmr.msrb.gmra.mxu1 %v5613_v55 }
0x18a2   : > { %v5520_v31 = vadd.f32 %v5519_v59, %v5243_v29  ;;  %v5533_v45 = vadd.f32 %v5532_v61, %v5244_v6  ;;  %v5495_v27 = vpop.f32.mrf.mxu0  ;;  %v5508_v10 = vpop.f32.mrf.mxu1 }
0x18a4   : > { %v5598_v53 = vmax.f32 %v5520_v31, 0.0  ;;  %v5599_v38 = vmax.f32 %v5533_v45, 0.0 }
0x18a6   : > { %v5614_v32 = vpack.c.bf16 %v5598_v53, %v5598_v53  ;;  %v5615_v16 = vpack.c.bf16 %v5599_v38, %v5599_v38 }
0x18a8   : > { %5857 = vmatmul.bf16.vlgmr.msrb.gmra.mxu2 %v5614_v32  ;;  %5870 = vmatmul.bf16.vlgmr.msrb.gmra.mxu3 %v5615_v16 }
0x18a9   : > { %v5521_v1 = vpop.f32.mrf.mxu2  ;;  %v5534_v23 = vpop.f32.mrf.mxu3 }
0x18aa   : > { %v5545_v34 = vpop.f32.mrf.mxu0  ;;  %v5558_v44 = vpop.f32.mrf.mxu1 }
0x18ab   : > { %v5546_v28 = vadd.f32 %v5545_v34, %v5245_v46  ;;  %v5559_v9 = vadd.f32 %v5558_v44, %v5246_v50 }
0x18ad   : > { %v5600_v7 = vmax.f32 %v5546_v28, 0.0  ;;  %v5601_v3 = vmax.f32 %v5559_v9, 0.0 }
0x18af   : > { %v5616_v51 = vpack.c.bf16 %v5600_v7, %v5600_v7  ;;  %v5617_v41 = vpack.c.bf16 %v5601_v3, %v5601_v3 }
0x18b1   : > { %v5571_v58 = vpop.f32.mrf.mxu2  ;;  %v5584_v0 = vpop.f32.mrf.mxu3  ;;  %5883 = vmatmul.bf16.vlgmr.msra.gmra.mxu0 %v5616_v51  ;;  %5896 = vmatmul.bf16.vlgmr.msra.gmra.mxu1 %v5617_v41 }
0x18b2   : > { %v5572_v52 = vadd.f32 %v5571_v58, %v5247_v26  ;;  %v5585_v35 = vadd.f32 %v5584_v0, %v5248_v24  ;;  %v5547_v60 = vpop.f32.mrf.mxu0  ;;  %v5560_v17 = vpop.f32.mrf.mxu1 }
0x18b4   : > { %v5602_v43 = vmax.f32 %v5572_v52, 0.0  ;;  %v5603_v40 = vmax.f32 %v5585_v35, 0.0 }
0x18b6   : > { %v5618_v36 = vpack.c.bf16 %v5602_v43, %v5602_v43  ;;  %v5619_v12 = vpack.c.bf16 %v5603_v40, %v5603_v40 }
0x18b8   : > { %5909 = vmatmul.bf16.vlgmr.msra.gmra.mxu2 %v5618_v36  ;;  %5922 = vmatmul.bf16.vlgmr.msra.gmra.mxu3 %v5619_v12 }
0x18b9   : > { %v5573_v62 = vpop.f32.mrf.mxu2  ;;  %v5586_v33 = vpop.f32.mrf.mxu3 }
0x18fe   : > { %v5728_v63 = vpop.f32.mrf.mxu0  ;;  %v5741_v22 = vpop.f32.mrf.mxu1 }
0x18ff   : > { %v5729_v19 = vadd.f32 %v7144_v21, %v5728_v63  ;;  %v7146_v21 = vld [vmem:[%s9532_s8 + $0x3] ss:$0 sm:$0xff] }
0x1901   : > { %v5742_v5 = vadd.f32 %v5741_v22, %v5729_v19 }
0x1906   : > { %v5730_v48 = vpop.f32.mrf.mxu0  ;;  %v5743_v8 = vpop.f32.mrf.mxu1 }
0x1907   : > { %v7145_v48 = vld [vmem:[%s9531_s7 + $0x3] ss:$0 sm:$0xff] }
0x190b   : > { %v5754_v49 = vpop.f32.mrf.mxu2  ;;  %v5767_v15 = vpop.f32.mrf.mxu3 }
0x190c   : > { %v5755_v13 = vadd.f32 %v5754_v49, %v5742_v5 }
0x190e   : > { %v5780_v30 = vpop.f32.mrf.mxu0  ;;  %v5793_v54 = vpop.f32.mrf.mxu1  ;;  %v5768_v47 = vadd.f32 %v5767_v15, %v5755_v13 }
0x1910   : > { %v5781_v56 = vadd.f32 %v5780_v30, %v5768_v47 }
0x1912   : > { %v5794_v42 = vadd.f32 %v5793_v54, %v5781_v56 }
0x1913   : > { %v5756_v2 = vpop.f32.mrf.mxu2  ;;  %v5769_v4 = vpop.f32.mrf.mxu3 }
0x1916   : > { %v5782_v18 = vpop.f32.mrf.mxu0  ;;  %v5795_v11 = vpop.f32.mrf.mxu1 }
0x191b   : > { %v5806_v37 = vpop.f32.mrf.mxu2  ;;  %v5819_v14 = vpop.f32.mrf.mxu3 }
0x191c   : > { %v5807_v6 = vadd.f32 %v5806_v37, %v5794_v42 }
0x191e   : > { %v5832_v20 = vpop.f32.mrf.mxu0  ;;  %v5845_v29 = vpop.f32.mrf.mxu1  ;;  %v5820_v59 = vadd.f32 %v5819_v14, %v5807_v6 }
0x1920   : > { %v5833_v45 = vadd.f32 %v5832_v20, %v5820_v59 }
0x1922   : > { %v5846_v53 = vadd.f32 %v5845_v29, %v5833_v45 }
0x1923   : > { %v5808_v25 = vpop.f32.mrf.mxu2  ;;  %v5821_v55 = vpop.f32.mrf.mxu3 }
0x1926   : > { %v5834_v61 = vpop.f32.mrf.mxu0  ;;  %v5847_v31 = vpop.f32.mrf.mxu1 }
0x192b   : > { %v5858_v27 = vpop.f32.mrf.mxu2  ;;  %v5871_v10 = vpop.f32.mrf.mxu3 }
0x192c   : > { %v5859_v38 = vadd.f32 %v5858_v27, %v5846_v53 }
0x192e   : > { %v5884_v32 = vpop.f32.mrf.mxu0  ;;  %v5897_v16 = vpop.f32.mrf.mxu1  ;;  %v5872_v46 = vadd.f32 %v5871_v10, %v5859_v38 }
0x1930   : > { %v5885_v23 = vadd.f32 %v5884_v32, %v5872_v46 }
0x1932   : > { %v5898_v28 = vadd.f32 %v5897_v16, %v5885_v23 }
0x1933   : > { %v5860_v50 = vpop.f32.mrf.mxu2  ;;  %v5873_v1 = vpop.f32.mrf.mxu3 }
0x1936   : > { %v5886_v34 = vpop.f32.mrf.mxu0  ;;  %v5899_v44 = vpop.f32.mrf.mxu1 }
0x193b   : > { %v5910_v9 = vpop.f32.mrf.mxu2  ;;  %v5923_v7 = vpop.f32.mrf.mxu3 }
0x193c   : > { %v5911_v3 = vadd.f32 %v5910_v9, %v5898_v28 }
0x193e   : > { %v5924_v26 = vadd.f32 %v5923_v7, %v5911_v3 }
0x1940   : > { %v5927_v24 = vadd.f32 %v5924_v26, %v9313_v57 }
0x1942   : > { %v5930_v51 = vsel %vm442_vm1, %v5927_v24, 0.0 }
0x1943   : > { %v5912_v41 = vpop.f32.mrf.mxu2  ;;  %v5925_v58 = vpop.f32.mrf.mxu3  ;;  %5931 = vadd.xlane.f32.xlu1 %v5930_v51 }
0x19b6   : > { %v5932_v0 = vpop.xlane.xlu1 %5931 }
0x19b7   : > { %v5933_v52 = vmul.f32 %v5932_v0, %v7769_v39 }
0x19b9   : > { %v5934_v35 = vsub.f32 %v5927_v24, %v5933_v52 }
0x19bb   : > { %v5935_v60 = vmul.f32 %v5934_v35, %v5934_v35 }
0x19bd   : > { %v5936_v17 = vsel %vm442_vm1, %v5935_v60, 0.0 }
0x19be   : > { %5937 = vadd.xlane.f32.xlu2 %v5936_v17 }
0x1a31   : > { %v5938_v43 = vpop.xlane.xlu2 %5937 }
0x1a32   : > { %v5939_v40 = vmul.f32 %v5938_v43, %v7769_v39 }
0x1a34   : > { %v5940_v36 = vadd.f32 1e-05, %v5939_v40 }
0x1a36   : > { %7275 = vrsqrt.f32 %v5940_v36  ;;  %vm5947_vm12 = vweird.f32 %v5940_v36 }
0x1a3c   : > { %v7276_v57 = vpop.eup %7275 }
0x1a3d   : > { %v5942_v12 = vmul.f32 %v7276_v57, %v5940_v36  ;;  %vm5948_vm4 = vweird.f32 %v7276_v57 }
0x1a3e   : > { %vm5949_vm13 = vmor %vm5947_vm12, %vm5948_vm4 }
0x1a3f   : > { %v5943_v62 = vmul.f32 %v7276_v57, %v5942_v12 }
0x1a41   : > { %v5944_v33 = vmul.f32 0.5, %v5943_v62 }
0x1a43   : > { %v5945_v63 = vsub.f32 1.5, %v5944_v33 }
0x1a45   : > { %v5946_v22 = vmul.f32 %v7276_v57, %v5945_v63 }
0x1a47   : > { %v5950_v39 = vsel %vm5949_vm13, %v7276_v57, %v5946_v22 }
0x1a48   : > { %v5951_v8 = vmul.f32 %v5950_v39, %v5934_v35 }
0x1a4a   : > { %v5953_v49 = vmul.f32 %v7145_v48, %v5951_v8 }
0x1a4c   : > { %v5955_v15 = vadd.f32 %v7146_v21, %v5953_v49 }
0x1a4e   : > { %5956 = vst.msk [vmem:[%s431_s20] sm:$0xff] %vm442_vm1, %v5955_v15 }
0x1a4f   : > { %7304 = shalt.err (!%p7301_p3)
}
0x1a50   : > { %6869 = dma.vmem_to_hbm [thread:$0]  (%p7492_p5), %s5971_s29, 128, %s5973_s21, %s5958_s27  }
0x1a51 PF: > { %p6875_p4 = scmp.ge.s32.totalorder %s7339_s28, 2  ;;  %s5984_s17 = sand.u32 1, %s7327_s25  }
0x1a52   : > { %s5985_s16 = scalar_lea.sflag [#allocation3], %s5984_s17 }
0x1a53   : > { %p6872_p7 = pnand %p6875_p4, %p7496_p6 }
0x1a55   : > { %p6873_p8 = pneg %p6872_p7 }
0x1a57   : > { %7322 = dma.done.wait (%p6873_p8), %s5985_s16, 128  }
0x1a58   : > { %7324 = vsyncadd (%p6873_p8), %s5985_s16, 4294967168  ;;  %s9686_s28 = sld [smem:[#allocation6_spill]]  ;;  %s9689_s25 = smov %s7331_s26 }
0x1a59   : > { %s9687_s20 = sld [smem:[#allocation5_spill]] }
0x1a5a   : > { %s9688_s27 = sld [smem:[#allocation7_spill]] }
0x1a5e   : > { %p23_p9 = scmp.ge.s32.totalorder %s9686_s28, 4  }
0x1a5f   : > { %s9690_s26 = smov %s9687_s20 }
0x1a60   :  { %25 = sbr.rel (!%p23_p9) target bundleno = 5 (0x5), region = 126 }
0x1a65   :  { %5991 = vsyncpa [#allocation3], 1 }
0x1a66   :  { %5993 = vsyncpa [#allocation3 + $0x1], 1 }

</bundles_post_ra>
